<compile_context>
chip_gen: v7x
topology: tpu7x:2x2x1
jax: 0.10.0
libtpu: 0.0.40
codegen_flags: <defaults>
</compile_context>

<pallas_src>
from functools import partial
import math

import jax
import jax.numpy as jnp
from jax.experimental import pallas as pl
from jax.experimental.pallas import tpu as pltpu

LANE = 128                        # output-channel axes padded to the lane width
_P1_TARGET_OUT_ROWS = 1024        # target conv-output rows per pass-1 grid step
_P2_TARGET_ROWS = 2048            # target rows per pass-2 grid step
_BN_EPS = 1e-5


def _round_up(x, m):
    return ((x + m - 1) // m) * m


def _cdiv(a, b):
    return (a + b - 1) // b


def _vmem_limit_bytes():
    """Generation-aware scoped-VMEM limit (~3/4 of physical, clamped 32..96 MB)."""
    cap = None
    try:
        cap = getattr(pltpu.get_tpu_info(), "vmem_capacity_bytes", None)
    except Exception:
        cap = None
    if not cap:
        cap = 64 * 1024 * 1024            # conservative (v7x-sized) fallback
    return int(min(96 * 1024 * 1024, max(32 * 1024 * 1024, (3 * cap) // 4)))


def _compiler_params(vmem_limit):
    return pltpu.CompilerParams(
        dimension_semantics=("parallel",),
        vmem_limit_bytes=int(vmem_limit),
    )


def _choose_tile(total, target, multiple):
    """Tile size (multiple of `multiple`, bounded by `target`) + padded total.

    Never falls back to a whole-array tile; prefers >= 2 grid steps so both
    v7x TensorCores get work whenever there is enough data to split.
    """
    t = max(multiple, (min(target, total) // multiple) * multiple)
    if t >= total and total > multiple:
        t = max(multiple, _cdiv(_cdiv(total, 2), multiple) * multiple)
    return t, _cdiv(total, t) * t


# ----------------------------------------------------------------------------
# Pass 1: tiled 3x3 conv (3 kx-tap matmuls, bf16 operands / f32 accumulation)
#         + per-tile per-channel sum / sum-of-squares partials
# ----------------------------------------------------------------------------
def _conv3x3_pass1_kernel(a_ref, w_ref, out_ref, stats_ref, *, out_w):
    """a_ref: (TR, W+2, K_p) bf16 ky-stacked padded activations
       w_ref: (3, K_p, Cout_p) bf16 per-kx weight matrices
       out_ref:   (TR*W, Cout_p) bf16 conv output tile
       stats_ref: (1, 2, Cout_p) f32 per-channel [sum, sum_sq] partials."""
    tr, _, k = a_ref.shape

    # TODO(synk): replace the per-tap slice+reshape with full (tr*wp, K) matmuls
    # aligned via pltpu.roll so the vld/vst slots stay free of relayout copies.
    def tap(kx):
        a = a_ref[:, kx:kx + out_w, :].reshape(tr * out_w, k)
        return jnp.dot(a, w_ref[kx], preferred_element_type=jnp.float32)

    acc = tap(0) + tap(1) + tap(2)                    # f32 accumulation
    accb = acc.astype(out_ref.dtype)                  # bf16 store halves HBM bytes
    out_ref[...] = accb
    accf = accb.astype(jnp.float32)                   # BN stats at stored precision
    s = jnp.sum(accf, axis=0, keepdims=True)
    sq = jnp.sum(accf * accf, axis=0, keepdims=True)
    stats_ref[...] = jnp.concatenate([s, sq], axis=0)[None]


def _conv3x3_pass1(x_nhwc, wk, vmem_limit):
    """Tiled 3x3 / pad=1 / stride=1 conv.

    x_nhwc: (N,H,W,Cin) activations (channels UNpadded, any float dtype).
    wk:     (3[kx], K_p, Cout_p) bf16 packed weights, K_p = round_up(3*Cin, LANE).
    Returns (conv (M_pad, Cout_p) bf16, stats (tiles, 2, Cout_p) f32, real_m).
    """
    n, h, w, cin = x_nhwc.shape
    _, k_p, cout_p = wk.shape
    wp = w + 2

    # ky-stacked, spatially padded activations (3x bytes, not the 9x of im2col);
    # the kx shifts are taken in-kernel.
    # TODO(synk): feed halo blocks (tr+2 rows of the plain padded activation)
    # via manual DMA instead of materializing this 3x ky-stack in HBM.
    xp = jnp.pad(x_nhwc.astype(jnp.float32), ((0, 0), (1, 1), (1, 1), (0, 0)))
    a = jnp.concatenate([xp[:, ky:ky + h, :, :] for ky in range(3)], axis=-1)
    a = jnp.pad(a, ((0, 0), (0, 0), (0, 0), (0, k_p - 3 * cin)))
    a = a.astype(jnp.bfloat16).reshape(n * h, wp, k_p)

    rows = n * h
    mult = 16 // math.gcd(w, 16)                  # (tr*w) % 16 == 0 (bf16 tiles)
    # VMEM-aware cap on rows/step (double-buffered activation + output + weights).
    budget = int(0.6 * vmem_limit)
    row_bytes = 2 * (wp * k_p * 2 + w * cout_p * 2)
    fixed_bytes = 2 * 3 * k_p * cout_p * 2
    cap = max(mult, max(budget - fixed_bytes, row_bytes) // row_bytes)
    target = max(mult, min(max(_P1_TARGET_OUT_ROWS // w, 1), cap))
    tr, rows_pad = _choose_tile(rows, target, mult)
    if rows_pad != rows:                          # zero rows: conv & BN-stat no-ops
        a = jnp.pad(a, ((0, rows_pad - rows), (0, 0), (0, 0)))
    n_tiles = rows_pad // tr
    m_out = rows_pad * w

    # TODO(synk): single-buffer the constant-index weight block
    # (pipeline_mode=pl.Buffered(1)) to free VMEM on v7x at large channel counts.
    conv_out, stats = pl.pallas_call(
        partial(_conv3x3_pass1_kernel, out_w=w),
        out_shape=(
            jax.ShapeDtypeStruct((m_out, cout_p), jnp.bfloat16),
            jax.ShapeDtypeStruct((n_tiles, 2, cout_p), jnp.float32),
        ),
        grid=(n_tiles,),
        in_specs=[
            pl.BlockSpec((tr, wp, k_p), lambda m: (m, 0, 0)),
            pl.BlockSpec((3, k_p, cout_p), lambda m: (0, 0, 0)),  # resident weights
        ],
        out_specs=(
            pl.BlockSpec((tr * w, cout_p), lambda m: (m, 0)),
            pl.BlockSpec((1, 2, cout_p), lambda m: (m, 0, 0)),
        ),
        compiler_params=_compiler_params(vmem_limit),
    )(a, wk)
    return conv_out, stats, rows * w


# ----------------------------------------------------------------------------
# Pass 2: tiled  y = Swish( sum_i(scale_i*conv_i + shift_i) [+ residual] )
# ----------------------------------------------------------------------------
def _bn_act_kernel(*refs, n_conv, has_res):
    out_ref = refs[-1]
    sb = refs[-2][0]                                  # softplus(beta) from SMEM
    idx = 0
    y = None
    for _ in range(n_conv):
        c = refs[idx][...].astype(jnp.float32)
        ss = refs[idx + 1][...]                       # (2, C): [scale; shift]
        idx += 2
        t = c * ss[0:1, :] + ss[1:2, :]
        y = t if y is None else y + t
    if has_res:
        y = y + refs[idx][...]
    y = y * jax.nn.sigmoid(y * sb)                    # Swish
    out_ref[...] = y.astype(out_ref.dtype)


def _bn_act(conv_branches, residual, swish_sb, out_dtype, real_m, vmem_limit):
    """conv_branches: list of (conv (M,C) bf16, scale_shift (2,C) f32).
    Returns the first `real_m` rows of the fused BN(+add)+Swish as out_dtype."""
    m, cp = conv_branches[0][0].shape
    budget = int(0.6 * vmem_limit)
    row_bytes = 2 * (len(conv_branches) * cp * 2
                     + (cp * 4 if residual is not None else 0)
                     + cp * jnp.dtype(out_dtype).itemsize)
    cap = max(16, budget // row_bytes)
    tm, m_pad = _choose_tile(m, min(_P2_TARGET_ROWS, cap), 16)

    args, in_specs = [], []
    for conv_out, ss in conv_branches:
        if m_pad != m:
            conv_out = jnp.pad(conv_out, ((0, m_pad - m), (0, 0)))
        args.append(conv_out)
        in_specs.append(pl.BlockSpec((tm, cp), lambda i: (i, 0)))
        args.append(ss)
        in_specs.append(pl.BlockSpec((2, cp), lambda i: (0, 0)))
    if residual is not None:
        rm = residual.shape[0]
        if m_pad != rm:
            residual = jnp.pad(residual, ((0, m_pad - rm), (0, 0)))
        args.append(residual)
        in_specs.append(pl.BlockSpec((tm, cp), lambda i: (i, 0)))
    args.append(swish_sb)                             # (1,) f32 scalar in SMEM
    in_specs.append(pl.BlockSpec(memory_space=pltpu.MemorySpace.SMEM))

    out = pl.pallas_call(
        partial(_bn_act_kernel, n_conv=len(conv_branches),
                has_res=residual is not None),
        out_shape=jax.ShapeDtypeStruct((m_pad, cp), out_dtype),
        grid=(m_pad // tm,),
        in_specs=in_specs,
        out_specs=pl.BlockSpec((tm, cp), lambda i: (i, 0)),
        compiler_params=_compiler_params(vmem_limit),
    )(*args)
    return out if real_m == m_pad else out[:real_m]


# ----------------------------------------------------------------------------
# Glue: packing / padding / BN-stat folding / upsample (pure data movement)
# ----------------------------------------------------------------------------
def _pad_last(x, c_to):
    c = x.shape[-1]
    if c == c_to:
        return x
    return jnp.pad(x, [(0, 0)] * (x.ndim - 1) + [(0, c_to - c)])


def _pad_vec(v, c_to):
    return _pad_last(jnp.asarray(v, jnp.float32).reshape(-1), c_to)


def _pack_w3x3(w_oihw, k_p, cout_p):
    """PyTorch (Cout,Cin,3,3) -> (3[kx], K_p, Cout_p) bf16 matching ky-stacked A."""
    cout, cin = w_oihw.shape[0], w_oihw.shape[1]
    w = jnp.transpose(jnp.asarray(w_oihw, jnp.float32), (3, 2, 1, 0))  # kx,ky,ci,co
    w = w.reshape(3, 3 * cin, cout)
    w = jnp.pad(w, ((0, 0), (0, k_p - 3 * cin), (0, cout_p - cout)))
    return w.astype(jnp.bfloat16)


def _fold_bn(stats, count, gamma, beta, cout_p, eps=_BN_EPS):
    """Fold global (sum, sum_sq) + affine params into a (2, Cout_p) scale/shift."""
    # TODO(synk): switch to per-tile (count, mean, M2) Welford partials if BN
    # stats must stay robust to cancellation at very large activation counts.
    tot = jnp.sum(stats, axis=0)                      # (2, Cout_p)
    mean = tot[0] / count
    var = jnp.maximum(tot[1] / count - mean * mean, 0.0)
    rstd = jax.lax.rsqrt(var + eps)
    scale = _pad_vec(gamma, cout_p) * rstd
    shift = _pad_vec(beta, cout_p) - mean * scale
    return jnp.stack([scale, shift], axis=0)


def _softplus_sb(beta):
    return jax.nn.softplus(jnp.asarray(beta, jnp.float32)).reshape(1)


def _upsample_nearest(x_nhwc, s):
    # TODO(synk): fold the nearest-neighbour upsample into the conv patch
    # indexing (in-kernel gather) instead of materializing the s^2-larger tensor.
    return jnp.repeat(jnp.repeat(x_nhwc, s, axis=1), s, axis=2)


# ----------------------------------------------------------------------------
# BasicBlockDec forward (Pallas-backed)
# ----------------------------------------------------------------------------
def basic_block_dec_forward(x_nchw, p, stride):
    vmem_limit = _vmem_limit_bytes()
    # TODO(synk): keep NHWC / lane-padded channels end-to-end across decoder
    # blocks to drop the entry/exit transposes and the final channel slice.
    x = jnp.transpose(x_nchw, (0, 2, 3, 1)).astype(jnp.float32)    # NCHW -> NHWC
    n, h, w, cin = x.shape
    cout = p["w1"].shape[0]
    cout_p = _round_up(cout, LANE)
    c2_p = _round_up(cin, LANE)                 # stage-2 padded output channels
    k_p = _round_up(3 * cin, LANE)              # stacked contraction dim (once)

    # ---- stage 2: o = Swish_b2(BN2(conv2(x))) -------------------------------
    conv2_out, st2, cnt2 = _conv3x3_pass1(x, _pack_w3x3(p["w2"], k_p, c2_p),
                                          vmem_limit)
    ss2 = _fold_bn(st2, cnt2, p["g2"], p["b2"], c2_p)
    o_flat = _bn_act([(conv2_out, ss2)], None, _softplus_sb(p["sb2"]),
                     jnp.bfloat16, cnt2, vmem_limit)
    o = o_flat.reshape(n, h, w, c2_p)[..., :cin]      # padded channels are zeros

    sb1 = _softplus_sb(p["sb1"])
    if stride == 1:
        # ---- out = Swish_b1(BN1(conv1(o)) + x) -------------------------------
        conv1_out, st1, cnt1 = _conv3x3_pass1(o, _pack_w3x3(p["w1"], k_p, cout_p),
                                              vmem_limit)
        ss1 = _fold_bn(st1, cnt1, p["g1"], p["b1"], cout_p)
        res = _pad_last(x, cout_p).reshape(n * h * w, cout_p)   # identity shortcut
        out_flat = _bn_act([(conv1_out, ss1)], res, sb1, jnp.float32,
                           cnt1, vmem_limit)
        ho, wo = h, w
    else:
        # ---- out = Swish_b1(BN1(ResizeConv1(o)) + BNs(ResizeConvS(x))) -------
        # Conv biases (bias1 / biass) are dropped: a per-channel constant added
        # before training-mode BatchNorm cancels exactly in (x - mean).
        ou = _upsample_nearest(o, stride)
        xu = _upsample_nearest(x, stride)
        conv1_out, st1, cnt1 = _conv3x3_pass1(ou, _pack_w3x3(p["w1"], k_p, cout_p),
                                              vmem_limit)
        convs_out, sts, _ = _conv3x3_pass1(xu, _pack_w3x3(p["ws"], k_p, cout_p),
                                           vmem_limit)
        ss1 = _fold_bn(st1, cnt1, p["g1"], p["b1"], cout_p)
        sss = _fold_bn(sts, cnt1, p["gs"], p["bs"], cout_p)
        # main-BN + shortcut-BN + add + Swish fused in one pass-2 call.
        out_flat = _bn_act([(conv1_out, ss1), (convs_out, sss)], None, sb1,
                           jnp.float32, cnt1, vmem_limit)
        ho, wo = h * stride, w * stride

    out = out_flat.reshape(n, ho, wo, cout_p)[..., :cout]
    return jnp.transpose(out, (0, 3, 1, 2))                        # NHWC -> NCHW


# ----------------------------------------------------------------------------
# Pure-JAX reference (mirrors the kernel's bf16 operand / bf16 storage precision)
# ----------------------------------------------------------------------------
def _bf16_operands(a):
    return a.astype(jnp.bfloat16).astype(jnp.float32)


def _ref_conv3x3(x, w_oihw, bias=None):
    w_hwio = jnp.transpose(jnp.asarray(w_oihw, jnp.float32), (2, 3, 1, 0))
    y = jax.lax.conv_general_dilated(
        _bf16_operands(x), _bf16_operands(w_hwio),
        window_strides=(1, 1), padding="SAME",
        dimension_numbers=("NHWC", "HWIO", "NHWC"),
        precision=jax.lax.Precision.HIGHEST)
    if bias is not None:
        y = y + jnp.asarray(bias, jnp.float32)
    return y.astype(jnp.bfloat16).astype(jnp.float32)   # kernel stores conv in bf16


def _ref_bn(y, gamma, beta, eps=_BN_EPS):
    m = jnp.mean(y, axis=(0, 1, 2), keepdims=True)
    v = jnp.mean(jnp.square(y - m), axis=(0, 1, 2), keepdims=True)
    return gamma * (y - m) * jax.lax.rsqrt(v + eps) + beta


def _ref_swish(y, b):
    return y * jax.nn.sigmoid(y * jax.nn.softplus(b))


def basic_block_dec_reference(x_nchw, p, stride):
    x = jnp.transpose(x_nchw, (0, 2, 3, 1)).astype(jnp.float32)
    o = _ref_swish(_ref_bn(_ref_conv3x3(x, p["w2"]), p["g2"], p["b2"]), p["sb2"])
    if stride == 1:
        out = _ref_bn(_ref_conv3x3(o, p["w1"]), p["g1"], p["b1"]) + x
    else:
        main = _ref_bn(_ref_conv3x3(_upsample_nearest(o, stride), p["w1"],
                                    p["bias1"]), p["g1"], p["b1"])
        sc = _ref_bn(_ref_conv3x3(_upsample_nearest(x, stride), p["ws"],
                                  p["biass"]), p["gs"], p["bs"])
        out = main + sc
    out = _ref_swish(out, p["sb1"])
    return jnp.transpose(out, (0, 3, 1, 2))


# ----------------------------------------------------------------------------
# Deterministic parameter construction + smoke test
# ----------------------------------------------------------------------------
def _make_params(key, in_planes, stride):
    planes = in_planes if stride == 1 else int(in_planes / stride)
    ks = jax.random.split(key, 12)
    nrm = jax.random.normal
    p = {
        "w2": 0.2 * nrm(ks[0], (in_planes, in_planes, 3, 3), jnp.float32),
        "g2": 1.0 + 0.1 * nrm(ks[1], (in_planes,), jnp.float32),
        "b2": 0.1 * nrm(ks[2], (in_planes,), jnp.float32),
        "sb2": jnp.float32(0.5),
        "g1": 1.0 + 0.1 * nrm(ks[3], (planes,), jnp.float32),
        "b1": 0.1 * nrm(ks[4], (planes,), jnp.float32),
        "sb1": jnp.float32(0.5),
        "w1": 0.2 * nrm(ks[5], (planes, in_planes, 3, 3), jnp.float32),
    }
    if stride != 1:
        p["bias1"] = 0.1 * nrm(ks[6], (planes,), jnp.float32)
        p["ws"] = 0.2 * nrm(ks[7], (planes, in_planes, 3, 3), jnp.float32)
        p["biass"] = 0.1 * nrm(ks[8], (planes,), jnp.float32)
        p["gs"] = 1.0 + 0.1 * nrm(ks[9], (planes,), jnp.float32)
        p["bs"] = 0.1 * nrm(ks[10], (planes,), jnp.float32)
    return p


if __name__ == "__main__":
    key = jax.random.PRNGKey(0)
    kx, kp1, kp2 = jax.random.split(key, 3)

    in_planes, n, h, w = 4, 2, 16, 16
    x = jax.random.normal(kx, (n, in_planes, h, w), jnp.float32)

    # stride=2 path (ResizeConv2d main branch + ResizeConv2d/BN shortcut)
    p2 = _make_params(kp2, in_planes, stride=2)
    fwd2 = jax.jit(partial(basic_block_dec_forward, stride=2))
    out2 = jax.block_until_ready(fwd2(x, p2))
    ref2 = basic_block_dec_reference(x, p2, stride=2)
    assert out2.shape == (n, in_planes // 2, 2 * h, 2 * w)
    assert jnp.allclose(out2, ref2, rtol=3e-2, atol=3e-2), \
        float(jnp.max(jnp.abs(out2 - ref2)))

    # stride=1 path (plain conv1 + identity shortcut)
    p1 = _make_params(kp1, in_planes, stride=1)
    fwd1 = jax.jit(partial(basic_block_dec_forward, stride=1))
    out1 = jax.block_until_ready(fwd1(x, p1))
    ref1 = basic_block_dec_reference(x, p1, stride=1)
    assert out1.shape == (n, in_planes, h, w)
    assert jnp.allclose(out1, ref1, rtol=3e-2, atol=3e-2), \
        float(jnp.max(jnp.abs(out1 - ref1)))

    print("KERNEL_OK")
</pallas_src>

<mosaic_0001>
module attributes {stable_mosaic.version = 11 : i64} {
  func.func @_conv3x3_pass1_kernel(%arg0: i32, %arg1: memref<16x18x128xbf16, #tpu.memory_space<vmem>>, %arg2: memref<3x128x128xbf16, #tpu.memory_space<vmem>>, %arg3: memref<256x128xbf16, #tpu.memory_space<vmem>>, %arg4: memref<1x2x128xf32, #tpu.memory_space<vmem>>) attributes {dimension_semantics = [#tpu.dimension_semantics<parallel>], iteration_bounds = array<i64: 2>, scalar_prefetch = 0 : i64, scratch_operands = 0 : i64, tpu.core_type = #tpu.core_type<tc>, window_params = [{transform_indices = @transform_0, window_bounds = array<i64: 16, 18, 128>}, {pipeline_mode = #tpu.pipeline_mode<synchronous>, transform_indices = @transform_1, window_bounds = array<i64: 3, 128, 128>}, {transform_indices = @transform_2, window_bounds = array<i64: 256, 128>}, {transform_indices = @transform_3, window_bounds = array<i64: 1, 2, 128>}]} {
    %c0 = arith.constant 0 : index
    %c0_0 = arith.constant 0 : index
    %c0_1 = arith.constant 0 : index
    %0 = vector.load %arg1[%c0, %c0_0, %c0_1] : memref<16x18x128xbf16, #tpu.memory_space<vmem>>, vector<16x16x128xbf16>
    %1 = vector.shape_cast %0 : vector<16x16x128xbf16> to vector<256x128xbf16>
    %c0_2 = arith.constant 0 : index
    %c0_3 = arith.constant 0 : index
    %c0_4 = arith.constant 0 : index
    %2 = vector.load %arg2[%c0_2, %c0_3, %c0_4] : memref<3x128x128xbf16, #tpu.memory_space<vmem>>, vector<1x128x128xbf16>
    %3 = vector.shape_cast %2 : vector<1x128x128xbf16> to vector<128x128xbf16>
    %cst = arith.constant dense<0.000000e+00> : vector<256x128xf32>
    %4 = tpu.matmul %1, %3, %cst {dimension_numbers = #tpu.dot_dimension_numbers<[1], [0], [0], [1], [0, 0, 1, 1], [], []>} : vector<256x128xbf16>, vector<128x128xbf16>, vector<256x128xf32> -> vector<256x128xf32>
    %c0_5 = arith.constant 0 : index
    %c1 = arith.constant 1 : index
    %c0_6 = arith.constant 0 : index
    %5 = vector.load %arg1[%c0_5, %c1, %c0_6] : memref<16x18x128xbf16, #tpu.memory_space<vmem>>, vector<16x16x128xbf16>
    %6 = vector.shape_cast %5 : vector<16x16x128xbf16> to vector<256x128xbf16>
    %c1_7 = arith.constant 1 : index
    %c0_8 = arith.constant 0 : index
    %c0_9 = arith.constant 0 : index
    %7 = vector.load %arg2[%c1_7, %c0_8, %c0_9] : memref<3x128x128xbf16, #tpu.memory_space<vmem>>, vector<1x128x128xbf16>
    %8 = vector.shape_cast %7 : vector<1x128x128xbf16> to vector<128x128xbf16>
    %cst_10 = arith.constant dense<0.000000e+00> : vector<256x128xf32>
    %9 = tpu.matmul %6, %8, %cst_10 {dimension_numbers = #tpu.dot_dimension_numbers<[1], [0], [0], [1], [0, 0, 1, 1], [], []>} : vector<256x128xbf16>, vector<128x128xbf16>, vector<256x128xf32> -> vector<256x128xf32>
    %10 = arith.addf %4, %9 : vector<256x128xf32>
    %c0_11 = arith.constant 0 : index
    %c2 = arith.constant 2 : index
    %c0_12 = arith.constant 0 : index
    %11 = vector.load %arg1[%c0_11, %c2, %c0_12] : memref<16x18x128xbf16, #tpu.memory_space<vmem>>, vector<16x16x128xbf16>
    %12 = vector.shape_cast %11 : vector<16x16x128xbf16> to vector<256x128xbf16>
    %c2_13 = arith.constant 2 : index
    %c0_14 = arith.constant 0 : index
    %c0_15 = arith.constant 0 : index
    %13 = vector.load %arg2[%c2_13, %c0_14, %c0_15] : memref<3x128x128xbf16, #tpu.memory_space<vmem>>, vector<1x128x128xbf16>
    %14 = vector.shape_cast %13 : vector<1x128x128xbf16> to vector<128x128xbf16>
    %cst_16 = arith.constant dense<0.000000e+00> : vector<256x128xf32>
    %15 = tpu.matmul %12, %14, %cst_16 {dimension_numbers = #tpu.dot_dimension_numbers<[1], [0], [0], [1], [0, 0, 1, 1], [], []>} : vector<256x128xbf16>, vector<128x128xbf16>, vector<256x128xf32> -> vector<256x128xf32>
    %16 = arith.addf %10, %15 : vector<256x128xf32>
    %17 = arith.truncf %16 : vector<256x128xf32> to vector<256x128xbf16>
    %c0_17 = arith.constant 0 : index
    %c0_18 = arith.constant 0 : index
    %18 = vector.load %arg3[%c0_17, %c0_18] : memref<256x128xbf16, #tpu.memory_space<vmem>>, vector<256x128xbf16>
    tpu.vector_store %arg3[%c0_17, %c0_18], %17 {strides = array<i32>} : memref<256x128xbf16, #tpu.memory_space<vmem>>, vector<256x128xbf16>,
    %19 = arith.extf %17 : vector<256x128xbf16> to vector<256x128xf32>
    %cst_19 = arith.constant dense<0.000000e+00> : vector<128xf32>
    %20 = vector.multi_reduction <add>, %19, %cst_19 [0] : vector<256x128xf32> to vector<128xf32>
    %21 = vector.shape_cast %20 : vector<128xf32> to vector<1x128xf32>
    %22 = arith.mulf %19, %19 : vector<256x128xf32>
    %cst_20 = arith.constant dense<0.000000e+00> : vector<128xf32>
    %23 = vector.multi_reduction <add>, %22, %cst_20 [0] : vector<256x128xf32> to vector<128xf32>
    %24 = vector.shape_cast %23 : vector<128xf32> to vector<1x128xf32>
    %25 = tpu.concatenate %21, %24 in 0 : vector<1x128xf32>, vector<1x128xf32> -> vector<2x128xf32>
    %26 = vector.shape_cast %25 : vector<2x128xf32> to vector<1x2x128xf32>
    %c0_21 = arith.constant 0 : index
    %c0_22 = arith.constant 0 : index
    %c0_23 = arith.constant 0 : index
    %27 = vector.load %arg4[%c0_21, %c0_22, %c0_23] : memref<1x2x128xf32, #tpu.memory_space<vmem>>, vector<1x2x128xf32>
    tpu.vector_store %arg4[%c0_21, %c0_22, %c0_23], %26 {strides = array<i32>} : memref<1x2x128xf32, #tpu.memory_space<vmem>>, vector<1x2x128xf32>,
    return
  }
  func.func @transform_0(%arg0: i32) -> (i32, i32, i32) {
    %c0_i32 = arith.constant 0 : i32
    %c0_i32_0 = arith.constant 0 : i32
    %c0_i32_1 = arith.constant 0 : i32
    return %arg0, %c0_i32, %c0_i32_0 : i32, i32, i32
  }
  func.func @transform_1(%arg0: i32) -> (i32, i32, i32) {
    %c0_i32 = arith.constant 0 : i32
    %c0_i32_0 = arith.constant 0 : i32
    %c0_i32_1 = arith.constant 0 : i32
    %c0_i32_2 = arith.constant 0 : i32
    return %c0_i32, %c0_i32_0, %c0_i32_1 : i32, i32, i32
  }
  func.func @transform_2(%arg0: i32) -> (i32, i32) {
    %c0_i32 = arith.constant 0 : i32
    %c0_i32_0 = arith.constant 0 : i32
    return %arg0, %c0_i32 : i32, i32
  }
  func.func @transform_3(%arg0: i32) -> (i32, i32, i32) {
    %c0_i32 = arith.constant 0 : i32
    %c0_i32_0 = arith.constant 0 : i32
    %c0_i32_1 = arith.constant 0 : i32
    return %arg0, %c0_i32, %c0_i32_0 : i32, i32, i32
  }
}

module attributes {stable_mosaic.version = 11 : i64} {
  func.func @_bn_act_kernel(%arg0: i32, %arg1: memref<256x128xbf16, #tpu.memory_space<vmem>>, %arg2: memref<2x128xf32, #tpu.memory_space<vmem>>, %arg3: memref<1xf32, #tpu.memory_space<smem>>, %arg4: memref<256x128xbf16, #tpu.memory_space<vmem>>) attributes {dimension_semantics = [#tpu.dimension_semantics<parallel>], iteration_bounds = array<i64: 2>, scalar_prefetch = 0 : i64, scratch_operands = 0 : i64, tpu.core_type = #tpu.core_type<tc>, window_params = [{transform_indices = @transform_0, window_bounds = array<i64: 256, 128>}, {pipeline_mode = #tpu.pipeline_mode<synchronous>, transform_indices = @transform_1, window_bounds = array<i64: 2, 128>}, {transform_indices = @transform_2, window_bounds = array<i64: 1>}, {transform_indices = @transform_3, window_bounds = array<i64: 256, 128>}]} {
    %c0 = arith.constant 0 : index
    %0 = memref.load %arg3[%c0] : memref<1xf32, #tpu.memory_space<smem>>
    %c0_0 = arith.constant 0 : index
    %c0_1 = arith.constant 0 : index
    %1 = vector.load %arg1[%c0_0, %c0_1] : memref<256x128xbf16, #tpu.memory_space<vmem>>, vector<256x128xbf16>
    %2 = arith.extf %1 : vector<256x128xbf16> to vector<256x128xf32>
    %c0_2 = arith.constant 0 : index
    %c0_3 = arith.constant 0 : index
    %3 = vector.load %arg2[%c0_2, %c0_3] : memref<2x128xf32, #tpu.memory_space<vmem>>, vector<2x128xf32>
    %4 = vector.extract_strided_slice %3 {offsets = [0, 0], sizes = [1, 128], strides = [1, 1]} : vector<2x128xf32> to vector<1x128xf32>
    %5 = vector.broadcast %4 : vector<1x128xf32> to vector<256x128xf32>
    %6 = arith.mulf %2, %5 : vector<256x128xf32>
    %7 = vector.extract_strided_slice %3 {offsets = [1, 0], sizes = [1, 128], strides = [1, 1]} : vector<2x128xf32> to vector<1x128xf32>
    %8 = vector.broadcast %7 : vector<1x128xf32> to vector<256x128xf32>
    %9 = arith.addf %6, %8 : vector<256x128xf32>
    %10 = vector.broadcast %0 : f32 to vector<256x128xf32>
    %11 = arith.mulf %9, %10 : vector<256x128xf32>
    %12 = arith.negf %11 : vector<256x128xf32>
    %13 = math.exp %12 : vector<256x128xf32>
    %cst = arith.constant 1.000000e+00 : f32
    %14 = vector.broadcast %cst : f32 to vector<256x128xf32>
    %15 = arith.addf %14, %13 : vector<256x128xf32>
    %16 = arith.divf %14, %15 : vector<256x128xf32>
    %17 = arith.mulf %9, %16 : vector<256x128xf32>
    %18 = arith.truncf %17 : vector<256x128xf32> to vector<256x128xbf16>
    %c0_4 = arith.constant 0 : index
    %c0_5 = arith.constant 0 : index
    %19 = vector.load %arg4[%c0_4, %c0_5] : memref<256x128xbf16, #tpu.memory_space<vmem>>, vector<256x128xbf16>
    tpu.vector_store %arg4[%c0_4, %c0_5], %18 {strides = array<i32>} : memref<256x128xbf16, #tpu.memory_space<vmem>>, vector<256x128xbf16>,
    return
  }
  func.func @transform_0(%arg0: i32) -> (i32, i32) {
    %c0_i32 = arith.constant 0 : i32
    %c0_i32_0 = arith.constant 0 : i32
    return %arg0, %c0_i32 : i32, i32
  }
  func.func @transform_1(%arg0: i32) -> (i32, i32) {
    %c0_i32 = arith.constant 0 : i32
    %c0_i32_0 = arith.constant 0 : i32
    %c0_i32_1 = arith.constant 0 : i32
    return %c0_i32, %c0_i32_0 : i32, i32
  }
  func.func @transform_2(%arg0: i32) -> i32 {
    %c0_i32 = arith.constant 0 : i32
    %c0_i32_0 = arith.constant 0 : i32
    return %c0_i32 : i32
  }
  func.func @transform_3(%arg0: i32) -> (i32, i32) {
    %c0_i32 = arith.constant 0 : i32
    %c0_i32_0 = arith.constant 0 : i32
    return %arg0, %c0_i32 : i32, i32
  }
}

module attributes {stable_mosaic.version = 11 : i64} {
  func.func @_conv3x3_pass1_kernel(%arg0: i32, %arg1: memref<32x34x128xbf16, #tpu.memory_space<vmem>>, %arg2: memref<3x128x128xbf16, #tpu.memory_space<vmem>>, %arg3: memref<1024x128xbf16, #tpu.memory_space<vmem>>, %arg4: memref<1x2x128xf32, #tpu.memory_space<vmem>>) attributes {dimension_semantics = [#tpu.dimension_semantics<parallel>], iteration_bounds = array<i64: 2>, scalar_prefetch = 0 : i64, scratch_operands = 0 : i64, tpu.core_type = #tpu.core_type<tc>, window_params = [{transform_indices = @transform_0, window_bounds = array<i64: 32, 34, 128>}, {pipeline_mode = #tpu.pipeline_mode<synchronous>, transform_indices = @transform_1, window_bounds = array<i64: 3, 128, 128>}, {transform_indices = @transform_2, window_bounds = array<i64: 1024, 128>}, {transform_indices = @transform_3, window_bounds = array<i64: 1, 2, 128>}]} {
    %c0 = arith.constant 0 : index
    %c0_0 = arith.constant 0 : index
    %c0_1 = arith.constant 0 : index
    %0 = vector.load %arg1[%c0, %c0_0, %c0_1] : memref<32x34x128xbf16, #tpu.memory_space<vmem>>, vector<32x32x128xbf16>
    %1 = vector.shape_cast %0 : vector<32x32x128xbf16> to vector<1024x128xbf16>
    %c0_2 = arith.constant 0 : index
    %c0_3 = arith.constant 0 : index
    %c0_4 = arith.constant 0 : index
    %2 = vector.load %arg2[%c0_2, %c0_3, %c0_4] : memref<3x128x128xbf16, #tpu.memory_space<vmem>>, vector<1x128x128xbf16>
    %3 = vector.shape_cast %2 : vector<1x128x128xbf16> to vector<128x128xbf16>
    %cst = arith.constant dense<0.000000e+00> : vector<1024x128xf32>
    %4 = tpu.matmul %1, %3, %cst {dimension_numbers = #tpu.dot_dimension_numbers<[1], [0], [0], [1], [0, 0, 1, 1], [], []>} : vector<1024x128xbf16>, vector<128x128xbf16>, vector<1024x128xf32> -> vector<1024x128xf32>
    %c0_5 = arith.constant 0 : index
    %c1 = arith.constant 1 : index
    %c0_6 = arith.constant 0 : index
    %5 = vector.load %arg1[%c0_5, %c1, %c0_6] : memref<32x34x128xbf16, #tpu.memory_space<vmem>>, vector<32x32x128xbf16>
    %6 = vector.shape_cast %5 : vector<32x32x128xbf16> to vector<1024x128xbf16>
    %c1_7 = arith.constant 1 : index
    %c0_8 = arith.constant 0 : index
    %c0_9 = arith.constant 0 : index
    %7 = vector.load %arg2[%c1_7, %c0_8, %c0_9] : memref<3x128x128xbf16, #tpu.memory_space<vmem>>, vector<1x128x128xbf16>
    %8 = vector.shape_cast %7 : vector<1x128x128xbf16> to vector<128x128xbf16>
    %cst_10 = arith.constant dense<0.000000e+00> : vector<1024x128xf32>
    %9 = tpu.matmul %6, %8, %cst_10 {dimension_numbers = #tpu.dot_dimension_numbers<[1], [0], [0], [1], [0, 0, 1, 1], [], []>} : vector<1024x128xbf16>, vector<128x128xbf16>, vector<1024x128xf32> -> vector<1024x128xf32>
    %10 = arith.addf %4, %9 : vector<1024x128xf32>
    %c0_11 = arith.constant 0 : index
    %c2 = arith.constant 2 : index
    %c0_12 = arith.constant 0 : index
    %11 = vector.load %arg1[%c0_11, %c2, %c0_12] : memref<32x34x128xbf16, #tpu.memory_space<vmem>>, vector<32x32x128xbf16>
    %12 = vector.shape_cast %11 : vector<32x32x128xbf16> to vector<1024x128xbf16>
    %c2_13 = arith.constant 2 : index
    %c0_14 = arith.constant 0 : index
    %c0_15 = arith.constant 0 : index
    %13 = vector.load %arg2[%c2_13, %c0_14, %c0_15] : memref<3x128x128xbf16, #tpu.memory_space<vmem>>, vector<1x128x128xbf16>
    %14 = vector.shape_cast %13 : vector<1x128x128xbf16> to vector<128x128xbf16>
    %cst_16 = arith.constant dense<0.000000e+00> : vector<1024x128xf32>
    %15 = tpu.matmul %12, %14, %cst_16 {dimension_numbers = #tpu.dot_dimension_numbers<[1], [0], [0], [1], [0, 0, 1, 1], [], []>} : vector<1024x128xbf16>, vector<128x128xbf16>, vector<1024x128xf32> -> vector<1024x128xf32>
    %16 = arith.addf %10, %15 : vector<1024x128xf32>
    %17 = arith.truncf %16 : vector<1024x128xf32> to vector<1024x128xbf16>
    %c0_17 = arith.constant 0 : index
    %c0_18 = arith.constant 0 : index
    %18 = vector.load %arg3[%c0_17, %c0_18] : memref<1024x128xbf16, #tpu.memory_space<vmem>>, vector<1024x128xbf16>
    tpu.vector_store %arg3[%c0_17, %c0_18], %17 {strides = array<i32>} : memref<1024x128xbf16, #tpu.memory_space<vmem>>, vector<1024x128xbf16>,
    %19 = arith.extf %17 : vector<1024x128xbf16> to vector<1024x128xf32>
    %cst_19 = arith.constant dense<0.000000e+00> : vector<128xf32>
    %20 = vector.multi_reduction <add>, %19, %cst_19 [0] : vector<1024x128xf32> to vector<128xf32>
    %21 = vector.shape_cast %20 : vector<128xf32> to vector<1x128xf32>
    %22 = arith.mulf %19, %19 : vector<1024x128xf32>
    %cst_20 = arith.constant dense<0.000000e+00> : vector<128xf32>
    %23 = vector.multi_reduction <add>, %22, %cst_20 [0] : vector<1024x128xf32> to vector<128xf32>
    %24 = vector.shape_cast %23 : vector<128xf32> to vector<1x128xf32>
    %25 = tpu.concatenate %21, %24 in 0 : vector<1x128xf32>, vector<1x128xf32> -> vector<2x128xf32>
    %26 = vector.shape_cast %25 : vector<2x128xf32> to vector<1x2x128xf32>
    %c0_21 = arith.constant 0 : index
    %c0_22 = arith.constant 0 : index
    %c0_23 = arith.constant 0 : index
    %27 = vector.load %arg4[%c0_21, %c0_22, %c0_23] : memref<1x2x128xf32, #tpu.memory_space<vmem>>, vector<1x2x128xf32>
    tpu.vector_store %arg4[%c0_21, %c0_22, %c0_23], %26 {strides = array<i32>} : memref<1x2x128xf32, #tpu.memory_space<vmem>>, vector<1x2x128xf32>,
    return
  }
  func.func @transform_0(%arg0: i32) -> (i32, i32, i32) {
    %c0_i32 = arith.constant 0 : i32
    %c0_i32_0 = arith.constant 0 : i32
    %c0_i32_1 = arith.constant 0 : i32
    return %arg0, %c0_i32, %c0_i32_0 : i32, i32, i32
  }
  func.func @transform_1(%arg0: i32) -> (i32, i32, i32) {
    %c0_i32 = arith.constant 0 : i32
    %c0_i32_0 = arith.constant 0 : i32
    %c0_i32_1 = arith.constant 0 : i32
    %c0_i32_2 = arith.constant 0 : i32
    return %c0_i32, %c0_i32_0, %c0_i32_1 : i32, i32, i32
  }
  func.func @transform_2(%arg0: i32) -> (i32, i32) {
    %c0_i32 = arith.constant 0 : i32
    %c0_i32_0 = arith.constant 0 : i32
    return %arg0, %c0_i32 : i32, i32
  }
  func.func @transform_3(%arg0: i32) -> (i32, i32, i32) {
    %c0_i32 = arith.constant 0 : i32
    %c0_i32_0 = arith.constant 0 : i32
    %c0_i32_1 = arith.constant 0 : i32
    return %arg0, %c0_i32, %c0_i32_0 : i32, i32, i32
  }
}

module attributes {stable_mosaic.version = 11 : i64} {
  func.func @_bn_act_kernel(%arg0: i32, %arg1: memref<1024x128xbf16, #tpu.memory_space<vmem>>, %arg2: memref<2x128xf32, #tpu.memory_space<vmem>>, %arg3: memref<1024x128xbf16, #tpu.memory_space<vmem>>, %arg4: memref<2x128xf32, #tpu.memory_space<vmem>>, %arg5: memref<1xf32, #tpu.memory_space<smem>>, %arg6: memref<1024x128xf32, #tpu.memory_space<vmem>>) attributes {dimension_semantics = [#tpu.dimension_semantics<parallel>], iteration_bounds = array<i64: 2>, scalar_prefetch = 0 : i64, scratch_operands = 0 : i64, tpu.core_type = #tpu.core_type<tc>, window_params = [{transform_indices = @transform_0, window_bounds = array<i64: 1024, 128>}, {pipeline_mode = #tpu.pipeline_mode<synchronous>, transform_indices = @transform_1, window_bounds = array<i64: 2, 128>}, {transform_indices = @transform_2, window_bounds = array<i64: 1024, 128>}, {pipeline_mode = #tpu.pipeline_mode<synchronous>, transform_indices = @transform_3, window_bounds = array<i64: 2, 128>}, {transform_indices = @transform_4, window_bounds = array<i64: 1>}, {transform_indices = @transform_5, window_bounds = array<i64: 1024, 128>}]} {
    %c0 = arith.constant 0 : index
    %0 = memref.load %arg5[%c0] : memref<1xf32, #tpu.memory_space<smem>>
    %c0_0 = arith.constant 0 : index
    %c0_1 = arith.constant 0 : index
    %1 = vector.load %arg1[%c0_0, %c0_1] : memref<1024x128xbf16, #tpu.memory_space<vmem>>, vector<1024x128xbf16>
    %2 = arith.extf %1 : vector<1024x128xbf16> to vector<1024x128xf32>
    %c0_2 = arith.constant 0 : index
    %c0_3 = arith.constant 0 : index
    %3 = vector.load %arg2[%c0_2, %c0_3] : memref<2x128xf32, #tpu.memory_space<vmem>>, vector<2x128xf32>
    %4 = vector.extract_strided_slice %3 {offsets = [0, 0], sizes = [1, 128], strides = [1, 1]} : vector<2x128xf32> to vector<1x128xf32>
    %5 = vector.broadcast %4 : vector<1x128xf32> to vector<1024x128xf32>
    %6 = arith.mulf %2, %5 : vector<1024x128xf32>
    %7 = vector.extract_strided_slice %3 {offsets = [1, 0], sizes = [1, 128], strides = [1, 1]} : vector<2x128xf32> to vector<1x128xf32>
    %8 = vector.broadcast %7 : vector<1x128xf32> to vector<1024x128xf32>
    %9 = arith.addf %6, %8 : vector<1024x128xf32>
    %c0_4 = arith.constant 0 : index
    %c0_5 = arith.constant 0 : index
    %10 = vector.load %arg3[%c0_4, %c0_5] : memref<1024x128xbf16, #tpu.memory_space<vmem>>, vector<1024x128xbf16>
    %11 = arith.extf %10 : vector<1024x128xbf16> to vector<1024x128xf32>
    %c0_6 = arith.constant 0 : index
    %c0_7 = arith.constant 0 : index
    %12 = vector.load %arg4[%c0_6, %c0_7] : memref<2x128xf32, #tpu.memory_space<vmem>>, vector<2x128xf32>
    %13 = vector.extract_strided_slice %12 {offsets = [0, 0], sizes = [1, 128], strides = [1, 1]} : vector<2x128xf32> to vector<1x128xf32>
    %14 = vector.broadcast %13 : vector<1x128xf32> to vector<1024x128xf32>
    %15 = arith.mulf %11, %14 : vector<1024x128xf32>
    %16 = vector.extract_strided_slice %12 {offsets = [1, 0], sizes = [1, 128], strides = [1, 1]} : vector<2x128xf32> to vector<1x128xf32>
    %17 = vector.broadcast %16 : vector<1x128xf32> to vector<1024x128xf32>
    %18 = arith.addf %15, %17 : vector<1024x128xf32>
    %19 = arith.addf %9, %18 : vector<1024x128xf32>
    %20 = vector.broadcast %0 : f32 to vector<1024x128xf32>
    %21 = arith.mulf %19, %20 : vector<1024x128xf32>
    %22 = arith.negf %21 : vector<1024x128xf32>
    %23 = math.exp %22 : vector<1024x128xf32>
    %cst = arith.constant 1.000000e+00 : f32
    %24 = vector.broadcast %cst : f32 to vector<1024x128xf32>
    %25 = arith.addf %24, %23 : vector<1024x128xf32>
    %26 = arith.divf %24, %25 : vector<1024x128xf32>
    %27 = arith.mulf %19, %26 : vector<1024x128xf32>
    %c0_8 = arith.constant 0 : index
    %c0_9 = arith.constant 0 : index
    %28 = vector.load %arg6[%c0_8, %c0_9] : memref<1024x128xf32, #tpu.memory_space<vmem>>, vector<1024x128xf32>
    tpu.vector_store %arg6[%c0_8, %c0_9], %27 {strides = array<i32>} : memref<1024x128xf32, #tpu.memory_space<vmem>>, vector<1024x128xf32>,
    return
  }
  func.func @transform_0(%arg0: i32) -> (i32, i32) {
    %c0_i32 = arith.constant 0 : i32
    %c0_i32_0 = arith.constant 0 : i32
    return %arg0, %c0_i32 : i32, i32
  }
  func.func @transform_1(%arg0: i32) -> (i32, i32) {
    %c0_i32 = arith.constant 0 : i32
    %c0_i32_0 = arith.constant 0 : i32
    %c0_i32_1 = arith.constant 0 : i32
    return %c0_i32, %c0_i32_0 : i32, i32
  }
  func.func @transform_2(%arg0: i32) -> (i32, i32) {
    %c0_i32 = arith.constant 0 : i32
    %c0_i32_0 = arith.constant 0 : i32
    return %arg0, %c0_i32 : i32, i32
  }
  func.func @transform_3(%arg0: i32) -> (i32, i32) {
    %c0_i32 = arith.constant 0 : i32
    %c0_i32_0 = arith.constant 0 : i32
    %c0_i32_1 = arith.constant 0 : i32
    return %c0_i32, %c0_i32_0 : i32, i32
  }
  func.func @transform_4(%arg0: i32) -> i32 {
    %c0_i32 = arith.constant 0 : i32
    %c0_i32_0 = arith.constant 0 : i32
    return %c0_i32 : i32
  }
  func.func @transform_5(%arg0: i32) -> (i32, i32) {
    %c0_i32 = arith.constant 0 : i32
    %c0_i32_0 = arith.constant 0 : i32
    return %arg0, %c0_i32 : i32, i32
  }
}

</mosaic_0001>

<bundles_post_ra>
// kernel: basic_block_dec_forward.6
= control target key start
LH: loop header
LB: loop body
LE: loop exit
PB: predicated region body
PF: predicated region fallthrough
CT: control target
= control target key end

     0   :  { %s1234_s14 = smov 0   ;;  %s1537_s0 = inlined_call_operand.vmem [shape: bf16[512,128], index: 0, kind: input, shape index: {}]   ;;  %s1538_s1 = inlined_call_operand.vmem [shape: f32[2,128], index: 1, kind: input, shape index: {}]   ;;  %s1539_s2 = inlined_call_operand.<no memory space> [shape: f32[1], index: 2, kind: input, shape index: {}]   ;;  %s1540_s3 = inlined_call_operand.vmem [shape: bf16[512,128], index: 3, kind: output, shape index: {}]  }
   0x1   :  { %8 = sst [smem:[#allocation2]] %s1539_s2 }
   0x2 LB: > { %s786_s15 = sadd.s32 4294967295, %s1209_s14   ;;  %p790_p0 = scmp.ge.s32.totalorder %s1209_s14, 1  ;;  %s1209_s14 = sphi %s1234_s14, %s14_s14  }
   0x3   : > { %p139_p1 = scmp.lt.s32.totalorder %s1209_s14, 3 }
   0x5   : > { %p140_p2 = pnand %p790_p0, %p139_p1 }
   0x6   : > { %s791_s16 = sshll.u32 (!%p140_p2), %s786_s15, 5  ;;  %s175_s17 = sld [smem:[#allocation2]] (!%p140_p2)  ;;  %v241_v0 = vlaneseq (!%p140_p2)  ;;  %v240_v2 = vld [vmem:[%s1538_s1] sm:$0x3] (!%p140_p2) }
   0x7   : > { %143 = sbr.rel (%p140_p2) target bundleno = 115 (0x73), region = 32  ;;  %p164_p3 = scmp.lt.s32.totalorder (!%p140_p2), %s791_s16, 63 }
   0x8   : > { %v242_v1 = vshrl.u32 (!%p140_p2), %v241_v0, 7 }
   0xa   : > { %v243_v3 = vsub.s32 (!%p140_p2), 0, %v242_v1  ;;  %v279_v4 = vsub.s32 (!%p140_p2), 1, %v242_v1 }
   0xc   : > { %v1255_v5 = vrot.slane (!%p140_p2), %v240_v2, %v243_v3  ;;  %v1258_v7 = vrot.slane (!%p140_p2), %v240_v2, %v279_v4  ;;  %v1260_v8 = vstv (!%p140_p2), %s175_s17 }
   0xe   : > { %s1542_s16 = smov (!%p164_p3, %s791_s16), 63 }
   0xf   : > { %s792_s19 = sshll.u32 %s1542_s16, 2 }
  0x10   : > { %s1253_s22 = scalar_lea.vmem %s1537_s0, %s792_s19  ;;  %s1416_s25 = scalar_lea.vmem %s1540_s3, %s792_s19 }
  0x11   : > { %v894_v6 = vld [vmem:[%s1253_s22] sm:$0xff]   ;;  %v1037_v9 = vld [vmem:[%s1253_s22 + $0x8] sm:$0xff]   ;;  %v1038_v10 = vld [vmem:[%s1253_s22 + $0x10] sm:$0xff]  }
  0x12   : > { %v895_v11 = vunpack.c.l.bf16 %v894_v6  ;;  %v896_v12 = vunpack.c.h.bf16 %v894_v6  ;;  %v899_v13 = vunpack.c.l.bf16 %v1037_v9  ;;  %v900_v14 = vunpack.c.h.bf16 %v1037_v9  ;;  %v1039_v15 = vld [vmem:[%s1253_s22 + $0x18] sm:$0xff]   ;;  %v1040_v36 = vld [vmem:[%s1253_s22 + $0x20] sm:$0xff]   ;;  %v1041_v45 = vld [vmem:[%s1253_s22 + $0x28] sm:$0xff]  }
  0x13   : > { %v903_v16 = vunpack.c.l.bf16 %v1038_v10  ;;  %v904_v17 = vunpack.c.h.bf16 %v1038_v10  ;;  %v907_v18 = vunpack.c.l.bf16 %v1039_v15  ;;  %v908_v19 = vunpack.c.h.bf16 %v1039_v15  ;;  %v1042_v46 = vld [vmem:[%s1253_s22 + $0x30] sm:$0xff]  }
  0x14   : > { %v245_v20 = vmul.f32 %v895_v11, %v1255_v5  ;;  %v246_v21 = vmul.f32 %v896_v12, %v1255_v5  ;;  %v247_v22 = vmul.f32 %v899_v13, %v1255_v5  ;;  %v248_v23 = vmul.f32 %v900_v14, %v1255_v5  ;;  %v1043_v12 = vld [vmem:[%s1253_s22 + $0x38] sm:$0xff]  }
  0x15   : > { %v249_v24 = vmul.f32 %v903_v16, %v1255_v5  ;;  %v250_v25 = vmul.f32 %v904_v17, %v1255_v5  ;;  %v251_v26 = vmul.f32 %v907_v18, %v1255_v5  ;;  %v252_v27 = vmul.f32 %v908_v19, %v1255_v5  ;;  %v1044_v19 = vld [vmem:[%s1253_s22 + $0x40] sm:$0xff]  }
  0x16   : > { %v1274_v28 = vadd.f32 %v1258_v7, %v245_v20  ;;  %v1277_v29 = vadd.f32 %v1258_v7, %v246_v21  ;;  %v1280_v30 = vadd.f32 %v1258_v7, %v247_v22  ;;  %v1283_v31 = vadd.f32 %v1258_v7, %v248_v23 }
  0x17   : > { %v1286_v32 = vadd.f32 %v1258_v7, %v249_v24  ;;  %v1289_v33 = vadd.f32 %v1258_v7, %v250_v25  ;;  %v1292_v34 = vadd.f32 %v1258_v7, %v251_v26  ;;  %v1295_v35 = vadd.f32 %v1258_v7, %v252_v27 }
  0x18   : > { %v314_v37 = vmul.f32 %v1260_v8, %v1274_v28  ;;  %v315_v38 = vmul.f32 %v1260_v8, %v1277_v29  ;;  %v316_v39 = vmul.f32 %v1260_v8, %v1280_v30  ;;  %v317_v40 = vmul.f32 %v1260_v8, %v1283_v31 }
  0x19   : > { %v318_v41 = vmul.f32 %v1260_v8, %v1286_v32  ;;  %v319_v42 = vmul.f32 %v1260_v8, %v1289_v33  ;;  %v320_v43 = vmul.f32 %v1260_v8, %v1292_v34  ;;  %v321_v44 = vmul.f32 %v1260_v8, %v1295_v35 }
  0x1a   : > { %v795_v47 = vmul.f32 -1.442695, %v314_v37  ;;  %v796_v48 = vmul.f32 -1.442695, %v315_v38  ;;  %v797_v49 = vmul.f32 -1.442695, %v316_v39  ;;  %v911_v50 = vunpack.c.l.bf16 %v1040_v36 }
  0x1b   : > { %v798_v51 = vmul.f32 -1.442695, %v317_v40  ;;  %v799_v52 = vmul.f32 -1.442695, %v318_v41  ;;  %v800_v53 = vmul.f32 -1.442695, %v319_v42  ;;  %v912_v54 = vunpack.c.h.bf16 %v1040_v36 }
  0x1c   : > { %1075 = vpow2.f32 %v795_v47  ;;  %v801_v55 = vmul.f32 -1.442695, %v320_v43  ;;  %v802_v56 = vmul.f32 -1.442695, %v321_v44  ;;  %v253_v57 = vmul.f32 %v911_v50, %v1255_v5 }
  0x1d   : > { %1077 = vpow2.f32 %v796_v48  ;;  %v254_v58 = vmul.f32 %v912_v54, %v1255_v5  ;;  %v915_v59 = vunpack.c.l.bf16 %v1041_v45  ;;  %v916_v60 = vunpack.c.h.bf16 %v1041_v45 }
  0x1e   : > { %1079 = vpow2.f32 %v797_v49  ;;  %v1319_v61 = vadd.f32 %v1258_v7, %v253_v57  ;;  %v919_v62 = vunpack.c.l.bf16 %v1042_v46  ;;  %v920_v63 = vunpack.c.h.bf16 %v1042_v46 }
  0x1f   : > { %1081 = vpow2.f32 %v798_v51  ;;  %v1322_v0 = vadd.f32 %v1258_v7, %v254_v58  ;;  %v255_v1 = vmul.f32 %v915_v59, %v1255_v5  ;;  %v256_v2 = vmul.f32 %v916_v60, %v1255_v5  ;;  %v1045_v59 = vld [vmem:[%s1253_s22 + $0x48] sm:$0xff]  }
  0x20   : > { %1083 = vpow2.f32 %v799_v52  ;;  %v322_v3 = vmul.f32 %v1260_v8, %v1319_v61  ;;  %v257_v4 = vmul.f32 %v919_v62, %v1255_v5  ;;  %v258_v6 = vmul.f32 %v920_v63, %v1255_v5 }
  0x21   : > { %1085 = vpow2.f32 %v800_v53  ;;  %v323_v9 = vmul.f32 %v1260_v8, %v1322_v0  ;;  %v1333_v10 = vadd.f32 %v1258_v7, %v255_v1  ;;  %v1336_v11 = vadd.f32 %v1258_v7, %v256_v2 }
  0x22   : > { %1087 = vpow2.f32 %v801_v55  ;;  %v803_v13 = vmul.f32 -1.442695, %v322_v3  ;;  %v1340_v14 = vadd.f32 %v1258_v7, %v257_v4  ;;  %v1343_v15 = vadd.f32 %v1258_v7, %v258_v6 }
  0x23   : > { %1089 = vpow2.f32 %v802_v56  ;;  %v804_v16 = vmul.f32 -1.442695, %v323_v9  ;;  %v324_v17 = vmul.f32 %v1260_v8, %v1333_v10  ;;  %v325_v18 = vmul.f32 %v1260_v8, %v1336_v11  ;;  %v1046_v9 = vld [vmem:[%s1253_s22 + $0x50] sm:$0xff]  }
  0x24   : > { %1091 = vpow2.f32 %v803_v13  ;;  %v326_v20 = vmul.f32 %v1260_v8, %v1340_v14  ;;  %v327_v21 = vmul.f32 %v1260_v8, %v1343_v15  ;;  %v923_v22 = vunpack.c.l.bf16 %v1043_v12 }
  0x25   : > { %1093 = vpow2.f32 %v804_v16  ;;  %v805_v23 = vmul.f32 -1.442695, %v324_v17  ;;  %v806_v24 = vmul.f32 -1.442695, %v325_v18  ;;  %v924_v25 = vunpack.c.h.bf16 %v1043_v12  ;;  %v1385_v18 = vld [vmem:[%s1253_s22 + $0x58] sm:$0xff]  }
  0x26   : > { %v1076_v26 = vpop.eup %1075  ;;  %v1354_v27 = vmul.f32 -1.442695, %v326_v20  ;;  %v1356_v36 = vmul.f32 -1.442695, %v327_v21  ;;  %v259_v37 = vmul.f32 %v923_v22, %v1255_v5  ;;  %v927_v38 = vunpack.c.l.bf16 %v1044_v19 }
  0x27   : > { %v1078_v39 = vpop.eup %1077  ;;  %v442_v40 = vadd.f32 1.0, %v1076_v26  ;;  %1095 = vpow2.f32 %v805_v23  ;;  %v260_v41 = vmul.f32 %v924_v25, %v1255_v5  ;;  %v928_v42 = vunpack.c.h.bf16 %v1044_v19 }
  0x28   : > { %v1080_v43 = vpop.eup %1079  ;;  %v443_v44 = vadd.f32 1.0, %v1078_v39  ;;  %1097 = vpow2.f32 %v806_v24  ;;  %v1361_v45 = vadd.f32 %v1258_v7, %v259_v37  ;;  %v261_v46 = vmul.f32 %v927_v38, %v1255_v5 }
  0x29   : > { %v1082_v47 = vpop.eup %1081  ;;  %1099 = vrcp.f32 %v442_v40  ;;  %v444_v48 = vadd.f32 1.0, %v1080_v43  ;;  %v1365_v49 = vadd.f32 %v1258_v7, %v260_v41  ;;  %v262_v50 = vmul.f32 %v928_v42, %v1255_v5 }
  0x2a   : > { %v1084_v51 = vpop.eup %1083  ;;  %1101 = vrcp.f32 %v443_v44  ;;  %v445_v52 = vadd.f32 1.0, %v1082_v47  ;;  %v328_v53 = vmul.f32 %v1260_v8, %v1361_v45  ;;  %v1371_v54 = vadd.f32 %v1258_v7, %v261_v46 }
  0x2b   : > { %v1086_v55 = vpop.eup %1085  ;;  %1103 = vrcp.f32 %v444_v48  ;;  %v446_v56 = vadd.f32 1.0, %v1084_v51  ;;  %v329_v57 = vmul.f32 %v1260_v8, %v1365_v49  ;;  %v1376_v58 = vadd.f32 %v1258_v7, %v262_v50 }
  0x2c   : > { %v1088_v60 = vpop.eup %1087  ;;  %1105 = vrcp.f32 %v445_v52  ;;  %v447_v62 = vadd.f32 1.0, %v1086_v55  ;;  %v809_v63 = vmul.f32 -1.442695, %v328_v53  ;;  %v330_v1 = vmul.f32 %v1260_v8, %v1371_v54 }
  0x2d   : > { %v1090_v2 = vpop.eup %1089  ;;  %1107 = vrcp.f32 %v446_v56  ;;  %v448_v3 = vadd.f32 1.0, %v1088_v60  ;;  %v810_v4 = vmul.f32 -1.442695, %v329_v57  ;;  %v331_v6 = vmul.f32 %v1260_v8, %v1376_v58 }
  0x2e   : > { %v1092_v12 = vpop.eup %1091  ;;  %1109 = vrcp.f32 %v447_v62  ;;  %v449_v13 = vadd.f32 1.0, %v1090_v2  ;;  %v811_v16 = vmul.f32 -1.442695, %v330_v1  ;;  %v931_v17 = vunpack.c.l.bf16 %v1045_v59 }
  0x2f   : > { %v1094_v19 = vpop.eup %1093  ;;  %1111 = vrcp.f32 %v448_v3  ;;  %v450_v20 = vadd.f32 1.0, %v1092_v12  ;;  %v812_v21 = vmul.f32 -1.442695, %v331_v6  ;;  %v932_v22 = vunpack.c.h.bf16 %v1045_v59 }
  0x30   : > { %1113 = vrcp.f32 %v449_v13  ;;  %v451_v23 = vadd.f32 1.0, %v1094_v19  ;;  %v263_v24 = vmul.f32 %v931_v17, %v1255_v5  ;;  %v935_v25 = vunpack.c.l.bf16 %v1046_v9 }
  0x31   : > { %v1096_v26 = vpop.eup %1095  ;;  %1115 = vrcp.f32 %v450_v20  ;;  %v264_v37 = vmul.f32 %v932_v22, %v1255_v5  ;;  %v936_v38 = vunpack.c.h.bf16 %v1046_v9  ;;  %v939_v39 = vunpack.c.l.bf16 %v1385_v18 }
  0x32   : > { %v1098_v40 = vpop.eup %1097  ;;  %1117 = vrcp.f32 %v451_v23  ;;  %v452_v41 = vadd.f32 1.0, %v1096_v26  ;;  %v1391_v42 = vadd.f32 %v1258_v7, %v263_v24  ;;  %v265_v43 = vmul.f32 %v935_v25, %v1255_v5 }
  0x33   : > { %v1100_v44 = vpop.eup %1099  ;;  %v453_v46 = vadd.f32 1.0, %v1098_v40  ;;  %1119 = vpow2.f32 %v1354_v27  ;;  %v1396_v47 = vadd.f32 %v1258_v7, %v264_v37  ;;  %v266_v48 = vmul.f32 %v936_v38, %v1255_v5 }
  0x34   : > { %v1102_v50 = vpop.eup %1101  ;;  %v538_v51 = vmul.f32 %v1100_v44, %v1274_v28  ;;  %1121 = vrcp.f32 %v452_v41  ;;  %v332_v52 = vmul.f32 %v1260_v8, %v1391_v42  ;;  %v1403_v53 = vadd.f32 %v1258_v7, %v265_v43  ;;  %v1049_v41 = vld [vmem:[%s1253_s22 + $0x68] sm:$0xff]  }
  0x35   : > { %v1104_v55 = vpop.eup %1103  ;;  %v539_v56 = vmul.f32 %v1102_v50, %v1277_v29  ;;  %1123 = vrcp.f32 %v453_v46  ;;  %v333_v27 = vmul.f32 %v1260_v8, %v1396_v47  ;;  %v1409_v57 = vadd.f32 %v1258_v7, %v266_v48 }
  0x36   : > { %v1106_v59 = vpop.eup %1105  ;;  %v540_v28 = vmul.f32 %v1104_v55, %v1280_v30  ;;  %1125 = vpow2.f32 %v1356_v36  ;;  %v813_v29 = vmul.f32 -1.442695, %v332_v52  ;;  %v334_v60 = vmul.f32 %v1260_v8, %v1403_v53 }
  0x37   : > { %v1108_v62 = vpop.eup %1107  ;;  %v960_v1 = vpack.c.bf16 %v539_v56, %v538_v51  ;;  %v541_v2 = vmul.f32 %v1106_v59, %v1283_v31  ;;  %1127 = vpow2.f32 %v809_v63  ;;  %v814_v3 = vmul.f32 -1.442695, %v333_v27  ;;  %v1048_v31 = vld [vmem:[%s1253_s22 + $0x60] sm:$0xff]  }
  0x38   : > { %v1110_v6 = vpop.eup %1109  ;;  %v542_v9 = vmul.f32 %v1108_v62, %v1286_v32  ;;  %1129 = vpow2.f32 %v810_v4  ;;  %v335_v30 = vmul.f32 %v1260_v8, %v1409_v57  ;;  %v815_v36 = vmul.f32 -1.442695, %v334_v60 }
  0x39   : > { %v1112_v12 = vpop.eup %1111  ;;  %961 = vst [vmem:[%s1416_s25] sm:$0xff] %v960_v1   ;;  %v965_v13 = vpack.c.bf16 %v541_v2, %v540_v28  ;;  %v543_v17 = vmul.f32 %v1110_v6, %v1289_v33  ;;  %1131 = vpow2.f32 %v811_v16  ;;  %v940_v19 = vunpack.c.h.bf16 %v1385_v18 }
  0x3a   : > { %v1114_v63 = vpop.eup %1113  ;;  %v544_v20 = vmul.f32 %v1112_v12, %v1292_v34  ;;  %1133 = vpow2.f32 %v812_v21  ;;  %v816_v32 = vmul.f32 -1.442695, %v335_v30  ;;  %v267_v4 = vmul.f32 %v939_v39, %v1255_v5  ;;  %v1050_v12 = vld [vmem:[%s1253_s22 + $0x70] sm:$0xff]  }
  0x3b   : > { %v1116_v22 = vpop.eup %1115  ;;  %1052 = vst [vmem:[%s1416_s25 + $0x8] sm:$0xff] %v965_v13   ;;  %v970_v23 = vpack.c.bf16 %v543_v17, %v542_v9  ;;  %v545_v24 = vmul.f32 %v1114_v63, %v1295_v35  ;;  %1135 = vpow2.f32 %v813_v29  ;;  %v268_v33 = vmul.f32 %v940_v19, %v1255_v5 }
  0x3c   : > { %v1118_v16 = vpop.eup %1117  ;;  %v546_v18 = vmul.f32 %v1116_v22, %v1319_v61  ;;  %1137 = vpow2.f32 %v814_v3  ;;  %v1437_v34 = vadd.f32 %v1258_v7, %v267_v4  ;;  %v943_v21 = vunpack.c.l.bf16 %v1048_v31 }
  0x3d   : > { %v1120_v25 = vpop.eup %1119  ;;  %1053 = vst [vmem:[%s1416_s25 + $0x10] sm:$0xff] %v970_v23   ;;  %v975_v26 = vpack.c.bf16 %v545_v24, %v544_v20  ;;  %v547_v37 = vmul.f32 %v1118_v16, %v1322_v0  ;;  %1139 = vpow2.f32 %v815_v36  ;;  %v1442_v35 = vadd.f32 %v1258_v7, %v268_v33  ;;  %v1051_v16 = vld [vmem:[%s1253_s22 + $0x78] sm:$0xff]  }
  0x3e   : > { %v1122_v38 = vpop.eup %1121  ;;  %v454_v39 = vadd.f32 1.0, %v1120_v25  ;;  %1141 = vpow2.f32 %v816_v32  ;;  %v336_v61 = vmul.f32 %v1260_v8, %v1437_v34  ;;  %v944_v40 = vunpack.c.h.bf16 %v1048_v31 }
  0x3f   : > { %v1124_v43 = vpop.eup %1123  ;;  %1054 = vst [vmem:[%s1416_s25 + $0x18] sm:$0xff] %v975_v26   ;;  %v980_v44 = vpack.c.bf16 %v547_v37, %v546_v18  ;;  %v548_v46 = vmul.f32 %v1122_v38, %v1333_v10  ;;  %v337_v0 = vmul.f32 %v1260_v8, %v1442_v35  ;;  %v269_v48 = vmul.f32 %v943_v21, %v1255_v5 }
  0x40   : > { %v1126_v50 = vpop.eup %1125  ;;  %v549_v51 = vmul.f32 %v1124_v43, %v1336_v11  ;;  %1143 = vrcp.f32 %v454_v39  ;;  %v817_v52 = vmul.f32 -1.442695, %v336_v61  ;;  %v270_v55 = vmul.f32 %v944_v40, %v1255_v5 }
  0x41   : > { %v1128_v56 = vpop.eup %1127  ;;  %1055 = vst [vmem:[%s1416_s25 + $0x20] sm:$0xff] %v980_v44   ;;  %v455_v27 = vadd.f32 1.0, %v1126_v50  ;;  %v1456_v59 = vadd.f32 %v1258_v7, %v269_v48  ;;  %v947_v10 = vunpack.c.l.bf16 %v1049_v41  ;;  %v948_v3 = vunpack.c.h.bf16 %v1049_v41 }
  0x42   : > { %v1130_v28 = vpop.eup %1129  ;;  %v985_v29 = vpack.c.bf16 %v549_v51, %v548_v46  ;;  %v456_v60 = vadd.f32 1.0, %v1128_v56  ;;  %1145 = vpow2.f32 %v817_v52  ;;  %v1459_v62 = vadd.f32 %v1258_v7, %v270_v55 }
  0x43   : > { %v1132_v11 = vpop.eup %1131  ;;  %1147 = vrcp.f32 %v455_v27  ;;  %v457_v1 = vadd.f32 1.0, %v1130_v28  ;;  %v338_v2 = vmul.f32 %v1260_v8, %v1456_v59  ;;  %v818_v30 = vmul.f32 -1.442695, %v337_v0 }
  0x44   : > { %v1134_v6 = vpop.eup %1133  ;;  %1056 = vst [vmem:[%s1416_s25 + $0x28] sm:$0xff] %v985_v29   ;;  %1149 = vrcp.f32 %v456_v60  ;;  %v458_v9 = vadd.f32 1.0, %v1132_v11  ;;  %v271_v36 = vmul.f32 %v947_v10, %v1255_v5  ;;  %v339_v19 = vmul.f32 %v1260_v8, %v1459_v62 }
  0x45   : > { %v1136_v13 = vpop.eup %1135  ;;  %1151 = vrcp.f32 %v457_v1  ;;  %v459_v17 = vadd.f32 1.0, %v1134_v6  ;;  %v272_v31 = vmul.f32 %v948_v3, %v1255_v5  ;;  %v819_v32 = vmul.f32 -1.442695, %v338_v2 }
  0x46   : > { %v1138_v63 = vpop.eup %1137  ;;  %1153 = vrcp.f32 %v458_v9  ;;  %v460_v20 = vadd.f32 1.0, %v1136_v13  ;;  %v1470_v4 = vadd.f32 %v1258_v7, %v271_v36  ;;  %v951_v33 = vunpack.c.l.bf16 %v1050_v12 }
  0x47   : > { %v1140_v22 = vpop.eup %1139  ;;  %1155 = vrcp.f32 %v459_v17  ;;  %v461_v23 = vadd.f32 1.0, %v1138_v63  ;;  %v1473_v24 = vadd.f32 %v1258_v7, %v272_v31  ;;  %v952_v26 = vunpack.c.h.bf16 %v1050_v12 }
  0x48   : > { %v1142_v18 = vpop.eup %1141  ;;  %1157 = vrcp.f32 %v460_v20  ;;  %v462_v21 = vadd.f32 1.0, %v1140_v22  ;;  %v340_v25 = vmul.f32 %v1260_v8, %v1470_v4  ;;  %v273_v39 = vmul.f32 %v951_v33, %v1255_v5 }
  0x49   : > { %1159 = vrcp.f32 %v461_v23  ;;  %v463_v37 = vadd.f32 1.0, %v1142_v18  ;;  %v341_v38 = vmul.f32 %v1260_v8, %v1473_v24  ;;  %v820_v40 = vmul.f32 -1.442695, %v339_v19 }
  0x4a   : > { %v1144_v61 = vpop.eup %1143  ;;  %1161 = vrcp.f32 %v462_v21  ;;  %v274_v41 = vmul.f32 %v952_v26, %v1255_v5  ;;  %v955_v43 = vunpack.c.l.bf16 %v1051_v16  ;;  %v821_v46 = vmul.f32 -1.442695, %v340_v25 }
  0x4b   : > { %v550_v44 = vmul.f32 %v1144_v61, %v1340_v14  ;;  %1163 = vrcp.f32 %v463_v37  ;;  %v1484_v0 = vadd.f32 %v1258_v7, %v273_v39  ;;  %v956_v51 = vunpack.c.h.bf16 %v1051_v16 }
  0x4c   : > { %v1146_v48 = vpop.eup %1145  ;;  %1165 = vpow2.f32 %v818_v30  ;;  %v1487_v50 = vadd.f32 %v1258_v7, %v274_v41  ;;  %v275_v52 = vmul.f32 %v955_v43, %v1255_v5  ;;  %v822_v56 = vmul.f32 -1.442695, %v341_v38 }
  0x4d   : > { %v1148_v55 = vpop.eup %1147  ;;  %1167 = vpow2.f32 %v819_v32  ;;  %v342_v27 = vmul.f32 %v1260_v8, %v1484_v0  ;;  %v276_v29 = vmul.f32 %v956_v51, %v1255_v5  ;;  %v464_v1 = vadd.f32 1.0, %v1146_v48 }
  0x4e   : > { %v1150_v14 = vpop.eup %1149  ;;  %v551_v10 = vmul.f32 %v1148_v55, %v1343_v15  ;;  %1169 = vpow2.f32 %v820_v40  ;;  %v343_v28 = vmul.f32 %v1260_v8, %v1487_v50  ;;  %v1498_v3 = vadd.f32 %v1258_v7, %v275_v52 }
  0x4f   : > { %v1152_v60 = vpop.eup %1151  ;;  %v552_v11 = vmul.f32 %v1150_v14, %v1361_v45  ;;  %v823_v2 = vmul.f32 -1.442695, %v342_v27  ;;  %1171 = vpow2.f32 %v821_v46  ;;  %v1503_v5 = vadd.f32 %v1258_v7, %v276_v29 }
  0x50   : > { %v1154_v6 = vpop.eup %1153  ;;  %v990_v9 = vpack.c.bf16 %v551_v10, %v550_v44  ;;  %v553_v30 = vmul.f32 %v1152_v60, %v1365_v49  ;;  %v824_v15 = vmul.f32 -1.442695, %v343_v28  ;;  %1173 = vpow2.f32 %v822_v56 }
  0x51   : > { %v1156_v36 = vpop.eup %1155  ;;  %v554_v12 = vmul.f32 %v1154_v6, %v1371_v54  ;;  %v344_v45 = vmul.f32 %v1260_v8, %v1498_v3  ;;  %1175 = vpow2.f32 %v823_v2  ;;  %v345_v54 = vmul.f32 %v1260_v8, %v1503_v5 }
  0x52   : > { %v1158_v13 = vpop.eup %1157  ;;  %1057 = vst [vmem:[%s1416_s25 + $0x30] sm:$0xff] %v990_v9   ;;  %v995_v17 = vpack.c.bf16 %v553_v30, %v552_v11  ;;  %v555_v19 = vmul.f32 %v1156_v36, %v1376_v58  ;;  %1177 = vpow2.f32 %v824_v15 }
  0x53   : > { %v1160_v49 = vpop.eup %1159  ;;  %v556_v31 = vmul.f32 %v1158_v13, %v1391_v42  ;;  %v825_v63 = vmul.f32 -1.442695, %v344_v45  ;;  %1179 = vrcp.f32 %v464_v1  ;;  %v826_v23 = vmul.f32 -1.442695, %v345_v54 }
  0x54   : > { %v1162_v7 = vpop.eup %1161  ;;  %1058 = vst [vmem:[%s1416_s25 + $0x38] sm:$0xff] %v995_v17   ;;  %v1000_v20 = vpack.c.bf16 %v555_v19, %v554_v12  ;;  %v557_v32 = vmul.f32 %v1160_v49, %v1396_v47 }
  0x55   : > { %v1164_v22 = vpop.eup %1163  ;;  %v558_v58 = vmul.f32 %v1162_v7, %v1403_v53  ;;  %1181 = vpow2.f32 %v825_v63 }
  0x56   : > { %v1166_v33 = vpop.eup %1165  ;;  %1059 = vst [vmem:[%s1416_s25 + $0x40] sm:$0xff] %v1000_v20   ;;  %v1005_v42 = vpack.c.bf16 %v557_v32, %v556_v31  ;;  %v559_v16 = vmul.f32 %v1164_v22, %v1409_v57  ;;  %1183 = vpow2.f32 %v826_v23 }
  0x57   : > { %v1168_v8 = vpop.eup %1167  ;;  %v465_v18 = vadd.f32 1.0, %v1166_v33 }
  0x58   : > { %v1170_v21 = vpop.eup %1169  ;;  %1060 = vst [vmem:[%s1416_s25 + $0x48] sm:$0xff] %v1005_v42   ;;  %v1010_v25 = vpack.c.bf16 %v559_v16, %v558_v58  ;;  %v466_v26 = vadd.f32 1.0, %v1168_v8 }
  0x59   : > { %1185 = vrcp.f32 %v465_v18  ;;  %v467_v47 = vadd.f32 1.0, %v1170_v21  ;;  %v1172_v37 = vpop.eup %1171 }
  0x5a   : > { %1061 = vst [vmem:[%s1416_s25 + $0x50] sm:$0xff] %v1010_v25   ;;  %1187 = vrcp.f32 %v466_v26  ;;  %v1174_v53 = vpop.eup %1173  ;;  %v468_v38 = vadd.f32 1.0, %v1172_v37 }
  0x5b   : > { %1189 = vrcp.f32 %v467_v47  ;;  %v1176_v39 = vpop.eup %1175  ;;  %v469_v61 = vadd.f32 1.0, %v1174_v53 }
  0x5c   : > { %v1178_v40 = vpop.eup %1177  ;;  %1191 = vrcp.f32 %v468_v38  ;;  %v470_v57 = vadd.f32 1.0, %v1176_v39 }
  0x5d   : > { %v1180_v41 = vpop.eup %1179  ;;  %1193 = vrcp.f32 %v469_v61  ;;  %v471_v43 = vadd.f32 1.0, %v1178_v40 }
  0x5e   : > { %1195 = vrcp.f32 %v470_v57  ;;  %v560_v51 = vmul.f32 %v1180_v41, %v1437_v34 }
  0x5f   : > { %v1182_v44 = vpop.eup %1181  ;;  %1197 = vrcp.f32 %v471_v43 }
  0x60   : > { %v472_v46 = vadd.f32 1.0, %v1182_v44  ;;  %v1184_v48 = vpop.eup %1183 }
  0x61   : > { %v473_v52 = vadd.f32 1.0, %v1184_v48 }
  0x62   : > { %1199 = vrcp.f32 %v472_v46 }
  0x63   : > { %v1186_v55 = vpop.eup %1185  ;;  %1201 = vrcp.f32 %v473_v52 }
  0x64   : > { %v1188_v56 = vpop.eup %1187  ;;  %v561_v27 = vmul.f32 %v1186_v55, %v1442_v35 }
  0x65   : > { %v1190_v14 = vpop.eup %1189  ;;  %v562_v10 = vmul.f32 %v1188_v56, %v1456_v59 }
  0x66   : > { %v1015_v28 = vpack.c.bf16 %v561_v27, %v560_v51  ;;  %v563_v29 = vmul.f32 %v1190_v14, %v1459_v62  ;;  %v1192_v60 = vpop.eup %1191 }
  0x67   : > { %v1194_v11 = vpop.eup %1193  ;;  %v564_v1 = vmul.f32 %v1192_v60, %v1470_v4 }
  0x68   : > { %1062 = vst [vmem:[%s1416_s25 + $0x58] sm:$0xff] %v1015_v28   ;;  %v1020_v34 = vpack.c.bf16 %v563_v29, %v562_v10  ;;  %v1196_v2 = vpop.eup %1195  ;;  %v565_v6 = vmul.f32 %v1194_v11, %v1473_v24 }
  0x69   : > { %v1198_v35 = vpop.eup %1197  ;;  %v566_v9 = vmul.f32 %v1196_v2, %v1484_v0 }
  0x6a   : > { %1063 = vst [vmem:[%s1416_s25 + $0x60] sm:$0xff] %v1020_v34   ;;  %v1025_v59 = vpack.c.bf16 %v565_v6, %v564_v1  ;;  %v567_v30 = vmul.f32 %v1198_v35, %v1487_v50 }
  0x6c   : > { %v1200_v15 = vpop.eup %1199  ;;  %1064 = vst [vmem:[%s1416_s25 + $0x68] sm:$0xff] %v1025_v59   ;;  %v1030_v62 = vpack.c.bf16 %v567_v30, %v566_v9 }
  0x6d   : > { %v568_v36 = vmul.f32 %v1200_v15, %v1498_v3  ;;  %v1202_v12 = vpop.eup %1201 }
  0x6e   : > { %1065 = vst [vmem:[%s1416_s25 + $0x70] sm:$0xff] %v1030_v62   ;;  %v569_v4 = vmul.f32 %v1202_v12, %v1503_v5 }
  0x70   : > { %v1035_v45 = vpack.c.bf16 %v569_v4, %v568_v36 }
  0x72   : > { %1066 = vst [vmem:[%s1416_s25 + $0x78] sm:$0xff] %v1035_v45  }
  0x73 PF: > { %s14_s14 = sadd.s32 1, %s1209_s14  }
  0x74   : > { %p11_p4 = scmp.ge.s32.totalorder %s14_s14, 4  }
  0x76   :  { %13 = sbr.rel (!%p11_p4) target bundleno = 2 (0x2), region = 62 }

// kernel: basic_block_dec_forward.5
= control target key start
LH: loop header
LB: loop body
LE: loop exit
PB: predicated region body
PF: predicated region fallthrough
CT: control target
= control target key end

     0   :  { %s2772_s12 = smov 0   ;;  %s3411_s0 = inlined_call_operand.vmem [shape: bf16[32,18,128], index: 0, kind: input, shape index: {}]   ;;  %s3412_s1 = inlined_call_operand.vmem [shape: bf16[3,128,128], index: 1, kind: input, shape index: {}]   ;;  %s3413_s2 = inlined_call_operand.vmem [shape: bf16[512,128], index: 2, kind: output, shape index: {0}]   ;;  %s3414_s3 = inlined_call_operand.vmem [shape: f32[2,2,128], index: 3, kind: output, shape index: {1}]  }
   0x1 LB: > { %s2778_s13 = sadd.s32 4294967295, %s2750_s12   ;;  %p2112_p0 = scmp.ge.s32.totalorder %s2750_s12, 1  ;;  %s2750_s12 = sphi %s2772_s12, %s14_s12  }
   0x2   : > { %p142_p1 = scmp.lt.s32.totalorder %s2750_s12, 3 }
   0x4   : > { %p143_p2 = pnand %p2112_p0, %p142_p1 }
   0x5   : > { %v2704_v0 = vld [vmem:[%s3412_s1 + $0x40] sm:$0xff] (!%p143_p2)   ;;  %s2113_s16 = sshll.u32 (!%p143_p2), %s2778_s13, 4  ;;  %v2706_v2 = vld [vmem:[%s3412_s1 + $0x48] sm:$0xff] (!%p143_p2)   ;;  %v2708_v4 = vld [vmem:[%s3412_s1 + $0x50] sm:$0xff] (!%p143_p2)   ;;  %vm253_vm0 = vsmask.f32 (!%p143_p2), 3328 }
   0x6   : > { %146 = sbr.rel (%p143_p2) target bundleno = 383 (0x17f), region = 28  ;;  %v2789_v1 = vld [vmem:[%s3412_s1] sm:$0xff] (!%p143_p2)   ;;  %p172_p3 = scmp.lt.s32.totalorder (!%p143_p2), %s2113_s16, 31  ;;  %2471 = vmatprep.subr.bf16.mxu1 (!%p143_p2), %v2704_v0  ;;  %v2798_v3 = vld [vmem:[%s3412_s1 + $0x8] sm:$0xff] (!%p143_p2)   ;;  %v2808_v5 = vld [vmem:[%s3412_s1 + $0x10] sm:$0xff] (!%p143_p2)   ;;  %vm1283_vm3 = vcmask (!%p143_p2), 1042432  }
   0x7   : > { %2519 = vmatprep.subr.bf16.mxu0 (!%p143_p2), %v2789_v1  ;;  %2472 = vmatpush3.bf16.msra.mxu1 (!%p143_p2), %v2704_v0  ;;  %v2710_v6 = vld [vmem:[%s3412_s1 + $0x58] sm:$0xff] (!%p143_p2)   ;;  %v2712_v8 = vld [vmem:[%s3412_s1 + $0x60] sm:$0xff] (!%p143_p2)   ;;  %v2714_v10 = vld [vmem:[%s3412_s1 + $0x68] sm:$0xff] (!%p143_p2)   ;;  %vm254_vm1 = vsmask.f32 (!%p143_p2), 7440  ;;  %vm1284_vm4 = vcmask (!%p143_p2), 1046532  }
   0x8   : > { %2520 = vmatpush3.bf16.msra.mxu0 (!%p143_p2), %v2789_v1  ;;  %2473 = vmatprep.subr.bf16.mxu1 (!%p143_p2), %v2706_v2  ;;  %v2818_v7 = vld [vmem:[%s3412_s1 + $0x18] sm:$0xff] (!%p143_p2)   ;;  %v2828_v9 = vld [vmem:[%s3412_s1 + $0x20] sm:$0xff] (!%p143_p2)   ;;  %v2841_v11 = vld [vmem:[%s3412_s1 + $0x28] sm:$0xff] (!%p143_p2)   ;;  %p184_p5 = scmp.lt.s32.totalorder (!%p143_p2), %s2778_s13, 1  ;;  %vm2018_vm6 = vcmask (!%p143_p2), 1040384  }
   0x9   : > { %2521 = vmatprep.subr.bf16.mxu0 (!%p143_p2), %v2798_v3  ;;  %v2716_v17 = vld [vmem:[%s3412_s1 + $0x70] sm:$0xff] (!%p143_p2)   ;;  %v2718_v37 = vld [vmem:[%s3412_s1 + $0x78] sm:$0xff] (!%p143_p2)   ;;  %vm2885_vm2 = vmor (!%p143_p2), %vm253_vm0, %vm254_vm1 }
   0xa   : > { %v2875_v32 = vld [vmem:[%s3412_s1 + $0x30] sm:$0xff] (!%p143_p2)   ;;  %v2904_v52 = vld [vmem:[%s3412_s1 + $0x38] sm:$0xff] (!%p143_p2)   ;;  %vm3085_vm5 = vmor (!%p143_p2), %vm1283_vm3, %vm1284_vm4 }
   0xb   : > { %2474 = vmatpush3.bf16.msra.mxu1 (!%p143_p2), %v2706_v2 }
   0xc   : > { %2522 = vmatpush3.bf16.msra.mxu0 (!%p143_p2), %v2798_v3  ;;  %2475 = vmatprep.subr.bf16.mxu1 (!%p143_p2), %v2708_v4 }
   0xd   : > { %s3420_s16 = smov (!%p172_p3, %s2113_s16), 31  ;;  %2523 = vmatprep.subr.bf16.mxu0 %v2808_v5 }
   0xe   : > { %s2695_s4 = smul.u32 12, %s3420_s16 }
   0xf   : > { %2476 = vmatpush3.bf16.msra.mxu1 %v2708_v4 }
  0x10   : > { %2524 = vmatpush3.bf16.msra.mxu0 %v2808_v5  ;;  %2477 = vmatprep.subr.bf16.mxu1 %v2710_v6  ;;  %s2833_s11 = scalar_lea.vmem %s3411_s0, %s2695_s4 }
  0x11   : > { %2525 = vmatprep.subr.bf16.mxu0 %v2818_v7  ;;  %v189_v12 = vld [vmem:[%s2833_s11] sm:$0xf]  ;;  %v2846_v13 = vld [vmem:[%s2833_s11 + $0x4] sm:$0xf]  ;;  %v2849_v14 = vld [vmem:[%s2833_s11 + $0x8] sm:$0x1] }
  0x12   : > { %v257_v15 = vshrl.u32 %v189_v12, 16  ;;  %v260_v16 = vshll.u32 %v189_v12, 16  ;;  %v266_v18 = vshll.u32 %v2846_v13, 16  ;;  %v270_v19 = vshrl.u32 %v2846_v13, 16  ;;  %v2860_v22 = vld [vmem:[%s2833_s11 + $0xc] sm:$0xf] }
  0x13   : > { %2478 = vmatpush3.bf16.msra.mxu1 %v2710_v6  ;;  %v276_v20 = vshll.u32 %v2849_v14, 16  ;;  %v1291_v21 = vrot.slane %v2849_v14, 5  ;;  %v2158_v25 = vcombine.low %v189_v12, %v2846_v13  ;;  %v2864_v26 = vld [vmem:[%s2833_s11 + $0x10] sm:$0xf]  ;;  %v2867_v27 = vld [vmem:[%s2833_s11 + $0x14] sm:$0x1] }
  0x14   : > { %2526 = vmatpush3.bf16.msra.mxu0 %v2818_v7  ;;  %2479 = vmatprep.subr.bf16.mxu1 %v2712_v8  ;;  %v259_v23 = vrot.slane %v257_v15, 4  ;;  %v262_v24 = vrot.slane %v260_v16, 5  ;;  %v268_v28 = vrot.slane %v266_v18, 5  ;;  %v272_v29 = vrot.slane %v270_v19, 4  ;;  %v2895_v50 = vld [vmem:[%s2833_s11 + $0x18] sm:$0xf] }
  0x15   : > { %2527 = vmatprep.subr.bf16.mxu0 %v2828_v9  ;;  %v278_v30 = vrot.slane %v276_v20, 5  ;;  %v281_v31 = vshrl.u32 %v2860_v22, 16  ;;  %2535 = vmatprep.mubr.bf16.mxu0 %v2158_v25  ;;  %v284_v34 = vshll.u32 %v2860_v22, 16  ;;  %v290_v35 = vshll.u32 %v2864_v26, 16  ;;  %v2898_v51 = vld [vmem:[%s2833_s11 + $0x1c] sm:$0xf] }
  0x16   : > { %v263_v33 = vor.u32 %v262_v24, %v259_v23  ;;  %v294_v36 = vshrl.u32 %v2864_v26, 16  ;;  %v273_v39 = vor.u32 %v272_v29, %v268_v28  ;;  %v300_v41 = vshll.u32 %v2867_v27, 16  ;;  %v2909_v56 = vld [vmem:[%s2833_s11 + $0x20] sm:$0x1]  ;;  %v2913_v58 = vld [vmem:[%s2833_s11 + $0x24] sm:$0xf] }
  0x17   : > { %2480 = vmatpush3.bf16.msra.mxu1 %v2712_v8  ;;  %v283_v40 = vrot.slane %v281_v31, 4  ;;  %v1298_v42 = vrot.slane %v2867_v27, 5  ;;  %v286_v44 = vrot.slane %v284_v34, 5  ;;  %v292_v45 = vrot.slane %v290_v35, 5  ;;  %v2921_v63 = vld [vmem:[%s2833_s11 + $0x28] sm:$0xf] }
  0x18   : > { %2528 = vmatpush3.bf16.msra.mxu0 %v2828_v9  ;;  %2481 = vmatprep.subr.bf16.mxu1 %v2714_v10  ;;  %v264_v43 = vrot.slane %v263_v33, 4  ;;  %v296_v46 = vrot.slane %v294_v36, 4  ;;  %v274_v47 = vrot.slane %v273_v39, 4  ;;  %v302_v48 = vrot.slane %v300_v41, 5  ;;  %v2924_v8 = vld [vmem:[%s2833_s11 + $0x2c] sm:$0x1] }
  0x19   : > { %2529 = vmatprep.subr.bf16.mxu0 %v2841_v11  ;;  %v2159_v49 = vcombine.low %v2860_v22, %v2864_v26  ;;  %v287_v54 = vor.u32 %v286_v44, %v283_v40  ;;  %v305_v57 = vshrl.u32 %v2895_v50, 16  ;;  %v308_v60 = vshll.u32 %v2895_v50, 16  ;;  %v2722_v19 = vld [vmem:[%s3412_s1 + $0x80] sm:$0xff]   ;;  %v2723_v36 = vld [vmem:[%s3412_s1 + $0x88] sm:$0xff]  }
  0x1a   : > { %v269_v53 = vsel %vm2885_vm2, %v264_v43, %v268_v28  ;;  %v297_v55 = vor.u32 %v296_v46, %v292_v45  ;;  %v279_v59 = vsel %vm2885_vm2, %v274_v47, %v278_v30  ;;  %v314_v61 = vshll.u32 %v2898_v51, 16  ;;  %v2940_v30 = vld [vmem:[%s2833_s11 + $0x30] sm:$0xf]  ;;  %v2954_v43 = vld [vmem:[%s2833_s11 + $0x34] sm:$0xf] }
  0x1b   : > { %2482 = vmatpush3.bf16.msra.mxu1 %v2714_v10  ;;  %v318_v62 = vshrl.u32 %v2898_v51, 16  ;;  %v2134_v0 = vcombine.low %v269_v53, %v279_v59  ;;  %v288_v2 = vrot.slane %v287_v54, 4  ;;  %v307_v6 = vrot.slane %v305_v57, 4  ;;  %v2957_v47 = vld [vmem:[%s2833_s11 + $0x38] sm:$0x1] }
  0x1c   : > { %2530 = vmatpush3.bf16.msra.mxu0 %v2841_v11  ;;  %2483 = vmatprep.subr.bf16.mxu1 %v2716_v17  ;;  %v298_v4 = vrot.slane %v297_v55, 4  ;;  %v310_v10 = vrot.slane %v308_v60, 5  ;;  %v316_v12 = vrot.slane %v314_v61, 5  ;;  %v324_v16 = vshll.u32 %v2909_v56, 16  ;;  %v2966_v57 = vld [vmem:[%s2833_s11 + $0x3c] sm:$0xf] }
  0x1d   : > { %2531 = vmatprep.subr.bf16.mxu0 %v2875_v32  ;;  %v320_v15 = vrot.slane %v318_v62, 4  ;;  %2487 = vmatprep.mubr.bf16.mxu1 %v2134_v0  ;;  %v2160_v20 = vcombine.low %v2895_v50, %v2898_v51  ;;  %v329_v23 = vshrl.u32 %v2913_v58, 16  ;;  %v332_v33 = vshll.u32 %v2913_v58, 16  ;;  %v2973_v0 = vld [vmem:[%s2833_s11 + $0x40] sm:$0xf] }
  0x1e   : > { %v303_v18 = vsel %vm2885_vm2, %v298_v4, %v302_v48  ;;  %v311_v25 = vor.u32 %v310_v10, %v307_v6  ;;  %v326_v29 = vrot.slane %v324_v16, 5  ;;  %v338_v34 = vshll.u32 %v2921_v63, 16  ;;  %v3158_v27 = vld [vmem:[%s2833_s11 + $0x8c] sm:$0x1] }
  0x1f   : > { %2484 = vmatpush3.bf16.msra.mxu1 %v2716_v17  ;;  %v293_v17 = vsel %vm2885_vm2, %v288_v2, %v292_v45  ;;  %v321_v28 = vor.u32 %v320_v15, %v316_v12  ;;  %v331_v31 = vrot.slane %v329_v23, 4  ;;  %v342_v35 = vshrl.u32 %v2921_v63, 16 }
  0x20   : > { %2532 = vmatpush3.bf16.msra.mxu0 %v2875_v32  ;;  %2485 = vmatprep.subr.bf16.mxu1 %v2718_v37  ;;  %v2135_v24 = vcombine.low %v293_v17, %v303_v18  ;;  %v312_v39 = vrot.slane %v311_v25, 4  ;;  %v2161_v41 = vcombine.low %v2913_v58, %v2921_v63  ;;  %v334_v44 = vrot.slane %v332_v33, 5 }
  0x21   : > { %2533 = vmatprep.subr.bf16.mxu0 %v2904_v52  ;;  %v322_v40 = vrot.slane %v321_v28, 4  ;;  %v340_v45 = vrot.slane %v338_v34, 5  ;;  %v344_v46 = vrot.slane %v342_v35, 4  ;;  %v353_v48 = vshrl.u32 %v2940_v30, 16  ;;  %v3000_v35 = vld [vmem:[%s2833_s11 + $0x4c] sm:$0xf] }
  0x22   : > { %v317_v50 = vsel %vm2885_vm2, %v312_v39, %v316_v12  ;;  %v356_v55 = vshll.u32 %v2940_v30, 16  ;;  %v335_v60 = vor.u32 %v334_v44, %v331_v31  ;;  %v362_v4 = vshll.u32 %v2954_v43, 16  ;;  %v3010_v44 = vld [vmem:[%s2833_s11 + $0x50] sm:$0x1] }
  0x23   : > { %2486 = vmatpush3.bf16.msra.mxu1 %v2718_v37  ;;  %v348_v37 = vshll.u32 %v2924_v8, 16  ;;  %v327_v53 = vsel %vm2885_vm2, %v322_v40, %v326_v29  ;;  %v345_v61 = vor.u32 %v344_v46, %v340_v45  ;;  %v355_v62 = vrot.slane %v353_v48, 4  ;;  %v2995_v29 = vld [vmem:[%s2833_s11 + $0x48] sm:$0xf] }
  0x24   : > { %2534 = vmatpush3.bf16.msra.mxu0 %v2904_v52  ;;  %2615 = vmatprep.subr.bf16.mxu1 %v2789_v1  ;;  %v2136_v59 = vcombine.low %v317_v50, %v327_v53  ;;  %v358_v2 = vrot.slane %v356_v55, 5  ;;  %v366_v6 = vshrl.u32 %v2954_v43, 16  ;;  %v372_v10 = vshll.u32 %v2957_v47, 16  ;;  %v3016_v53 = vld [vmem:[%s2833_s11 + $0x54] sm:$0xf] }
  0x25   : > { %2567 = vmatprep.subr.bf16.mxu0 %v2722_v19  ;;  %v350_v54 = vrot.slane %v348_v37, 5  ;;  %v336_v22 = vrot.slane %v335_v60, 4  ;;  %v2162_v12 = vcombine.low %v2940_v30, %v2954_v43  ;;  %v377_v15 = vshrl.u32 %v2966_v57, 16 }
  0x26   : > { %2488 = vmatmul.mubr.bf16.vlgmr.msra.gmra.mrb[0].mxu1 %v2135_v24  ;;  %v359_v16 = vor.u32 %v358_v2, %v355_v62  ;;  %v364_v17 = vrot.slane %v362_v4, 5  ;;  %v368_v18 = vrot.slane %v366_v6, 4  ;;  %v380_v28 = vshll.u32 %v2966_v57, 16 }
  0x27   : > { %2536 = vmatmul.mubr.bf16.vlgmr.msra.gmra.mrb[0].mxu0 %v2159_v49  ;;  %2623 = vmatpush3.bf16.msra.mxu1 %v2789_v1  ;;  %v346_v1 = vrot.slane %v345_v61, 4  ;;  %v2726_v49 = vld [vmem:[%s3412_s1 + $0x90] sm:$0xff]   ;;  %v341_v23 = vsel %vm2885_vm2, %v336_v22, %v340_v45  ;;  %v379_v25 = vrot.slane %v377_v15, 4  ;;  %v386_v34 = vshll.u32 %v2973_v0, 16  ;;  %v2730_v61 = vld [vmem:[%s3412_s1 + $0xa0] sm:$0xff]  }
  0x28   : > { %2568 = vmatpush3.bf16.msra.mxu0 %v2722_v19  ;;  %2539 = vmatprep.mubr.bf16.mxu0 %v2160_v20  ;;  %v374_v19 = vrot.slane %v372_v10, 5  ;;  %v2986_v20 = vld [vmem:[%s2833_s11 + $0x44] sm:$0x1]  ;;  %v360_v31 = vrot.slane %v359_v16, 4  ;;  %v369_v33 = vor.u32 %v368_v18, %v364_v17  ;;  %v382_v39 = vrot.slane %v380_v28, 5 }
  0x29   : > { %2569 = vmatprep.subr.bf16.mxu0 %v2723_v36  ;;  %2491 = vmatprep.mubr.bf16.mxu1 %v2136_v59  ;;  %v351_v24 = vsel %vm2885_vm2, %v346_v1, %v350_v54  ;;  %v390_v40 = vshrl.u32 %v2973_v0, 16  ;;  %v2163_v37 = vcombine.low %v2966_v57, %v2973_v0  ;;  %v388_v48 = vrot.slane %v386_v34, 5  ;;  %v3031_v10 = vld [vmem:[%s2833_s11 + $0x58] sm:$0xf]  ;;  %v3054_v34 = vld [vmem:[%s2833_s11 + $0x60] sm:$0xf] }
  0x2a   : > { %2616 = vmatprep.subr.bf16.mxu1 %v2798_v3  ;;  %v2137_v30 = vcombine.low %v341_v23, %v351_v24  ;;  %v365_v45 = vsel %vm2885_vm2, %v360_v31, %v364_v17  ;;  %v370_v46 = vrot.slane %v369_v33, 4  ;;  %v401_v50 = vshrl.u32 %v2995_v29, 16  ;;  %v3042_v24 = vld [vmem:[%s2833_s11 + $0x5c] sm:$0x1] }
  0x2b   : > { %2624 = vmatpush3.bf16.msra.mxu1 %v2798_v3  ;;  %v2727_v3 = vld [vmem:[%s3412_s1 + $0x98] sm:$0xff]   ;;  %v383_v54 = vor.u32 %v382_v39, %v379_v25  ;;  %v392_v55 = vrot.slane %v390_v40, 4  ;;  %v404_v57 = vshll.u32 %v2995_v29, 16  ;;  %v410_v58 = vshll.u32 %v3000_v35, 16 }
  0x2c   : > { %2570 = vmatpush3.bf16.msra.mxu0 %v2723_v36  ;;  %2617 = vmatprep.subr.bf16.mxu1 %v2808_v5  ;;  %v396_v36 = vshll.u32 %v2986_v20, 16  ;;  %v375_v60 = vsel %vm2885_vm2, %v370_v46, %v374_v19  ;;  %v403_v62 = vrot.slane %v401_v50, 4  ;;  %v425_v18 = vshrl.u32 %v3016_v53, 16 }
  0x2d   : > { %2571 = vmatprep.subr.bf16.mxu0 %v2726_v49  ;;  %v384_v2 = vrot.slane %v383_v54, 4  ;;  %v393_v4 = vor.u32 %v392_v55, %v388_v48  ;;  %v406_v6 = vrot.slane %v404_v57, 5  ;;  %v412_v22 = vrot.slane %v410_v58, 5  ;;  %v3068_v57 = vld [vmem:[%s2833_s11 + $0x68] sm:$0x1] }
  0x2e   : > { %2492 = vmatmul.mubr.bf16.gmra.mrb[4].mxu1 %v2137_v30  ;;  %v398_v59 = vrot.slane %v396_v36, 5  ;;  %v428_v25 = vshll.u32 %v3016_v53, 16  ;;  %v434_v28 = vshll.u32 %v3031_v10, 16  ;;  %v427_v31 = vrot.slane %v425_v18, 4 }
  0x2f   : > { %2540 = vmatmul.mubr.bf16.gmra.mrb[4].mxu0 %v2161_v41  ;;  %2625 = vmatpush3.bf16.msra.mxu1 %v2808_v5  ;;  %v414_v41 = vshrl.u32 %v3000_v35, 16  ;;  %v2138_v5 = vcombine.low %v365_v45, %v375_v60  ;;  %v389_v15 = vsel %vm2885_vm2, %v384_v2, %v388_v48  ;;  %v394_v16 = vrot.slane %v393_v4, 4  ;;  %v3057_v45 = vld [vmem:[%s2833_s11 + $0x64] sm:$0xf] }
  0x30   : > { %2572 = vmatpush3.bf16.msra.mxu0 %v2726_v49  ;;  %2543 = vmatprep.mubr.bf16.mxu0 %v2162_v12  ;;  %v420_v49 = vshll.u32 %v3010_v44, 16  ;;  %v2164_v12 = vcombine.low %v2995_v29, %v3000_v35  ;;  %v407_v17 = vor.u32 %v406_v6, %v403_v62  ;;  %v438_v33 = vshrl.u32 %v3031_v10, 16  ;;  %v1235_v62 = vld [vmem:[%s2833_s11] sm:$0xe] }
  0x31   : > { %2573 = vmatprep.subr.bf16.mxu0 %v2727_v3  ;;  %2618 = vmatprep.subr.bf16.mxu1 %v2818_v7  ;;  %v416_v1 = vrot.slane %v414_v41, 4  ;;  %v399_v29 = vsel %vm2885_vm2, %v394_v16, %v398_v59  ;;  %v430_v40 = vrot.slane %v428_v25, 5  ;;  %v436_v36 = vrot.slane %v434_v28, 5  ;;  %v3094_v25 = vld [vmem:[%s2833_s11 + $0x70] sm:$0xf] }
  0x32   : > { %2495 = vmatprep.mubr.bf16.mxu1 %v2138_v5  ;;  %v422_v23 = vrot.slane %v420_v49, 5  ;;  %v408_v30 = vrot.slane %v407_v17, 4  ;;  %v440_v48 = vrot.slane %v438_v33, 4  ;;  %v444_v50 = vshll.u32 %v3042_v24, 16 }
  0x33   : > { %2626 = vmatpush3.bf16.msra.mxu1 %v2818_v7  ;;  %v417_v19 = vor.u32 %v416_v1, %v412_v22  ;;  %v2731_v7 = vld [vmem:[%s3412_s1 + $0xa8] sm:$0xff]   ;;  %v2165_v54 = vcombine.low %v3016_v53, %v3031_v10  ;;  %v431_v59 = vor.u32 %v430_v40, %v427_v31  ;;  %v452_v60 = vshll.u32 %v3054_v34, 16 }
  0x34   : > { %2574 = vmatpush3.bf16.msra.mxu0 %v2727_v3  ;;  %2619 = vmatprep.subr.bf16.mxu1 %v2828_v9  ;;  %v2139_v3 = vcombine.low %v389_v15, %v399_v29  ;;  %v413_v46 = vsel %vm2885_vm2, %v408_v30, %v412_v22  ;;  %v441_v53 = vor.u32 %v440_v48, %v436_v36  ;;  %v446_v41 = vrot.slane %v444_v50, 5  ;;  %v3079_v22 = vld [vmem:[%s2833_s11 + $0x6c] sm:$0xf] }
  0x35   : > { %2575 = vmatprep.subr.bf16.mxu0 %v2730_v61  ;;  %v418_v39 = vrot.slane %v417_v19, 4  ;;  %v432_v5 = vrot.slane %v431_v59, 4  ;;  %v454_v4 = vrot.slane %v452_v60, 5  ;;  %v462_v6 = vshrl.u32 %v3057_v45, 16  ;;  %v1236_v40 = vld [vmem:[%s2833_s11 + $0xc] sm:$0xe] }
  0x36   : > { %2496 = vmatmul.mubr.bf16.gmra.mrb[8].mxu1 %v2139_v3  ;;  %v442_v1 = vrot.slane %v441_v53, 4  ;;  %v2182_v16 = vrot.slane %v1235_v62, 9  ;;  %v473_v30 = vshrl.u32 %v3079_v22, 16  ;;  %v476_v31 = vshll.u32 %v3079_v22, 16 }
  0x37   : > { %2544 = vmatmul.mubr.bf16.gmra.mrb[8].mxu0 %v2163_v37  ;;  %2627 = vmatpush3.bf16.msra.mxu1 %v2828_v9  ;;  %v423_v55 = vsel %vm2885_vm2, %v418_v39, %v422_v23  ;;  %v449_v37 = vshrl.u32 %v3054_v34, 16  ;;  %v2734_v9 = vld [vmem:[%s3412_s1 + $0xb0] sm:$0xff]   ;;  %v437_v17 = vsel %vm2885_vm2, %v432_v5, %v436_v36  ;;  %v464_v19 = vrot.slane %v462_v6, 4 }
  0x38   : > { %2576 = vmatpush3.bf16.msra.mxu0 %v2730_v61  ;;  %v2140_v58 = vcombine.low %v413_v46, %v423_v55  ;;  %2547 = vmatprep.mubr.bf16.mxu0 %v2164_v12  ;;  %v458_v61 = vshll.u32 %v3057_v45, 16  ;;  %v468_v12 = vshll.u32 %v3068_v57, 16  ;;  %v1288_v23 = vrot.slane %v2846_v13, 5 }
  0x39   : > { %2577 = vmatprep.subr.bf16.mxu0 %v2731_v7  ;;  %v451_v2 = vrot.slane %v449_v37, 4  ;;  %2620 = vmatprep.subr.bf16.mxu1 %v2841_v11  ;;  %v447_v28 = vsel %vm2885_vm2, %v442_v1, %v446_v41  ;;  %v475_v46 = vrot.slane %v473_v30, 4  ;;  %v478_v48 = vrot.slane %v476_v31, 5  ;;  %v3124_v41 = vld [vmem:[%s2833_s11 + $0x7c] sm:$0xf] }
  0x3a   : > { %2499 = vmatprep.mubr.bf16.mxu1 %v2140_v58  ;;  %v460_v49 = vrot.slane %v458_v61, 5  ;;  %v470_v29 = vrot.slane %v468_v12, 5  ;;  %v2141_v13 = vcombine.low %v437_v17, %v447_v28  ;;  %v1289_v39 = vsel %vm3085_vm5, %v2182_v16, %v1288_v23  ;;  %v3131_v1 = vld [vmem:[%s2833_s11 + $0x80] sm:$0x1] }
  0x3b   : > { %2628 = vmatpush3.bf16.msra.mxu1 %v2841_v11  ;;  %v455_v18 = vor.u32 %v454_v4, %v451_v2  ;;  %v2735_v11 = vld [vmem:[%s3412_s1 + $0xb8] sm:$0xff]   ;;  %v1290_v36 = vrot.slane %v1288_v23, 4  ;;  %v482_v50 = vshll.u32 %v3094_v25, 16  ;;  %v486_v37 = vshrl.u32 %v3094_v25, 16 }
  0x3c   : > { %2578 = vmatpush3.bf16.msra.mxu0 %v2731_v7  ;;  %2621 = vmatprep.subr.bf16.mxu1 %v2875_v32  ;;  %v3103_v7 = vld [vmem:[%s2833_s11 + $0x74] sm:$0x1]  ;;  %v465_v3 = vor.u32 %v464_v19, %v460_v49  ;;  %v2183_v53 = vrot.slane %v1236_v40, 9  ;;  %v1295_v14 = vrot.slane %v2864_v26, 5  ;;  %v506_v16 = vshll.u32 %v3124_v41, 16 }
  0x3d   : > { %2579 = vmatprep.subr.bf16.mxu0 %v2734_v9  ;;  %v456_v33 = vrot.slane %v455_v18, 4  ;;  %v492_v60 = vshll.u32 %v3103_v7, 16  ;;  %v1292_v62 = vsel %vm3085_vm5, %v1290_v36, %v1291_v21  ;;  %v484_v58 = vrot.slane %v482_v50, 5  ;;  %v1237_v18 = vld [vmem:[%s2833_s11 + $0x18] sm:$0xe] }
  0x3e   : > { %2500 = vmatmul.mubr.bf16.gmra.mrb[12].mxu1 %v2141_v13  ;;  %v466_v59 = vrot.slane %v465_v3, 4  ;;  %v2214_v61 = vcombine.low %v1289_v39, %v1292_v62  ;;  %v488_v5 = vrot.slane %v486_v37, 4  ;;  %v510_v17 = vshrl.u32 %v3124_v41, 16  ;;  %v3150_v39 = vld [vmem:[%s2833_s11 + $0x84] sm:$0xf] }
  0x3f   : > { %2548 = vmatmul.mubr.bf16.gmra.mrb[12].mxu0 %v2165_v54  ;;  %2629 = vmatpush3.bf16.msra.mxu1 %v2875_v32  ;;  %v461_v55 = vsel %vm2885_vm2, %v456_v33, %v460_v49  ;;  %v3117_v54 = vld [vmem:[%s2833_s11 + $0x78] sm:$0xf]  ;;  %v479_v32 = vor.u32 %v478_v48, %v475_v46  ;;  %v494_v2 = vrot.slane %v492_v60, 5  ;;  %v1296_v19 = vsel %vm3085_vm5, %v2183_v53, %v1295_v14  ;;  %v3155_v50 = vld [vmem:[%s2833_s11 + $0x88] sm:$0xf] }
  0x40   : > { %2580 = vmatpush3.bf16.msra.mxu0 %v2734_v9  ;;  %2622 = vmatprep.subr.bf16.mxu1 %v2904_v52  ;;  %v471_v9 = vsel %vm2885_vm2, %v466_v59, %v470_v29  ;;  %v497_v21 = vshrl.u32 %v3117_v54, 16  ;;  %v489_v49 = vor.u32 %v488_v5, %v484_v58  ;;  %v500_v12 = vshll.u32 %v3117_v54, 16  ;;  %v1238_v5 = vld [vmem:[%s2833_s11 + $0x24] sm:$0xe] }
  0x41   : > { %2581 = vmatprep.subr.bf16.mxu0 %v2735_v11  ;;  %v2142_v4 = vcombine.low %v461_v55, %v471_v9  ;;  %v480_v6 = vrot.slane %v479_v32, 4  ;;  %2583 = vmatprep.mubr.bf16.mxu0 %v2214_v61  ;;  %v508_v29 = vrot.slane %v506_v16, 5  ;;  %v512_v30 = vrot.slane %v510_v17, 4  ;;  %v3179_v17 = vld [vmem:[%s2833_s11 + $0x94] sm:$0xf] }
  0x42   : > { %v499_v23 = vrot.slane %v497_v21, 4  ;;  %v490_v28 = vrot.slane %v489_v49, 4  ;;  %v516_v13 = vshll.u32 %v3131_v1, 16  ;;  %v2184_v33 = vrot.slane %v1237_v18, 9 }
  0x43   : > { %2630 = vmatpush3.bf16.msra.mxu1 %v2904_v52  ;;  %2503 = vmatprep.mubr.bf16.mxu1 %v2142_v4  ;;  %v485_v26 = vsel %vm2885_vm2, %v480_v6, %v484_v58  ;;  %v1297_v52 = vrot.slane %v1295_v14, 4  ;;  %v1302_v3 = vrot.slane %v2898_v51, 5  ;;  %v513_v48 = vor.u32 %v512_v30, %v508_v29  ;;  %v3176_v14 = vld [vmem:[%s2833_s11 + $0x90] sm:$0xf] }
  0x44   : > { %2582 = vmatpush3.bf16.msra.mxu0 %v2735_v11  ;;  %v502_v11 = vrot.slane %v500_v12, 5  ;;  %v495_v40 = vsel %vm2885_vm2, %v490_v28, %v494_v2  ;;  %v1305_v62 = vrot.slane %v2909_v56, 5  ;;  %v521_v32 = vshrl.u32 %v3150_v39, 16 }
  0x45   : > { %v1299_v31 = vsel %vm3085_vm5, %v1297_v52, %v1298_v42  ;;  %v2143_v55 = vcombine.low %v485_v26, %v495_v40  ;;  %v518_v42 = vrot.slane %v516_v13, 5  ;;  %v1303_v59 = vsel %vm3085_vm5, %v2184_v33, %v1302_v3 }
  0x46   : > { %v2215_v36 = vcombine.low %v1296_v19, %v1299_v31  ;;  %v503_v46 = vor.u32 %v502_v11, %v499_v23  ;;  %v1304_v37 = vrot.slane %v1302_v3, 4  ;;  %v514_v60 = vrot.slane %v513_v48, 4  ;;  %v3184_v11 = vld [vmem:[%s2833_s11 + $0x98] sm:$0x1] }
  0x47   : > { %2504 = vmatmul.mubr.bf16.gmra.mrb[16].mxu1 %v2143_v55  ;;  %v524_v58 = vshll.u32 %v3150_v39, 16  ;;  %v530_v53 = vshll.u32 %v3155_v50, 16  ;;  %v534_v9 = vshrl.u32 %v3155_v50, 16  ;;  %v540_v61 = vshll.u32 %v3158_v27, 16 }
  0x48   : > { %2584 = vmatmul.mubr.bf16.vlgmr.msra.gmra.mrb[0].mxu0 %v2215_v36  ;;  %v504_v51 = vrot.slane %v503_v46, 4  ;;  %v519_v4 = vsel %vm2885_vm2, %v514_v60, %v518_v42  ;;  %v1306_v56 = vsel %vm3085_vm5, %v1304_v37, %v1305_v62  ;;  %v523_v6 = vrot.slane %v521_v32, 4  ;;  %v1239_v46 = vld [vmem:[%s2833_s11 + $0x30] sm:$0xe]  ;;  %v3199_v32 = vld [vmem:[%s2833_s11 + $0x9c] sm:$0xf] }
  0x49   : > { %v2216_v49 = vcombine.low %v1303_v59, %v1306_v56  ;;  %v526_v12 = vrot.slane %v524_v58, 5  ;;  %v532_v16 = vrot.slane %v530_v53, 5  ;;  %v536_v18 = vrot.slane %v534_v9, 4 }
  0x4a   : > { %v509_v2 = vsel %vm2885_vm2, %v504_v51, %v508_v29  ;;  %v542_v26 = vrot.slane %v540_v61, 5  ;;  %v2185_v19 = vrot.slane %v1238_v5, 9  ;;  %v1309_v52 = vrot.slane %v2921_v63, 5  ;;  %v3205_v5 = vld [vmem:[%s2833_s11 + $0xa0] sm:$0xf] }
  0x4b   : > { %v2144_v21 = vcombine.low %v509_v2, %v519_v4  ;;  %2587 = vmatprep.mubr.bf16.mxu0 %v2216_v49  ;;  %v527_v23 = vor.u32 %v526_v12, %v523_v6  ;;  %v1312_v28 = vrot.slane %v2924_v8, 5  ;;  %v545_v29 = vshrl.u32 %v3176_v14, 16 }
  0x4c   : > { %v548_v30 = vshll.u32 %v3176_v14, 16  ;;  %v537_v31 = vor.u32 %v536_v18, %v532_v16  ;;  %v1310_v13 = vsel %vm3085_vm5, %v2185_v19, %v1309_v52  ;;  %v1311_v33 = vrot.slane %v1309_v52, 4  ;;  %v1240_v52 = vld [vmem:[%s2833_s11 + $0x3c] sm:$0xe] }
  0x4d   : > { %2507 = vmatprep.mubr.bf16.mxu1 %v2144_v21  ;;  %v554_v63 = vshll.u32 %v3179_v17, 16  ;;  %v528_v3 = vrot.slane %v527_v23, 4  ;;  %v547_v40 = vrot.slane %v545_v29, 4  ;;  %v558_v8 = vshrl.u32 %v3179_v17, 16  ;;  %v3209_v21 = vld [vmem:[%s2833_s11 + $0xa4] sm:$0x1] }
  0x4e   : > { %v550_v36 = vrot.slane %v548_v30, 5  ;;  %v538_v48 = vrot.slane %v537_v31, 4  ;;  %v1313_v55 = vsel %vm3085_vm5, %v1311_v33, %v1312_v28  ;;  %v564_v59 = vshll.u32 %v3184_v11, 16  ;;  %v3224_v31 = vld [vmem:[%s2833_s11 + $0xa8] sm:$0xf] }
  0x4f   : > { %v556_v42 = vrot.slane %v554_v63, 5  ;;  %v533_v37 = vsel %vm2885_vm2, %v528_v3, %v532_v16  ;;  %v2217_v51 = vcombine.low %v1310_v13, %v1313_v55  ;;  %v560_v62 = vrot.slane %v558_v8, 4 }
  0x50   : > { %v551_v60 = vor.u32 %v550_v36, %v547_v40  ;;  %v543_v58 = vsel %vm2885_vm2, %v538_v48, %v542_v26  ;;  %v566_v53 = vrot.slane %v564_v59, 5  ;;  %v2186_v9 = vrot.slane %v1239_v46, 9  ;;  %v3229_v40 = vld [vmem:[%s2833_s11 + $0xac] sm:$0xf] }
  0x51   : > { %v1316_v61 = vrot.slane %v2954_v43, 5  ;;  %v2145_v2 = vcombine.low %v533_v37, %v543_v58  ;;  %2588 = vmatmul.mubr.bf16.gmra.mrb[4].mxu0 %v2217_v51  ;;  %v561_v56 = vor.u32 %v560_v62, %v556_v42  ;;  %v1319_v6 = vrot.slane %v2957_v47, 5  ;;  %v3234_v37 = vld [vmem:[%s2833_s11 + $0xb0] sm:$0x1] }
  0x52   : > { %v552_v4 = vrot.slane %v551_v60, 4  ;;  %v569_v16 = vshrl.u32 %v3199_v32, 16  ;;  %v572_v43 = vshll.u32 %v3199_v32, 16  ;;  %v578_v19 = vshll.u32 %v3205_v5, 16 }
  0x53   : > { %v1317_v49 = vsel %vm3085_vm5, %v2186_v9, %v1316_v61  ;;  %v1318_v12 = vrot.slane %v1316_v61, 4  ;;  %2508 = vmatmul.mubr.bf16.gmra.mrb[20].mxu1 %v2145_v2  ;;  %v562_v26 = vrot.slane %v561_v56, 4  ;;  %v582_v47 = vshrl.u32 %v3205_v5, 16  ;;  %v1241_v9 = vld [vmem:[%s2833_s11 + $0x48] sm:$0xe] }
  0x54   : > { %v557_v18 = vsel %vm2885_vm2, %v552_v4, %v556_v42  ;;  %v571_v28 = vrot.slane %v569_v16, 4  ;;  %v574_v29 = vrot.slane %v572_v43, 5  ;;  %v588_v30 = vshll.u32 %v3209_v21, 16 }
  0x55   : > { %v1320_v23 = vsel %vm3085_vm5, %v1318_v12, %v1319_v6  ;;  %v567_v13 = vsel %vm2885_vm2, %v562_v26, %v566_v53  ;;  %v580_v63 = vrot.slane %v578_v19, 5  ;;  %v584_v3 = vrot.slane %v582_v47, 4  ;;  %v3246_v12 = vld [vmem:[%s2833_s11 + $0xb4] sm:$0xf]  ;;  %v3254_v19 = vld [vmem:[%s2833_s11 + $0xb8] sm:$0xf] }
  0x56   : > { %v2218_v33 = vcombine.low %v1317_v49, %v1320_v23  ;;  %v2146_v36 = vcombine.low %v557_v18, %v567_v13  ;;  %v575_v8 = vor.u32 %v574_v29, %v571_v28  ;;  %v590_v46 = vrot.slane %v588_v30, 5 }
  0x57   : > { %v2187_v48 = vrot.slane %v1240_v52, 9  ;;  %v585_v55 = vor.u32 %v584_v3, %v580_v63  ;;  %v1323_v42 = vrot.slane %v2973_v0, 5  ;;  %v1326_v59 = vrot.slane %v2986_v20, 5 }
  0x58   : > { %2591 = vmatprep.mubr.bf16.mxu0 %v2218_v33  ;;  %v593_v51 = vshrl.u32 %v3224_v31, 16  ;;  %2511 = vmatprep.mubr.bf16.mxu1 %v2146_v36  ;;  %v576_v60 = vrot.slane %v575_v8, 4  ;;  %v596_v62 = vshll.u32 %v3224_v31, 16  ;;  %v602_v58 = vshll.u32 %v3229_v40, 16  ;;  %v3260_v36 = vld [vmem:[%s2833_s11 + $0xbc] sm:$0x1] }
  0x59   : > { %v606_v53 = vshrl.u32 %v3229_v40, 16  ;;  %v586_v61 = vrot.slane %v585_v55, 4  ;;  %v1324_v0 = vsel %vm3085_vm5, %v2187_v48, %v1323_v42  ;;  %v1325_v20 = vrot.slane %v1323_v42, 4  ;;  %v1242_v42 = vld [vmem:[%s2833_s11 + $0x54] sm:$0xe] }
  0x5a   : > { %v595_v2 = vrot.slane %v593_v51, 4  ;;  %v581_v4 = vsel %vm2885_vm2, %v576_v60, %v580_v63  ;;  %v598_v56 = vrot.slane %v596_v62, 5  ;;  %v604_v6 = vrot.slane %v602_v58, 5 }
  0x5b   : > { %v608_v49 = vrot.slane %v606_v53, 4  ;;  %v591_v16 = vsel %vm2885_vm2, %v586_v61, %v590_v46  ;;  %v1327_v43 = vsel %vm3085_vm5, %v1325_v20, %v1326_v59  ;;  %v612_v18 = vshll.u32 %v3234_v37, 16 }
  0x5c   : > { %v2188_v26 = vrot.slane %v1241_v9, 9  ;;  %v2147_v47 = vcombine.low %v581_v4, %v591_v16  ;;  %v2219_v52 = vcombine.low %v1324_v0, %v1327_v43  ;;  %v599_v23 = vor.u32 %v598_v56, %v595_v2  ;;  %v1243_v0 = vld [vmem:[%s2833_s11 + $0x60] sm:$0xe]  ;;  %v1244_v43 = vld [vmem:[%s2833_s11 + $0x6c] sm:$0xe] }
  0x5d   : > { %v609_v28 = vor.u32 %v608_v49, %v604_v6  ;;  %v614_v29 = vrot.slane %v612_v18, 5  ;;  %v1330_v30 = vrot.slane %v3000_v35, 5  ;;  %v1333_v13 = vrot.slane %v3010_v44, 5 }
  0x5e   : > { %v617_v33 = vshrl.u32 %v3246_v12, 16  ;;  %2512 = vmatmul.mubr.bf16.gmra.mrb[24].mxu1 %v2147_v47  ;;  %2592 = vmatmul.mubr.bf16.gmra.mrb[8].mxu0 %v2219_v52  ;;  %v600_v63 = vrot.slane %v599_v23, 4  ;;  %v620_v8 = vshll.u32 %v3246_v12, 16  ;;  %v626_v46 = vshll.u32 %v3254_v19, 16 }
  0x5f   : > { %v610_v3 = vrot.slane %v609_v28, 4  ;;  %v1331_v48 = vsel %vm3085_vm5, %v2188_v26, %v1330_v30  ;;  %v1332_v55 = vrot.slane %v1330_v30, 4  ;;  %v630_v44 = vshrl.u32 %v3254_v19, 16 }
  0x60   : > { %v619_v35 = vrot.slane %v617_v33, 4  ;;  %v605_v59 = vsel %vm2885_vm2, %v600_v63, %v604_v6  ;;  %v622_v60 = vrot.slane %v620_v8, 5  ;;  %v628_v62 = vrot.slane %v626_v46, 5  ;;  %v1245_v63 = vld [vmem:[%s2833_s11 + $0x78] sm:$0xe] }
  0x61   : > { %v615_v51 = vsel %vm2885_vm2, %v610_v3, %v614_v29  ;;  %v1334_v53 = vsel %vm3085_vm5, %v1332_v55, %v1333_v13  ;;  %v632_v9 = vrot.slane %v630_v44, 4  ;;  %v636_v61 = vshll.u32 %v3260_v36, 16 }
  0x62   : > { %v2148_v58 = vcombine.low %v605_v59, %v615_v51  ;;  %v2220_v20 = vcombine.low %v1331_v48, %v1334_v53  ;;  %v623_v2 = vor.u32 %v622_v60, %v619_v35  ;;  %v2189_v4 = vrot.slane %v1242_v42, 9  ;;  %v1246_v60 = vld [vmem:[%s2833_s11 + $0x84] sm:$0xe]  ;;  %v1248_v53 = vld [vmem:[%s2833_s11 + $0x9c] sm:$0xe] }
  0x63   : > { %v1337_v56 = vrot.slane %v3031_v10, 5  ;;  %v633_v6 = vor.u32 %v632_v9, %v628_v62  ;;  %v638_v49 = vrot.slane %v636_v61, 5  ;;  %v1340_v16 = vrot.slane %v3042_v24, 5 }
  0x64   : > { %2515 = vmatprep.mubr.bf16.mxu1 %v2148_v58  ;;  %2595 = vmatprep.mubr.bf16.mxu0 %v2220_v20  ;;  %v624_v18 = vrot.slane %v623_v2, 4  ;;  %v2190_v52 = vrot.slane %v1243_v0, 9  ;;  %v2166_v28 = vcombine.low %v3054_v34, %v3057_v45  ;;  %v1344_v10 = vrot.slane %v3057_v45, 5 }
  0x65   : > { %v1338_v26 = vsel %vm3085_vm5, %v2189_v4, %v1337_v56  ;;  %v1339_v47 = vrot.slane %v1337_v56, 4  ;;  %v634_v23 = vrot.slane %v633_v6, 4  ;;  %v1347_v29 = vrot.slane %v3068_v57, 5  ;;  %v1249_v6 = vld [vmem:[%s2833_s11 + $0xa8] sm:$0xe] }
  0x66   : > { %v629_v30 = vsel %vm2885_vm2, %v624_v18, %v628_v62  ;;  %v2191_v13 = vrot.slane %v1244_v43, 9  ;;  %v1351_v33 = vrot.slane %v3094_v25, 5  ;;  %v1345_v34 = vsel %vm3085_vm5, %v2190_v52, %v1344_v10  ;;  %v1250_v52 = vld [vmem:[%s2833_s11 + $0xb4] sm:$0xe] }
  0x67   : > { %v1341_v24 = vsel %vm3085_vm5, %v1339_v47, %v1340_v16  ;;  %v639_v3 = vsel %vm2885_vm2, %v634_v23, %v638_v49  ;;  %v1346_v45 = vrot.slane %v1344_v10, 4  ;;  %v1354_v48 = vrot.slane %v3103_v7, 5  ;;  %v1247_v7 = vld [vmem:[%s2833_s11 + $0x90] sm:$0xe]  ;;  %s2115_s11 = sshll.u32 %s2778_s13, 5  ;;  %s3424_s13 = smov (!%p184_p5, %s2778_s13), 1 }
  0x68   : > { %v2221_v8 = vcombine.low %v1338_v26, %v1341_v24  ;;  %v2149_v57 = vcombine.low %v629_v30, %v639_v3  ;;  %v1353_v46 = vrot.slane %v1351_v33, 4  ;;  %v1352_v38 = vsel %vm3085_vm5, %v2191_v13, %v1351_v33  ;;  %p179_p4 = scmp.lt.s32.totalorder %s2115_s11, 63  ;;  %s2117_s22 = sshll.u32 %s3424_s13, 1 }
  0x69   : > { %v1348_v55 = vsel %vm3085_vm5, %v1346_v45, %v1347_v29  ;;  %v2192_v35 = vrot.slane %v1245_v63, 9  ;;  %v1358_v44 = vrot.slane %v3124_v41, 5  ;;  %v1361_v51 = vrot.slane %v3131_v1, 5  ;;  %s187_s25 = scalar_lea.vmem %s3414_s3, %s2117_s22 }
  0x6a   : > { %2596 = vmatmul.mubr.bf16.gmra.mrb[12].mxu0 %v2221_v8  ;;  %2516 = vmatmul.mubr.bf16.gmra.mrb[28].mxu1 %v2149_v57  ;;  %v2222_v42 = vcombine.low %v1345_v34, %v1348_v55  ;;  %v1355_v59 = vsel %vm3085_vm5, %v1353_v46, %v1354_v48  ;;  %v2167_v9 = vcombine.low %v3079_v22, %v3094_v25  ;;  %v1365_v20 = vrot.slane %v3155_v50, 5  ;;  %s3422_s11 = smov (!%p179_p4, %s2115_s11), 63 }
  0x6b   : > { %2551 = vmatprep.mubr.bf16.mxu1 %v2166_v28  ;;  %v1359_v62 = vsel %vm3085_vm5, %v2192_v35, %v1358_v44  ;;  %v1360_v58 = vrot.slane %v1358_v44, 4  ;;  %v2223_v61 = vcombine.low %v1352_v38, %v1355_v59  ;;  %v2168_v0 = vcombine.low %v3117_v54, %v3124_v41  ;;  %s2116_s18 = sshll.u32 %s3422_s11, 2 }
  0x6c   : > { %2599 = vmatprep.mubr.bf16.mxu0 %v2222_v42  ;;  %v2193_v2 = vrot.slane %v1246_v60, 9  ;;  %v2194_v4 = vrot.slane %v1247_v7, 9  ;;  %v1372_v56 = vrot.slane %v3179_v17, 5  ;;  %v1367_v16 = vrot.slane %v1365_v20, 4  ;;  %s3377_s21 = scalar_lea.vmem %s3413_s2, %s2116_s18 }
  0x6d   : > { %v1362_v1 = vsel %vm3085_vm5, %v1360_v58, %v1361_v51  ;;  %v1368_v43 = vrot.slane %v3158_v27, 5  ;;  %v2195_v22 = vrot.slane %v1248_v53, 9  ;;  %v1375_v18 = vrot.slane %v3184_v11, 5 }
  0x6e   : > { %v2224_v49 = vcombine.low %v1359_v62, %v1362_v1  ;;  %v1374_v25 = vrot.slane %v1372_v56, 4  ;;  %v1379_v54 = vrot.slane %v3205_v5, 5  ;;  %v1382_v41 = vrot.slane %v3209_v21, 5 }
  0x6f   : > { %v2196_v26 = vrot.slane %v1249_v6, 9  ;;  %v1386_v47 = vrot.slane %v3229_v40, 5  ;;  %v1366_v23 = vsel %vm3085_vm5, %v2193_v2, %v1365_v20  ;;  %v1373_v28 = vsel %vm3085_vm5, %v2194_v4, %v1372_v56 }
  0x70   : > { %v1380_v27 = vsel %vm3085_vm5, %v2195_v22, %v1379_v54  ;;  %v1381_v10 = vrot.slane %v1379_v54, 4  ;;  %v1369_v11 = vsel %vm3085_vm5, %v1367_v16, %v1368_v43  ;;  %v1389_v30 = vrot.slane %v3234_v37, 5 }
  0x71   : > { %v1387_v21 = vsel %vm3085_vm5, %v2196_v26, %v1386_v47  ;;  %v1388_v29 = vrot.slane %v1386_v47, 4  ;;  %v1376_v24 = vsel %vm3085_vm5, %v1374_v25, %v1375_v18  ;;  %v2197_v33 = vrot.slane %v1250_v52, 9 }
  0x72   : > { %2600 = vmatmul.mubr.bf16.gmra.mrb[16].mxu0 %v2223_v61  ;;  %2552 = vmatmul.mubr.bf16.vlgmr.msra.gmra.mrb[16].mxu1 %v2167_v9  ;;  %v1383_v13 = vsel %vm3085_vm5, %v1381_v10, %v1382_v41  ;;  %v1393_v63 = vrot.slane %v3254_v19, 5  ;;  %v1396_v34 = vrot.slane %v3260_v36, 5  ;;  %v2225_v45 = vcombine.low %v1366_v23, %v1369_v11 }
  0x73   : > { %2603 = vmatprep.mubr.bf16.mxu0 %v2224_v49  ;;  %2555 = vmatprep.mubr.bf16.mxu1 %v2168_v0  ;;  %v2227_v3 = vcombine.low %v1380_v27, %v1383_v13  ;;  %v1390_v8 = vsel %vm3085_vm5, %v1388_v29, %v1389_v30  ;;  %v2169_v48 = vcombine.low %v3150_v39, %v3155_v50 }
  0x74   : > { %v2228_v57 = vcombine.low %v1387_v21, %v1390_v8  ;;  %v1394_v37 = vsel %vm3085_vm5, %v2197_v33, %v1393_v63  ;;  %v1395_v46 = vrot.slane %v1393_v63, 4  ;;  %v2226_v55 = vcombine.low %v1373_v28, %v1376_v24 }
  0x75   : > { %v2170_v38 = vcombine.low %v3176_v14, %v3179_v17  ;;  %v2171_v36 = vcombine.low %v3199_v32, %v3205_v5  ;;  %v2172_v42 = vcombine.low %v3224_v31, %v3229_v40  ;;  %v2173_v39 = vcombine.low %v3246_v12, %v3254_v19 }
  0x76   : > { %v1397_v35 = vsel %vm3085_vm5, %v1395_v46, %v1396_v34 }
  0x77   : > { %v2229_v44 = vcombine.low %v1394_v37, %v1397_v35 }
  0x7a   : > { %2604 = vmatmul.mubr.bf16.gmra.mrb[20].mxu0 %v2225_v45  ;;  %2556 = vmatmul.mubr.bf16.gmra.mrb[20].mxu1 %v2169_v48 }
  0x7b   : > { %2607 = vmatprep.mubr.bf16.mxu0 %v2226_v55  ;;  %2559 = vmatprep.mubr.bf16.mxu1 %v2170_v38 }
  0x82   : > { %2608 = vmatmul.mubr.bf16.gmra.mrb[24].mxu0 %v2227_v3  ;;  %2560 = vmatmul.mubr.bf16.gmra.mrb[24].mxu1 %v2171_v36 }
  0x83   : > { %2611 = vmatprep.mubr.bf16.mxu0 %v2228_v57  ;;  %2563 = vmatprep.mubr.bf16.mxu1 %v2172_v42 }
  0x8a   : > { %2612 = vmatmul.mubr.bf16.gmra.mrb[28].mxu0 %v2229_v44  ;;  %2564 = vmatmul.mubr.bf16.gmra.mrb[28].mxu1 %v2173_v39 }
  0xf9   : > { %v2489_v15 = vpop.f32.mrb[0].mxu1 }
  0xfa   : > { %v803_v50 = vpop.f32.mrb[1].mxu1 }
  0xfb   : > { %v2490_v14 = vpop.f32.mrb[2].mxu1 }
  0xfc   : > { %v806_v17 = vpop.f32.mrb[3].mxu1 }
 0x101   : > { %v2493_v59 = vpop.f32.mrb[4].mxu1 }
 0x102   : > { %v819_v51 = vpop.f32.mrb[5].mxu1 }
 0x103   : > { %v2494_v32 = vpop.f32.mrb[6].mxu1 }
 0x104   : > { %v822_v5 = vpop.f32.mrb[7].mxu1 }
 0x109   : > { %v3357_v60 = vpop.f32.mrb[8].mxu1 }
 0x10a   : > { %v3359_v31 = vpop.f32.mrb[9].mxu1 }
 0x10b   : > { %v3361_v40 = vpop.f32.mrb[10].mxu1 }
 0x10c   : > { %v3363_v7 = vpop.f32.mrb[11].mxu1 }
 0x111   : > { %v3365_v12 = vpop.f32.mrb[12].mxu1 }
 0x112   : > { %v3368_v19 = vpop.f32.mrb[13].mxu1 }
 0x113   : > { %v3370_v62 = vpop.f32.mrb[14].mxu1 }
 0x114   : > { %v3372_v58 = vpop.f32.mrb[15].mxu1 }
 0x11b   : > { %v2585_v53 = vpop.f32.mrb[0].mxu0 }
 0x11c   : > { %v2631_v9 = vadd.f32 %v2585_v53, %v2489_v15  ;;  %v1561_v61 = vpop.f32.mrb[1].mxu0 }
 0x11d   : > { %v2632_v0 = vadd.f32 %v1561_v61, %v803_v50  ;;  %v2586_v20 = vpop.f32.mrb[2].mxu0 }
 0x11e   : > { %v2633_v1 = vadd.f32 %v2586_v20, %v2490_v14  ;;  %v1564_v2 = vpop.f32.mrb[3].mxu0 }
 0x11f   : > { %v2634_v4 = vadd.f32 %v1564_v2, %v806_v17 }
 0x120   : > { %v1721_v56 = vpack.c.bf16 %v2633_v1, %v2631_v9 }
 0x121   : > { %v1720_v6 = vpack.c.bf16 %v2634_v4, %v2632_v0 }
 0x122   : > { %2384 = vst [vmem:[%s3377_s21 + $0x8] sm:$0xff] %v1721_v56   ;;  %v1882_v49 = vunpack.c.l.bf16 %v1721_v56  ;;  %v1883_v22 = vunpack.c.h.bf16 %v1721_v56 }
 0x123   : > { %2308 = vst [vmem:[%s3377_s21] sm:$0xff] %v1720_v6   ;;  %v1880_v16 = vunpack.c.l.bf16 %v1720_v6  ;;  %v1881_v43 = vunpack.c.h.bf16 %v1720_v6 }
 0x124   : > { %v2589_v41 = vpop.f32.mrb[4].mxu0  ;;  %v1951_v26 = vmul.f32 %v1882_v49, %v1882_v49  ;;  %v1952_v11 = vmul.f32 %v1883_v22, %v1883_v22 }
 0x125   : > { %v1912_v25 = vadd.f32 %v1881_v43, %v1880_v16  ;;  %v1949_v18 = vmul.f32 %v1880_v16, %v1880_v16  ;;  %v1950_v54 = vmul.f32 %v1881_v43, %v1881_v43  ;;  %v2635_v23 = vadd.f32 %v2589_v41, %v2493_v59  ;;  %v1577_v28 = vpop.f32.mrb[5].mxu0 }
 0x126   : > { %v2636_v27 = vadd.f32 %v1577_v28, %v819_v51  ;;  %v2590_v10 = vpop.f32.mrb[6].mxu0 }
 0x127   : > { %v1913_v47 = vadd.f32 %v1912_v25, %v1882_v49  ;;  %v1981_v52 = vadd.f32 %v1950_v54, %v1949_v18  ;;  %v2637_v29 = vadd.f32 %v2590_v10, %v2494_v32  ;;  %v1580_v30 = vpop.f32.mrb[7].mxu0 }
 0x128   : > { %v2638_v13 = vadd.f32 %v1580_v30, %v822_v5 }
 0x129   : > { %v1982_v21 = vadd.f32 %v1981_v52, %v1951_v26  ;;  %v1914_v24 = vadd.f32 %v1913_v47, %v1883_v22  ;;  %v1723_v33 = vpack.c.bf16 %v2637_v29, %v2635_v23 }
 0x12a   : > { %v1722_v3 = vpack.c.bf16 %v2638_v13, %v2636_v27 }
 0x12b   : > { %v1983_v63 = vadd.f32 %v1982_v21, %v1952_v11  ;;  %2386 = vst [vmem:[%s3377_s21 + $0x18] sm:$0xff] %v1723_v33   ;;  %v1886_v45 = vunpack.c.l.bf16 %v1723_v33  ;;  %v1887_v46 = vunpack.c.h.bf16 %v1723_v33 }
 0x12c   : > { %2385 = vst [vmem:[%s3377_s21 + $0x10] sm:$0xff] %v1722_v3   ;;  %v1884_v8 = vunpack.c.l.bf16 %v1722_v3  ;;  %v1885_v34 = vunpack.c.h.bf16 %v1722_v3 }
 0x12d   : > { %v1955_v44 = vmul.f32 %v1886_v45, %v1886_v45  ;;  %v1956_v17 = vmul.f32 %v1887_v46, %v1887_v46 }
 0x12e   : > { %v1915_v57 = vadd.f32 %v1914_v24, %v1884_v8  ;;  %v1953_v37 = vmul.f32 %v1884_v8, %v1884_v8  ;;  %v1954_v55 = vmul.f32 %v1885_v34, %v1885_v34 }
 0x130   : > { %v1916_v48 = vadd.f32 %v1915_v57, %v1885_v34  ;;  %v1984_v38 = vadd.f32 %v1983_v63, %v1953_v37 }
 0x131   : > { %v2593_v35 = vpop.f32.mrb[8].mxu0 }
 0x132   : > { %v1917_v36 = vadd.f32 %v1916_v48, %v1886_v45  ;;  %v1985_v42 = vadd.f32 %v1984_v38, %v1954_v55  ;;  %v2639_v39 = vadd.f32 %v2593_v35, %v3357_v60  ;;  %v1593_v15 = vpop.f32.mrb[9].mxu0 }
 0x133   : > { %v2640_v50 = vadd.f32 %v1593_v15, %v3359_v31  ;;  %v2594_v14 = vpop.f32.mrb[10].mxu0 }
 0x134   : > { %v1986_v59 = vadd.f32 %v1985_v42, %v1955_v44  ;;  %v2641_v51 = vadd.f32 %v2594_v14, %v3361_v40  ;;  %v1596_v32 = vpop.f32.mrb[11].mxu0  ;;  %v1918_v5 = vadd.f32 %v1917_v36, %v1887_v46 }
 0x135   : > { %v2642_v53 = vadd.f32 %v1596_v32, %v3363_v7 }
 0x136   : > { %v1725_v9 = vpack.c.bf16 %v2641_v51, %v2639_v39  ;;  %v1987_v61 = vadd.f32 %v1986_v59, %v1956_v17 }
 0x137   : > { %v1724_v0 = vpack.c.bf16 %v2642_v53, %v2640_v50 }
 0x138   : > { %2388 = vst [vmem:[%s3377_s21 + $0x28] sm:$0xff] %v1725_v9   ;;  %v1890_v60 = vunpack.c.l.bf16 %v1725_v9  ;;  %v1891_v31 = vunpack.c.h.bf16 %v1725_v9 }
 0x139   : > { %2387 = vst [vmem:[%s3377_s21 + $0x20] sm:$0xff] %v1724_v0   ;;  %v1888_v20 = vunpack.c.l.bf16 %v1724_v0  ;;  %v1889_v1 = vunpack.c.h.bf16 %v1724_v0 }
 0x13a   : > { %v1959_v25 = vmul.f32 %v1890_v60, %v1890_v60  ;;  %v1960_v52 = vmul.f32 %v1891_v31, %v1891_v31 }
 0x13b   : > { %v1919_v2 = vadd.f32 %v1918_v5, %v1888_v20  ;;  %v1957_v4 = vmul.f32 %v1888_v20, %v1888_v20  ;;  %v1958_v49 = vmul.f32 %v1889_v1, %v1889_v1 }
 0x13d   : > { %v2597_v56 = vpop.f32.mrb[12].mxu0  ;;  %v1920_v6 = vadd.f32 %v1919_v2, %v1889_v1  ;;  %v1988_v16 = vadd.f32 %v1987_v61, %v1957_v4 }
 0x13e   : > { %v2643_v40 = vadd.f32 %v2597_v56, %v3365_v12  ;;  %v1609_v43 = vpop.f32.mrb[13].mxu0 }
 0x13f   : > { %v2644_v7 = vadd.f32 %v1609_v43, %v3368_v19  ;;  %v2598_v22 = vpop.f32.mrb[14].mxu0  ;;  %v1921_v18 = vadd.f32 %v1920_v6, %v1890_v60  ;;  %v1989_v54 = vadd.f32 %v1988_v16, %v1958_v49 }
 0x140   : > { %v2645_v41 = vadd.f32 %v2598_v22, %v3370_v62  ;;  %v1612_v26 = vpop.f32.mrb[15].mxu0 }
 0x141   : > { %v2646_v47 = vadd.f32 %v1612_v26, %v3372_v58  ;;  %v1990_v23 = vadd.f32 %v1989_v54, %v1959_v25  ;;  %v1922_v27 = vadd.f32 %v1921_v18, %v1891_v31 }
 0x142   : > { %v1727_v28 = vpack.c.bf16 %v2645_v41, %v2643_v40 }
 0x143   : > { %v1726_v10 = vpack.c.bf16 %v2646_v47, %v2644_v7  ;;  %v1991_v12 = vadd.f32 %v1990_v23, %v1960_v52 }
 0x144   : > { %2390 = vst [vmem:[%s3377_s21 + $0x38] sm:$0xff] %v1727_v28   ;;  %v1894_v24 = vunpack.c.l.bf16 %v1727_v28  ;;  %v1895_v58 = vunpack.c.h.bf16 %v1727_v28 }
 0x145   : > { %2389 = vst [vmem:[%s3377_s21 + $0x30] sm:$0xff] %v1726_v10   ;;  %v1892_v11 = vunpack.c.l.bf16 %v1726_v10  ;;  %v1893_v21 = vunpack.c.h.bf16 %v1726_v10  ;;  %v2601_v19 = vpop.f32.mrb[16].mxu0  ;;  %v2553_v29 = vpop.f32.mrb[16].mxu1 }
 0x146   : > { %v1625_v30 = vpop.f32.mrb[17].mxu0  ;;  %v2647_v62 = vadd.f32 %v2601_v19, %v2553_v29  ;;  %v1172_v63 = vpop.f32.mrb[17].mxu1  ;;  %v1963_v35 = vmul.f32 %v1894_v24, %v1894_v24  ;;  %v1964_v15 = vmul.f32 %v1895_v58, %v1895_v58 }
 0x147   : > { %v1923_v13 = vadd.f32 %v1922_v27, %v1892_v11  ;;  %v1961_v33 = vmul.f32 %v1892_v11, %v1892_v11  ;;  %v2602_v3 = vpop.f32.mrb[18].mxu0  ;;  %v2648_v8 = vadd.f32 %v1625_v30, %v1172_v63  ;;  %v2554_v34 = vpop.f32.mrb[18].mxu1  ;;  %v1962_v37 = vmul.f32 %v1893_v21, %v1893_v21 }
 0x148   : > { %v1628_v45 = vpop.f32.mrb[19].mxu0  ;;  %v2649_v48 = vadd.f32 %v2602_v3, %v2554_v34  ;;  %v1175_v55 = vpop.f32.mrb[19].mxu1 }
 0x149   : > { %v1924_v57 = vadd.f32 %v1923_v13, %v1893_v21  ;;  %v1992_v46 = vadd.f32 %v1991_v12, %v1961_v33  ;;  %v2650_v38 = vadd.f32 %v1628_v45, %v1175_v55 }
 0x14a   : > { %v1729_v42 = vpack.c.bf16 %v2649_v48, %v2647_v62 }
 0x14b   : > { %v1925_v44 = vadd.f32 %v1924_v57, %v1894_v24  ;;  %v1993_v36 = vadd.f32 %v1992_v46, %v1962_v37  ;;  %v1728_v39 = vpack.c.bf16 %v2650_v38, %v2648_v8 }
 0x14c   : > { %2392 = vst [vmem:[%s3377_s21 + $0x48] sm:$0xff] %v1729_v42   ;;  %v1898_v20 = vunpack.c.l.bf16 %v1729_v42  ;;  %v1899_v56 = vunpack.c.h.bf16 %v1729_v42 }
 0x14d   : > { %v1994_v50 = vadd.f32 %v1993_v36, %v1963_v35  ;;  %v1926_v14 = vadd.f32 %v1925_v44, %v1895_v58  ;;  %v2605_v17 = vpop.f32.mrb[20].mxu0  ;;  %2391 = vst [vmem:[%s3377_s21 + $0x40] sm:$0xff] %v1728_v39   ;;  %v1896_v59 = vunpack.c.l.bf16 %v1728_v39  ;;  %v1897_v51 = vunpack.c.h.bf16 %v1728_v39  ;;  %v2557_v32 = vpop.f32.mrb[20].mxu1 }
 0x14e   : > { %v1641_v5 = vpop.f32.mrb[21].mxu0  ;;  %v2651_v9 = vadd.f32 %v2605_v17, %v2557_v32  ;;  %v1188_v61 = vpop.f32.mrb[21].mxu1  ;;  %v1967_v25 = vmul.f32 %v1898_v20, %v1898_v20  ;;  %v1968_v26 = vmul.f32 %v1899_v56, %v1899_v56 }
 0x14f   : > { %v1995_v53 = vadd.f32 %v1994_v50, %v1964_v15  ;;  %v2606_v0 = vpop.f32.mrb[22].mxu0  ;;  %v1927_v1 = vadd.f32 %v1926_v14, %v1896_v59  ;;  %v1965_v60 = vmul.f32 %v1896_v59, %v1896_v59  ;;  %v2652_v2 = vadd.f32 %v1641_v5, %v1188_v61  ;;  %v2558_v4 = vpop.f32.mrb[22].mxu1 }
 0x150   : > { %v1644_v31 = vpop.f32.mrb[23].mxu0  ;;  %v2653_v6 = vadd.f32 %v2606_v0, %v2558_v4  ;;  %v1191_v49 = vpop.f32.mrb[23].mxu1  ;;  %v1966_v40 = vmul.f32 %v1897_v51, %v1897_v51 }
 0x151   : > { %v1928_v16 = vadd.f32 %v1927_v1, %v1897_v51  ;;  %v1996_v43 = vadd.f32 %v1995_v53, %v1965_v60  ;;  %v2654_v7 = vadd.f32 %v1644_v31, %v1191_v49 }
 0x152   : > { %v1731_v22 = vpack.c.bf16 %v2653_v6, %v2651_v9 }
 0x153   : > { %v1929_v18 = vadd.f32 %v1928_v16, %v1898_v20  ;;  %v1997_v54 = vadd.f32 %v1996_v43, %v1966_v40  ;;  %v1730_v41 = vpack.c.bf16 %v2654_v7, %v2652_v2 }
 0x154   : > { %2394 = vst [vmem:[%s3377_s21 + $0x58] sm:$0xff] %v1731_v22   ;;  %v1902_v29 = vunpack.c.l.bf16 %v1731_v22  ;;  %v1903_v63 = vunpack.c.h.bf16 %v1731_v22 }
 0x155   : > { %v2609_v47 = vpop.f32.mrb[24].mxu0  ;;  %v1998_v52 = vadd.f32 %v1997_v54, %v1967_v25  ;;  %2393 = vst [vmem:[%s3377_s21 + $0x50] sm:$0xff] %v1730_v41   ;;  %v1900_v23 = vunpack.c.l.bf16 %v1730_v41  ;;  %v1901_v28 = vunpack.c.h.bf16 %v1730_v41  ;;  %v1930_v27 = vadd.f32 %v1929_v18, %v1899_v56  ;;  %v2561_v10 = vpop.f32.mrb[24].mxu1 }
 0x156   : > { %v1657_v12 = vpop.f32.mrb[25].mxu0  ;;  %v2655_v11 = vadd.f32 %v2609_v47, %v2561_v10  ;;  %v1204_v21 = vpop.f32.mrb[25].mxu1  ;;  %v1971_v48 = vmul.f32 %v1902_v29, %v1902_v29  ;;  %v1972_v44 = vmul.f32 %v1903_v63, %v1903_v63 }
 0x157   : > { %v2610_v19 = vpop.f32.mrb[26].mxu0  ;;  %v1931_v30 = vadd.f32 %v1930_v27, %v1900_v23  ;;  %v1969_v24 = vmul.f32 %v1900_v23, %v1900_v23  ;;  %v1999_v13 = vadd.f32 %v1998_v52, %v1968_v26  ;;  %v2562_v33 = vpop.f32.mrb[26].mxu1  ;;  %v2656_v3 = vadd.f32 %v1657_v12, %v1204_v21 }
 0x158   : > { %v1660_v62 = vpop.f32.mrb[27].mxu0  ;;  %v2657_v58 = vadd.f32 %v2610_v19, %v2562_v33  ;;  %v1207_v8 = vpop.f32.mrb[27].mxu1  ;;  %v1970_v45 = vmul.f32 %v1901_v28, %v1901_v28 }
 0x159   : > { %v1932_v34 = vadd.f32 %v1931_v30, %v1901_v28  ;;  %v2000_v57 = vadd.f32 %v1999_v13, %v1969_v24  ;;  %v2658_v37 = vadd.f32 %v1660_v62, %v1207_v8 }
 0x15a   : > { %v1733_v46 = vpack.c.bf16 %v2657_v58, %v2655_v11 }
 0x15b   : > { %v1933_v55 = vadd.f32 %v1932_v34, %v1902_v29  ;;  %v2001_v38 = vadd.f32 %v2000_v57, %v1970_v45  ;;  %v1732_v35 = vpack.c.bf16 %v2658_v37, %v2656_v3 }
 0x15c   : > { %2396 = vst [vmem:[%s3377_s21 + $0x68] sm:$0xff] %v1733_v46   ;;  %v1906_v5 = vunpack.c.l.bf16 %v1733_v46  ;;  %v1907_v1 = vunpack.c.h.bf16 %v1733_v46 }
 0x15d   : > { %v2613_v36 = vpop.f32.mrb[28].mxu0  ;;  %v2002_v42 = vadd.f32 %v2001_v38, %v1971_v48  ;;  %2395 = vst [vmem:[%s3377_s21 + $0x60] sm:$0xff] %v1732_v35   ;;  %v1904_v39 = vunpack.c.l.bf16 %v1732_v35  ;;  %v1905_v15 = vunpack.c.h.bf16 %v1732_v35  ;;  %v1934_v50 = vadd.f32 %v1933_v55, %v1903_v63  ;;  %v2565_v14 = vpop.f32.mrb[28].mxu1 }
 0x15e   : > { %v1673_v17 = vpop.f32.mrb[29].mxu0  ;;  %v2659_v59 = vadd.f32 %v2613_v36, %v2565_v14  ;;  %v1220_v51 = vpop.f32.mrb[29].mxu1  ;;  %v1975_v40 = vmul.f32 %v1906_v5, %v1906_v5  ;;  %v1976_v25 = vmul.f32 %v1907_v1, %v1907_v1 }
 0x15f   : > { %v2614_v32 = vpop.f32.mrb[30].mxu0  ;;  %v1935_v53 = vadd.f32 %v1934_v50, %v1904_v39  ;;  %v1973_v9 = vmul.f32 %v1904_v39, %v1904_v39  ;;  %v2003_v61 = vadd.f32 %v2002_v42, %v1972_v44  ;;  %v2566_v0 = vpop.f32.mrb[30].mxu1  ;;  %v2660_v60 = vadd.f32 %v1673_v17, %v1220_v51 }
 0x160   : > { %v1676_v20 = vpop.f32.mrb[31].mxu0  ;;  %v2661_v2 = vadd.f32 %v2614_v32, %v2566_v0  ;;  %v1223_v4 = vpop.f32.mrb[31].mxu1  ;;  %v1974_v56 = vmul.f32 %v1905_v15, %v1905_v15 }
 0x161   : > { %v1936_v31 = vadd.f32 %v1935_v53, %v1905_v15  ;;  %v2004_v6 = vadd.f32 %v2003_v61, %v1973_v9  ;;  %v2662_v49 = vadd.f32 %v1676_v20, %v1223_v4 }
 0x162   : > { %v1735_v16 = vpack.c.bf16 %v2661_v2, %v2659_v59 }
 0x163   : > { %v1937_v43 = vadd.f32 %v1936_v31, %v1906_v5  ;;  %v2005_v7 = vadd.f32 %v2004_v6, %v1974_v56  ;;  %v1734_v22 = vpack.c.bf16 %v2662_v49, %v2660_v60 }
 0x164   : > { %2398 = vst [vmem:[%s3377_s21 + $0x78] sm:$0xff] %v1735_v16   ;;  %v1910_v47 = vunpack.c.l.bf16 %v1735_v16  ;;  %v1911_v27 = vunpack.c.h.bf16 %v1735_v16 }
 0x165   : > { %v2006_v18 = vadd.f32 %v2005_v7, %v1975_v40  ;;  %2397 = vst [vmem:[%s3377_s21 + $0x70] sm:$0xff] %v1734_v22   ;;  %v1908_v54 = vunpack.c.l.bf16 %v1734_v22  ;;  %v1909_v41 = vunpack.c.h.bf16 %v1734_v22  ;;  %v1938_v26 = vadd.f32 %v1937_v43, %v1907_v1 }
 0x166   : > { %v1979_v21 = vmul.f32 %v1910_v47, %v1910_v47  ;;  %v1980_v30 = vmul.f32 %v1911_v27, %v1911_v27 }
 0x167   : > { %v1939_v52 = vadd.f32 %v1938_v26, %v1908_v54  ;;  %v1977_v23 = vmul.f32 %v1908_v54, %v1908_v54  ;;  %v2007_v28 = vadd.f32 %v2006_v18, %v1976_v25  ;;  %v1978_v12 = vmul.f32 %v1909_v41, %v1909_v41 }
 0x169   : > { %v1940_v10 = vadd.f32 %v1939_v52, %v1909_v41  ;;  %v2008_v11 = vadd.f32 %v2007_v28, %v1977_v23 }
 0x16b   : > { %v1941_v19 = vadd.f32 %v1940_v10, %v1910_v47  ;;  %v2009_v29 = vadd.f32 %v2008_v11, %v1978_v12 }
 0x16d   : > { %v1942_v24 = vadd.f32 %v1941_v19, %v1911_v27  ;;  %v2010_v13 = vadd.f32 %v2009_v29, %v1979_v21 }
 0x16f   : > { %v1943_v33 = vrot.slane %v1942_v24, 4  ;;  %v2011_v62 = vadd.f32 %v2010_v13, %v1980_v30 }
 0x171   : > { %v1944_v63 = vadd.f32 %v1943_v33, %v1942_v24  ;;  %v2012_v3 = vrot.slane %v2011_v62, 4 }
 0x173   : > { %v1945_v58 = vrot.slane %v1944_v63, 2  ;;  %v2013_v8 = vadd.f32 %v2012_v3, %v2011_v62 }
 0x175   : > { %v1946_v34 = vadd.f32 %v1945_v58, %v1944_v63  ;;  %v2014_v45 = vrot.slane %v2013_v8, 2 }
 0x177   : > { %v1947_v57 = vrot.slane %v1946_v34, 1  ;;  %v2015_v37 = vadd.f32 %v2014_v45, %v2013_v8 }
 0x179   : > { %v2016_v46 = vrot.slane %v2015_v37, 1  ;;  %v1948_v48 = vadd.f32 %v1947_v57, %v1946_v34 }
 0x17b   : > { %v2017_v55 = vadd.f32 %v2016_v46, %v2015_v37 }
 0x17d   : > { %v2019_v38 = vsel %vm2018_vm6, %v1948_v48, %v2017_v55 }
 0x17e   : > { %2020 = vst [vmem:[%s187_s25] sm:$0x3] %v2019_v38 }
 0x17f PF: > { %s14_s12 = sadd.s32 1, %s2750_s12  }
 0x180   : > { %p11_p6 = scmp.ge.s32.totalorder %s14_s12, 4  }
 0x182   :  { %13 = sbr.rel (!%p11_p6) target bundleno = 1 (0x1), region = 72 }

// kernel: basic_block_dec_forward.9
= control target key start
LH: loop header
LB: loop body
LE: loop exit
PB: predicated region body
PF: predicated region fallthrough
CT: control target
= control target key end

     0   :  { %s3983_s20 = smov 0   ;;  %s5437_s0 = inlined_call_operand.vmem [shape: bf16[2048,128], index: 0, kind: input, shape index: {}]   ;;  %s5438_s1 = inlined_call_operand.vmem [shape: f32[2,128], index: 1, kind: input, shape index: {}]   ;;  %s5439_s2 = inlined_call_operand.vmem [shape: bf16[2048,128], index: 2, kind: input, shape index: {}]   ;;  %s5440_s3 = inlined_call_operand.vmem [shape: f32[2,128], index: 3, kind: input, shape index: {}]   ;;  %s5441_s4 = inlined_call_operand.<no memory space> [shape: f32[1], index: 4, kind: input, shape index: {}]   ;;  %s5442_s5 = inlined_call_operand.vmem [shape: f32[2048,128], index: 5, kind: output, shape index: {}]  }
   0x1   :  { %10 = sst [smem:[#allocation2]] %s5441_s4 }
   0x2 LB: > { %s2643_s21 = sadd.s32 4294967295, %s3948_s20   ;;  %p2647_p0 = scmp.ge.s32.totalorder %s3948_s20, 1  ;;  %s3948_s20 = sphi %s3983_s20, %s16_s20  }
   0x3   : > { %p200_p1 = scmp.lt.s32.totalorder %s3948_s20, 3 }
   0x5   : > { %p201_p2 = pnand %p2647_p0, %p200_p1 }
   0x6   : > { %s2648_s22 = sshll.u32 (!%p201_p2), %s2643_s21, 7  ;;  %s251_s23 = sld [smem:[#allocation2]] (!%p201_p2)  ;;  %v509_v0 = vlaneseq (!%p201_p2)  ;;  %v508_v2 = vld [vmem:[%s5438_s1] sm:$0x3] (!%p201_p2) }
   0x7   : > { %204 = sbr.rel (%p201_p2) target bundleno = 461 (0x1cd), region = 40  ;;  %p234_p3 = scmp.lt.s32.totalorder (!%p201_p2), %s2648_s22, 255  ;;  %v1029_v3 = vld [vmem:[%s5440_s3] sm:$0x3] (!%p201_p2) }
   0x8   : > { %v510_v1 = vshrl.u32 (!%p201_p2), %v509_v0, 7 }
   0xa   : > { %v511_v4 = vsub.s32 (!%p201_p2), 0, %v510_v1  ;;  %v643_v5 = vsub.s32 (!%p201_p2), 1, %v510_v1 }
   0xc   : > { %v4010_v6 = vrot.slane (!%p201_p2), %v508_v2, %v511_v4  ;;  %v4012_v7 = vrot.slane (!%p201_p2), %v1029_v3, %v511_v4  ;;  %v4015_v9 = vrot.slane (!%p201_p2), %v508_v2, %v643_v5  ;;  %v4018_v11 = vrot.slane (!%p201_p2), %v1029_v3, %v643_v5 }
   0xd   : > { %v4020_v12 = vstv (!%p201_p2), %s251_s23 }
   0xe   : > { %s5444_s22 = smov (!%p234_p3, %s2648_s22), 255 }
   0xf   : > { %s2649_s27 = sshll.u32 %s5444_s22, 2  ;;  %s2653_s9 = sshll.u32 %s5444_s22, 3 }
  0x10   : > { %s4003_s30 = scalar_lea.vmem %s5437_s0, %s2649_s27  ;;  %s4008_s8 = scalar_lea.vmem %s5439_s2, %s2649_s27 }
  0x11   : > { %v2785_v8 = vld [vmem:[%s4003_s30] sm:$0xff]   ;;  %v3296_v13 = vld [vmem:[%s4003_s30 + $0x8] sm:$0xff]   ;;  %v3297_v31 = vld [vmem:[%s4003_s30 + $0x10] sm:$0xff]   ;;  %s4142_s12 = scalar_lea.vmem %s5442_s5, %s2653_s9 }
  0x12   : > { %v3041_v10 = vld [vmem:[%s4008_s8] sm:$0xff]   ;;  %v2786_v14 = vunpack.c.l.bf16 %v2785_v8  ;;  %v2787_v16 = vunpack.c.h.bf16 %v2785_v8  ;;  %v3359_v18 = vld [vmem:[%s4008_s8 + $0x8] sm:$0xff]   ;;  %v2790_v19 = vunpack.c.l.bf16 %v3296_v13  ;;  %v2791_v21 = vunpack.c.h.bf16 %v3296_v13  ;;  %v3360_v32 = vld [vmem:[%s4008_s8 + $0x10] sm:$0xff]  }
  0x13   : > { %v3042_v15 = vunpack.c.l.bf16 %v3041_v10  ;;  %v3043_v17 = vunpack.c.h.bf16 %v3041_v10  ;;  %v3046_v20 = vunpack.c.l.bf16 %v3359_v18  ;;  %v3047_v22 = vunpack.c.h.bf16 %v3359_v18  ;;  %v3298_v57 = vld [vmem:[%s4003_s30 + $0x18] sm:$0xff]   ;;  %v3362_v18 = vld [vmem:[%s4008_s8 + $0x20] sm:$0xff]  }
  0x14   : > { %v513_v23 = vmul.f32 %v2786_v14, %v4010_v6  ;;  %v514_v25 = vmul.f32 %v2787_v16, %v4010_v6  ;;  %v515_v27 = vmul.f32 %v2790_v19, %v4010_v6  ;;  %v516_v29 = vmul.f32 %v2791_v21, %v4010_v6  ;;  %v3361_v58 = vld [vmem:[%s4008_s8 + $0x18] sm:$0xff]   ;;  %v3299_v14 = vld [vmem:[%s4003_s30 + $0x20] sm:$0xff]  }
  0x15   : > { %v1034_v24 = vmul.f32 %v3042_v15, %v4012_v7  ;;  %v1035_v26 = vmul.f32 %v3043_v17, %v4012_v7  ;;  %v1036_v28 = vmul.f32 %v3046_v20, %v4012_v7  ;;  %v1037_v30 = vmul.f32 %v3047_v22, %v4012_v7 }
  0x16   : > { %v645_v33 = vadd.f32 %v4015_v9, %v513_v23  ;;  %v646_v35 = vadd.f32 %v4015_v9, %v514_v25  ;;  %v647_v37 = vadd.f32 %v4015_v9, %v515_v27  ;;  %v648_v39 = vadd.f32 %v4015_v9, %v516_v29 }
  0x17   : > { %v1166_v34 = vadd.f32 %v4018_v11, %v1034_v24  ;;  %v1167_v36 = vadd.f32 %v4018_v11, %v1035_v26  ;;  %v1168_v38 = vadd.f32 %v4018_v11, %v1036_v28  ;;  %v1169_v40 = vadd.f32 %v4018_v11, %v1037_v30  ;;  %v3300_v30 = vld [vmem:[%s4003_s30 + $0x28] sm:$0xff]  }
  0x18   : > { %v2794_v43 = vunpack.c.l.bf16 %v3297_v31  ;;  %v3050_v44 = vunpack.c.l.bf16 %v3360_v32  ;;  %v2795_v47 = vunpack.c.h.bf16 %v3297_v31  ;;  %v3051_v48 = vunpack.c.h.bf16 %v3360_v32 }
  0x19   : > { %v4042_v41 = vadd.f32 %v1166_v34, %v645_v33  ;;  %v4044_v42 = vadd.f32 %v1167_v36, %v646_v35  ;;  %v4046_v45 = vadd.f32 %v1168_v38, %v647_v37  ;;  %v4048_v46 = vadd.f32 %v1169_v40, %v648_v39  ;;  %v3363_v34 = vld [vmem:[%s4008_s8 + $0x28] sm:$0xff]  }
  0x1a   : > { %v517_v51 = vmul.f32 %v2794_v43, %v4010_v6  ;;  %v1038_v52 = vmul.f32 %v3050_v44, %v4012_v7  ;;  %v518_v55 = vmul.f32 %v2795_v47, %v4010_v6  ;;  %v1039_v56 = vmul.f32 %v3051_v48, %v4012_v7 }
  0x1b   : > { %v1423_v49 = vmul.f32 %v4020_v12, %v4042_v41  ;;  %v1424_v50 = vmul.f32 %v4020_v12, %v4044_v42  ;;  %v1425_v53 = vmul.f32 %v4020_v12, %v4046_v45  ;;  %v1426_v54 = vmul.f32 %v4020_v12, %v4048_v46 }
  0x1c   : > { %v649_v61 = vadd.f32 %v4015_v9, %v517_v51  ;;  %v1170_v62 = vadd.f32 %v4018_v11, %v1038_v52  ;;  %v650_v1 = vadd.f32 %v4015_v9, %v518_v55  ;;  %v1171_v2 = vadd.f32 %v4018_v11, %v1039_v56 }
  0x1d   : > { %v2654_v59 = vmul.f32 -1.442695, %v1423_v49  ;;  %v2655_v60 = vmul.f32 -1.442695, %v1424_v50  ;;  %v2656_v63 = vmul.f32 -1.442695, %v1425_v53  ;;  %v2798_v4 = vunpack.c.l.bf16 %v3298_v57 }
  0x1e   : > { %v2657_v0 = vmul.f32 -1.442695, %v1426_v54  ;;  %v4068_v3 = vadd.f32 %v1170_v62, %v649_v61  ;;  %v3054_v5 = vunpack.c.l.bf16 %v3361_v58  ;;  %v4070_v8 = vadd.f32 %v1171_v2, %v650_v1 }
  0x1f   : > { %3430 = vpow2.f32 %v2654_v59  ;;  %v2799_v10 = vunpack.c.h.bf16 %v3298_v57  ;;  %v3055_v13 = vunpack.c.h.bf16 %v3361_v58  ;;  %v519_v16 = vmul.f32 %v2798_v4, %v4010_v6 }
  0x20   : > { %3432 = vpow2.f32 %v2655_v60  ;;  %v1427_v15 = vmul.f32 %v4020_v12, %v4068_v3  ;;  %v1040_v17 = vmul.f32 %v3054_v5, %v4012_v7  ;;  %v1428_v19 = vmul.f32 %v4020_v12, %v4070_v8  ;;  %v3301_v5 = vld [vmem:[%s4003_s30 + $0x30] sm:$0xff]  }
  0x21   : > { %3434 = vpow2.f32 %v2656_v63  ;;  %v520_v20 = vmul.f32 %v2799_v10, %v4010_v6  ;;  %v1041_v21 = vmul.f32 %v3055_v13, %v4012_v7  ;;  %v651_v23 = vadd.f32 %v4015_v9, %v519_v16 }
  0x22   : > { %3436 = vpow2.f32 %v2657_v0  ;;  %v2658_v22 = vmul.f32 -1.442695, %v1427_v15  ;;  %v1172_v24 = vadd.f32 %v4018_v11, %v1040_v17  ;;  %v2802_v25 = vunpack.c.l.bf16 %v3299_v14 }
  0x23   : > { %v2659_v26 = vmul.f32 -1.442695, %v1428_v19  ;;  %v652_v27 = vadd.f32 %v4015_v9, %v520_v20  ;;  %v1173_v28 = vadd.f32 %v4018_v11, %v1041_v21  ;;  %v3058_v29 = vunpack.c.l.bf16 %v3362_v18 }
  0x24   : > { %3438 = vpow2.f32 %v2658_v22  ;;  %v4087_v31 = vadd.f32 %v1172_v24, %v651_v23  ;;  %v521_v32 = vmul.f32 %v2802_v25, %v4010_v6  ;;  %v2803_v33 = vunpack.c.h.bf16 %v3299_v14  ;;  %v3364_v22 = vld [vmem:[%s4008_s8 + $0x30] sm:$0xff]  }
  0x25   : > { %3440 = vpow2.f32 %v2659_v26  ;;  %v4091_v35 = vadd.f32 %v1173_v28, %v652_v27  ;;  %v1042_v36 = vmul.f32 %v3058_v29, %v4012_v7  ;;  %v3059_v37 = vunpack.c.h.bf16 %v3362_v18 }
  0x26   : > { %v1429_v38 = vmul.f32 %v4020_v12, %v4087_v31  ;;  %v653_v39 = vadd.f32 %v4015_v9, %v521_v32  ;;  %v522_v40 = vmul.f32 %v2803_v33, %v4010_v6  ;;  %v2806_v43 = vunpack.c.l.bf16 %v3300_v30 }
  0x27   : > { %v1430_v44 = vmul.f32 %v4020_v12, %v4091_v35  ;;  %v1174_v47 = vadd.f32 %v4018_v11, %v1042_v36  ;;  %v1043_v48 = vmul.f32 %v3059_v37, %v4012_v7  ;;  %v3062_v49 = vunpack.c.l.bf16 %v3363_v34  ;;  %v4129_v36 = vld [vmem:[%s4008_s8 + $0x38] sm:$0xff]  }
  0x28   : > { %v2660_v51 = vmul.f32 -1.442695, %v1429_v38  ;;  %v654_v52 = vadd.f32 %v4015_v9, %v522_v40  ;;  %v523_v53 = vmul.f32 %v2806_v43, %v4010_v6  ;;  %v2807_v54 = vunpack.c.h.bf16 %v3300_v30 }
  0x29   : > { %v3431_v50 = vpop.eup %3430  ;;  %v2661_v57 = vmul.f32 -1.442695, %v1430_v44  ;;  %v4104_v58 = vadd.f32 %v1174_v47, %v653_v39  ;;  %v1175_v59 = vadd.f32 %v4018_v11, %v1043_v48  ;;  %v1044_v63 = vmul.f32 %v3062_v49, %v4012_v7 }
  0x2a   : > { %v3433_v55 = vpop.eup %3432  ;;  %v1935_v56 = vadd.f32 1.0, %v3431_v50  ;;  %3442 = vpow2.f32 %v2660_v51  ;;  %v655_v62 = vadd.f32 %v4015_v9, %v523_v53  ;;  %v524_v14 = vmul.f32 %v2807_v54, %v4010_v6 }
  0x2b   : > { %v3435_v60 = vpop.eup %3434  ;;  %v1936_v61 = vadd.f32 1.0, %v3433_v55  ;;  %v1431_v2 = vmul.f32 %v4020_v12, %v4104_v58  ;;  %v4111_v4 = vadd.f32 %v1175_v59, %v654_v52  ;;  %v1176_v13 = vadd.f32 %v4018_v11, %v1044_v63 }
  0x2c   : > { %v3437_v0 = vpop.eup %3436  ;;  %3444 = vrcp.f32 %v1935_v56  ;;  %v1937_v1 = vadd.f32 1.0, %v3435_v60  ;;  %v3063_v17 = vunpack.c.h.bf16 %v3363_v34  ;;  %v656_v20 = vadd.f32 %v4015_v9, %v524_v14  ;;  %v3302_v34 = vld [vmem:[%s4003_s30 + $0x38] sm:$0xff]   ;;  %v3303_v14 = vld [vmem:[%s4003_s30 + $0x40] sm:$0xff]  }
  0x2d   : > { %3446 = vrcp.f32 %v1936_v61  ;;  %v1938_v10 = vadd.f32 1.0, %v3437_v0  ;;  %v2662_v15 = vmul.f32 -1.442695, %v1431_v2  ;;  %v1432_v16 = vmul.f32 %v4020_v12, %v4111_v4 }
  0x2e   : > { %3448 = vrcp.f32 %v1937_v1  ;;  %v3439_v18 = vpop.eup %3438  ;;  %v4118_v19 = vadd.f32 %v1176_v13, %v655_v62  ;;  %v2810_v21 = vunpack.c.l.bf16 %v3301_v5  ;;  %v1045_v26 = vmul.f32 %v3063_v17, %v4012_v7 }
  0x2f   : > { %3450 = vrcp.f32 %v1938_v10  ;;  %v3441_v23 = vpop.eup %3440  ;;  %v1939_v24 = vadd.f32 1.0, %v3439_v18  ;;  %v2663_v25 = vmul.f32 -1.442695, %v1432_v16  ;;  %v3066_v32 = vunpack.c.l.bf16 %v3364_v22 }
  0x30   : > { %3452 = vpow2.f32 %v2661_v57  ;;  %v1940_v27 = vadd.f32 1.0, %v3441_v23  ;;  %v1433_v28 = vmul.f32 %v4020_v12, %v4118_v19  ;;  %v525_v29 = vmul.f32 %v2810_v21, %v4010_v6 }
  0x31   : > { %3454 = vpow2.f32 %v2662_v15  ;;  %v1177_v30 = vadd.f32 %v4018_v11, %v1045_v26  ;;  %v2811_v33 = vunpack.c.h.bf16 %v3301_v5  ;;  %v3067_v39 = vunpack.c.h.bf16 %v3364_v22 }
  0x32   : > { %3456 = vrcp.f32 %v1939_v24  ;;  %v2664_v37 = vmul.f32 -1.442695, %v1433_v28  ;;  %v657_v38 = vadd.f32 %v4015_v9, %v525_v29  ;;  %v1046_v43 = vmul.f32 %v3066_v32, %v4012_v7  ;;  %v3366_v32 = vld [vmem:[%s4008_s8 + $0x40] sm:$0xff]  }
  0x33   : > { %3458 = vrcp.f32 %v1940_v27  ;;  %v4133_v40 = vadd.f32 %v1177_v30, %v656_v20  ;;  %v526_v44 = vmul.f32 %v2811_v33, %v4010_v6  ;;  %v1047_v48 = vmul.f32 %v3067_v39, %v4012_v7 }
  0x34   : > { %3460 = vpow2.f32 %v2663_v25  ;;  %v3443_v47 = vpop.eup %3442  ;;  %v2814_v49 = vunpack.c.l.bf16 %v3302_v34  ;;  %v3070_v50 = vunpack.c.l.bf16 %v4129_v36  ;;  %v1178_v54 = vadd.f32 %v4018_v11, %v1046_v43 }
  0x35   : > { %3462 = vpow2.f32 %v2664_v37  ;;  %v1941_v52 = vadd.f32 1.0, %v3443_v47  ;;  %v1434_v53 = vmul.f32 %v4020_v12, %v4133_v40  ;;  %v658_v55 = vadd.f32 %v4015_v9, %v526_v44  ;;  %v3304_v44 = vld [vmem:[%s4003_s30 + $0x48] sm:$0xff]  }
  0x36   : > { %v3445_v51 = vpop.eup %3444  ;;  %v1179_v59 = vadd.f32 %v4018_v11, %v1047_v48  ;;  %v527_v60 = vmul.f32 %v2814_v49, %v4010_v6  ;;  %v1048_v61 = vmul.f32 %v3070_v50, %v4012_v7  ;;  %v4153_v1 = vadd.f32 %v1178_v54, %v657_v38 }
  0x37   : > { %v3447_v56 = vpop.eup %3446  ;;  %v2319_v57 = vmul.f32 %v3445_v51, %v4042_v41  ;;  %3464 = vrcp.f32 %v1941_v52  ;;  %v2665_v0 = vmul.f32 -1.442695, %v1434_v53  ;;  %v2815_v17 = vunpack.c.h.bf16 %v3302_v34  ;;  %v3367_v52 = vld [vmem:[%s4008_s8 + $0x48] sm:$0xff]  }
  0x38   : > { %v3449_v62 = vpop.eup %3448  ;;  %v2320_v63 = vmul.f32 %v3447_v56, %v4044_v42  ;;  %v4157_v41 = vadd.f32 %v1179_v59, %v658_v55  ;;  %v659_v10 = vadd.f32 %v4015_v9, %v527_v60  ;;  %v1180_v13 = vadd.f32 %v4018_v11, %v1048_v61 }
  0x39   : > { %v3451_v2 = vpop.eup %3450  ;;  %2447 = vst [vmem:[%s4142_s12] sm:$0xff] %v2319_v57  ;;  %v2321_v5 = vmul.f32 %v3449_v62, %v4046_v45  ;;  %3466 = vpow2.f32 %v2665_v0  ;;  %v1435_v16 = vmul.f32 %v4020_v12, %v4153_v1  ;;  %v3071_v22 = vunpack.c.h.bf16 %v4129_v36 }
  0x3a   : > { %v3453_v15 = vpop.eup %3452  ;;  %2448 = vst [vmem:[%s4142_s12 + $0x8] sm:$0xff] %v2320_v63  ;;  %v2322_v42 = vmul.f32 %v3451_v2, %v4048_v46  ;;  %v1436_v20 = vmul.f32 %v4020_v12, %v4157_v41  ;;  %v4169_v21 = vadd.f32 %v1180_v13, %v659_v10  ;;  %v528_v25 = vmul.f32 %v2815_v17, %v4010_v6 }
  0x3b   : > { %v3455_v18 = vpop.eup %3454  ;;  %2449 = vst [vmem:[%s4142_s12 + $0x10] sm:$0xff] %v2321_v5  ;;  %v1942_v45 = vadd.f32 1.0, %v3453_v15  ;;  %v2666_v46 = vmul.f32 -1.442695, %v1435_v16  ;;  %v2818_v26 = vunpack.c.l.bf16 %v3303_v14  ;;  %v1049_v37 = vmul.f32 %v3071_v22, %v4012_v7  ;;  %v3305_v22 = vld [vmem:[%s4003_s30 + $0x50] sm:$0xff]  }
  0x3c   : > { %v3457_v23 = vpop.eup %3456  ;;  %2450 = vst [vmem:[%s4142_s12 + $0x18] sm:$0xff] %v2322_v42  ;;  %v1943_v24 = vadd.f32 1.0, %v3455_v18  ;;  %v2667_v29 = vmul.f32 -1.442695, %v1436_v20  ;;  %v1437_v30 = vmul.f32 %v4020_v12, %v4169_v21  ;;  %v660_v36 = vadd.f32 %v4015_v9, %v528_v25 }
  0x3d   : > { %v3459_v27 = vpop.eup %3458  ;;  %v2323_v28 = vmul.f32 %v3457_v23, %v4068_v3  ;;  %3468 = vrcp.f32 %v1942_v45  ;;  %v529_v43 = vmul.f32 %v2818_v26, %v4010_v6  ;;  %v1181_v48 = vadd.f32 %v4018_v11, %v1049_v37  ;;  %v3368_v26 = vld [vmem:[%s4008_s8 + $0x50] sm:$0xff]  }
  0x3e   : > { %v3461_v33 = vpop.eup %3460  ;;  %v2324_v34 = vmul.f32 %v3459_v27, %v4070_v8  ;;  %3470 = vrcp.f32 %v1943_v24  ;;  %v2668_v39 = vmul.f32 -1.442695, %v1437_v30  ;;  %v3074_v8 = vunpack.c.l.bf16 %v3366_v32 }
  0x3f   : > { %v3463_v38 = vpop.eup %3462  ;;  %2451 = vst [vmem:[%s4142_s12 + $0x20] sm:$0xff] %v2323_v28  ;;  %v1944_v3 = vadd.f32 1.0, %v3461_v33  ;;  %3472 = vpow2.f32 %v2666_v46  ;;  %v661_v49 = vadd.f32 %v4015_v9, %v529_v43  ;;  %v2819_v50 = vunpack.c.h.bf16 %v3303_v14 }
  0x40   : > { %2452 = vst [vmem:[%s4142_s12 + $0x28] sm:$0xff] %v2324_v34  ;;  %v1945_v47 = vadd.f32 1.0, %v3463_v38  ;;  %3474 = vpow2.f32 %v2667_v29  ;;  %v3075_v51 = vunpack.c.h.bf16 %v3366_v32  ;;  %v4188_v54 = vadd.f32 %v1181_v48, %v660_v36 }
  0x41   : > { %3476 = vrcp.f32 %v1944_v3  ;;  %v3465_v53 = vpop.eup %3464  ;;  %v1050_v55 = vmul.f32 %v3074_v8, %v4012_v7  ;;  %v2822_v56 = vunpack.c.l.bf16 %v3304_v44  ;;  %v530_v59 = vmul.f32 %v2819_v50, %v4010_v6 }
  0x42   : > { %3478 = vrcp.f32 %v1945_v47  ;;  %v2325_v57 = vmul.f32 %v3465_v53, %v4087_v31  ;;  %v1051_v60 = vmul.f32 %v3075_v51, %v4012_v7  ;;  %v1438_v62 = vmul.f32 %v4020_v12, %v4188_v54  ;;  %v3306_v53 = vld [vmem:[%s4003_s30 + $0x58] sm:$0xff]  }
  0x43   : > { %3480 = vpow2.f32 %v2668_v39  ;;  %v3467_v61 = vpop.eup %3466  ;;  %v1182_v63 = vadd.f32 %v4018_v11, %v1050_v55  ;;  %v531_v0 = vmul.f32 %v2822_v56, %v4010_v6  ;;  %v3078_v2 = vunpack.c.l.bf16 %v3367_v52  ;;  %v3369_v55 = vld [vmem:[%s4008_s8 + $0x58] sm:$0xff]  }
  0x44   : > { %2453 = vst [vmem:[%s4142_s12 + $0x30] sm:$0xff] %v2325_v57  ;;  %v1946_v5 = vadd.f32 1.0, %v3467_v61  ;;  %v662_v10 = vadd.f32 %v4015_v9, %v530_v59  ;;  %v1183_v31 = vadd.f32 %v4018_v11, %v1051_v60  ;;  %v2823_v13 = vunpack.c.h.bf16 %v3304_v44 }
  0x45   : > { %v2669_v14 = vmul.f32 -1.442695, %v1438_v62  ;;  %v4201_v15 = vadd.f32 %v1182_v63, %v661_v49  ;;  %v663_v42 = vadd.f32 %v4015_v9, %v531_v0  ;;  %v1052_v16 = vmul.f32 %v3078_v2, %v4012_v7 }
  0x46   : > { %3482 = vrcp.f32 %v1946_v5  ;;  %v4205_v18 = vadd.f32 %v1183_v31, %v662_v10  ;;  %v532_v45 = vmul.f32 %v2823_v13, %v4010_v6  ;;  %v3079_v20 = vunpack.c.h.bf16 %v3367_v52 }
  0x47   : > { %v3469_v17 = vpop.eup %3468  ;;  %3484 = vpow2.f32 %v2669_v14  ;;  %v1439_v46 = vmul.f32 %v4020_v12, %v4201_v15  ;;  %v1184_v25 = vadd.f32 %v4018_v11, %v1052_v16  ;;  %v2826_v37 = vunpack.c.l.bf16 %v3305_v22 }
  0x48   : > { %v3471_v23 = vpop.eup %3470  ;;  %v2326_v24 = vmul.f32 %v3469_v17, %v4091_v35  ;;  %v1440_v29 = vmul.f32 %v4020_v12, %v4205_v18  ;;  %v664_v30 = vadd.f32 %v4015_v9, %v532_v45  ;;  %v1053_v32 = vmul.f32 %v3079_v20, %v4012_v7  ;;  %v3307_v17 = vld [vmem:[%s4003_s30 + $0x60] sm:$0xff]  }
  0x49   : > { %v3473_v27 = vpop.eup %3472  ;;  %v2327_v28 = vmul.f32 %v3471_v23, %v4104_v58  ;;  %v2670_v34 = vmul.f32 -1.442695, %v1439_v46  ;;  %v4220_v36 = vadd.f32 %v1184_v25, %v663_v42  ;;  %v3082_v43 = vunpack.c.l.bf16 %v3368_v26  ;;  %v3370_v23 = vld [vmem:[%s4008_s8 + $0x60] sm:$0xff]  }
  0x4a   : > { %v3475_v33 = vpop.eup %3474  ;;  %2454 = vst [vmem:[%s4142_s12 + $0x38] sm:$0xff] %v2326_v24  ;;  %v1947_v35 = vadd.f32 1.0, %v3473_v27  ;;  %v2671_v58 = vmul.f32 -1.442695, %v1440_v29  ;;  %v1185_v39 = vadd.f32 %v4018_v11, %v1053_v32  ;;  %v533_v8 = vmul.f32 %v2826_v37, %v4010_v6 }
  0x4b   : > { %v3477_v38 = vpop.eup %3476  ;;  %2455 = vst [vmem:[%s4142_s12 + $0x40] sm:$0xff] %v2327_v28  ;;  %v1948_v3 = vadd.f32 1.0, %v3475_v33  ;;  %v1441_v48 = vmul.f32 %v4020_v12, %v4220_v36  ;;  %v1054_v52 = vmul.f32 %v3082_v43, %v4012_v7  ;;  %v2827_v60 = vunpack.c.h.bf16 %v3305_v22 }
  0x4c   : > { %v3479_v44 = vpop.eup %3478  ;;  %v2328_v47 = vmul.f32 %v3477_v38, %v4111_v4  ;;  %3486 = vrcp.f32 %v1947_v35  ;;  %v4229_v51 = vadd.f32 %v1185_v39, %v664_v30  ;;  %v665_v57 = vadd.f32 %v4015_v9, %v533_v8 }
  0x4d   : > { %v3481_v49 = vpop.eup %3480  ;;  %v2329_v50 = vmul.f32 %v3479_v44, %v4118_v19  ;;  %3488 = vrcp.f32 %v1948_v3  ;;  %v2672_v4 = vmul.f32 -1.442695, %v1441_v48  ;;  %v1186_v19 = vadd.f32 %v4018_v11, %v1054_v52 }
  0x4e   : > { %2456 = vst [vmem:[%s4142_s12 + $0x48] sm:$0xff] %v2328_v47  ;;  %v1949_v56 = vadd.f32 1.0, %v3481_v49  ;;  %3490 = vpow2.f32 %v2670_v34  ;;  %v1442_v59 = vmul.f32 %v4020_v12, %v4229_v51  ;;  %v3083_v61 = vunpack.c.h.bf16 %v3368_v26 }
  0x4f   : > { %2457 = vst [vmem:[%s4142_s12 + $0x50] sm:$0xff] %v2329_v50  ;;  %3492 = vpow2.f32 %v2671_v58  ;;  %v2830_v62 = vunpack.c.l.bf16 %v3306_v53  ;;  %v3086_v63 = vunpack.c.l.bf16 %v3369_v55  ;;  %v4240_v5 = vadd.f32 %v1186_v19, %v665_v57 }
  0x50   : > { %3494 = vrcp.f32 %v1949_v56  ;;  %v3483_v0 = vpop.eup %3482  ;;  %v2673_v2 = vmul.f32 -1.442695, %v1442_v59  ;;  %v534_v10 = vmul.f32 %v2827_v60, %v4010_v6  ;;  %v1055_v14 = vmul.f32 %v3083_v61, %v4012_v7 }
  0x51   : > { %3496 = vpow2.f32 %v2672_v4  ;;  %v3485_v31 = vpop.eup %3484  ;;  %v2330_v13 = vmul.f32 %v3483_v0, %v4133_v40  ;;  %v535_v42 = vmul.f32 %v2830_v62, %v4010_v6  ;;  %v1056_v16 = vmul.f32 %v3086_v63, %v4012_v7  ;;  %v3308_v4 = vld [vmem:[%s4003_s30 + $0x68] sm:$0xff]  }
  0x52   : > { %v1950_v45 = vadd.f32 1.0, %v3485_v31  ;;  %3498 = vpow2.f32 %v2673_v2  ;;  %v1443_v20 = vmul.f32 %v4020_v12, %v4240_v5  ;;  %v666_v22 = vadd.f32 %v4015_v9, %v534_v10  ;;  %v3371_v31 = vld [vmem:[%s4008_s8 + $0x68] sm:$0xff]  }
  0x53   : > { %2458 = vst [vmem:[%s4142_s12 + $0x58] sm:$0xff] %v2330_v13  ;;  %v1187_v24 = vadd.f32 %v4018_v11, %v1055_v14  ;;  %v667_v40 = vadd.f32 %v4015_v9, %v535_v42  ;;  %v1188_v46 = vadd.f32 %v4018_v11, %v1056_v16  ;;  %v2831_v25 = vunpack.c.h.bf16 %v3306_v53 }
  0x54   : > { %3500 = vrcp.f32 %v1950_v45  ;;  %v2674_v26 = vmul.f32 -1.442695, %v1443_v20  ;;  %v3087_v27 = vunpack.c.h.bf16 %v3369_v55  ;;  %v2834_v28 = vunpack.c.l.bf16 %v3307_v17 }
  0x55   : > { %v4256_v30 = vadd.f32 %v1187_v24, %v666_v22  ;;  %v4258_v32 = vadd.f32 %v1188_v46, %v667_v40  ;;  %v536_v33 = vmul.f32 %v2831_v25, %v4010_v6  ;;  %v3090_v35 = vunpack.c.l.bf16 %v3370_v23  ;;  %v3309_v40 = vld [vmem:[%s4003_s30 + $0x70] sm:$0xff]  }
  0x56   : > { %v3487_v29 = vpop.eup %3486  ;;  %3502 = vpow2.f32 %v2674_v26  ;;  %v1057_v38 = vmul.f32 %v3087_v27, %v4012_v7  ;;  %v537_v3 = vmul.f32 %v2834_v28, %v4010_v6  ;;  %v2835_v56 = vunpack.c.h.bf16 %v3307_v17  ;;  %v3372_v46 = vld [vmem:[%s4008_s8 + $0x70] sm:$0xff]  }
  0x57   : > { %v3489_v34 = vpop.eup %3488  ;;  %v2331_v37 = vmul.f32 %v3487_v29, %v4153_v1  ;;  %v1444_v43 = vmul.f32 %v4020_v12, %v4256_v30  ;;  %v1445_v44 = vmul.f32 %v4020_v12, %v4258_v32  ;;  %v668_v47 = vadd.f32 %v4015_v9, %v536_v33 }
  0x58   : > { %v3491_v58 = vpop.eup %3490  ;;  %v2332_v39 = vmul.f32 %v3489_v34, %v4157_v41  ;;  %v1189_v8 = vadd.f32 %v4018_v11, %v1057_v38  ;;  %v669_v49 = vadd.f32 %v4015_v9, %v537_v3  ;;  %v1058_v50 = vmul.f32 %v3090_v35, %v4012_v7 }
  0x59   : > { %v3493_v48 = vpop.eup %3492  ;;  %2459 = vst [vmem:[%s4142_s12 + $0x60] sm:$0xff] %v2331_v37  ;;  %v1951_v1 = vadd.f32 1.0, %v3491_v58  ;;  %v2675_v53 = vmul.f32 -1.442695, %v1444_v43  ;;  %v2676_v55 = vmul.f32 -1.442695, %v1445_v44  ;;  %v538_v62 = vmul.f32 %v2835_v56, %v4010_v6 }
  0x5a   : > { %v3495_v52 = vpop.eup %3494  ;;  %2460 = vst [vmem:[%s4142_s12 + $0x68] sm:$0xff] %v2332_v39  ;;  %v1952_v41 = vadd.f32 1.0, %v3493_v48  ;;  %v4277_v19 = vadd.f32 %v1189_v8, %v668_v47  ;;  %v1190_v60 = vadd.f32 %v4018_v11, %v1058_v50  ;;  %v3091_v63 = vunpack.c.h.bf16 %v3370_v23 }
  0x5b   : > { %v3497_v57 = vpop.eup %3496  ;;  %v2333_v59 = vmul.f32 %v3495_v52, %v4169_v21  ;;  %3504 = vrcp.f32 %v1951_v1  ;;  %v2838_v21 = vunpack.c.l.bf16 %v3308_v4  ;;  %v670_v14 = vadd.f32 %v4015_v9, %v538_v62  ;;  %v3310_v62 = vld [vmem:[%s4003_s30 + $0x78] sm:$0xff]  }
  0x5c   : > { %3506 = vrcp.f32 %v1952_v41  ;;  %v1953_v61 = vadd.f32 1.0, %v3497_v57  ;;  %v3499_v0 = vpop.eup %3498  ;;  %v1446_v2 = vmul.f32 %v4020_v12, %v4277_v19  ;;  %v4284_v10 = vadd.f32 %v1190_v60, %v669_v49 }
  0x5d   : > { %2461 = vst [vmem:[%s4142_s12 + $0x70] sm:$0xff] %v2333_v59  ;;  %3508 = vpow2.f32 %v2675_v53  ;;  %v1954_v13 = vadd.f32 1.0, %v3499_v0  ;;  %v1059_v42 = vmul.f32 %v3091_v63, %v4012_v7  ;;  %v539_v20 = vmul.f32 %v2838_v21, %v4010_v6 }
  0x5e   : > { %3510 = vrcp.f32 %v1953_v61  ;;  %v3501_v16 = vpop.eup %3500  ;;  %v2677_v17 = vmul.f32 -1.442695, %v1446_v2  ;;  %v1447_v45 = vmul.f32 %v4020_v12, %v4284_v10  ;;  %v3094_v24 = vunpack.c.l.bf16 %v3371_v31 }
  0x5f   : > { %3512 = vpow2.f32 %v2676_v55  ;;  %v2334_v22 = vmul.f32 %v3501_v16, %v4188_v54  ;;  %v1191_v23 = vadd.f32 %v4018_v11, %v1059_v42  ;;  %v671_v27 = vadd.f32 %v4015_v9, %v539_v20 }
  0x60   : > { %3514 = vrcp.f32 %v1954_v13  ;;  %v3503_v25 = vpop.eup %3502  ;;  %v2678_v26 = vmul.f32 -1.442695, %v1447_v45  ;;  %v2839_v28 = vunpack.c.h.bf16 %v3308_v4  ;;  %v1060_v35 = vmul.f32 %v3094_v24, %v4012_v7 }
  0x61   : > { %3516 = vpow2.f32 %v2677_v17  ;;  %2462 = vst [vmem:[%s4142_s12 + $0x78] sm:$0xff] %v2334_v22  ;;  %v1955_v29 = vadd.f32 1.0, %v3503_v25  ;;  %v4298_v33 = vadd.f32 %v1191_v23, %v670_v14  ;;  %v3095_v34 = vunpack.c.h.bf16 %v3371_v31  ;;  %v3373_v31 = vld [vmem:[%s4008_s8 + $0x78] sm:$0xff]  }
  0x62   : > { %3518 = vpow2.f32 %v2678_v26  ;;  %v540_v54 = vmul.f32 %v2839_v28, %v4010_v6  ;;  %v2842_v37 = vunpack.c.l.bf16 %v3309_v40  ;;  %v3098_v38 = vunpack.c.l.bf16 %v3372_v46 }
  0x63   : > { %3520 = vrcp.f32 %v1955_v29  ;;  %v1448_v3 = vmul.f32 %v4020_v12, %v4298_v33  ;;  %v1192_v58 = vadd.f32 %v4018_v11, %v1060_v35  ;;  %v1061_v39 = vmul.f32 %v3095_v34, %v4012_v7  ;;  %v3311_v34 = vld [vmem:[%s4003_s30 + $0x80] sm:$0xff]  }
  0x64   : > { %v672_v44 = vadd.f32 %v4015_v9, %v540_v54  ;;  %v541_v47 = vmul.f32 %v2842_v37, %v4010_v6  ;;  %v1062_v48 = vmul.f32 %v3098_v38, %v4012_v7  ;;  %v2843_v1 = vunpack.c.h.bf16 %v3309_v40  ;;  %v3374_v54 = vld [vmem:[%s4008_s8 + $0x80] sm:$0xff]  }
  0x65   : > { %v3505_v43 = vpop.eup %3504  ;;  %v2679_v50 = vmul.f32 -1.442695, %v1448_v3  ;;  %v4310_v52 = vadd.f32 %v1192_v58, %v671_v27  ;;  %v1193_v41 = vadd.f32 %v4018_v11, %v1061_v39  ;;  %v3099_v21 = vunpack.c.h.bf16 %v3372_v46 }
  0x66   : > { %v3507_v8 = vpop.eup %3506  ;;  %v2335_v49 = vmul.f32 %v3505_v43, %v4201_v15  ;;  %v673_v56 = vadd.f32 %v4015_v9, %v541_v47  ;;  %v1194_v4 = vadd.f32 %v4018_v11, %v1062_v48  ;;  %v542_v57 = vmul.f32 %v2843_v1, %v4010_v6 }
  0x67   : > { %v3509_v53 = vpop.eup %3508  ;;  %v2336_v55 = vmul.f32 %v3507_v8, %v4205_v18  ;;  %3522 = vpow2.f32 %v2679_v50  ;;  %v1449_v15 = vmul.f32 %v4020_v12, %v4310_v52  ;;  %v4320_v61 = vadd.f32 %v1193_v41, %v672_v44 }
  0x68   : > { %v3511_v59 = vpop.eup %3510  ;;  %2463 = vst [vmem:[%s4142_s12 + $0x80] sm:$0xff] %v2335_v49  ;;  %v1956_v60 = vadd.f32 1.0, %v3509_v53  ;;  %v4325_v0 = vadd.f32 %v1194_v4, %v673_v56  ;;  %v674_v2 = vadd.f32 %v4015_v9, %v542_v57  ;;  %v1063_v20 = vmul.f32 %v3099_v21, %v4012_v7  ;;  %v3375_v21 = vld [vmem:[%s4008_s8 + $0x88] sm:$0xff]  }
  0x69   : > { %v3513_v63 = vpop.eup %3512  ;;  %2464 = vst [vmem:[%s4142_s12 + $0x88] sm:$0xff] %v2336_v55  ;;  %v2337_v18 = vmul.f32 %v3511_v59, %v4220_v36  ;;  %v2680_v42 = vmul.f32 -1.442695, %v1449_v15  ;;  %v1450_v16 = vmul.f32 %v4020_v12, %v4320_v61  ;;  %v2846_v22 = vunpack.c.l.bf16 %v3310_v62 }
  0x6a   : > { %v3515_v13 = vpop.eup %3514  ;;  %3524 = vrcp.f32 %v1956_v60  ;;  %v1957_v14 = vadd.f32 1.0, %v3513_v63  ;;  %v1451_v36 = vmul.f32 %v4020_v12, %v4325_v0  ;;  %v3102_v40 = vunpack.c.l.bf16 %v3373_v31 }
  0x6b   : > { %v3517_v17 = vpop.eup %3516  ;;  %2465 = vst [vmem:[%s4142_s12 + $0x90] sm:$0xff] %v2337_v18  ;;  %v2338_v45 = vmul.f32 %v3515_v13, %v4229_v51  ;;  %v2681_v24 = vmul.f32 -1.442695, %v1450_v16  ;;  %v1195_v26 = vadd.f32 %v4018_v11, %v1063_v20  ;;  %v543_v51 = vmul.f32 %v2846_v22, %v4010_v6 }
  0x6c   : > { %3526 = vrcp.f32 %v1957_v14  ;;  %v1958_v23 = vadd.f32 1.0, %v3517_v17  ;;  %v3519_v46 = vpop.eup %3518  ;;  %v2682_v25 = vmul.f32 -1.442695, %v1451_v36  ;;  %v1064_v29 = vmul.f32 %v3102_v40, %v4012_v7 }
  0x6d   : > { %2466 = vst [vmem:[%s4142_s12 + $0x98] sm:$0xff] %v2338_v45  ;;  %3528 = vpow2.f32 %v2680_v42  ;;  %v3521_v27 = vpop.eup %3520  ;;  %v1959_v28 = vadd.f32 1.0, %v3519_v46  ;;  %v2847_v35 = vunpack.c.h.bf16 %v3310_v62  ;;  %v4343_v38 = vadd.f32 %v1195_v26, %v674_v2  ;;  %v3312_v62 = vld [vmem:[%s4003_s30 + $0x88] sm:$0xff]  }
  0x6e   : > { %3530 = vrcp.f32 %v1958_v23  ;;  %v2339_v37 = vmul.f32 %v3521_v27, %v4240_v5  ;;  %v675_v3 = vadd.f32 %v4015_v9, %v543_v51  ;;  %v1196_v58 = vadd.f32 %v4018_v11, %v1064_v29 }
  0x6f   : > { %3532 = vpow2.f32 %v2681_v24  ;;  %v544_v39 = vmul.f32 %v2847_v35, %v4010_v6  ;;  %v3103_v43 = vunpack.c.h.bf16 %v3373_v31  ;;  %v1452_v44 = vmul.f32 %v4020_v12, %v4343_v38  ;;  %v3313_v35 = vld [vmem:[%s4003_s30 + $0x90] sm:$0xff]  }
  0x70   : > { %3534 = vrcp.f32 %v1959_v28  ;;  %2467 = vst [vmem:[%s4142_s12 + $0xa0] sm:$0xff] %v2339_v37  ;;  %v2850_v47 = vunpack.c.l.bf16 %v3311_v34  ;;  %v3106_v48 = vunpack.c.l.bf16 %v3374_v54  ;;  %v4351_v1 = vadd.f32 %v1196_v58, %v675_v3  ;;  %v3376_v58 = vld [vmem:[%s4008_s8 + $0x90] sm:$0xff]  }
  0x71   : > { %3536 = vpow2.f32 %v2682_v25  ;;  %v3523_v5 = vpop.eup %3522  ;;  %v676_v8 = vadd.f32 %v4015_v9, %v544_v39  ;;  %v1065_v49 = vmul.f32 %v3103_v43, %v4012_v7  ;;  %v2851_v50 = vunpack.c.h.bf16 %v3311_v34 }
  0x72   : > { %v1960_v41 = vadd.f32 1.0, %v3523_v5  ;;  %v2683_v53 = vmul.f32 -1.442695, %v1452_v44  ;;  %v545_v55 = vmul.f32 %v2850_v47, %v4010_v6  ;;  %v1066_v56 = vmul.f32 %v3106_v48, %v4012_v7 }
  0x73   : > { %v1453_v57 = vmul.f32 %v4020_v12, %v4351_v1  ;;  %v1197_v59 = vadd.f32 %v4018_v11, %v1065_v49  ;;  %v546_v60 = vmul.f32 %v2851_v50, %v4010_v6  ;;  %v3107_v15 = vunpack.c.h.bf16 %v3374_v54 }
  0x74   : > { %v3525_v4 = vpop.eup %3524  ;;  %3538 = vrcp.f32 %v1960_v41  ;;  %v677_v18 = vadd.f32 %v4015_v9, %v545_v55  ;;  %v1198_v2 = vadd.f32 %v4018_v11, %v1066_v56  ;;  %v2854_v36 = vunpack.c.l.bf16 %v3312_v62 }
  0x75   : > { %v2340_v63 = vmul.f32 %v3525_v4, %v4256_v30  ;;  %3540 = vpow2.f32 %v2683_v53  ;;  %v2684_v13 = vmul.f32 -1.442695, %v1453_v57  ;;  %v4366_v14 = vadd.f32 %v1197_v59, %v676_v8 }
  0x76   : > { %v3527_v31 = vpop.eup %3526  ;;  %v678_v42 = vadd.f32 %v4015_v9, %v546_v60  ;;  %v4371_v45 = vadd.f32 %v1198_v2, %v677_v18  ;;  %v1067_v30 = vmul.f32 %v3107_v15, %v4012_v7  ;;  %v3110_v24 = vunpack.c.l.bf16 %v3375_v21  ;;  %v3314_v15 = vld [vmem:[%s4003_s30 + $0x98] sm:$0xff]  }
  0x77   : > { %v3529_v16 = vpop.eup %3528  ;;  %2468 = vst [vmem:[%s4142_s12 + $0xa8] sm:$0xff] %v2340_v63  ;;  %v2341_v17 = vmul.f32 %v3527_v31, %v4258_v32  ;;  %3542 = vpow2.f32 %v2684_v13  ;;  %v1454_v23 = vmul.f32 %v4020_v12, %v4366_v14  ;;  %v547_v26 = vmul.f32 %v2854_v36, %v4010_v6 }
  0x78   : > { %v3531_v20 = vpop.eup %3530  ;;  %v1961_v22 = vadd.f32 1.0, %v3529_v16  ;;  %v1455_v32 = vmul.f32 %v4020_v12, %v4371_v45  ;;  %v1199_v25 = vadd.f32 %v4018_v11, %v1067_v30  ;;  %v1068_v29 = vmul.f32 %v3110_v24, %v4012_v7  ;;  %v3377_v30 = vld [vmem:[%s4008_s8 + $0x98] sm:$0xff]  }
  0x79   : > { %v3533_v40 = vpop.eup %3532  ;;  %2469 = vst [vmem:[%s4142_s12 + $0xb0] sm:$0xff] %v2341_v17  ;;  %v2342_v46 = vmul.f32 %v3531_v20, %v4277_v19  ;;  %v2685_v28 = vmul.f32 -1.442695, %v1454_v23  ;;  %v679_v3 = vadd.f32 %v4015_v9, %v547_v26  ;;  %v2855_v44 = vunpack.c.h.bf16 %v3312_v62 }
  0x7a   : > { %v3535_v51 = vpop.eup %3534  ;;  %3544 = vrcp.f32 %v1961_v22  ;;  %v1962_v27 = vadd.f32 1.0, %v3533_v40  ;;  %v2686_v54 = vmul.f32 -1.442695, %v1455_v32  ;;  %v4386_v37 = vadd.f32 %v1199_v25, %v678_v42 }
  0x7b   : > { %v3537_v34 = vpop.eup %3536  ;;  %2470 = vst [vmem:[%s4142_s12 + $0xb8] sm:$0xff] %v2342_v46  ;;  %v2343_v19 = vmul.f32 %v3535_v51, %v4284_v10  ;;  %v1200_v43 = vadd.f32 %v4018_v11, %v1068_v29  ;;  %v3111_v48 = vunpack.c.h.bf16 %v3375_v21  ;;  %v2858_v5 = vunpack.c.l.bf16 %v3313_v35 }
  0x7c   : > { %3546 = vrcp.f32 %v1962_v27  ;;  %v1963_v39 = vadd.f32 1.0, %v3537_v34  ;;  %v1456_v47 = vmul.f32 %v4020_v12, %v4386_v37  ;;  %v548_v8 = vmul.f32 %v2855_v44, %v4010_v6 }
  0x7d   : > { %2471 = vst [vmem:[%s4142_s12 + $0xc0] sm:$0xff] %v2343_v19  ;;  %3548 = vpow2.f32 %v2685_v28  ;;  %v4394_v10 = vadd.f32 %v1200_v43, %v679_v3  ;;  %v3114_v49 = vunpack.c.l.bf16 %v3376_v58  ;;  %v1069_v53 = vmul.f32 %v3111_v48, %v4012_v7  ;;  %v3315_v43 = vld [vmem:[%s4003_s30 + $0xa0] sm:$0xff]  }
  0x7e   : > { %3550 = vrcp.f32 %v1963_v39  ;;  %v3539_v50 = vpop.eup %3538  ;;  %v2687_v41 = vmul.f32 -1.442695, %v1456_v47  ;;  %v549_v55 = vmul.f32 %v2858_v5, %v4010_v6  ;;  %v680_v59 = vadd.f32 %v4015_v9, %v548_v8 }
  0x7f   : > { %3552 = vpow2.f32 %v2686_v54  ;;  %v3541_v56 = vpop.eup %3540  ;;  %v2344_v4 = vmul.f32 %v3539_v50, %v4298_v33  ;;  %v1457_v57 = vmul.f32 %v4020_v12, %v4394_v10  ;;  %v1070_v60 = vmul.f32 %v3114_v49, %v4012_v7  ;;  %v3378_v50 = vld [vmem:[%s4008_s8 + $0xa0] sm:$0xff]  }
  0x80   : > { %v1964_v62 = vadd.f32 1.0, %v3541_v56  ;;  %3554 = vpow2.f32 %v2687_v41  ;;  %v1201_v63 = vadd.f32 %v4018_v11, %v1069_v53  ;;  %v681_v18 = vadd.f32 %v4015_v9, %v549_v55 }
  0x81   : > { %v3543_v2 = vpop.eup %3542  ;;  %2472 = vst [vmem:[%s4142_s12 + $0xc8] sm:$0xff] %v2344_v4  ;;  %v2688_v21 = vmul.f32 -1.442695, %v1457_v57  ;;  %v1202_v33 = vadd.f32 %v4018_v11, %v1070_v60  ;;  %v2859_v31 = vunpack.c.h.bf16 %v3313_v35  ;;  %v3115_v13 = vunpack.c.h.bf16 %v3376_v58 }
  0x82   : > { %3556 = vrcp.f32 %v1964_v62  ;;  %v1965_v42 = vadd.f32 1.0, %v3543_v2  ;;  %v4409_v16 = vadd.f32 %v1201_v63, %v680_v59  ;;  %v2862_v17 = vunpack.c.l.bf16 %v3314_v15 }
  0x83   : > { %3558 = vpow2.f32 %v2688_v21  ;;  %v4412_v20 = vadd.f32 %v1202_v33, %v681_v18  ;;  %v550_v22 = vmul.f32 %v2859_v31, %v4010_v6  ;;  %v1071_v23 = vmul.f32 %v3115_v13, %v4012_v7  ;;  %v3316_v31 = vld [vmem:[%s4003_s30 + $0xa8] sm:$0xff]  }
  0x84   : > { %v3545_v36 = vpop.eup %3544  ;;  %3560 = vrcp.f32 %v1965_v42  ;;  %v1458_v40 = vmul.f32 %v4020_v12, %v4409_v16  ;;  %v551_v46 = vmul.f32 %v2862_v17, %v4010_v6  ;;  %v3118_v27 = vunpack.c.l.bf16 %v3377_v30 }
  0x85   : > { %v2345_v24 = vmul.f32 %v3545_v36, %v4310_v52  ;;  %v1459_v25 = vmul.f32 %v4020_v12, %v4412_v20  ;;  %v682_v26 = vadd.f32 %v4015_v9, %v550_v22  ;;  %v1203_v51 = vadd.f32 %v4018_v11, %v1071_v23  ;;  %v3379_v36 = vld [vmem:[%s4008_s8 + $0xa8] sm:$0xff]  }
  0x86   : > { %v3547_v32 = vpop.eup %3546  ;;  %v2689_v29 = vmul.f32 -1.442695, %v1458_v40  ;;  %v683_v35 = vadd.f32 %v4015_v9, %v551_v46  ;;  %v2863_v34 = vunpack.c.h.bf16 %v3314_v15  ;;  %v1072_v39 = vmul.f32 %v3118_v27, %v4012_v7 }
  0x87   : > { %v3549_v28 = vpop.eup %3548  ;;  %2473 = vst [vmem:[%s4142_s12 + $0xd0] sm:$0xff] %v2345_v24  ;;  %v2346_v52 = vmul.f32 %v3547_v32, %v4320_v61  ;;  %v2690_v3 = vmul.f32 -1.442695, %v1459_v25  ;;  %v4427_v58 = vadd.f32 %v1203_v51, %v682_v26  ;;  %v3119_v48 = vunpack.c.h.bf16 %v3377_v30 }
  0x88   : > { %v3551_v19 = vpop.eup %3550  ;;  %v1966_v54 = vadd.f32 1.0, %v3549_v28  ;;  %3562 = vpow2.f32 %v2689_v29  ;;  %v552_v61 = vmul.f32 %v2863_v34, %v4010_v6  ;;  %v1204_v49 = vadd.f32 %v4018_v11, %v1072_v39 }
  0x89   : > { %v3553_v44 = vpop.eup %3552  ;;  %2474 = vst [vmem:[%s4142_s12 + $0xd8] sm:$0xff] %v2346_v52  ;;  %v2347_v47 = vmul.f32 %v3551_v19, %v4325_v0  ;;  %v1460_v8 = vmul.f32 %v4020_v12, %v4427_v58  ;;  %v1073_v55 = vmul.f32 %v3119_v48, %v4012_v7  ;;  %v2866_v0 = vunpack.c.l.bf16 %v3315_v43 }
  0x8a   : > { %3564 = vrcp.f32 %v1966_v54  ;;  %v1967_v5 = vadd.f32 1.0, %v3553_v44  ;;  %v3555_v41 = vpop.eup %3554  ;;  %v684_v53 = vadd.f32 %v4015_v9, %v552_v61  ;;  %v4441_v57 = vadd.f32 %v1204_v49, %v683_v35  ;;  %v3317_v61 = vld [vmem:[%s4003_s30 + $0xb0] sm:$0xff]  }
  0x8b   : > { %2475 = vst [vmem:[%s4142_s12 + $0xe0] sm:$0xff] %v2347_v47  ;;  %3566 = vpow2.f32 %v2690_v3  ;;  %v1968_v56 = vadd.f32 1.0, %v3555_v41  ;;  %v2691_v4 = vmul.f32 -1.442695, %v1460_v8  ;;  %v1205_v60 = vadd.f32 %v4018_v11, %v1073_v55 }
  0x8c   : > { %3568 = vrcp.f32 %v1967_v5  ;;  %v3557_v59 = vpop.eup %3556  ;;  %v553_v15 = vmul.f32 %v2866_v0, %v4010_v6  ;;  %v3122_v62 = vunpack.c.l.bf16 %v3378_v50  ;;  %v2867_v63 = vunpack.c.h.bf16 %v3315_v43 }
  0x8d   : > { %v3559_v18 = vpop.eup %3558  ;;  %v2348_v2 = vmul.f32 %v3557_v59, %v4343_v38  ;;  %3570 = vrcp.f32 %v1968_v56  ;;  %v1461_v21 = vmul.f32 %v4020_v12, %v4441_v57  ;;  %v3123_v33 = vunpack.c.h.bf16 %v3378_v50  ;;  %v3380_v59 = vld [vmem:[%s4008_s8 + $0xb0] sm:$0xff]  }
  0x8e   : > { %v3561_v13 = vpop.eup %3560  ;;  %v1969_v42 = vadd.f32 1.0, %v3559_v18  ;;  %3572 = vpow2.f32 %v2691_v4  ;;  %v4449_v17 = vadd.f32 %v1205_v60, %v684_v53  ;;  %v685_v30 = vadd.f32 %v4015_v9, %v553_v15 }
  0x8f   : > { %2476 = vst [vmem:[%s4142_s12 + $0xe8] sm:$0xff] %v2348_v2  ;;  %v2349_v22 = vmul.f32 %v3561_v13, %v4351_v1  ;;  %v2692_v23 = vmul.f32 -1.442695, %v1461_v21  ;;  %v1074_v38 = vmul.f32 %v3122_v62, %v4012_v7  ;;  %v554_v24 = vmul.f32 %v2867_v63, %v4010_v6 }
  0x90   : > { %3574 = vrcp.f32 %v1969_v42  ;;  %v1462_v40 = vmul.f32 %v4020_v12, %v4449_v17  ;;  %v1075_v46 = vmul.f32 %v3123_v33, %v4012_v7  ;;  %v2870_v32 = vunpack.c.l.bf16 %v3316_v31  ;;  %v3318_v42 = vld [vmem:[%s4003_s30 + $0xb8] sm:$0xff]  }
  0x91   : > { %2477 = vst [vmem:[%s4142_s12 + $0xf0] sm:$0xff] %v2349_v22  ;;  %3576 = vpow2.f32 %v2692_v23  ;;  %v1206_v25 = vadd.f32 %v4018_v11, %v1074_v38  ;;  %v686_v26 = vadd.f32 %v4015_v9, %v554_v24  ;;  %v3126_v51 = vunpack.c.l.bf16 %v3379_v36 }
  0x92   : > { %v3563_v1 = vpop.eup %3562  ;;  %v2693_v27 = vmul.f32 -1.442695, %v1462_v40  ;;  %v1207_v28 = vadd.f32 %v4018_v11, %v1075_v46  ;;  %v555_v52 = vmul.f32 %v2870_v32, %v4010_v6  ;;  %v2871_v29 = vunpack.c.h.bf16 %v3316_v31 }
  0x93   : > { %v1970_v34 = vadd.f32 1.0, %v3563_v1  ;;  %v4465_v19 = vadd.f32 %v1206_v25, %v685_v30  ;;  %v1076_v54 = vmul.f32 %v3126_v51, %v4012_v7  ;;  %v3127_v3 = vunpack.c.h.bf16 %v3379_v36  ;;  %v3381_v30 = vld [vmem:[%s4008_s8 + $0xb8] sm:$0xff]  }
  0x94   : > { %v3565_v35 = vpop.eup %3564  ;;  %3578 = vpow2.f32 %v2693_v27  ;;  %v4469_v44 = vadd.f32 %v1207_v28, %v686_v26  ;;  %v687_v47 = vadd.f32 %v4015_v9, %v555_v52  ;;  %v556_v41 = vmul.f32 %v2871_v29, %v4010_v6 }
  0x95   : > { %v3567_v39 = vpop.eup %3566  ;;  %v2350_v43 = vmul.f32 %v3565_v35, %v4366_v14  ;;  %3580 = vrcp.f32 %v1970_v34  ;;  %v1463_v8 = vmul.f32 %v4020_v12, %v4465_v19  ;;  %v1208_v49 = vadd.f32 %v4018_v11, %v1076_v54 }
  0x96   : > { %v3569_v48 = vpop.eup %3568  ;;  %v1971_v5 = vadd.f32 1.0, %v3567_v39  ;;  %v1464_v14 = vmul.f32 %v4020_v12, %v4469_v44  ;;  %v1077_v53 = vmul.f32 %v3127_v3, %v4012_v7  ;;  %v2874_v4 = vunpack.c.l.bf16 %v3317_v61 }
  0x97   : > { %2478 = vst [vmem:[%s4142_s12 + $0xf8] sm:$0xff] %v2350_v43  ;;  %v2351_v50 = vmul.f32 %v3569_v48, %v4371_v45  ;;  %v3571_v55 = vpop.eup %3570  ;;  %v2694_v0 = vmul.f32 -1.442695, %v1463_v8  ;;  %v4482_v56 = vadd.f32 %v1208_v49, %v687_v47  ;;  %v688_v62 = vadd.f32 %v4015_v9, %v556_v41  ;;  %v3319_v47 = vld [vmem:[%s4003_s30 + $0xc0] sm:$0xff]  }
  0x98   : > { %3582 = vrcp.f32 %v1971_v5  ;;  %v3573_v60 = vpop.eup %3572  ;;  %v2352_v45 = vmul.f32 %v3571_v55, %v4386_v37  ;;  %v2695_v15 = vmul.f32 -1.442695, %v1464_v14  ;;  %v1209_v63 = vadd.f32 %v4018_v11, %v1077_v53 }
  0x99   : > { %2479 = vst [vmem:[%s4142_s12 + $0x100] sm:$0xff] %v2351_v50  ;;  %v1972_v18 = vadd.f32 1.0, %v3573_v60  ;;  %3584 = vpow2.f32 %v2694_v0  ;;  %v1465_v2 = vmul.f32 %v4020_v12, %v4482_v56  ;;  %v557_v21 = vmul.f32 %v2874_v4, %v4010_v6 }
  0x9a   : > { %v3575_v33 = vpop.eup %3574  ;;  %2480 = vst [vmem:[%s4142_s12 + $0x108] sm:$0xff] %v2352_v45  ;;  %3586 = vpow2.f32 %v2695_v15  ;;  %v4493_v31 = vadd.f32 %v1209_v63, %v688_v62  ;;  %v3130_v13 = vunpack.c.l.bf16 %v3380_v59  ;;  %v2875_v37 = vunpack.c.h.bf16 %v3317_v61  ;;  %v3382_v61 = vld [vmem:[%s4008_s8 + $0xc0] sm:$0xff]  }
  0x9b   : > { %v3577_v36 = vpop.eup %3576  ;;  %v2353_v22 = vmul.f32 %v3575_v33, %v4394_v10  ;;  %3588 = vrcp.f32 %v1972_v18  ;;  %v2696_v23 = vmul.f32 -1.442695, %v1465_v2  ;;  %v689_v38 = vadd.f32 %v4015_v9, %v557_v21 }
  0x9c   : > { %v1973_v24 = vadd.f32 1.0, %v3577_v36  ;;  %v1466_v40 = vmul.f32 %v4020_v12, %v4493_v31  ;;  %v1078_v46 = vmul.f32 %v3130_v13, %v4012_v7  ;;  %v558_v32 = vmul.f32 %v2875_v37, %v4010_v6 }
  0x9d   : > { %2481 = vst [vmem:[%s4142_s12 + $0x110] sm:$0xff] %v2353_v22  ;;  %3590 = vpow2.f32 %v2696_v23  ;;  %v3131_v25 = vunpack.c.h.bf16 %v3380_v59  ;;  %v2878_v26 = vunpack.c.l.bf16 %v3318_v42  ;;  %v3134_v51 = vunpack.c.l.bf16 %v3381_v30 }
  0x9e   : > { %v3579_v10 = vpop.eup %3578  ;;  %3592 = vrcp.f32 %v1973_v24  ;;  %v2697_v1 = vmul.f32 -1.442695, %v1466_v40  ;;  %v1210_v27 = vadd.f32 %v4018_v11, %v1078_v46  ;;  %v690_v28 = vadd.f32 %v4015_v9, %v558_v32 }
  0x9f   : > { %v3581_v52 = vpop.eup %3580  ;;  %v1974_v29 = vadd.f32 1.0, %v3579_v10  ;;  %v1079_v35 = vmul.f32 %v3131_v25, %v4012_v7  ;;  %v559_v34 = vmul.f32 %v2878_v26, %v4010_v6  ;;  %v1080_v54 = vmul.f32 %v3134_v51, %v4012_v7 }
  0xa0   : > { %v2354_v3 = vmul.f32 %v3581_v52, %v4409_v16  ;;  %3594 = vpow2.f32 %v2697_v1  ;;  %v4510_v39 = vadd.f32 %v1210_v27, %v689_v38  ;;  %v2879_v43 = vunpack.c.h.bf16 %v3318_v42  ;;  %v3320_v38 = vld [vmem:[%s4003_s30 + $0xc8] sm:$0xff]  }
  0xa1   : > { %3596 = vrcp.f32 %v1974_v29  ;;  %v1211_v5 = vadd.f32 %v4018_v11, %v1079_v35  ;;  %v691_v8 = vadd.f32 %v4015_v9, %v559_v34  ;;  %v1212_v49 = vadd.f32 %v4018_v11, %v1080_v54 }
  0xa2   : > { %v3583_v48 = vpop.eup %3582  ;;  %2482 = vst [vmem:[%s4142_s12 + $0x118] sm:$0xff] %v2354_v3  ;;  %v1467_v16 = vmul.f32 %v4020_v12, %v4510_v39  ;;  %v560_v14 = vmul.f32 %v2879_v43, %v4010_v6  ;;  %v3135_v41 = vunpack.c.h.bf16 %v3381_v30  ;;  %v2882_v4 = vunpack.c.l.bf16 %v3319_v47 }
  0xa3   : > { %v2355_v50 = vmul.f32 %v3583_v48, %v4412_v20  ;;  %v3585_v53 = vpop.eup %3584  ;;  %v4522_v55 = vadd.f32 %v1211_v5, %v690_v28  ;;  %v4524_v0 = vadd.f32 %v1212_v49, %v691_v8  ;;  %v3138_v59 = vunpack.c.l.bf16 %v3382_v61  ;;  %v3383_v28 = vld [vmem:[%s4008_s8 + $0xc8] sm:$0xff]   ;;  %v4560_v8 = vld [vmem:[%s4008_s8 + $0xd0] sm:$0xff]  }
  0xa4   : > { %v3587_v60 = vpop.eup %3586  ;;  %v1975_v45 = vadd.f32 1.0, %v3585_v53  ;;  %v2698_v15 = vmul.f32 -1.442695, %v1467_v16  ;;  %v692_v62 = vadd.f32 %v4015_v9, %v560_v14  ;;  %v1081_v20 = vmul.f32 %v3135_v41, %v4012_v7 }
  0xa5   : > { %2483 = vst [vmem:[%s4142_s12 + $0x120] sm:$0xff] %v2355_v50  ;;  %v3589_v63 = vpop.eup %3588  ;;  %v1976_v18 = vadd.f32 1.0, %v3587_v60  ;;  %v1468_v2 = vmul.f32 %v4020_v12, %v4522_v55  ;;  %v1469_v21 = vmul.f32 %v4020_v12, %v4524_v0  ;;  %v561_v33 = vmul.f32 %v2882_v4, %v4010_v6 }
  0xa6   : > { %v2356_v13 = vmul.f32 %v3589_v63, %v4427_v58  ;;  %3598 = vrcp.f32 %v1975_v45  ;;  %v1213_v37 = vadd.f32 %v4018_v11, %v1081_v20  ;;  %v1082_v42 = vmul.f32 %v3138_v59, %v4012_v7 }
  0xa7   : > { %v3591_v30 = vpop.eup %3590  ;;  %3600 = vrcp.f32 %v1976_v18  ;;  %v2699_v36 = vmul.f32 -1.442695, %v1468_v2  ;;  %v2700_v22 = vmul.f32 -1.442695, %v1469_v21  ;;  %v693_v23 = vadd.f32 %v4015_v9, %v561_v33 }
  0xa8   : > { %v3593_v24 = vpop.eup %3592  ;;  %2484 = vst [vmem:[%s4142_s12 + $0x128] sm:$0xff] %v2356_v13  ;;  %v1977_v40 = vadd.f32 1.0, %v3591_v30  ;;  %3602 = vpow2.f32 %v2698_v15  ;;  %v4540_v46 = vadd.f32 %v1213_v37, %v692_v62  ;;  %v1214_v58 = vadd.f32 %v4018_v11, %v1082_v42 }
  0xa9   : > { %v2357_v32 = vmul.f32 %v3593_v24, %v4441_v57  ;;  %3604 = vpow2.f32 %v2699_v36  ;;  %v2883_v25 = vunpack.c.h.bf16 %v3319_v47  ;;  %v3139_v26 = vunpack.c.h.bf16 %v3382_v61  ;;  %v3321_v47 = vld [vmem:[%s4003_s30 + $0xd0] sm:$0xff]  }
  0xaa   : > { %v3595_v51 = vpop.eup %3594  ;;  %3606 = vrcp.f32 %v1977_v40  ;;  %v1470_v10 = vmul.f32 %v4020_v12, %v4540_v46  ;;  %v4546_v1 = vadd.f32 %v1214_v58, %v693_v23  ;;  %v2886_v27 = vunpack.c.l.bf16 %v3320_v38 }
  0xab   : > { %v3597_v52 = vpop.eup %3596  ;;  %2485 = vst [vmem:[%s4142_s12 + $0x130] sm:$0xff] %v2357_v32  ;;  %v1978_v29 = vadd.f32 1.0, %v3595_v51  ;;  %3608 = vpow2.f32 %v2700_v22  ;;  %v562_v57 = vmul.f32 %v2883_v25, %v4010_v6  ;;  %v1083_v35 = vmul.f32 %v3139_v26, %v4012_v7  ;;  %v3322_v51 = vld [vmem:[%s4003_s30 + $0xd8] sm:$0xff]  }
  0xac   : > { %v2358_v34 = vmul.f32 %v3597_v52, %v4449_v17  ;;  %v2701_v54 = vmul.f32 -1.442695, %v1470_v10  ;;  %v1471_v3 = vmul.f32 %v4020_v12, %v4546_v1  ;;  %v563_v43 = vmul.f32 %v2886_v27, %v4010_v6 }
  0xad   : > { %3610 = vrcp.f32 %v1978_v29  ;;  %v694_v61 = vadd.f32 %v4015_v9, %v562_v57  ;;  %v1215_v48 = vadd.f32 %v4018_v11, %v1083_v35  ;;  %v3142_v5 = vunpack.c.l.bf16 %v3383_v28  ;;  %v3385_v35 = vld [vmem:[%s4008_s8 + $0xd8] sm:$0xff]  }
  0xae   : > { %2486 = vst [vmem:[%s4142_s12 + $0x138] sm:$0xff] %v2358_v34  ;;  %3612 = vpow2.f32 %v2701_v54  ;;  %v2702_v49 = vmul.f32 -1.442695, %v1471_v3  ;;  %v695_v17 = vadd.f32 %v4015_v9, %v563_v43  ;;  %v2887_v50 = vunpack.c.h.bf16 %v3320_v38 }
  0xaf   : > { %v4564_v16 = vadd.f32 %v1215_v48, %v694_v61  ;;  %v1084_v14 = vmul.f32 %v3142_v5, %v4012_v7  ;;  %v3143_v41 = vunpack.c.h.bf16 %v3383_v28  ;;  %v2890_v53 = vunpack.c.l.bf16 %v3321_v47 }
  0xb0   : > { %v3599_v4 = vpop.eup %3598  ;;  %3614 = vpow2.f32 %v2702_v49  ;;  %v564_v59 = vmul.f32 %v2887_v50, %v4010_v6  ;;  %v3146_v60 = vunpack.c.l.bf16 %v4560_v8  ;;  %v2891_v45 = vunpack.c.h.bf16 %v3321_v47 }
  0xb1   : > { %v3601_v15 = vpop.eup %3600  ;;  %v2359_v62 = vmul.f32 %v3599_v4, %v4465_v19  ;;  %v1472_v20 = vmul.f32 %v4020_v12, %v4564_v16  ;;  %v1216_v63 = vadd.f32 %v4018_v11, %v1084_v14  ;;  %v1085_v18 = vmul.f32 %v3143_v41, %v4012_v7  ;;  %v3323_v14 = vld [vmem:[%s4003_s30 + $0xe0] sm:$0xff]  }
  0xb2   : > { %v3603_v2 = vpop.eup %3602  ;;  %v2360_v21 = vmul.f32 %v3601_v15, %v4469_v44  ;;  %v696_v33 = vadd.f32 %v4015_v9, %v564_v59  ;;  %v565_v13 = vmul.f32 %v2890_v53, %v4010_v6  ;;  %v1086_v37 = vmul.f32 %v3146_v60, %v4012_v7  ;;  %v3386_v4 = vld [vmem:[%s4008_s8 + $0xe0] sm:$0xff]  }
  0xb3   : > { %v3605_v42 = vpop.eup %3604  ;;  %2487 = vst [vmem:[%s4142_s12 + $0x140] sm:$0xff] %v2359_v62  ;;  %v1979_v19 = vadd.f32 1.0, %v3603_v2  ;;  %v2703_v30 = vmul.f32 -1.442695, %v1472_v20  ;;  %v4579_v36 = vadd.f32 %v1216_v63, %v695_v17  ;;  %v1217_v22 = vadd.f32 %v4018_v11, %v1085_v18 }
  0xb4   : > { %v3607_v23 = vpop.eup %3606  ;;  %2488 = vst [vmem:[%s4142_s12 + $0x148] sm:$0xff] %v2360_v21  ;;  %v1980_v38 = vadd.f32 1.0, %v3605_v42  ;;  %v697_v44 = vadd.f32 %v4015_v9, %v565_v13  ;;  %v1218_v24 = vadd.f32 %v4018_v11, %v1086_v37  ;;  %v566_v40 = vmul.f32 %v2891_v45, %v4010_v6 }
  0xb5   : > { %v3609_v58 = vpop.eup %3608  ;;  %v2361_v32 = vmul.f32 %v3607_v23, %v4482_v56  ;;  %3616 = vrcp.f32 %v1979_v19  ;;  %v1473_v25 = vmul.f32 %v4020_v12, %v4579_v36  ;;  %v4589_v26 = vadd.f32 %v1217_v22, %v696_v33 }
  0xb6   : > { %3618 = vrcp.f32 %v1980_v38  ;;  %v1981_v10 = vadd.f32 1.0, %v3609_v58  ;;  %v4592_v27 = vadd.f32 %v1218_v24, %v697_v44  ;;  %v698_v28 = vadd.f32 %v4015_v9, %v566_v40 }
  0xb7   : > { %v3611_v52 = vpop.eup %3610  ;;  %2489 = vst [vmem:[%s4142_s12 + $0x150] sm:$0xff] %v2361_v32  ;;  %3620 = vpow2.f32 %v2703_v30  ;;  %v2704_v29 = vmul.f32 -1.442695, %v1473_v25  ;;  %v1474_v56 = vmul.f32 %v4020_v12, %v4589_v26  ;;  %v3147_v57 = vunpack.c.h.bf16 %v4560_v8 }
  0xb8   : > { %v3613_v34 = vpop.eup %3612  ;;  %v2362_v54 = vmul.f32 %v3611_v52, %v4493_v31  ;;  %3622 = vrcp.f32 %v1981_v10  ;;  %v1475_v3 = vmul.f32 %v4020_v12, %v4592_v27  ;;  %v2894_v43 = vunpack.c.l.bf16 %v3322_v51  ;;  %v3324_v52 = vld [vmem:[%s4003_s30 + $0xe8] sm:$0xff]  }
  0xb9   : > { %v1982_v47 = vadd.f32 1.0, %v3613_v34  ;;  %3624 = vpow2.f32 %v2704_v29  ;;  %v2705_v61 = vmul.f32 -1.442695, %v1474_v56  ;;  %v1087_v48 = vmul.f32 %v3147_v57, %v4012_v7 }
  0xba   : > { %v3615_v5 = vpop.eup %3614  ;;  %2490 = vst [vmem:[%s4142_s12 + $0x158] sm:$0xff] %v2362_v54  ;;  %v2706_v49 = vmul.f32 -1.442695, %v1475_v3  ;;  %v567_v8 = vmul.f32 %v2894_v43, %v4010_v6  ;;  %v3150_v17 = vunpack.c.l.bf16 %v3385_v35  ;;  %v2895_v50 = vunpack.c.h.bf16 %v3322_v51 }
  0xbb   : > { %3626 = vrcp.f32 %v1982_v47  ;;  %v1983_v31 = vadd.f32 1.0, %v3615_v5  ;;  %v1219_v41 = vadd.f32 %v4018_v11, %v1087_v48  ;;  %v3151_v53 = vunpack.c.h.bf16 %v3385_v35  ;;  %v3387_v35 = vld [vmem:[%s4008_s8 + $0xe8] sm:$0xff]  }
  0xbc   : > { %3628 = vpow2.f32 %v2705_v61  ;;  %v699_v59 = vadd.f32 %v4015_v9, %v567_v8  ;;  %v1088_v60 = vmul.f32 %v3150_v17, %v4012_v7  ;;  %v568_v45 = vmul.f32 %v2895_v50, %v4010_v6 }
  0xbd   : > { %3630 = vrcp.f32 %v1983_v31  ;;  %v4612_v15 = vadd.f32 %v1219_v41, %v698_v28  ;;  %v1089_v62 = vmul.f32 %v3151_v53, %v4012_v7  ;;  %v2898_v20 = vunpack.c.l.bf16 %v3323_v14 }
  0xbe   : > { %3632 = vpow2.f32 %v2706_v49  ;;  %v1220_v63 = vadd.f32 %v4018_v11, %v1088_v60  ;;  %v700_v18 = vadd.f32 %v4015_v9, %v568_v45  ;;  %v3154_v2 = vunpack.c.l.bf16 %v3386_v4  ;;  %v3325_v60 = vld [vmem:[%s4003_s30 + $0xf0] sm:$0xff]  }
  0xbf   : > { %v3617_v21 = vpop.eup %3616  ;;  %v1476_v33 = vmul.f32 %v4020_v12, %v4612_v15  ;;  %v1221_v13 = vadd.f32 %v4018_v11, %v1089_v62  ;;  %v569_v37 = vmul.f32 %v2898_v20, %v4010_v6  ;;  %v2899_v42 = vunpack.c.h.bf16 %v3323_v14  ;;  %v3388_v45 = vld [vmem:[%s4008_s8 + $0xf0] sm:$0xff]  }
  0xc0   : > { %v3619_v19 = vpop.eup %3618  ;;  %v2363_v30 = vmul.f32 %v3617_v21, %v4510_v39  ;;  %v4622_v22 = vadd.f32 %v1220_v63, %v699_v59  ;;  %v1090_v23 = vmul.f32 %v3154_v2, %v4012_v7  ;;  %v3155_v38 = vunpack.c.h.bf16 %v3386_v4 }
  0xc1   : > { %v3621_v44 = vpop.eup %3620  ;;  %v2364_v24 = vmul.f32 %v3619_v19, %v4522_v55  ;;  %v2707_v40 = vmul.f32 -1.442695, %v1476_v33  ;;  %v4626_v58 = vadd.f32 %v1221_v13, %v700_v18  ;;  %v701_v32 = vadd.f32 %v4015_v9, %v569_v37 }
  0xc2   : > { %v3623_v25 = vpop.eup %3622  ;;  %2491 = vst [vmem:[%s4142_s12 + $0x160] sm:$0xff] %v2363_v30  ;;  %v1984_v51 = vadd.f32 1.0, %v3621_v44  ;;  %v1477_v39 = vmul.f32 %v4020_v12, %v4622_v22  ;;  %v1222_v10 = vadd.f32 %v4018_v11, %v1090_v23  ;;  %v570_v28 = vmul.f32 %v2899_v42, %v4010_v6 }
  0xc3   : > { %v3625_v29 = vpop.eup %3624  ;;  %2492 = vst [vmem:[%s4142_s12 + $0x168] sm:$0xff] %v2364_v24  ;;  %v2365_v55 = vmul.f32 %v3623_v25, %v4524_v0  ;;  %3634 = vpow2.f32 %v2707_v40  ;;  %v1478_v56 = vmul.f32 %v4020_v12, %v4626_v58  ;;  %v1091_v57 = vmul.f32 %v3155_v38, %v4012_v7 }
  0xc4   : > { %3636 = vrcp.f32 %v1984_v51  ;;  %v1985_v34 = vadd.f32 1.0, %v3625_v29  ;;  %v2708_v54 = vmul.f32 -1.442695, %v1477_v39  ;;  %v4641_v3 = vadd.f32 %v1222_v10, %v701_v32  ;;  %v3326_v10 = vld [vmem:[%s4003_s30 + $0xf8] sm:$0xff]  }
  0xc5   : > { %v3627_v43 = vpop.eup %3626  ;;  %2493 = vst [vmem:[%s4142_s12 + $0x170] sm:$0xff] %v2365_v55  ;;  %v2709_v47 = vmul.f32 -1.442695, %v1478_v56  ;;  %v702_v61 = vadd.f32 %v4015_v9, %v570_v28  ;;  %v1223_v0 = vadd.f32 %v4018_v11, %v1091_v57  ;;  %v2902_v48 = vunpack.c.l.bf16 %v3324_v52 }
  0xc6   : > { %v3629_v5 = vpop.eup %3628  ;;  %v2366_v49 = vmul.f32 %v3627_v43, %v4540_v46  ;;  %3638 = vrcp.f32 %v1985_v34  ;;  %v1479_v8 = vmul.f32 %v4020_v12, %v4641_v3  ;;  %v3158_v17 = vunpack.c.l.bf16 %v3387_v35 }
  0xc7   : > { %v3631_v50 = vpop.eup %3630  ;;  %v1986_v14 = vadd.f32 1.0, %v3629_v5  ;;  %3640 = vpow2.f32 %v2708_v54  ;;  %v4649_v31 = vadd.f32 %v1223_v0, %v702_v61  ;;  %v571_v41 = vmul.f32 %v2902_v48, %v4010_v6  ;;  %v3389_v54 = vld [vmem:[%s4008_s8 + $0xf8] sm:$0xff]  }
  0xc8   : > { %v3633_v53 = vpop.eup %3632  ;;  %2494 = vst [vmem:[%s4142_s12 + $0x178] sm:$0xff] %v2366_v49  ;;  %v2367_v4 = vmul.f32 %v3631_v50, %v4546_v1  ;;  %3642 = vpow2.f32 %v2709_v47  ;;  %v2710_v46 = vmul.f32 -1.442695, %v1479_v8  ;;  %v1092_v59 = vmul.f32 %v3158_v17, %v4012_v7 }
  0xc9   : > { %3644 = vrcp.f32 %v1986_v14  ;;  %v1987_v62 = vadd.f32 1.0, %v3633_v53  ;;  %v1480_v20 = vmul.f32 %v4020_v12, %v4649_v31  ;;  %v703_v63 = vadd.f32 %v4015_v9, %v571_v41 }
  0xca   : > { %2495 = vst [vmem:[%s4142_s12 + $0x180] sm:$0xff] %v2367_v4  ;;  %3646 = vpow2.f32 %v2710_v46  ;;  %v1224_v18 = vadd.f32 %v4018_v11, %v1092_v59  ;;  %v2903_v2 = vunpack.c.h.bf16 %v3324_v52  ;;  %v3159_v21 = vunpack.c.h.bf16 %v3387_v35 }
  0xcb   : > { %3648 = vrcp.f32 %v1987_v62  ;;  %v2711_v1 = vmul.f32 -1.442695, %v1480_v20  ;;  %v2906_v33 = vunpack.c.l.bf16 %v3325_v60  ;;  %v3162_v13 = vunpack.c.l.bf16 %v3388_v45 }
  0xcc   : > { %v4662_v37 = vadd.f32 %v1224_v18, %v703_v63  ;;  %v572_v42 = vmul.f32 %v2903_v2, %v4010_v6  ;;  %v1093_v19 = vmul.f32 %v3159_v21, %v4012_v7  ;;  %v2907_v30 = vunpack.c.h.bf16 %v3325_v60  ;;  %v3327_v60 = vld [vmem:[%s4003_s30 + $0x100] sm:$0xff]  }
  0xcd   : > { %v3635_v23 = vpop.eup %3634  ;;  %3650 = vpow2.f32 %v2711_v1  ;;  %v573_v38 = vmul.f32 %v2906_v33, %v4010_v6  ;;  %v1094_v44 = vmul.f32 %v3162_v13, %v4012_v7  ;;  %v3163_v24 = vunpack.c.h.bf16 %v3388_v45  ;;  %v3390_v21 = vld [vmem:[%s4008_s8 + $0x100] sm:$0xff]  }
  0xce   : > { %v3637_v40 = vpop.eup %3636  ;;  %v1988_v32 = vadd.f32 1.0, %v3635_v23  ;;  %v1481_v25 = vmul.f32 %v4020_v12, %v4662_v37  ;;  %v704_v51 = vadd.f32 %v4015_v9, %v572_v42  ;;  %v1225_v39 = vadd.f32 %v4018_v11, %v1093_v19 }
  0xcf   : > { %v2368_v28 = vmul.f32 %v3637_v40, %v4564_v16  ;;  %v705_v52 = vadd.f32 %v4015_v9, %v573_v38  ;;  %v1226_v29 = vadd.f32 %v4018_v11, %v1094_v44  ;;  %v574_v55 = vmul.f32 %v2907_v30, %v4010_v6 }
  0xd0   : > { %v3639_v56 = vpop.eup %3638  ;;  %3652 = vrcp.f32 %v1988_v32  ;;  %v2712_v57 = vmul.f32 -1.442695, %v1481_v25  ;;  %v4677_v35 = vadd.f32 %v1225_v39, %v704_v51  ;;  %v1095_v34 = vmul.f32 %v3163_v24, %v4012_v7  ;;  %v3328_v39 = vld [vmem:[%s4003_s30 + $0x108] sm:$0xff]  }
  0xd1   : > { %v3641_v43 = vpop.eup %3640  ;;  %2496 = vst [vmem:[%s4142_s12 + $0x188] sm:$0xff] %v2368_v28  ;;  %v2369_v47 = vmul.f32 %v3639_v56, %v4579_v36  ;;  %v4683_v16 = vadd.f32 %v1226_v29, %v705_v52  ;;  %v706_v61 = vadd.f32 %v4015_v9, %v574_v55  ;;  %v2910_v0 = vunpack.c.l.bf16 %v3326_v10  ;;  %v3391_v29 = vld [vmem:[%s4008_s8 + $0x108] sm:$0xff]  }
  0xd2   : > { %v3643_v48 = vpop.eup %3642  ;;  %v1989_v5 = vadd.f32 1.0, %v3641_v43  ;;  %3654 = vpow2.f32 %v2712_v57  ;;  %v1482_v49 = vmul.f32 %v4020_v12, %v4677_v35  ;;  %v1227_v8 = vadd.f32 %v4018_v11, %v1095_v34 }
  0xd3   : > { %v3645_v17 = vpop.eup %3644  ;;  %2497 = vst [vmem:[%s4142_s12 + $0x190] sm:$0xff] %v2369_v47  ;;  %v1990_v50 = vadd.f32 1.0, %v3643_v48  ;;  %v1483_v36 = vmul.f32 %v4020_v12, %v4683_v16  ;;  %v575_v14 = vmul.f32 %v2910_v0, %v4010_v6  ;;  %v3166_v41 = vunpack.c.l.bf16 %v3389_v54 }
  0xd4   : > { %v3647_v53 = vpop.eup %3646  ;;  %v2370_v4 = vmul.f32 %v3645_v17, %v4589_v26  ;;  %3656 = vrcp.f32 %v1989_v5  ;;  %v2713_v46 = vmul.f32 -1.442695, %v1482_v49  ;;  %v4694_v59 = vadd.f32 %v1227_v8, %v706_v61 }
  0xd5   : > { %v3649_v45 = vpop.eup %3648  ;;  %3658 = vrcp.f32 %v1990_v50  ;;  %v1991_v62 = vadd.f32 1.0, %v3647_v53  ;;  %v2714_v20 = vmul.f32 -1.442695, %v1483_v36  ;;  %v707_v63 = vadd.f32 %v4015_v9, %v575_v14 }
  0xd6   : > { %2498 = vst [vmem:[%s4142_s12 + $0x198] sm:$0xff] %v2370_v4  ;;  %v2371_v18 = vmul.f32 %v3649_v45, %v4592_v27  ;;  %3660 = vpow2.f32 %v2713_v46  ;;  %v1484_v2 = vmul.f32 %v4020_v12, %v4694_v59  ;;  %v1096_v26 = vmul.f32 %v3166_v41, %v4012_v7 }
  0xd7   : > { %v3651_v1 = vpop.eup %3650  ;;  %3662 = vrcp.f32 %v1991_v62  ;;  %v2911_v33 = vunpack.c.h.bf16 %v3326_v10  ;;  %v3167_v13 = vunpack.c.h.bf16 %v3389_v54  ;;  %v2914_v42 = vunpack.c.l.bf16 %v3327_v60 }
  0xd8   : > { %2499 = vst [vmem:[%s4142_s12 + $0x1a0] sm:$0xff] %v2371_v18  ;;  %v1992_v19 = vadd.f32 1.0, %v3651_v1  ;;  %3664 = vpow2.f32 %v2714_v20  ;;  %v2715_v30 = vmul.f32 -1.442695, %v1484_v2  ;;  %v1228_v27 = vadd.f32 %v4018_v11, %v1096_v26 }
  0xd9   : > { %v576_v23 = vmul.f32 %v2911_v33, %v4010_v6  ;;  %v1097_v38 = vmul.f32 %v3167_v13, %v4012_v7  ;;  %v577_v44 = vmul.f32 %v2914_v42, %v4010_v6  ;;  %v3170_v24 = vunpack.c.l.bf16 %v3390_v21 }
  0xda   : > { %v3653_v40 = vpop.eup %3652  ;;  %3666 = vrcp.f32 %v1992_v19  ;;  %v4709_v32 = vadd.f32 %v1228_v27, %v707_v63  ;;  %v2915_v25 = vunpack.c.h.bf16 %v3327_v60  ;;  %v3171_v51 = vunpack.c.h.bf16 %v3390_v21  ;;  %v3392_v27 = vld [vmem:[%s4008_s8 + $0x110] sm:$0xff]  }
  0xdb   : > { %v2372_v10 = vmul.f32 %v3653_v40, %v4612_v15  ;;  %3668 = vpow2.f32 %v2715_v30  ;;  %v708_v28 = vadd.f32 %v4015_v9, %v576_v23  ;;  %v1229_v52 = vadd.f32 %v4018_v11, %v1097_v38  ;;  %v3329_v30 = vld [vmem:[%s4003_s30 + $0x110] sm:$0xff]  }
  0xdc   : > { %v3655_v55 = vpop.eup %3654  ;;  %v1485_v56 = vmul.f32 %v4020_v12, %v4709_v32  ;;  %v709_v57 = vadd.f32 %v4015_v9, %v577_v44  ;;  %v1098_v34 = vmul.f32 %v3170_v24, %v4012_v7  ;;  %v578_v54 = vmul.f32 %v2915_v25, %v4010_v6 }
  0xdd   : > { %2500 = vst [vmem:[%s4142_s12 + $0x1a8] sm:$0xff] %v2372_v10  ;;  %v1993_v43 = vadd.f32 1.0, %v3655_v55  ;;  %v4722_v47 = vadd.f32 %v1229_v52, %v708_v28  ;;  %v1099_v15 = vmul.f32 %v3171_v51, %v4012_v7  ;;  %v2918_v61 = vunpack.c.l.bf16 %v3328_v39 }
  0xde   : > { %v3657_v0 = vpop.eup %3656  ;;  %v2716_v48 = vmul.f32 -1.442695, %v1485_v56  ;;  %v1230_v5 = vadd.f32 %v4018_v11, %v1098_v34  ;;  %v710_v49 = vadd.f32 %v4015_v9, %v578_v54  ;;  %v3174_v8 = vunpack.c.l.bf16 %v3391_v29 }
  0xdf   : > { %v3659_v17 = vpop.eup %3658  ;;  %v2373_v50 = vmul.f32 %v3657_v0, %v4622_v22  ;;  %3670 = vrcp.f32 %v1993_v43  ;;  %v1486_v36 = vmul.f32 %v4020_v12, %v4722_v47  ;;  %v1231_v14 = vadd.f32 %v4018_v11, %v1099_v15 }
  0xe0   : > { %v3661_v41 = vpop.eup %3660  ;;  %v2374_v53 = vmul.f32 %v3659_v17, %v4626_v58  ;;  %3672 = vpow2.f32 %v2716_v48  ;;  %v4732_v4 = vadd.f32 %v1230_v5, %v709_v57  ;;  %v579_v46 = vmul.f32 %v2918_v61, %v4010_v6 }
  0xe1   : > { %v3663_v60 = vpop.eup %3662  ;;  %2501 = vst [vmem:[%s4142_s12 + $0x1b0] sm:$0xff] %v2373_v50  ;;  %v1994_v45 = vadd.f32 1.0, %v3661_v41  ;;  %v2717_v22 = vmul.f32 -1.442695, %v1486_v36  ;;  %v4736_v62 = vadd.f32 %v1231_v14, %v710_v49  ;;  %v1100_v20 = vmul.f32 %v3174_v8, %v4012_v7  ;;  %v3393_v49 = vld [vmem:[%s4008_s8 + $0x118] sm:$0xff]  }
  0xe2   : > { %v3665_v63 = vpop.eup %3664  ;;  %2502 = vst [vmem:[%s4142_s12 + $0x1b8] sm:$0xff] %v2374_v53  ;;  %v2375_v58 = vmul.f32 %v3663_v60, %v4641_v3  ;;  %v1487_v18 = vmul.f32 %v4020_v12, %v4732_v4  ;;  %v711_v2 = vadd.f32 %v4015_v9, %v579_v46  ;;  %v2919_v26 = vunpack.c.h.bf16 %v3328_v39  ;;  %v3330_v39 = vld [vmem:[%s4003_s30 + $0x118] sm:$0xff]  }
  0xe3   : > { %3674 = vrcp.f32 %v1994_v45  ;;  %v1995_v21 = vadd.f32 1.0, %v3665_v63  ;;  %v1488_v1 = vmul.f32 %v4020_v12, %v4736_v62  ;;  %v1232_v33 = vadd.f32 %v4018_v11, %v1100_v20 }
  0xe4   : > { %v3667_v13 = vpop.eup %3666  ;;  %2503 = vst [vmem:[%s4142_s12 + $0x1c0] sm:$0xff] %v2375_v58  ;;  %3676 = vpow2.f32 %v2717_v22  ;;  %v2718_v42 = vmul.f32 -1.442695, %v1487_v18  ;;  %v580_v3 = vmul.f32 %v2919_v26, %v4010_v6  ;;  %v3175_v19 = vunpack.c.h.bf16 %v3391_v29 }
  0xe5   : > { %v3669_v23 = vpop.eup %3668  ;;  %v2376_v38 = vmul.f32 %v3667_v13, %v4649_v31  ;;  %3678 = vrcp.f32 %v1995_v21  ;;  %v2719_v44 = vmul.f32 -1.442695, %v1488_v1  ;;  %v4752_v24 = vadd.f32 %v1232_v33, %v711_v2 }
  0xe6   : > { %v1996_v40 = vadd.f32 1.0, %v3669_v23  ;;  %3680 = vpow2.f32 %v2718_v42  ;;  %v712_v25 = vadd.f32 %v4015_v9, %v580_v3  ;;  %v1101_v51 = vmul.f32 %v3175_v19, %v4012_v7  ;;  %v3331_v19 = vld [vmem:[%s4003_s30 + $0x120] sm:$0xff]  }
  0xe7   : > { %2504 = vst [vmem:[%s4142_s12 + $0x1c8] sm:$0xff] %v2376_v38  ;;  %3682 = vpow2.f32 %v2719_v44  ;;  %v1489_v10 = vmul.f32 %v4020_v12, %v4752_v24  ;;  %v2922_v28 = vunpack.c.l.bf16 %v3329_v30  ;;  %v3178_v52 = vunpack.c.l.bf16 %v3392_v27  ;;  %v3394_v44 = vld [vmem:[%s4008_s8 + $0x120] sm:$0xff]  }
  0xe8   : > { %3684 = vrcp.f32 %v1996_v40  ;;  %v1233_v31 = vadd.f32 %v4018_v11, %v1101_v51  ;;  %v2923_v29 = vunpack.c.h.bf16 %v3329_v30  ;;  %v3179_v55 = vunpack.c.h.bf16 %v3392_v27 }
  0xe9   : > { %v3671_v56 = vpop.eup %3670  ;;  %v2720_v57 = vmul.f32 -1.442695, %v1489_v10  ;;  %v581_v34 = vmul.f32 %v2922_v28, %v4010_v6  ;;  %v1102_v54 = vmul.f32 %v3178_v52, %v4012_v7  ;;  %v2926_v43 = vunpack.c.l.bf16 %v3330_v39 }
  0xea   : > { %v3673_v15 = vpop.eup %3672  ;;  %v2377_v61 = vmul.f32 %v3671_v56, %v4662_v37  ;;  %v4764_v0 = vadd.f32 %v1233_v31, %v712_v25  ;;  %v582_v48 = vmul.f32 %v2923_v29, %v4010_v6  ;;  %v1103_v5 = vmul.f32 %v3179_v55, %v4012_v7 }
  0xeb   : > { %v1997_v8 = vadd.f32 1.0, %v3673_v15  ;;  %3686 = vpow2.f32 %v2720_v57  ;;  %v713_v17 = vadd.f32 %v4015_v9, %v581_v34  ;;  %v1234_v50 = vadd.f32 %v4018_v11, %v1102_v54 }
  0xec   : > { %2505 = vst [vmem:[%s4142_s12 + $0x1d0] sm:$0xff] %v2377_v61  ;;  %v1490_v36 = vmul.f32 %v4020_v12, %v4764_v0  ;;  %v714_v14 = vadd.f32 %v4015_v9, %v582_v48  ;;  %v1235_v37 = vadd.f32 %v4018_v11, %v1103_v5  ;;  %v583_v41 = vmul.f32 %v2926_v43, %v4010_v6  ;;  %v3332_v61 = vld [vmem:[%s4003_s30 + $0x128] sm:$0xff]  }
  0xed   : > { %v3675_v53 = vpop.eup %3674  ;;  %3688 = vrcp.f32 %v1997_v8  ;;  %v4777_v46 = vadd.f32 %v1234_v50, %v713_v17  ;;  %v3182_v60 = vunpack.c.l.bf16 %v3393_v49  ;;  %v2927_v45 = vunpack.c.h.bf16 %v3330_v39  ;;  %v3395_v50 = vld [vmem:[%s4008_s8 + $0x128] sm:$0xff]  }
  0xee   : > { %v3677_v22 = vpop.eup %3676  ;;  %v2378_v20 = vmul.f32 %v3675_v53, %v4677_v35  ;;  %v2721_v63 = vmul.f32 -1.442695, %v1490_v36  ;;  %v4780_v58 = vadd.f32 %v1235_v37, %v714_v14  ;;  %v715_v18 = vadd.f32 %v4015_v9, %v583_v41 }
  0xef   : > { %v3679_v2 = vpop.eup %3678  ;;  %v1998_v26 = vadd.f32 1.0, %v3677_v22  ;;  %v1491_v21 = vmul.f32 %v4020_v12, %v4777_v46  ;;  %v1104_v1 = vmul.f32 %v3182_v60, %v4012_v7  ;;  %v584_v33 = vmul.f32 %v2927_v45, %v4010_v6 }
  0xf0   : > { %v3681_v13 = vpop.eup %3680  ;;  %2506 = vst [vmem:[%s4142_s12 + $0x1d8] sm:$0xff] %v2378_v20  ;;  %v2379_v35 = vmul.f32 %v3679_v2, %v4683_v16  ;;  %3690 = vpow2.f32 %v2721_v63  ;;  %v1492_v42 = vmul.f32 %v4020_v12, %v4780_v58  ;;  %v3183_v3 = vunpack.c.h.bf16 %v3393_v49 }
  0xf1   : > { %v3683_v30 = vpop.eup %3682  ;;  %3692 = vrcp.f32 %v1998_v26  ;;  %v1999_v27 = vadd.f32 1.0, %v3681_v13  ;;  %v2722_v23 = vmul.f32 -1.442695, %v1491_v21  ;;  %v1236_v38 = vadd.f32 %v4018_v11, %v1104_v1 }
  0xf2   : > { %v3685_v40 = vpop.eup %3684  ;;  %2507 = vst [vmem:[%s4142_s12 + $0x1e0] sm:$0xff] %v2379_v35  ;;  %v2000_v25 = vadd.f32 1.0, %v3683_v30  ;;  %v2723_v51 = vmul.f32 -1.442695, %v1492_v42  ;;  %v716_v16 = vadd.f32 %v4015_v9, %v584_v33  ;;  %v1105_v39 = vmul.f32 %v3183_v3, %v4012_v7  ;;  %v3333_v42 = vld [vmem:[%s4003_s30 + $0x130] sm:$0xff]  }
  0xf3   : > { %v2380_v10 = vmul.f32 %v3685_v40, %v4694_v59  ;;  %3694 = vrcp.f32 %v1999_v27  ;;  %v4798_v28 = vadd.f32 %v1236_v38, %v715_v18  ;;  %v2930_v52 = vunpack.c.l.bf16 %v3331_v19 }
  0xf4   : > { %3696 = vrcp.f32 %v2000_v25  ;;  %v1237_v31 = vadd.f32 %v4018_v11, %v1105_v39  ;;  %v3186_v29 = vunpack.c.l.bf16 %v3394_v44  ;;  %v2931_v55 = vunpack.c.h.bf16 %v3331_v19  ;;  %v3396_v25 = vld [vmem:[%s4008_s8 + $0x130] sm:$0xff]  }
  0xf5   : > { %v3687_v56 = vpop.eup %3686  ;;  %2508 = vst [vmem:[%s4142_s12 + $0x1e8] sm:$0xff] %v2380_v10  ;;  %3698 = vpow2.f32 %v2722_v23  ;;  %v1493_v57 = vmul.f32 %v4020_v12, %v4798_v28  ;;  %v585_v34 = vmul.f32 %v2930_v52, %v4010_v6  ;;  %v3187_v59 = vunpack.c.h.bf16 %v3394_v44 }
  0xf6   : > { %v2001_v54 = vadd.f32 1.0, %v3687_v56  ;;  %3700 = vpow2.f32 %v2723_v51  ;;  %v4805_v43 = vadd.f32 %v1237_v31, %v716_v16  ;;  %v1106_v15 = vmul.f32 %v3186_v29, %v4012_v7 }
  0xf7   : > { %v3689_v48 = vpop.eup %3688  ;;  %v2724_v5 = vmul.f32 -1.442695, %v1493_v57  ;;  %v717_v49 = vadd.f32 %v4015_v9, %v585_v34  ;;  %v586_v8 = vmul.f32 %v2931_v55, %v4010_v6  ;;  %v1107_v17 = vmul.f32 %v3187_v59, %v4012_v7 }
  0xf8   : > { %v2381_v36 = vmul.f32 %v3689_v48, %v4709_v32  ;;  %3702 = vrcp.f32 %v2001_v54  ;;  %v1494_v14 = vmul.f32 %v4020_v12, %v4805_v43  ;;  %v1238_v37 = vadd.f32 %v4018_v11, %v1106_v15  ;;  %v3397_v48 = vld [vmem:[%s4008_s8 + $0x138] sm:$0xff]  }
  0xf9   : > { %3704 = vpow2.f32 %v2724_v5  ;;  %v718_v41 = vadd.f32 %v4015_v9, %v586_v8  ;;  %v1239_v53 = vadd.f32 %v4018_v11, %v1107_v17  ;;  %v2934_v60 = vunpack.c.l.bf16 %v3332_v61 }
  0xfa   : > { %v3691_v45 = vpop.eup %3690  ;;  %2509 = vst [vmem:[%s4142_s12 + $0x1f0] sm:$0xff] %v2381_v36  ;;  %v2725_v22 = vmul.f32 -1.442695, %v1494_v14  ;;  %v4820_v20 = vadd.f32 %v1238_v37, %v717_v49  ;;  %v3190_v63 = vunpack.c.l.bf16 %v3395_v50  ;;  %v2935_v32 = vunpack.c.h.bf16 %v3332_v61  ;;  %v3334_v61 = vld [vmem:[%s4003_s30 + $0x138] sm:$0xff]  }
  0xfb   : > { %v3693_v18 = vpop.eup %3692  ;;  %v2002_v2 = vadd.f32 1.0, %v3691_v45  ;;  %v4822_v26 = vadd.f32 %v1239_v53, %v718_v41  ;;  %v587_v21 = vmul.f32 %v2934_v60, %v4010_v6  ;;  %v3191_v1 = vunpack.c.h.bf16 %v3395_v50 }
  0xfc   : > { %v2382_v33 = vmul.f32 %v3693_v18, %v4722_v47  ;;  %3706 = vpow2.f32 %v2725_v22  ;;  %v1495_v13 = vmul.f32 %v4020_v12, %v4820_v20  ;;  %v1108_v35 = vmul.f32 %v3190_v63, %v4012_v7 }
  0xfd   : > { %v3695_v3 = vpop.eup %3694  ;;  %3708 = vrcp.f32 %v2002_v2  ;;  %v1496_v19 = vmul.f32 %v4020_v12, %v4822_v26  ;;  %v719_v30 = vadd.f32 %v4015_v9, %v587_v21  ;;  %v588_v27 = vmul.f32 %v2935_v32, %v4010_v6 }
  0xfe   : > { %v3697_v23 = vpop.eup %3696  ;;  %2510 = vst [vmem:[%s4142_s12 + $0x1f8] sm:$0xff] %v2382_v33  ;;  %v2383_v47 = vmul.f32 %v3695_v3, %v4732_v4  ;;  %v2726_v38 = vmul.f32 -1.442695, %v1495_v13  ;;  %v1240_v44 = vadd.f32 %v4018_v11, %v1108_v35  ;;  %v1109_v40 = vmul.f32 %v3191_v1, %v4012_v7  ;;  %v3335_v33 = vld [vmem:[%s4003_s30 + $0x140] sm:$0xff]  }
  0xff   : > { %v3699_v51 = vpop.eup %3698  ;;  %v2384_v16 = vmul.f32 %v3697_v23, %v4736_v62  ;;  %v2727_v39 = vmul.f32 -1.442695, %v1496_v19  ;;  %v720_v10 = vadd.f32 %v4015_v9, %v588_v27  ;;  %v2938_v52 = vunpack.c.l.bf16 %v3333_v42 }
 0x100   : > { %v3701_v31 = vpop.eup %3700  ;;  %2511 = vst [vmem:[%s4142_s12 + $0x200] sm:$0xff] %v2383_v47  ;;  %v2003_v29 = vadd.f32 1.0, %v3699_v51  ;;  %3710 = vpow2.f32 %v2726_v38  ;;  %v4842_v4 = vadd.f32 %v1240_v44, %v719_v30  ;;  %v1241_v55 = vadd.f32 %v4018_v11, %v1109_v40  ;;  %v3398_v44 = vld [vmem:[%s4008_s8 + $0x140] sm:$0xff]  }
 0x101   : > { %2512 = vst [vmem:[%s4142_s12 + $0x208] sm:$0xff] %v2384_v16  ;;  %v2004_v56 = vadd.f32 1.0, %v3701_v31  ;;  %3712 = vpow2.f32 %v2727_v39  ;;  %v589_v57 = vmul.f32 %v2938_v52, %v4010_v6  ;;  %v3194_v62 = vunpack.c.l.bf16 %v3396_v25 }
 0x102   : > { %v3703_v34 = vpop.eup %3702  ;;  %3714 = vrcp.f32 %v2003_v29  ;;  %v1497_v59 = vmul.f32 %v4020_v12, %v4842_v4  ;;  %v4849_v54 = vadd.f32 %v1241_v55, %v720_v10  ;;  %v2939_v15 = vunpack.c.h.bf16 %v3333_v42 }
 0x103   : > { %v3705_v5 = vpop.eup %3704  ;;  %v2385_v49 = vmul.f32 %v3703_v34, %v4752_v24  ;;  %3716 = vrcp.f32 %v2004_v56  ;;  %v721_v8 = vadd.f32 %v4015_v9, %v589_v57  ;;  %v1110_v17 = vmul.f32 %v3194_v62, %v4012_v7 }
 0x104   : > { %v2005_v50 = vadd.f32 1.0, %v3705_v5  ;;  %v2728_v36 = vmul.f32 -1.442695, %v1497_v59  ;;  %v1498_v14 = vmul.f32 %v4020_v12, %v4849_v54  ;;  %v590_v37 = vmul.f32 %v2939_v15, %v4010_v6 }
 0x105   : > { %2513 = vst [vmem:[%s4142_s12 + $0x210] sm:$0xff] %v2385_v49  ;;  %v1242_v41 = vadd.f32 %v4018_v11, %v1110_v17  ;;  %v3195_v53 = vunpack.c.h.bf16 %v3396_v25  ;;  %v2942_v60 = vunpack.c.l.bf16 %v3334_v61  ;;  %v3198_v45 = vunpack.c.l.bf16 %v3397_v48 }
 0x106   : > { %v3707_v24 = vpop.eup %3706  ;;  %3718 = vrcp.f32 %v2005_v50  ;;  %v2729_v22 = vmul.f32 -1.442695, %v1498_v14  ;;  %v722_v63 = vadd.f32 %v4015_v9, %v590_v37  ;;  %v2943_v32 = vunpack.c.h.bf16 %v3334_v61 }
 0x107   : > { %v3709_v18 = vpop.eup %3708  ;;  %v2006_v2 = vadd.f32 1.0, %v3707_v24  ;;  %3720 = vpow2.f32 %v2728_v36  ;;  %v4862_v21 = vadd.f32 %v1242_v41, %v721_v8  ;;  %v1111_v1 = vmul.f32 %v3195_v53, %v4012_v7 }
 0x108   : > { %v2386_v13 = vmul.f32 %v3709_v18, %v4764_v0  ;;  %3722 = vpow2.f32 %v2729_v22  ;;  %v591_v35 = vmul.f32 %v2942_v60, %v4010_v6  ;;  %v1112_v42 = vmul.f32 %v3198_v45, %v4012_v7 }
 0x109   : > { %3724 = vrcp.f32 %v2006_v2  ;;  %v1499_v3 = vmul.f32 %v4020_v12, %v4862_v21  ;;  %v1243_v19 = vadd.f32 %v4018_v11, %v1111_v1  ;;  %v592_v30 = vmul.f32 %v2943_v32, %v4010_v6  ;;  %v3399_v1 = vld [vmem:[%s4008_s8 + $0x148] sm:$0xff]  }
 0x10a   : > { %v3711_v27 = vpop.eup %3710  ;;  %2514 = vst [vmem:[%s4142_s12 + $0x218] sm:$0xff] %v2386_v13  ;;  %v723_v23 = vadd.f32 %v4015_v9, %v591_v35  ;;  %v1244_v47 = vadd.f32 %v4018_v11, %v1112_v42  ;;  %v3199_v0 = vunpack.c.h.bf16 %v3397_v48  ;;  %v2946_v38 = vunpack.c.l.bf16 %v3335_v33  ;;  %v3336_v48 = vld [vmem:[%s4003_s30 + $0x148] sm:$0xff]   ;;  %v3337_v42 = vld [vmem:[%s4003_s30 + $0x150] sm:$0xff]  }
 0x10b   : > { %v3713_v40 = vpop.eup %3712  ;;  %v2007_v25 = vadd.f32 1.0, %v3711_v27  ;;  %v2730_v51 = vmul.f32 -1.442695, %v1499_v3  ;;  %v4877_v16 = vadd.f32 %v1243_v19, %v722_v63  ;;  %v724_v39 = vadd.f32 %v4015_v9, %v592_v30  ;;  %v3400_v3 = vld [vmem:[%s4008_s8 + $0x150] sm:$0xff]  }
 0x10c   : > { %v3715_v10 = vpop.eup %3714  ;;  %v2008_v52 = vadd.f32 1.0, %v3713_v40  ;;  %v4880_v31 = vadd.f32 %v1244_v47, %v723_v23  ;;  %v1113_v29 = vmul.f32 %v3199_v0, %v4012_v7  ;;  %v593_v55 = vmul.f32 %v2946_v38, %v4010_v6 }
 0x10d   : > { %v3717_v56 = vpop.eup %3716  ;;  %v2387_v57 = vmul.f32 %v3715_v10, %v4777_v46  ;;  %3726 = vrcp.f32 %v2007_v25  ;;  %v1500_v62 = vmul.f32 %v4020_v12, %v4877_v16  ;;  %v3202_v34 = vunpack.c.l.bf16 %v3398_v44 }
 0x10e   : > { %v2388_v59 = vmul.f32 %v3717_v56, %v4780_v58  ;;  %3728 = vrcp.f32 %v2008_v52  ;;  %v1501_v15 = vmul.f32 %v4020_v12, %v4880_v31  ;;  %v1245_v61 = vadd.f32 %v4018_v11, %v1113_v29 }
 0x10f   : > { %2515 = vst [vmem:[%s4142_s12 + $0x220] sm:$0xff] %v2387_v57  ;;  %3730 = vpow2.f32 %v2730_v51  ;;  %v2731_v5 = vmul.f32 -1.442695, %v1500_v62  ;;  %v725_v49 = vadd.f32 %v4015_v9, %v593_v55  ;;  %v1114_v46 = vmul.f32 %v3202_v34, %v4012_v7 }
 0x110   : > { %v3719_v8 = vpop.eup %3718  ;;  %2516 = vst [vmem:[%s4142_s12 + $0x228] sm:$0xff] %v2388_v59  ;;  %v2732_v17 = vmul.f32 -1.442695, %v1501_v15  ;;  %v4896_v50 = vadd.f32 %v1245_v61, %v724_v39  ;;  %v2947_v58 = vunpack.c.h.bf16 %v3335_v33  ;;  %v3203_v36 = vunpack.c.h.bf16 %v3398_v44 }
 0x111   : > { %v3721_v14 = vpop.eup %3720  ;;  %v2389_v37 = vmul.f32 %v3719_v8, %v4798_v28  ;;  %3732 = vpow2.f32 %v2731_v5  ;;  %v1246_v41 = vadd.f32 %v4018_v11, %v1114_v46  ;;  %v2950_v53 = vunpack.c.l.bf16 %v3336_v48 }
 0x112   : > { %v3723_v60 = vpop.eup %3722  ;;  %v2009_v45 = vadd.f32 1.0, %v3721_v14  ;;  %3734 = vpow2.f32 %v2732_v17  ;;  %v1502_v24 = vmul.f32 %v4020_v12, %v4896_v50  ;;  %v594_v22 = vmul.f32 %v2947_v58, %v4010_v6 }
 0x113   : > { %v3725_v63 = vpop.eup %3724  ;;  %2517 = vst [vmem:[%s4142_s12 + $0x230] sm:$0xff] %v2389_v37  ;;  %v2010_v32 = vadd.f32 1.0, %v3723_v60  ;;  %v4904_v18 = vadd.f32 %v1246_v41, %v725_v49  ;;  %v1115_v28 = vmul.f32 %v3203_v36, %v4012_v7  ;;  %v595_v2 = vmul.f32 %v2950_v53, %v4010_v6 }
 0x114   : > { %v2390_v33 = vmul.f32 %v3725_v63, %v4805_v43  ;;  %3736 = vrcp.f32 %v2009_v45  ;;  %v2733_v13 = vmul.f32 -1.442695, %v1502_v24  ;;  %v726_v35 = vadd.f32 %v4015_v9, %v594_v22  ;;  %v3338_v24 = vld [vmem:[%s4003_s30 + $0x158] sm:$0xff]  }
 0x115   : > { %3738 = vrcp.f32 %v2010_v32  ;;  %v1503_v19 = vmul.f32 %v4020_v12, %v4904_v18  ;;  %v1247_v30 = vadd.f32 %v4018_v11, %v1115_v28  ;;  %v727_v27 = vadd.f32 %v4015_v9, %v595_v2  ;;  %v3401_v22 = vld [vmem:[%s4008_s8 + $0x158] sm:$0xff]  }
 0x116   : > { %2518 = vst [vmem:[%s4142_s12 + $0x238] sm:$0xff] %v2390_v33  ;;  %3740 = vpow2.f32 %v2733_v13  ;;  %v3206_v23 = vunpack.c.l.bf16 %v3399_v1  ;;  %v2951_v47 = vunpack.c.h.bf16 %v3336_v48  ;;  %v3207_v0 = vunpack.c.h.bf16 %v3399_v1 }
 0x117   : > { %v3727_v43 = vpop.eup %3726  ;;  %v2734_v38 = vmul.f32 -1.442695, %v1503_v19  ;;  %v4918_v44 = vadd.f32 %v1247_v30, %v726_v35  ;;  %v2954_v40 = vunpack.c.l.bf16 %v3337_v42  ;;  %v3210_v25 = vunpack.c.l.bf16 %v3400_v3 }
 0x118   : > { %v3729_v51 = vpop.eup %3728  ;;  %v2391_v39 = vmul.f32 %v3727_v43, %v4820_v20  ;;  %v1116_v10 = vmul.f32 %v3206_v23, %v4012_v7  ;;  %v596_v52 = vmul.f32 %v2951_v47, %v4010_v6  ;;  %v1117_v29 = vmul.f32 %v3207_v0, %v4012_v7 }
 0x119   : > { %v3731_v55 = vpop.eup %3730  ;;  %v2392_v56 = vmul.f32 %v3729_v51, %v4822_v26  ;;  %3742 = vpow2.f32 %v2734_v38  ;;  %v1504_v57 = vmul.f32 %v4020_v12, %v4918_v44  ;;  %v597_v62 = vmul.f32 %v2954_v40, %v4010_v6  ;;  %v3339_v40 = vld [vmem:[%s4003_s30 + $0x160] sm:$0xff]  }
 0x11a   : > { %2519 = vst [vmem:[%s4142_s12 + $0x240] sm:$0xff] %v2391_v39  ;;  %v2011_v34 = vadd.f32 1.0, %v3731_v55  ;;  %v1248_v59 = vadd.f32 %v4018_v11, %v1116_v10  ;;  %v728_v20 = vadd.f32 %v4015_v9, %v596_v52  ;;  %v1249_v15 = vadd.f32 %v4018_v11, %v1117_v29  ;;  %v3402_v10 = vld [vmem:[%s4008_s8 + $0x160] sm:$0xff]  }
 0x11b   : > { %v3733_v61 = vpop.eup %3732  ;;  %2520 = vst [vmem:[%s4142_s12 + $0x248] sm:$0xff] %v2392_v56  ;;  %v2735_v48 = vmul.f32 -1.442695, %v1504_v57  ;;  %v729_v5 = vadd.f32 %v4015_v9, %v597_v62  ;;  %v1118_v26 = vmul.f32 %v3210_v25, %v4012_v7  ;;  %v2955_v49 = vunpack.c.h.bf16 %v3337_v42 }
 0x11c   : > { %v3735_v46 = vpop.eup %3734  ;;  %3744 = vrcp.f32 %v2011_v34  ;;  %v2012_v8 = vadd.f32 1.0, %v3733_v61  ;;  %v4935_v17 = vadd.f32 %v1248_v59, %v727_v27  ;;  %v4937_v58 = vadd.f32 %v1249_v15, %v728_v20 }
 0x11d   : > { %v2013_v36 = vadd.f32 1.0, %v3735_v46  ;;  %3746 = vpow2.f32 %v2735_v48  ;;  %v1250_v14 = vadd.f32 %v4018_v11, %v1118_v26  ;;  %v598_v37 = vmul.f32 %v2955_v49, %v4010_v6 }
 0x11e   : > { %v3737_v41 = vpop.eup %3736  ;;  %3748 = vrcp.f32 %v2012_v8  ;;  %v1505_v53 = vmul.f32 %v4020_v12, %v4935_v17  ;;  %v1506_v60 = vmul.f32 %v4020_v12, %v4937_v58  ;;  %v3211_v45 = vunpack.c.h.bf16 %v3400_v3 }
 0x11f   : > { %v3739_v63 = vpop.eup %3738  ;;  %v2393_v32 = vmul.f32 %v3737_v41, %v4842_v4  ;;  %3750 = vrcp.f32 %v2013_v36  ;;  %v4948_v28 = vadd.f32 %v1250_v14, %v729_v5  ;;  %v730_v2 = vadd.f32 %v4015_v9, %v598_v37 }
 0x120   : > { %v3741_v1 = vpop.eup %3740  ;;  %v2394_v33 = vmul.f32 %v3739_v63, %v4849_v54  ;;  %v2736_v13 = vmul.f32 -1.442695, %v1505_v53  ;;  %v2737_v35 = vmul.f32 -1.442695, %v1506_v60  ;;  %v1119_v42 = vmul.f32 %v3211_v45, %v4012_v7  ;;  %v3340_v53 = vld [vmem:[%s4003_s30 + $0x168] sm:$0xff]  }
 0x121   : > { %2521 = vst [vmem:[%s4142_s12 + $0x250] sm:$0xff] %v2393_v32  ;;  %v2014_v3 = vadd.f32 1.0, %v3741_v1  ;;  %v1507_v19 = vmul.f32 %v4020_v12, %v4948_v28  ;;  %v2958_v30 = vunpack.c.l.bf16 %v3338_v24  ;;  %v3214_v4 = vunpack.c.l.bf16 %v3401_v22  ;;  %v3403_v60 = vld [vmem:[%s4008_s8 + $0x168] sm:$0xff]  }
 0x122   : > { %2522 = vst [vmem:[%s4142_s12 + $0x258] sm:$0xff] %v2394_v33  ;;  %3752 = vpow2.f32 %v2736_v13  ;;  %v1251_v27 = vadd.f32 %v4018_v11, %v1119_v42  ;;  %v2959_v23 = vunpack.c.h.bf16 %v3338_v24  ;;  %v3215_v47 = vunpack.c.h.bf16 %v3401_v22 }
 0x123   : > { %v3743_v54 = vpop.eup %3742  ;;  %3754 = vrcp.f32 %v2014_v3  ;;  %v2738_v0 = vmul.f32 -1.442695, %v1507_v19  ;;  %v599_v43 = vmul.f32 %v2958_v30, %v4010_v6  ;;  %v1120_v38 = vmul.f32 %v3214_v4, %v4012_v7 }
 0x124   : > { %v2015_v25 = vadd.f32 1.0, %v3743_v54  ;;  %3756 = vpow2.f32 %v2737_v35  ;;  %v4961_v51 = vadd.f32 %v1251_v27, %v730_v2  ;;  %v600_v39 = vmul.f32 %v2959_v23, %v4010_v6 }
 0x125   : > { %3758 = vpow2.f32 %v2738_v0  ;;  %v731_v52 = vadd.f32 %v4015_v9, %v599_v43  ;;  %v1252_v29 = vadd.f32 %v4018_v11, %v1120_v38  ;;  %v1121_v55 = vmul.f32 %v3215_v47, %v4012_v7 }
 0x126   : > { %v3745_v56 = vpop.eup %3744  ;;  %3760 = vrcp.f32 %v2015_v25  ;;  %v1508_v57 = vmul.f32 %v4020_v12, %v4961_v51  ;;  %v732_v62 = vadd.f32 %v4015_v9, %v600_v39  ;;  %v2962_v34 = vunpack.c.l.bf16 %v3339_v40 }
 0x127   : > { %v3747_v59 = vpop.eup %3746  ;;  %v2395_v20 = vmul.f32 %v3745_v56, %v4862_v21  ;;  %v4972_v15 = vadd.f32 %v1252_v29, %v731_v52  ;;  %v1253_v61 = vadd.f32 %v4018_v11, %v1121_v55  ;;  %v3218_v48 = vunpack.c.l.bf16 %v3402_v10  ;;  %v3404_v52 = vld [vmem:[%s4008_s8 + $0x170] sm:$0xff]  }
 0x128   : > { %v3749_v5 = vpop.eup %3748  ;;  %v2016_v26 = vadd.f32 1.0, %v3747_v59  ;;  %v2739_v49 = vmul.f32 -1.442695, %v1508_v57  ;;  %v601_v46 = vmul.f32 %v2962_v34, %v4010_v6  ;;  %v2963_v8 = vunpack.c.h.bf16 %v3339_v40 }
 0x129   : > { %v3751_v36 = vpop.eup %3750  ;;  %2523 = vst [vmem:[%s4142_s12 + $0x260] sm:$0xff] %v2395_v20  ;;  %v2396_v14 = vmul.f32 %v3749_v5, %v4877_v16  ;;  %v1509_v21 = vmul.f32 %v4020_v12, %v4972_v15  ;;  %v4980_v37 = vadd.f32 %v1253_v61, %v732_v62  ;;  %v1122_v41 = vmul.f32 %v3218_v48, %v4012_v7 }
 0x12a   : > { %v2397_v45 = vmul.f32 %v3751_v36, %v4880_v31  ;;  %3762 = vrcp.f32 %v2016_v26  ;;  %v733_v24 = vadd.f32 %v4015_v9, %v601_v46  ;;  %v602_v22 = vmul.f32 %v2963_v8, %v4010_v6 }
 0x12b   : > { %2524 = vst [vmem:[%s4142_s12 + $0x268] sm:$0xff] %v2396_v14  ;;  %3764 = vpow2.f32 %v2739_v49  ;;  %v2740_v16 = vmul.f32 -1.442695, %v1509_v21  ;;  %v1510_v63 = vmul.f32 %v4020_v12, %v4980_v37  ;;  %v1254_v32 = vadd.f32 %v4018_v11, %v1122_v41 }
 0x12c   : > { %v3753_v2 = vpop.eup %3752  ;;  %2525 = vst [vmem:[%s4142_s12 + $0x270] sm:$0xff] %v2397_v45  ;;  %v734_v1 = vadd.f32 %v4015_v9, %v602_v22  ;;  %v3219_v33 = vunpack.c.h.bf16 %v3402_v10  ;;  %v2966_v13 = vunpack.c.l.bf16 %v3340_v53  ;;  %v3222_v31 = vunpack.c.l.bf16 %v3403_v60  ;;  %v3341_v10 = vld [vmem:[%s4003_s30 + $0x170] sm:$0xff]  }
 0x12d   : > { %v3755_v35 = vpop.eup %3754  ;;  %v2017_v42 = vadd.f32 1.0, %v3753_v2  ;;  %3766 = vpow2.f32 %v2740_v16  ;;  %v2741_v3 = vmul.f32 -1.442695, %v1510_v63  ;;  %v4994_v19 = vadd.f32 %v1254_v32, %v733_v24  ;;  %v3342_v24 = vld [vmem:[%s4003_s30 + $0x178] sm:$0xff]  }
 0x12e   : > { %v3757_v30 = vpop.eup %3756  ;;  %v2398_v4 = vmul.f32 %v3755_v35, %v4896_v50  ;;  %v1123_v27 = vmul.f32 %v3219_v33, %v4012_v7  ;;  %v603_v23 = vmul.f32 %v2966_v13, %v4010_v6  ;;  %v1124_v47 = vmul.f32 %v3222_v31, %v4012_v7  ;;  %v3405_v2 = vld [vmem:[%s4008_s8 + $0x178] sm:$0xff]  }
 0x12f   : > { %v3759_v54 = vpop.eup %3758  ;;  %3768 = vrcp.f32 %v2017_v42  ;;  %v2018_v0 = vadd.f32 1.0, %v3757_v30  ;;  %v1511_v43 = vmul.f32 %v4020_v12, %v4994_v19  ;;  %v2967_v38 = vunpack.c.h.bf16 %v3340_v53 }
 0x130   : > { %v3761_v40 = vpop.eup %3760  ;;  %2526 = vst [vmem:[%s4142_s12 + $0x278] sm:$0xff] %v2398_v4  ;;  %v2019_v25 = vadd.f32 1.0, %v3759_v54  ;;  %3770 = vpow2.f32 %v2741_v3  ;;  %v1255_v50 = vadd.f32 %v4018_v11, %v1123_v27  ;;  %v735_v39 = vadd.f32 %v4015_v9, %v603_v23 }
 0x131   : > { %v2399_v29 = vmul.f32 %v3761_v40, %v4904_v18  ;;  %3772 = vrcp.f32 %v2018_v0  ;;  %v2742_v55 = vmul.f32 -1.442695, %v1511_v43  ;;  %v1256_v56 = vadd.f32 %v4018_v11, %v1124_v47 }
 0x132   : > { %3774 = vrcp.f32 %v2019_v25  ;;  %v5009_v57 = vadd.f32 %v1255_v50, %v734_v1  ;;  %v604_v62 = vmul.f32 %v2967_v38, %v4010_v6  ;;  %v3223_v34 = vunpack.c.h.bf16 %v3403_v60 }
 0x133   : > { %2527 = vst [vmem:[%s4142_s12 + $0x280] sm:$0xff] %v2399_v29  ;;  %3776 = vpow2.f32 %v2742_v55  ;;  %v5013_v59 = vadd.f32 %v1256_v56, %v735_v39  ;;  %v2970_v20 = vunpack.c.l.bf16 %v3341_v10  ;;  %v3226_v61 = vunpack.c.l.bf16 %v3404_v52  ;;  %v3343_v55 = vld [vmem:[%s4003_s30 + $0x180] sm:$0xff]  }
 0x134   : > { %v3763_v48 = vpop.eup %3762  ;;  %v1512_v18 = vmul.f32 %v4020_v12, %v5009_v57  ;;  %v736_v5 = vadd.f32 %v4015_v9, %v604_v62  ;;  %v1125_v26 = vmul.f32 %v3223_v34, %v4012_v7  ;;  %v2971_v49 = vunpack.c.h.bf16 %v3341_v10  ;;  %v3406_v56 = vld [vmem:[%s4008_s8 + $0x180] sm:$0xff]  }
 0x135   : > { %v3765_v46 = vpop.eup %3764  ;;  %v2400_v8 = vmul.f32 %v3763_v48, %v4918_v44  ;;  %v1513_v36 = vmul.f32 %v4020_v12, %v5013_v59  ;;  %v605_v14 = vmul.f32 %v2970_v20, %v4010_v6  ;;  %v1126_v21 = vmul.f32 %v3226_v61, %v4012_v7 }
 0x136   : > { %v2020_v41 = vadd.f32 1.0, %v3765_v46  ;;  %v2743_v53 = vmul.f32 -1.442695, %v1512_v18  ;;  %v1257_v60 = vadd.f32 %v4018_v11, %v1125_v26  ;;  %v606_v45 = vmul.f32 %v2971_v49, %v4010_v6 }
 0x137   : > { %v3767_v22 = vpop.eup %3766  ;;  %2528 = vst [vmem:[%s4142_s12 + $0x288] sm:$0xff] %v2400_v8  ;;  %v2744_v16 = vmul.f32 -1.442695, %v1513_v36  ;;  %v737_v63 = vadd.f32 %v4015_v9, %v605_v14  ;;  %v1258_v44 = vadd.f32 %v4018_v11, %v1126_v21  ;;  %v3227_v32 = vunpack.c.h.bf16 %v3404_v52 }
 0x138   : > { %3778 = vrcp.f32 %v2020_v41  ;;  %v2021_v1 = vadd.f32 1.0, %v3767_v22  ;;  %v5031_v33 = vadd.f32 %v1257_v60, %v736_v5  ;;  %v738_v13 = vadd.f32 %v4015_v9, %v606_v45 }
 0x139   : > { %v3769_v31 = vpop.eup %3768  ;;  %3780 = vpow2.f32 %v2743_v53  ;;  %v5034_v35 = vadd.f32 %v1258_v44, %v737_v63  ;;  %v1127_v42 = vmul.f32 %v3227_v32, %v4012_v7  ;;  %v2974_v3 = vunpack.c.l.bf16 %v3342_v24 }
 0x13a   : > { %v3771_v30 = vpop.eup %3770  ;;  %v2401_v4 = vmul.f32 %v3769_v31, %v4935_v17  ;;  %3782 = vrcp.f32 %v2021_v1  ;;  %v1514_v27 = vmul.f32 %v4020_v12, %v5031_v33  ;;  %v3230_v23 = vunpack.c.l.bf16 %v3405_v2 }
 0x13b   : > { %v3773_v47 = vpop.eup %3772  ;;  %v2022_v54 = vadd.f32 1.0, %v3771_v30  ;;  %3784 = vpow2.f32 %v2744_v16  ;;  %v1515_v0 = vmul.f32 %v4020_v12, %v5034_v35  ;;  %v1259_v43 = vadd.f32 %v4018_v11, %v1127_v42  ;;  %v3344_v16 = vld [vmem:[%s4003_s30 + $0x188] sm:$0xff]  }
 0x13c   : > { %v3775_v38 = vpop.eup %3774  ;;  %2529 = vst [vmem:[%s4142_s12 + $0x290] sm:$0xff] %v2401_v4  ;;  %v2402_v17 = vmul.f32 %v3773_v47, %v4937_v58  ;;  %v2745_v40 = vmul.f32 -1.442695, %v1514_v27  ;;  %v607_v25 = vmul.f32 %v2974_v3, %v4010_v6  ;;  %v1128_v50 = vmul.f32 %v3230_v23, %v4012_v7  ;;  %v3407_v23 = vld [vmem:[%s4008_s8 + $0x188] sm:$0xff]  }
 0x13d   : > { %v3777_v39 = vpop.eup %3776  ;;  %v2403_v10 = vmul.f32 %v3775_v38, %v4948_v28  ;;  %3786 = vrcp.f32 %v2022_v54  ;;  %v2746_v52 = vmul.f32 -1.442695, %v1515_v0  ;;  %v5048_v29 = vadd.f32 %v1259_v43, %v738_v13 }
 0x13e   : > { %2530 = vst [vmem:[%s4142_s12 + $0x298] sm:$0xff] %v2402_v17  ;;  %v2023_v62 = vadd.f32 1.0, %v3777_v39  ;;  %3788 = vpow2.f32 %v2745_v40  ;;  %v739_v58 = vadd.f32 %v4015_v9, %v607_v25  ;;  %v1260_v34 = vadd.f32 %v4018_v11, %v1128_v50 }
 0x13f   : > { %2531 = vst [vmem:[%s4142_s12 + $0x2a0] sm:$0xff] %v2403_v10  ;;  %3790 = vpow2.f32 %v2746_v52  ;;  %v1516_v20 = vmul.f32 %v4020_v12, %v5048_v29  ;;  %v2975_v61 = vunpack.c.h.bf16 %v3342_v24  ;;  %v3231_v28 = vunpack.c.h.bf16 %v3405_v2 }
 0x140   : > { %3792 = vrcp.f32 %v2023_v62  ;;  %v5058_v48 = vadd.f32 %v1260_v34, %v739_v58  ;;  %v2978_v18 = vunpack.c.l.bf16 %v3343_v55  ;;  %v3234_v5 = vunpack.c.l.bf16 %v3406_v56 }
 0x141   : > { %v2747_v26 = vmul.f32 -1.442695, %v1516_v20  ;;  %v608_v49 = vmul.f32 %v2975_v61, %v4010_v6  ;;  %v1129_v46 = vmul.f32 %v3231_v28, %v4012_v7  ;;  %v2979_v8 = vunpack.c.h.bf16 %v3343_v55  ;;  %v3345_v55 = vld [vmem:[%s4003_s30 + $0x190] sm:$0xff]  }
 0x142   : > { %v3779_v36 = vpop.eup %3778  ;;  %v1517_v14 = vmul.f32 %v4020_v12, %v5058_v48  ;;  %v609_v21 = vmul.f32 %v2978_v18, %v4010_v6  ;;  %v1130_v41 = vmul.f32 %v3234_v5, %v4012_v7  ;;  %v3235_v53 = vunpack.c.h.bf16 %v3406_v56  ;;  %v3408_v20 = vld [vmem:[%s4008_s8 + $0x190] sm:$0xff]  }
 0x143   : > { %v3781_v60 = vpop.eup %3780  ;;  %v2404_v45 = vmul.f32 %v3779_v36, %v4961_v51  ;;  %3794 = vpow2.f32 %v2747_v26  ;;  %v740_v24 = vadd.f32 %v4015_v9, %v608_v49  ;;  %v1261_v22 = vadd.f32 %v4018_v11, %v1129_v46 }
 0x144   : > { %v3783_v63 = vpop.eup %3782  ;;  %v2024_v44 = vadd.f32 1.0, %v3781_v60  ;;  %v2748_v32 = vmul.f32 -1.442695, %v1517_v14  ;;  %v741_v2 = vadd.f32 %v4015_v9, %v609_v21  ;;  %v1262_v1 = vadd.f32 %v4018_v11, %v1130_v41 }
 0x145   : > { %v3785_v13 = vpop.eup %3784  ;;  %2532 = vst [vmem:[%s4142_s12 + $0x2a8] sm:$0xff] %v2404_v45  ;;  %v2405_v31 = vmul.f32 %v3783_v63, %v4972_v15  ;;  %v5074_v51 = vadd.f32 %v1261_v22, %v740_v24  ;;  %v610_v42 = vmul.f32 %v2979_v8, %v4010_v6  ;;  %v1131_v3 = vmul.f32 %v3235_v53, %v4012_v7 }
 0x146   : > { %3796 = vrcp.f32 %v2024_v44  ;;  %v2025_v30 = vadd.f32 1.0, %v3785_v13  ;;  %v5078_v4 = vadd.f32 %v1262_v1, %v741_v2  ;;  %v2982_v27 = vunpack.c.l.bf16 %v3344_v16  ;;  %v3346_v44 = vld [vmem:[%s4003_s30 + $0x198] sm:$0xff]  }
 0x147   : > { %v3787_v47 = vpop.eup %3786  ;;  %2533 = vst [vmem:[%s4142_s12 + $0x2b0] sm:$0xff] %v2405_v31  ;;  %3798 = vpow2.f32 %v2748_v32  ;;  %v1518_v15 = vmul.f32 %v4020_v12, %v5074_v51  ;;  %v742_v54 = vadd.f32 %v4015_v9, %v610_v42  ;;  %v1263_v0 = vadd.f32 %v4018_v11, %v1131_v3 }
 0x148   : > { %v3789_v43 = vpop.eup %3788  ;;  %v2406_v38 = vmul.f32 %v3787_v47, %v4980_v37  ;;  %3800 = vrcp.f32 %v2025_v30  ;;  %v1519_v17 = vmul.f32 %v4020_v12, %v5078_v4  ;;  %v611_v40 = vmul.f32 %v2982_v27, %v4010_v6  ;;  %v3409_v47 = vld [vmem:[%s4008_s8 + $0x198] sm:$0xff]  }
 0x149   : > { %v3791_v25 = vpop.eup %3790  ;;  %v2026_v50 = vadd.f32 1.0, %v3789_v43  ;;  %v2749_v39 = vmul.f32 -1.442695, %v1518_v15  ;;  %v5090_v10 = vadd.f32 %v1263_v0, %v742_v54  ;;  %v3238_v52 = vunpack.c.l.bf16 %v3407_v23 }
 0x14a   : > { %v3793_v56 = vpop.eup %3792  ;;  %2534 = vst [vmem:[%s4142_s12 + $0x2b8] sm:$0xff] %v2406_v38  ;;  %v2027_v62 = vadd.f32 1.0, %v3791_v25  ;;  %v2750_v58 = vmul.f32 -1.442695, %v1519_v17  ;;  %v743_v37 = vadd.f32 %v4015_v9, %v611_v40  ;;  %v2983_v34 = vunpack.c.h.bf16 %v3344_v16 }
 0x14b   : > { %v2407_v61 = vmul.f32 %v3793_v56, %v4994_v19  ;;  %3802 = vrcp.f32 %v2026_v50  ;;  %v1520_v28 = vmul.f32 %v4020_v12, %v5090_v10  ;;  %v1132_v18 = vmul.f32 %v3238_v52, %v4012_v7 }
 0x14c   : > { %3804 = vrcp.f32 %v2027_v62  ;;  %v612_v5 = vmul.f32 %v2983_v34, %v4010_v6  ;;  %v3239_v26 = vunpack.c.h.bf16 %v3407_v23  ;;  %v2986_v49 = vunpack.c.l.bf16 %v3345_v55 }
 0x14d   : > { %v3795_v46 = vpop.eup %3794  ;;  %2535 = vst [vmem:[%s4142_s12 + $0x2c0] sm:$0xff] %v2407_v61  ;;  %3806 = vpow2.f32 %v2749_v39  ;;  %v2751_v8 = vmul.f32 -1.442695, %v1520_v28  ;;  %v1264_v36 = vadd.f32 %v4018_v11, %v1132_v18  ;;  %v3242_v14 = vunpack.c.l.bf16 %v3408_v20 }
 0x14e   : > { %v2028_v19 = vadd.f32 1.0, %v3795_v46  ;;  %3808 = vpow2.f32 %v2750_v58  ;;  %v744_v21 = vadd.f32 %v4015_v9, %v612_v5  ;;  %v1133_v41 = vmul.f32 %v3239_v26, %v4012_v7 }
 0x14f   : > { %3810 = vpow2.f32 %v2751_v8  ;;  %v5105_v53 = vadd.f32 %v1264_v36, %v743_v37  ;;  %v613_v60 = vmul.f32 %v2986_v49, %v4010_v6  ;;  %v1134_v45 = vmul.f32 %v3242_v14, %v4012_v7  ;;  %v3347_v8 = vld [vmem:[%s4003_s30 + $0x1a0] sm:$0xff]  }
 0x150   : > { %v3797_v24 = vpop.eup %3796  ;;  %3812 = vrcp.f32 %v2028_v19  ;;  %v1265_v22 = vadd.f32 %v4018_v11, %v1133_v41  ;;  %v2987_v16 = vunpack.c.h.bf16 %v3345_v55  ;;  %v3243_v63 = vunpack.c.h.bf16 %v3408_v20  ;;  %v3410_v36 = vld [vmem:[%s4008_s8 + $0x1a0] sm:$0xff]  }
 0x151   : > { %v3799_v32 = vpop.eup %3798  ;;  %v2408_v2 = vmul.f32 %v3797_v24, %v5009_v57  ;;  %v1521_v1 = vmul.f32 %v4020_v12, %v5105_v53  ;;  %v745_v13 = vadd.f32 %v4015_v9, %v613_v60  ;;  %v1266_v31 = vadd.f32 %v4018_v11, %v1134_v45 }
 0x152   : > { %v3801_v42 = vpop.eup %3800  ;;  %v2029_v3 = vadd.f32 1.0, %v3799_v32  ;;  %v5116_v30 = vadd.f32 %v1265_v22, %v744_v21  ;;  %v614_v27 = vmul.f32 %v2987_v16, %v4010_v6  ;;  %v1135_v23 = vmul.f32 %v3243_v63, %v4012_v7  ;;  %v3348_v22 = vld [vmem:[%s4003_s30 + $0x1a8] sm:$0xff]  }
 0x153   : > { %2536 = vst [vmem:[%s4142_s12 + $0x2c8] sm:$0xff] %v2408_v2  ;;  %v2409_v57 = vmul.f32 %v3801_v42, %v5013_v59  ;;  %v2752_v15 = vmul.f32 -1.442695, %v1521_v1  ;;  %v5123_v54 = vadd.f32 %v1266_v31, %v745_v13  ;;  %v2990_v0 = vunpack.c.l.bf16 %v3346_v44 }
 0x154   : > { %3814 = vrcp.f32 %v2029_v3  ;;  %v1522_v43 = vmul.f32 %v4020_v12, %v5116_v30  ;;  %v746_v38 = vadd.f32 %v4015_v9, %v614_v27  ;;  %v1267_v17 = vadd.f32 %v4018_v11, %v1135_v23 }
 0x155   : > { %v3803_v40 = vpop.eup %3802  ;;  %2537 = vst [vmem:[%s4142_s12 + $0x2d0] sm:$0xff] %v2409_v57  ;;  %3816 = vpow2.f32 %v2752_v15  ;;  %v1523_v25 = vmul.f32 %v4020_v12, %v5123_v54  ;;  %v615_v59 = vmul.f32 %v2990_v0, %v4010_v6  ;;  %v3246_v50 = vunpack.c.l.bf16 %v3409_v47  ;;  %v3411_v0 = vld [vmem:[%s4008_s8 + $0x1a8] sm:$0xff]  }
 0x156   : > { %v3805_v39 = vpop.eup %3804  ;;  %v2410_v52 = vmul.f32 %v3803_v40, %v5031_v33  ;;  %v2753_v55 = vmul.f32 -1.442695, %v1522_v43  ;;  %v5134_v56 = vadd.f32 %v1267_v17, %v746_v38  ;;  %v2991_v62 = vunpack.c.h.bf16 %v3346_v44 }
 0x157   : > { %v3807_v58 = vpop.eup %3806  ;;  %v2411_v37 = vmul.f32 %v3805_v39, %v5034_v35  ;;  %v2754_v34 = vmul.f32 -1.442695, %v1523_v25  ;;  %v747_v20 = vadd.f32 %v4015_v9, %v615_v59  ;;  %v1136_v61 = vmul.f32 %v3246_v50, %v4012_v7 }
 0x158   : > { %v3809_v28 = vpop.eup %3808  ;;  %2538 = vst [vmem:[%s4142_s12 + $0x2d8] sm:$0xff] %v2410_v52  ;;  %v2030_v18 = vadd.f32 1.0, %v3807_v58  ;;  %3818 = vpow2.f32 %v2753_v55  ;;  %v1524_v33 = vmul.f32 %v4020_v12, %v5134_v56  ;;  %v616_v5 = vmul.f32 %v2991_v62, %v4010_v6 }
 0x159   : > { %v3811_v26 = vpop.eup %3810  ;;  %2539 = vst [vmem:[%s4142_s12 + $0x2e0] sm:$0xff] %v2411_v37  ;;  %v2031_v35 = vadd.f32 1.0, %v3809_v28  ;;  %3820 = vpow2.f32 %v2754_v34  ;;  %v1268_v49 = vadd.f32 %v4018_v11, %v1136_v61  ;;  %v3247_v46 = vunpack.c.h.bf16 %v3409_v47 }
 0x15a   : > { %v3813_v14 = vpop.eup %3812  ;;  %3822 = vrcp.f32 %v2030_v18  ;;  %v2032_v19 = vadd.f32 1.0, %v3811_v26  ;;  %v2755_v21 = vmul.f32 -1.442695, %v1524_v33  ;;  %v748_v41 = vadd.f32 %v4015_v9, %v616_v5 }
 0x15b   : > { %v2412_v60 = vmul.f32 %v3813_v14, %v5048_v29  ;;  %3824 = vrcp.f32 %v2031_v35  ;;  %v5149_v45 = vadd.f32 %v1268_v49, %v747_v20  ;;  %v1137_v24 = vmul.f32 %v3247_v46, %v4012_v7 }
 0x15c   : > { %3826 = vrcp.f32 %v2032_v19  ;;  %v2994_v16 = vunpack.c.l.bf16 %v3347_v8  ;;  %v3250_v63 = vunpack.c.l.bf16 %v3410_v36  ;;  %v2995_v44 = vunpack.c.h.bf16 %v3347_v8 }
 0x15d   : > { %2540 = vst [vmem:[%s4142_s12 + $0x2e8] sm:$0xff] %v2412_v60  ;;  %3828 = vpow2.f32 %v2755_v21  ;;  %v1525_v32 = vmul.f32 %v4020_v12, %v5149_v45  ;;  %v1269_v2 = vadd.f32 %v4018_v11, %v1137_v24  ;;  %v3251_v1 = vunpack.c.h.bf16 %v3410_v36  ;;  %v3349_v21 = vld [vmem:[%s4003_s30 + $0x1b0] sm:$0xff]  }
 0x15e   : > { %v3815_v29 = vpop.eup %3814  ;;  %v617_v13 = vmul.f32 %v2994_v16, %v4010_v6  ;;  %v1138_v31 = vmul.f32 %v3250_v63, %v4012_v7  ;;  %v618_v42 = vmul.f32 %v2995_v44, %v4010_v6  ;;  %v2998_v3 = vunpack.c.l.bf16 %v3348_v22  ;;  %v3350_v44 = vld [vmem:[%s4003_s30 + $0x1b8] sm:$0xff]  }
 0x15f   : > { %v3817_v27 = vpop.eup %3816  ;;  %v2413_v23 = vmul.f32 %v3815_v29, %v5058_v48  ;;  %v2756_v47 = vmul.f32 -1.442695, %v1525_v32  ;;  %v5161_v57 = vadd.f32 %v1269_v2, %v748_v41  ;;  %v1139_v15 = vmul.f32 %v3251_v1, %v4012_v7  ;;  %v3412_v41 = vld [vmem:[%s4008_s8 + $0x1b0] sm:$0xff]  }
 0x160   : > { %v2033_v43 = vadd.f32 1.0, %v3817_v27  ;;  %v749_v38 = vadd.f32 %v4015_v9, %v617_v13  ;;  %v1270_v17 = vadd.f32 %v4018_v11, %v1138_v31  ;;  %v750_v40 = vadd.f32 %v4015_v9, %v618_v42 }
 0x161   : > { %2541 = vst [vmem:[%s4142_s12 + $0x2f0] sm:$0xff] %v2413_v23  ;;  %3830 = vpow2.f32 %v2756_v47  ;;  %v1526_v25 = vmul.f32 %v4020_v12, %v5161_v57  ;;  %v1271_v48 = vadd.f32 %v4018_v11, %v1139_v15  ;;  %v619_v59 = vmul.f32 %v2998_v3, %v4010_v6 }
 0x162   : > { %v3819_v50 = vpop.eup %3818  ;;  %3832 = vrcp.f32 %v2033_v43  ;;  %v5173_v39 = vadd.f32 %v1270_v17, %v749_v38  ;;  %v3254_v52 = vunpack.c.l.bf16 %v3411_v0  ;;  %v2999_v55 = vunpack.c.h.bf16 %v3348_v22  ;;  %v3413_v17 = vld [vmem:[%s4008_s8 + $0x1b8] sm:$0xff]  }
 0x163   : > { %v3821_v62 = vpop.eup %3820  ;;  %v2034_v58 = vadd.f32 1.0, %v3819_v50  ;;  %v2757_v37 = vmul.f32 -1.442695, %v1526_v25  ;;  %v5175_v34 = vadd.f32 %v1271_v48, %v750_v40  ;;  %v751_v20 = vadd.f32 %v4015_v9, %v619_v59 }
 0x164   : > { %v3823_v61 = vpop.eup %3822  ;;  %v2035_v28 = vadd.f32 1.0, %v3821_v62  ;;  %v1527_v18 = vmul.f32 %v4020_v12, %v5173_v39  ;;  %v1140_v33 = vmul.f32 %v3254_v52, %v4012_v7  ;;  %v620_v5 = vmul.f32 %v2999_v55, %v4010_v6 }
 0x165   : > { %v3825_v26 = vpop.eup %3824  ;;  %v2414_v35 = vmul.f32 %v3823_v61, %v5074_v51  ;;  %3834 = vrcp.f32 %v2034_v58  ;;  %v1528_v49 = vmul.f32 %v4020_v12, %v5175_v34  ;;  %v3255_v46 = vunpack.c.h.bf16 %v3411_v0 }
 0x166   : > { %v3827_v8 = vpop.eup %3826  ;;  %v2415_v36 = vmul.f32 %v3825_v26, %v5078_v4  ;;  %3836 = vrcp.f32 %v2035_v28  ;;  %v2758_v14 = vmul.f32 -1.442695, %v1527_v18  ;;  %v1272_v19 = vadd.f32 %v4018_v11, %v1140_v33 }
 0x167   : > { %v3829_v60 = vpop.eup %3828  ;;  %2542 = vst [vmem:[%s4142_s12 + $0x2f8] sm:$0xff] %v2414_v35  ;;  %v2416_v51 = vmul.f32 %v3827_v8, %v5090_v10  ;;  %3838 = vpow2.f32 %v2757_v37  ;;  %v2759_v24 = vmul.f32 -1.442695, %v1528_v49  ;;  %v752_v22 = vadd.f32 %v4015_v9, %v620_v5 }
 0x168   : > { %2543 = vst [vmem:[%s4142_s12 + $0x300] sm:$0xff] %v2415_v36  ;;  %v2036_v16 = vadd.f32 1.0, %v3829_v60  ;;  %3840 = vpow2.f32 %v2758_v14  ;;  %v5193_v4 = vadd.f32 %v1272_v19, %v751_v20  ;;  %v1141_v63 = vmul.f32 %v3255_v46, %v4012_v7  ;;  %v3351_v19 = vld [vmem:[%s4003_s30 + $0x1c0] sm:$0xff]  }
 0x169   : > { %2544 = vst [vmem:[%s4142_s12 + $0x308] sm:$0xff] %v2416_v51  ;;  %3842 = vpow2.f32 %v2759_v24  ;;  %v3002_v32 = vunpack.c.l.bf16 %v3349_v21  ;;  %v3258_v2 = vunpack.c.l.bf16 %v3412_v41  ;;  %v3003_v1 = vunpack.c.h.bf16 %v3349_v21  ;;  %v3414_v24 = vld [vmem:[%s4008_s8 + $0x1c0] sm:$0xff]  }
 0x16a   : > { %3844 = vrcp.f32 %v2036_v16  ;;  %v1529_v10 = vmul.f32 %v4020_v12, %v5193_v4  ;;  %v1273_v29 = vadd.f32 %v4018_v11, %v1141_v63  ;;  %v3259_v13 = vunpack.c.h.bf16 %v3412_v41 }
 0x16b   : > { %v3831_v31 = vpop.eup %3830  ;;  %v621_v42 = vmul.f32 %v3002_v32, %v4010_v6  ;;  %v1142_v3 = vmul.f32 %v3258_v2, %v4012_v7  ;;  %v622_v27 = vmul.f32 %v3003_v1, %v4010_v6  ;;  %v3006_v23 = vunpack.c.l.bf16 %v3350_v44 }
 0x16c   : > { %v3833_v47 = vpop.eup %3832  ;;  %v2037_v15 = vadd.f32 1.0, %v3831_v31  ;;  %v2760_v0 = vmul.f32 -1.442695, %v1529_v10  ;;  %v5204_v43 = vadd.f32 %v1273_v29, %v752_v22  ;;  %v1143_v38 = vmul.f32 %v3259_v13, %v4012_v7 }
 0x16d   : > { %v2417_v40 = vmul.f32 %v3833_v47, %v5105_v53  ;;  %v753_v25 = vadd.f32 %v4015_v9, %v621_v42  ;;  %v1274_v48 = vadd.f32 %v4018_v11, %v1142_v3  ;;  %v754_v59 = vadd.f32 %v4015_v9, %v622_v27 }
 0x16e   : > { %3846 = vrcp.f32 %v2037_v15  ;;  %v1530_v50 = vmul.f32 %v4020_v12, %v5204_v43  ;;  %v1275_v52 = vadd.f32 %v4018_v11, %v1143_v38  ;;  %v623_v55 = vmul.f32 %v3006_v23, %v4010_v6  ;;  %v3352_v15 = vld [vmem:[%s4003_s30 + $0x1c8] sm:$0xff]  }
 0x16f   : > { %v3835_v62 = vpop.eup %3834  ;;  %2545 = vst [vmem:[%s4142_s12 + $0x310] sm:$0xff] %v2417_v40  ;;  %3848 = vpow2.f32 %v2760_v0  ;;  %v5217_v58 = vadd.f32 %v1274_v48, %v753_v25  ;;  %v3262_v53 = vunpack.c.l.bf16 %v3413_v17  ;;  %v3007_v37 = vunpack.c.h.bf16 %v3350_v44  ;;  %v3415_v0 = vld [vmem:[%s4008_s8 + $0x1c8] sm:$0xff]  }
 0x170   : > { %v3837_v20 = vpop.eup %3836  ;;  %v2418_v61 = vmul.f32 %v3835_v62, %v5116_v30  ;;  %v2761_v28 = vmul.f32 -1.442695, %v1530_v50  ;;  %v5220_v18 = vadd.f32 %v1275_v52, %v754_v59  ;;  %v755_v33 = vadd.f32 %v4015_v9, %v623_v55 }
 0x171   : > { %v3839_v5 = vpop.eup %3838  ;;  %v2419_v26 = vmul.f32 %v3837_v20, %v5123_v54  ;;  %v1531_v35 = vmul.f32 %v4020_v12, %v5217_v58  ;;  %v1144_v49 = vmul.f32 %v3262_v53, %v4012_v7  ;;  %v624_v46 = vmul.f32 %v3007_v37, %v4010_v6 }
 0x172   : > { %v3841_v8 = vpop.eup %3840  ;;  %2546 = vst [vmem:[%s4142_s12 + $0x318] sm:$0xff] %v2418_v61  ;;  %v2038_v30 = vadd.f32 1.0, %v3839_v5  ;;  %3850 = vpow2.f32 %v2761_v28  ;;  %v1532_v36 = vmul.f32 %v4020_v12, %v5220_v18  ;;  %v3263_v14 = vunpack.c.h.bf16 %v3413_v17 }
 0x173   : > { %v3843_v21 = vpop.eup %3842  ;;  %2547 = vst [vmem:[%s4142_s12 + $0x320] sm:$0xff] %v2419_v26  ;;  %v2039_v54 = vadd.f32 1.0, %v3841_v8  ;;  %v2762_v41 = vmul.f32 -1.442695, %v1531_v35  ;;  %v1276_v60 = vadd.f32 %v4018_v11, %v1144_v49  ;;  %v756_v51 = vadd.f32 %v4015_v9, %v624_v46 }
 0x174   : > { %v3845_v22 = vpop.eup %3844  ;;  %3852 = vrcp.f32 %v2038_v30  ;;  %v2040_v16 = vadd.f32 1.0, %v3843_v21  ;;  %v2763_v63 = vmul.f32 -1.442695, %v1532_v36  ;;  %v1145_v44 = vmul.f32 %v3263_v14, %v4012_v7  ;;  %v3353_v36 = vld [vmem:[%s4003_s30 + $0x1d0] sm:$0xff]  }
 0x175   : > { %v2420_v32 = vmul.f32 %v3845_v22, %v5134_v56  ;;  %3854 = vrcp.f32 %v2039_v54  ;;  %v5238_v2 = vadd.f32 %v1276_v60, %v755_v33  ;;  %v3010_v1 = vunpack.c.l.bf16 %v3351_v19 }
 0x176   : > { %3856 = vrcp.f32 %v2040_v16  ;;  %v1277_v10 = vadd.f32 %v4018_v11, %v1145_v44  ;;  %v3266_v29 = vunpack.c.l.bf16 %v3414_v24  ;;  %v3011_v13 = vunpack.c.h.bf16 %v3351_v19 }
 0x177   : > { %2548 = vst [vmem:[%s4142_s12 + $0x328] sm:$0xff] %v2420_v32  ;;  %3858 = vpow2.f32 %v2762_v41  ;;  %v1533_v31 = vmul.f32 %v4020_v12, %v5238_v2  ;;  %v625_v42 = vmul.f32 %v3010_v1, %v4010_v6  ;;  %v3267_v3 = vunpack.c.h.bf16 %v3414_v24  ;;  %v3416_v41 = vld [vmem:[%s4008_s8 + $0x1d0] sm:$0xff]  }
 0x178   : > { %v3847_v56 = vpop.eup %3846  ;;  %3860 = vpow2.f32 %v2763_v63  ;;  %v5245_v27 = vadd.f32 %v1277_v10, %v756_v51  ;;  %v1146_v23 = vmul.f32 %v3266_v29, %v4012_v7  ;;  %v626_v47 = vmul.f32 %v3011_v13, %v4010_v6 }
 0x179   : > { %v3849_v38 = vpop.eup %3848  ;;  %v2421_v17 = vmul.f32 %v3847_v56, %v5149_v45  ;;  %v2764_v40 = vmul.f32 -1.442695, %v1533_v31  ;;  %v757_v25 = vadd.f32 %v4015_v9, %v625_v42  ;;  %v1147_v48 = vmul.f32 %v3267_v3, %v4012_v7 }
 0x17a   : > { %v2041_v59 = vadd.f32 1.0, %v3849_v38  ;;  %v1534_v50 = vmul.f32 %v4020_v12, %v5245_v27  ;;  %v1278_v52 = vadd.f32 %v4018_v11, %v1146_v23  ;;  %v758_v55 = vadd.f32 %v4015_v9, %v626_v47  ;;  %v3354_v47 = vld [vmem:[%s4003_s30 + $0x1d8] sm:$0xff]  }
 0x17b   : > { %2549 = vst [vmem:[%s4142_s12 + $0x330] sm:$0xff] %v2421_v17  ;;  %3862 = vpow2.f32 %v2764_v40  ;;  %v1279_v62 = vadd.f32 %v4018_v11, %v1147_v48  ;;  %v3014_v53 = vunpack.c.l.bf16 %v3352_v15  ;;  %v3270_v45 = vunpack.c.l.bf16 %v3415_v0  ;;  %v3417_v40 = vld [vmem:[%s4008_s8 + $0x1d8] sm:$0xff]  }
 0x17c   : > { %v3851_v37 = vpop.eup %3850  ;;  %3864 = vrcp.f32 %v2041_v59  ;;  %v2765_v20 = vmul.f32 -1.442695, %v1534_v50  ;;  %v5260_v61 = vadd.f32 %v1278_v52, %v757_v25  ;;  %v3015_v28 = vunpack.c.h.bf16 %v3352_v15 }
 0x17d   : > { %v2042_v33 = vadd.f32 1.0, %v3851_v37  ;;  %v5262_v5 = vadd.f32 %v1279_v62, %v758_v55  ;;  %v627_v26 = vmul.f32 %v3014_v53, %v4010_v6  ;;  %v1148_v35 = vmul.f32 %v3270_v45, %v4012_v7 }
 0x17e   : > { %v3853_v49 = vpop.eup %3852  ;;  %3866 = vpow2.f32 %v2765_v20  ;;  %v1535_v46 = vmul.f32 %v4020_v12, %v5260_v61  ;;  %v628_v8 = vmul.f32 %v3015_v28, %v4010_v6  ;;  %v3271_v30 = vunpack.c.h.bf16 %v3415_v0 }
 0x17f   : > { %v3855_v14 = vpop.eup %3854  ;;  %v2422_v19 = vmul.f32 %v3853_v49, %v5161_v57  ;;  %3868 = vrcp.f32 %v2042_v33  ;;  %v1536_v21 = vmul.f32 %v4020_v12, %v5262_v5  ;;  %v759_v54 = vadd.f32 %v4015_v9, %v627_v26 }
 0x180   : > { %v3857_v60 = vpop.eup %3856  ;;  %v2423_v51 = vmul.f32 %v3855_v14, %v5173_v39  ;;  %v2766_v24 = vmul.f32 -1.442695, %v1535_v46  ;;  %v1280_v22 = vadd.f32 %v4018_v11, %v1148_v35  ;;  %v760_v16 = vadd.f32 %v4015_v9, %v628_v8 }
 0x181   : > { %v3859_v63 = vpop.eup %3858  ;;  %2550 = vst [vmem:[%s4142_s12 + $0x338] sm:$0xff] %v2422_v19  ;;  %v2424_v57 = vmul.f32 %v3857_v60, %v5175_v34  ;;  %v2767_v44 = vmul.f32 -1.442695, %v1536_v21  ;;  %v1149_v32 = vmul.f32 %v3271_v30, %v4012_v7  ;;  %v3018_v1 = vunpack.c.l.bf16 %v3353_v36 }
 0x182   : > { %v3861_v10 = vpop.eup %3860  ;;  %2551 = vst [vmem:[%s4142_s12 + $0x340] sm:$0xff] %v2423_v51  ;;  %v2043_v29 = vadd.f32 1.0, %v3859_v63  ;;  %3870 = vpow2.f32 %v2766_v24  ;;  %v5282_v39 = vadd.f32 %v1280_v22, %v759_v54  ;;  %v3274_v13 = vunpack.c.l.bf16 %v3416_v41  ;;  %v3355_v54 = vld [vmem:[%s4003_s30 + $0x1e0] sm:$0xff]  }
 0x183   : > { %2552 = vst [vmem:[%s4142_s12 + $0x348] sm:$0xff] %v2424_v57  ;;  %v2044_v31 = vadd.f32 1.0, %v3861_v10  ;;  %3872 = vpow2.f32 %v2767_v44  ;;  %v1281_v42 = vadd.f32 %v4018_v11, %v1149_v32  ;;  %v629_v34 = vmul.f32 %v3018_v1, %v4010_v6 }
 0x184   : > { %3874 = vrcp.f32 %v2043_v29  ;;  %v1537_v3 = vmul.f32 %v4020_v12, %v5282_v39  ;;  %v1150_v56 = vmul.f32 %v3274_v13, %v4012_v7  ;;  %v3019_v23 = vunpack.c.h.bf16 %v3353_v36  ;;  %v3418_v29 = vld [vmem:[%s4008_s8 + $0x1e0] sm:$0xff]  }
 0x185   : > { %v3863_v15 = vpop.eup %3862  ;;  %3876 = vrcp.f32 %v2044_v31  ;;  %v5291_v0 = vadd.f32 %v1281_v42, %v760_v16  ;;  %v761_v38 = vadd.f32 %v4015_v9, %v629_v34  ;;  %v3275_v17 = vunpack.c.h.bf16 %v3416_v41 }
 0x186   : > { %v3865_v25 = vpop.eup %3864  ;;  %v2045_v48 = vadd.f32 1.0, %v3863_v15  ;;  %v2768_v59 = vmul.f32 -1.442695, %v1537_v3  ;;  %v1282_v50 = vadd.f32 %v4018_v11, %v1150_v56  ;;  %v630_v52 = vmul.f32 %v3019_v23, %v4010_v6  ;;  %v3356_v3 = vld [vmem:[%s4003_s30 + $0x1e8] sm:$0xff]  }
 0x187   : > { %v2425_v55 = vmul.f32 %v3865_v25, %v5193_v4  ;;  %v1538_v62 = vmul.f32 %v4020_v12, %v5291_v0  ;;  %v1151_v53 = vmul.f32 %v3275_v17, %v4012_v7  ;;  %v3022_v45 = vunpack.c.l.bf16 %v3354_v47 }
 0x188   : > { %v3867_v37 = vpop.eup %3866  ;;  %3878 = vrcp.f32 %v2045_v48  ;;  %v5301_v20 = vadd.f32 %v1282_v50, %v761_v38  ;;  %v762_v28 = vadd.f32 %v4015_v9, %v630_v52  ;;  %v3278_v33 = vunpack.c.l.bf16 %v3417_v40 }
 0x189   : > { %v3869_v26 = vpop.eup %3868  ;;  %2553 = vst [vmem:[%s4142_s12 + $0x350] sm:$0xff] %v2425_v55  ;;  %v2046_v35 = vadd.f32 1.0, %v3867_v37  ;;  %3880 = vpow2.f32 %v2768_v59  ;;  %v2769_v4 = vmul.f32 -1.442695, %v1538_v62  ;;  %v1283_v49 = vadd.f32 %v4018_v11, %v1151_v53  ;;  %v3419_v59 = vld [vmem:[%s4008_s8 + $0x1e8] sm:$0xff]  }
 0x18a   : > { %v2426_v46 = vmul.f32 %v3869_v26, %v5204_v43  ;;  %v1539_v8 = vmul.f32 %v4020_v12, %v5301_v20  ;;  %v631_v30 = vmul.f32 %v3022_v45, %v4010_v6  ;;  %v1152_v36 = vmul.f32 %v3278_v33, %v4012_v7 }
 0x18b   : > { %3882 = vrcp.f32 %v2046_v35  ;;  %v5311_v14 = vadd.f32 %v1283_v49, %v762_v28  ;;  %v3023_v19 = vunpack.c.h.bf16 %v3354_v47  ;;  %v3279_v21 = vunpack.c.h.bf16 %v3417_v40 }
 0x18c   : > { %v3871_v41 = vpop.eup %3870  ;;  %2554 = vst [vmem:[%s4142_s12 + $0x358] sm:$0xff] %v2426_v46  ;;  %3884 = vpow2.f32 %v2769_v4  ;;  %v2770_v60 = vmul.f32 -1.442695, %v1539_v8  ;;  %v763_v43 = vadd.f32 %v4015_v9, %v631_v30  ;;  %v1284_v51 = vadd.f32 %v4018_v11, %v1152_v36 }
 0x18d   : > { %v3873_v24 = vpop.eup %3872  ;;  %v2047_v22 = vadd.f32 1.0, %v3871_v41  ;;  %v1540_v16 = vmul.f32 %v4020_v12, %v5311_v14  ;;  %v632_v63 = vmul.f32 %v3023_v19, %v4010_v6  ;;  %v1153_v57 = vmul.f32 %v3279_v21, %v4012_v7 }
 0x18e   : > { %v3875_v44 = vpop.eup %3874  ;;  %v2048_v32 = vadd.f32 1.0, %v3873_v24  ;;  %3886 = vpow2.f32 %v2770_v60  ;;  %v5321_v1 = vadd.f32 %v1284_v51, %v763_v43  ;;  %v3026_v10 = vunpack.c.l.bf16 %v3355_v54 }
 0x18f   : > { %v3877_v13 = vpop.eup %3876  ;;  %v2427_v31 = vmul.f32 %v3875_v44, %v5217_v58  ;;  %3888 = vrcp.f32 %v2047_v22  ;;  %v2771_v42 = vmul.f32 -1.442695, %v1540_v16  ;;  %v764_v34 = vadd.f32 %v4015_v9, %v632_v63 }
 0x190   : > { %v2428_v56 = vmul.f32 %v3877_v13, %v5220_v18  ;;  %3890 = vrcp.f32 %v2048_v32  ;;  %v1541_v23 = vmul.f32 %v4020_v12, %v5321_v1  ;;  %v1285_v47 = vadd.f32 %v4018_v11, %v1153_v57  ;;  %v3420_v13 = vld [vmem:[%s4008_s8 + $0x1f0] sm:$0xff]  }
 0x191   : > { %2555 = vst [vmem:[%s4142_s12 + $0x360] sm:$0xff] %v2427_v31  ;;  %3892 = vpow2.f32 %v2771_v42  ;;  %v633_v15 = vmul.f32 %v3026_v10, %v4010_v6  ;;  %v3282_v38 = vunpack.c.l.bf16 %v3418_v29  ;;  %v3027_v58 = vunpack.c.h.bf16 %v3355_v54 }
 0x192   : > { %v3879_v17 = vpop.eup %3878  ;;  %2556 = vst [vmem:[%s4142_s12 + $0x368] sm:$0xff] %v2428_v56  ;;  %v2772_v40 = vmul.f32 -1.442695, %v1541_v23  ;;  %v5334_v25 = vadd.f32 %v1285_v47, %v764_v34  ;;  %v3283_v48 = vunpack.c.h.bf16 %v3418_v29  ;;  %v3030_v18 = vunpack.c.l.bf16 %v3356_v3  ;;  %v3357_v29 = vld [vmem:[%s4003_s30 + $0x1f0] sm:$0xff]  }
 0x193   : > { %v3881_v50 = vpop.eup %3880  ;;  %v2429_v52 = vmul.f32 %v3879_v17, %v5238_v2  ;;  %v765_v55 = vadd.f32 %v4015_v9, %v633_v15  ;;  %v1154_v62 = vmul.f32 %v3282_v38, %v4012_v7  ;;  %v634_v53 = vmul.f32 %v3027_v58, %v4010_v6 }
 0x194   : > { %v2049_v45 = vadd.f32 1.0, %v3881_v50  ;;  %3894 = vpow2.f32 %v2772_v40  ;;  %v1542_v37 = vmul.f32 %v4020_v12, %v5334_v25  ;;  %v1155_v28 = vmul.f32 %v3283_v48, %v4012_v7 }
 0x195   : > { %v3883_v33 = vpop.eup %3882  ;;  %2557 = vst [vmem:[%s4142_s12 + $0x370] sm:$0xff] %v2429_v52  ;;  %v1286_v26 = vadd.f32 %v4018_v11, %v1154_v62  ;;  %v766_v2 = vadd.f32 %v4015_v9, %v634_v53  ;;  %v635_v35 = vmul.f32 %v3030_v18, %v4010_v6  ;;  %v3286_v4 = vunpack.c.l.bf16 %v3419_v59  ;;  %v3358_v18 = vld [vmem:[%s4003_s30 + $0x1f8] sm:$0xff]  }
 0x196   : > { %v3885_v49 = vpop.eup %3884  ;;  %v2430_v46 = vmul.f32 %v3883_v33, %v5245_v27  ;;  %3896 = vrcp.f32 %v2049_v45  ;;  %v2773_v8 = vmul.f32 -1.442695, %v1542_v37  ;;  %v1287_v30 = vadd.f32 %v4018_v11, %v1155_v28  ;;  %v3421_v28 = vld [vmem:[%s4008_s8 + $0x1f8] sm:$0xff]  }
 0x197   : > { %v2050_v36 = vadd.f32 1.0, %v3885_v49  ;;  %v5350_v19 = vadd.f32 %v1286_v26, %v765_v55  ;;  %v767_v21 = vadd.f32 %v4015_v9, %v635_v35  ;;  %v1156_v54 = vmul.f32 %v3286_v4, %v4012_v7 }
 0x198   : > { %v3887_v41 = vpop.eup %3886  ;;  %2558 = vst [vmem:[%s4142_s12 + $0x378] sm:$0xff] %v2430_v46  ;;  %3898 = vpow2.f32 %v2773_v8  ;;  %v5355_v60 = vadd.f32 %v1287_v30, %v766_v2  ;;  %v3031_v43 = vunpack.c.h.bf16 %v3356_v3  ;;  %v3287_v27 = vunpack.c.h.bf16 %v3419_v59 }
 0x199   : > { %v3889_v51 = vpop.eup %3888  ;;  %3900 = vrcp.f32 %v2050_v36  ;;  %v2051_v24 = vadd.f32 1.0, %v3887_v41  ;;  %v1543_v22 = vmul.f32 %v4020_v12, %v5350_v19  ;;  %v1288_v16 = vadd.f32 %v4018_v11, %v1156_v54 }
 0x19a   : > { %v3891_v63 = vpop.eup %3890  ;;  %v2431_v57 = vmul.f32 %v3889_v51, %v5260_v61  ;;  %v1544_v44 = vmul.f32 %v4020_v12, %v5355_v60  ;;  %v636_v32 = vmul.f32 %v3031_v43, %v4010_v6  ;;  %v1157_v10 = vmul.f32 %v3287_v27, %v4012_v7 }
 0x19b   : > { %v3893_v31 = vpop.eup %3892  ;;  %v2432_v42 = vmul.f32 %v3891_v63, %v5262_v5  ;;  %3902 = vrcp.f32 %v2051_v24  ;;  %v2774_v34 = vmul.f32 -1.442695, %v1543_v22  ;;  %v5368_v3 = vadd.f32 %v1288_v16, %v767_v21 }
 0x19c   : > { %2559 = vst [vmem:[%s4142_s12 + $0x380] sm:$0xff] %v2431_v57  ;;  %v2052_v61 = vadd.f32 1.0, %v3893_v31  ;;  %v2775_v56 = vmul.f32 -1.442695, %v1544_v44  ;;  %v768_v23 = vadd.f32 %v4015_v9, %v636_v32  ;;  %v1289_v47 = vadd.f32 %v4018_v11, %v1157_v10 }
 0x19d   : > { %2560 = vst [vmem:[%s4142_s12 + $0x388] sm:$0xff] %v2432_v42  ;;  %3904 = vpow2.f32 %v2774_v34  ;;  %v1545_v15 = vmul.f32 %v4020_v12, %v5368_v3  ;;  %v3034_v38 = vunpack.c.l.bf16 %v3357_v29  ;;  %v3290_v58 = vunpack.c.l.bf16 %v3420_v13 }
 0x19e   : > { %v3895_v5 = vpop.eup %3894  ;;  %3906 = vrcp.f32 %v2052_v61  ;;  %v5376_v17 = vadd.f32 %v1289_v47, %v768_v23  ;;  %v3035_v40 = vunpack.c.h.bf16 %v3357_v29  ;;  %v3291_v48 = vunpack.c.h.bf16 %v3420_v13 }
 0x19f   : > { %v2053_v59 = vadd.f32 1.0, %v3895_v5  ;;  %3908 = vpow2.f32 %v2775_v56  ;;  %v2776_v50 = vmul.f32 -1.442695, %v1545_v15  ;;  %v637_v52 = vmul.f32 %v3034_v38, %v4010_v6 }
 0x1a0   : > { %v3897_v55 = vpop.eup %3896  ;;  %v1546_v62 = vmul.f32 %v4020_v12, %v5376_v17  ;;  %v1158_v53 = vmul.f32 %v3290_v58, %v4012_v7  ;;  %v638_v45 = vmul.f32 %v3035_v40, %v4010_v6  ;;  %v1159_v37 = vmul.f32 %v3291_v48, %v4012_v7 }
 0x1a1   : > { %v2433_v33 = vmul.f32 %v3897_v55, %v5282_v39  ;;  %3910 = vrcp.f32 %v2053_v59  ;;  %v769_v26 = vadd.f32 %v4015_v9, %v637_v52  ;;  %v3038_v2 = vunpack.c.l.bf16 %v3358_v18 }
 0x1a2   : > { %v3899_v35 = vpop.eup %3898  ;;  %3912 = vpow2.f32 %v2776_v50  ;;  %v2777_v4 = vmul.f32 -1.442695, %v1546_v62  ;;  %v1290_v49 = vadd.f32 %v4018_v11, %v1158_v53  ;;  %v770_v46 = vadd.f32 %v4015_v9, %v638_v45 }
 0x1a3   : > { %v3901_v8 = vpop.eup %3900  ;;  %2561 = vst [vmem:[%s4142_s12 + $0x390] sm:$0xff] %v2433_v33  ;;  %v2054_v30 = vadd.f32 1.0, %v3899_v35  ;;  %v1291_v36 = vadd.f32 %v4018_v11, %v1159_v37  ;;  %v639_v21 = vmul.f32 %v3038_v2, %v4010_v6  ;;  %v3294_v39 = vunpack.c.l.bf16 %v3421_v28 }
 0x1a4   : > { %v2434_v54 = vmul.f32 %v3901_v8, %v5291_v0  ;;  %3914 = vpow2.f32 %v2777_v4  ;;  %v5394_v41 = vadd.f32 %v1290_v49, %v769_v26  ;;  %v3039_v43 = vunpack.c.h.bf16 %v3358_v18 }
 0x1a5   : > { %v3903_v27 = vpop.eup %3902  ;;  %3916 = vrcp.f32 %v2054_v30  ;;  %v5396_v51 = vadd.f32 %v1291_v36, %v770_v46  ;;  %v771_v24 = vadd.f32 %v4015_v9, %v639_v21  ;;  %v1160_v22 = vmul.f32 %v3294_v39, %v4012_v7 }
 0x1a6   : > { %2562 = vst [vmem:[%s4142_s12 + $0x398] sm:$0xff] %v2434_v54  ;;  %v2435_v16 = vmul.f32 %v3903_v27, %v5301_v20  ;;  %v1547_v63 = vmul.f32 %v4020_v12, %v5394_v41  ;;  %v640_v0 = vmul.f32 %v3039_v43, %v4010_v6  ;;  %v3295_v57 = vunpack.c.h.bf16 %v3421_v28 }
 0x1a7   : > { %v3905_v44 = vpop.eup %3904  ;;  %v1548_v32 = vmul.f32 %v4020_v12, %v5396_v51  ;;  %v1292_v10 = vadd.f32 %v4018_v11, %v1160_v22 }
 0x1a8   : > { %v3907_v29 = vpop.eup %3906  ;;  %2563 = vst [vmem:[%s4142_s12 + $0x3a0] sm:$0xff] %v2435_v16  ;;  %v2055_v13 = vadd.f32 1.0, %v3905_v44  ;;  %v2778_v31 = vmul.f32 -1.442695, %v1547_v63  ;;  %v772_v42 = vadd.f32 %v4015_v9, %v640_v0  ;;  %v1161_v20 = vmul.f32 %v3295_v57, %v4012_v7 }
 0x1a9   : > { %v3909_v34 = vpop.eup %3908  ;;  %v2436_v61 = vmul.f32 %v3907_v29, %v5311_v14  ;;  %v2779_v6 = vmul.f32 -1.442695, %v1548_v32  ;;  %v1420_v56 = vadd.f32 %v1292_v10, %v771_v24 }
 0x1aa   : > { %3918 = vrcp.f32 %v2055_v13  ;;  %v2056_v23 = vadd.f32 1.0, %v3909_v34  ;;  %v1293_v47 = vadd.f32 %v4018_v11, %v1161_v20 }
 0x1ab   : > { %v3911_v15 = vpop.eup %3910  ;;  %2564 = vst [vmem:[%s4142_s12 + $0x3a8] sm:$0xff] %v2436_v61  ;;  %3920 = vpow2.f32 %v2778_v31  ;;  %v1549_v38 = vmul.f32 %v4020_v12, %v1420_v56 }
 0x1ac   : > { %v3913_v58 = vpop.eup %3912  ;;  %v2437_v9 = vmul.f32 %v3911_v15, %v5321_v1  ;;  %3922 = vrcp.f32 %v2056_v23  ;;  %v1421_v7 = vadd.f32 %v1293_v47, %v772_v42 }
 0x1ad   : > { %v2057_v5 = vadd.f32 1.0, %v3913_v58  ;;  %3924 = vpow2.f32 %v2779_v6  ;;  %v2780_v14 = vmul.f32 -1.442695, %v1549_v38 }
 0x1ae   : > { %v3915_v40 = vpop.eup %3914  ;;  %2565 = vst [vmem:[%s4142_s12 + $0x3b0] sm:$0xff] %v2437_v9  ;;  %v1550_v48 = vmul.f32 %v4020_v12, %v1421_v7 }
 0x1af   : > { %v3917_v11 = vpop.eup %3916  ;;  %3926 = vrcp.f32 %v2057_v5  ;;  %v2058_v18 = vadd.f32 1.0, %v3915_v40 }
 0x1b0   : > { %v2438_v59 = vmul.f32 %v3917_v11, %v5334_v25  ;;  %3928 = vpow2.f32 %v2780_v14  ;;  %v2781_v50 = vmul.f32 -1.442695, %v1550_v48 }
 0x1b1   : > { %3930 = vrcp.f32 %v2058_v18 }
 0x1b2   : > { %2566 = vst [vmem:[%s4142_s12 + $0x3b8] sm:$0xff] %v2438_v59  ;;  %3932 = vpow2.f32 %v2781_v50 }
 0x1b4   : > { %v3919_v1 = vpop.eup %3918 }
 0x1b5   : > { %v3921_v52 = vpop.eup %3920  ;;  %v2439_v55 = vmul.f32 %v3919_v1, %v5350_v19 }
 0x1b6   : > { %v3923_v62 = vpop.eup %3922  ;;  %v2059_v53 = vadd.f32 1.0, %v3921_v52 }
 0x1b7   : > { %v3925_v12 = vpop.eup %3924  ;;  %2567 = vst [vmem:[%s4142_s12 + $0x3c0] sm:$0xff] %v2439_v55  ;;  %v2440_v45 = vmul.f32 %v3923_v62, %v5355_v60 }
 0x1b8   : > { %3934 = vrcp.f32 %v2059_v53  ;;  %v2060_v25 = vadd.f32 1.0, %v3925_v12 }
 0x1b9   : > { %v3927_v37 = vpop.eup %3926  ;;  %2568 = vst [vmem:[%s4142_s12 + $0x3c8] sm:$0xff] %v2440_v45 }
 0x1ba   : > { %v3929_v28 = vpop.eup %3928  ;;  %v2441_v33 = vmul.f32 %v3927_v37, %v5368_v3  ;;  %3936 = vrcp.f32 %v2060_v25 }
 0x1bb   : > { %v3931_v26 = vpop.eup %3930  ;;  %v2061_v19 = vadd.f32 1.0, %v3929_v28 }
 0x1bc   : > { %v3933_v2 = vpop.eup %3932  ;;  %2569 = vst [vmem:[%s4142_s12 + $0x3d0] sm:$0xff] %v2441_v33  ;;  %v2442_v35 = vmul.f32 %v3931_v26, %v5376_v17 }
 0x1bd   : > { %3938 = vrcp.f32 %v2061_v19  ;;  %v2062_v60 = vadd.f32 1.0, %v3933_v2 }
 0x1be   : > { %2570 = vst [vmem:[%s4142_s12 + $0x3d8] sm:$0xff] %v2442_v35 }
 0x1bf   : > { %3940 = vrcp.f32 %v2062_v60 }
 0x1c2   : > { %v3935_v4 = vpop.eup %3934 }
 0x1c3   : > { %v2443_v49 = vmul.f32 %v3935_v4, %v5394_v41 }
 0x1c4   : > { %v3937_v46 = vpop.eup %3936 }
 0x1c5   : > { %2571 = vst [vmem:[%s4142_s12 + $0x3e0] sm:$0xff] %v2443_v49  ;;  %v2444_v3 = vmul.f32 %v3937_v46, %v5396_v51 }
 0x1c7   : > { %v3939_v8 = vpop.eup %3938  ;;  %2572 = vst [vmem:[%s4142_s12 + $0x3e8] sm:$0xff] %v2444_v3 }
 0x1c8   : > { %v2445_v30 = vmul.f32 %v3939_v8, %v1420_v56 }
 0x1c9   : > { %v3941_v36 = vpop.eup %3940 }
 0x1ca   : > { %2573 = vst [vmem:[%s4142_s12 + $0x3f0] sm:$0xff] %v2445_v30  ;;  %v2446_v21 = vmul.f32 %v3941_v36, %v1421_v7 }
 0x1cc   : > { %2574 = vst [vmem:[%s4142_s12 + $0x3f8] sm:$0xff] %v2446_v21 }
 0x1cd PF: > { %s16_s20 = sadd.s32 1, %s3948_s20  }
 0x1ce   : > { %p13_p4 = scmp.ge.s32.totalorder %s16_s20, 4  }
 0x1d0   :  { %15 = sbr.rel (!%p13_p4) target bundleno = 2 (0x2), region = 73 }

// kernel: basic_block_dec_forward.8
= control target key start
LH: loop header
LB: loop body
LE: loop exit
PB: predicated region body
PF: predicated region fallthrough
CT: control target
= control target key end

     0   :  { %s8499_s12 = smov 0   ;;  %s10146_s0 = inlined_call_operand.vmem [shape: bf16[64,34,128], index: 0, kind: input, shape index: {}]   ;;  %s10147_s1 = inlined_call_operand.vmem [shape: bf16[3,128,128], index: 1, kind: input, shape index: {}]   ;;  %s10148_s2 = inlined_call_operand.vmem [shape: bf16[2048,128], index: 2, kind: output, shape index: {0}]   ;;  %s10149_s3 = inlined_call_operand.vmem [shape: f32[2,2,128], index: 3, kind: output, shape index: {1}]  }
   0x1 LB: > { %s8505_s13 = sadd.s32 4294967295, %s8477_s12   ;;  %p6384_p0 = scmp.ge.s32.totalorder %s8477_s12, 1  ;;  %s8477_s12 = sphi %s8499_s12, %s14_s12  }
   0x2   : > { %p142_p1 = scmp.lt.s32.totalorder %s8477_s12, 3 }
   0x4   : > { %p143_p2 = pnand %p6384_p0, %p142_p1 }
   0x6   : > { %146 = sbr.rel (%p143_p2) target bundleno = 720 (0x2d0), region = 28 }
   0xd   : > { %v8240_v0 = vld [vmem:[%s10147_s1 + $0x40] sm:$0xff]   ;;  %s6385_s16 = sshll.u32 %s8505_s13, 5  ;;  %v8242_v2 = vld [vmem:[%s10147_s1 + $0x48] sm:$0xff]   ;;  %v8244_v4 = vld [vmem:[%s10147_s1 + $0x50] sm:$0xff]   ;;  %vm365_vm0 = vsmask.f32 3328 }
   0xe   : > { %v8516_v1 = vld [vmem:[%s10147_s1] sm:$0xff]   ;;  %p172_p3 = scmp.lt.s32.totalorder %s6385_s16, 63  ;;  %7527 = vmatprep.subr.bf16.mxu1 %v8240_v0  ;;  %v8525_v3 = vld [vmem:[%s10147_s1 + $0x8] sm:$0xff]   ;;  %v8535_v5 = vld [vmem:[%s10147_s1 + $0x10] sm:$0xff]   ;;  %vm366_vm1 = vsmask.f32 7440 }
   0xf   : > { %7671 = vmatprep.subr.bf16.mxu0 %v8516_v1  ;;  %7528 = vmatpush3.bf16.msra.mxu1 %v8240_v0  ;;  %v8246_v6 = vld [vmem:[%s10147_s1 + $0x58] sm:$0xff]   ;;  %v8248_v8 = vld [vmem:[%s10147_s1 + $0x60] sm:$0xff]   ;;  %v8250_v10 = vld [vmem:[%s10147_s1 + $0x68] sm:$0xff]   ;;  %vm3715_vm3 = vcmask 1042432   ;;  %vm3716_vm4 = vcmask 1046532   ;;  %s6387_s18 = sshll.u32 %s8505_s13, 7 }
  0x10   : > { %7672 = vmatpush3.bf16.msra.mxu0 %v8516_v1  ;;  %7529 = vmatprep.subr.bf16.mxu1 %v8242_v2  ;;  %s10220_s16 = smov (!%p172_p3, %s6385_s16), 63  ;;  %v8545_v7 = vld [vmem:[%s10147_s1 + $0x18] sm:$0xff]   ;;  %v8555_v9 = vld [vmem:[%s10147_s1 + $0x20] sm:$0xff]   ;;  %v8568_v11 = vld [vmem:[%s10147_s1 + $0x28] sm:$0xff]   ;;  %p9688_p4 = scmp.lt.s32.totalorder %s6387_s18, 255  ;;  %vm6290_vm6 = vcmask 1040384  }
  0x11   : > { %7673 = vmatprep.subr.bf16.mxu0 %v8525_v3  ;;  %s8231_s4 = smul.u32 20, %s10220_s16  ;;  %v8252_v22 = vld [vmem:[%s10147_s1 + $0x70] sm:$0xff]   ;;  %vm8600_vm2 = vmor %vm365_vm0, %vm366_vm1  ;;  %v8254_v44 = vld [vmem:[%s10147_s1 + $0x78] sm:$0xff]   ;;  %p184_p5 = scmp.lt.s32.totalorder %s8505_s13, 1 }
  0x12   : > { %v8594_v32 = vld [vmem:[%s10147_s1 + $0x30] sm:$0xff]   ;;  %v8627_v54 = vld [vmem:[%s10147_s1 + $0x38] sm:$0xff]   ;;  %vm9050_vm5 = vmor %vm3715_vm3, %vm3716_vm4  ;;  %s10222_s18 = smov (!%p9688_p4, %s6387_s18), 255 }
  0x13   : > { %7530 = vmatpush3.bf16.msra.mxu1 %v8242_v2  ;;  %s8560_s11 = scalar_lea.vmem %s10146_s0, %s8231_s4  ;;  %s6388_s20 = sshll.u32 %s10222_s18, 2 }
  0x14   : > { %7674 = vmatpush3.bf16.msra.mxu0 %v8525_v3  ;;  %7531 = vmatprep.subr.bf16.mxu1 %v8244_v4  ;;  %v189_v12 = vld [vmem:[%s8560_s11] sm:$0xf]  ;;  %v190_v13 = vld [vmem:[%s8560_s11 + $0x4] sm:$0xf]  ;;  %v8574_v14 = vld [vmem:[%s8560_s11 + $0x8] sm:$0xf]  ;;  %s9751_s23 = scalar_lea.vmem %s10148_s2, %s6388_s20 }
  0x15   : > { %7675 = vmatprep.subr.bf16.mxu0 %v8535_v5  ;;  %v369_v15 = vshrl.u32 %v189_v12, 16  ;;  %v372_v16 = vshll.u32 %v189_v12, 16  ;;  %v378_v17 = vshll.u32 %v190_v13, 16  ;;  %v382_v18 = vshrl.u32 %v190_v13, 16  ;;  %v8580_v21 = vld [vmem:[%s8560_s11 + $0xc] sm:$0xf] }
  0x16   : > { %v388_v19 = vshll.u32 %v8574_v14, 16  ;;  %v392_v20 = vshrl.u32 %v8574_v14, 16  ;;  %v6478_v25 = vcombine.low %v189_v12, %v190_v13  ;;  %v8586_v26 = vld [vmem:[%s8560_s11 + $0x10] sm:$0x1]  ;;  %v398_v27 = vshll.u32 %v8580_v21, 16  ;;  %s10224_s13 = smov (!%p184_p5, %s8505_s13), 1 }
  0x17   : > { %7532 = vmatpush3.bf16.msra.mxu1 %v8244_v4  ;;  %v371_v23 = vrot.slane %v369_v15, 4  ;;  %v374_v24 = vrot.slane %v372_v16, 5  ;;  %v380_v28 = vrot.slane %v378_v17, 5  ;;  %v384_v29 = vrot.slane %v382_v18, 4  ;;  %v8608_v42 = vld [vmem:[%s8560_s11 + $0x14] sm:$0xf] }
  0x18   : > { %7676 = vmatpush3.bf16.msra.mxu0 %v8535_v5  ;;  %7533 = vmatprep.subr.bf16.mxu1 %v8246_v6  ;;  %v390_v30 = vrot.slane %v388_v19, 5  ;;  %v394_v31 = vrot.slane %v392_v20, 4  ;;  %v400_v34 = vrot.slane %v398_v27, 5  ;;  %v402_v35 = vshrl.u32 %v8580_v21, 16  ;;  %v8611_v43 = vld [vmem:[%s8560_s11 + $0x18] sm:$0xf] }
  0x19   : > { %7677 = vmatprep.subr.bf16.mxu0 %v8545_v7  ;;  %v375_v33 = vor.u32 %v374_v24, %v371_v23  ;;  %7687 = vmatprep.mubr.bf16.mxu0 %v6478_v25  ;;  %v408_v36 = vshll.u32 %v8586_v26, 16  ;;  %v385_v38 = vor.u32 %v384_v29, %v380_v28  ;;  %v3729_v40 = vrot.slane %v8586_v26, 5  ;;  %v8619_v51 = vld [vmem:[%s8560_s11 + $0x1c] sm:$0xf]  ;;  %v8633_v59 = vld [vmem:[%s8560_s11 + $0x20] sm:$0xf] }
  0x1a   : > { %v395_v39 = vor.u32 %v394_v31, %v390_v30  ;;  %v6479_v41 = vcombine.low %v8574_v14, %v8580_v21  ;;  %v404_v46 = vrot.slane %v402_v35, 4  ;;  %v413_v48 = vshrl.u32 %v8608_v42, 16  ;;  %v8258_v4 = vld [vmem:[%s10147_s1 + $0x80] sm:$0xff]  }
  0x1b   : > { %7534 = vmatpush3.bf16.msra.mxu1 %v8246_v6  ;;  %v376_v45 = vrot.slane %v375_v33, 4  ;;  %v410_v47 = vrot.slane %v408_v36, 5  ;;  %v386_v49 = vrot.slane %v385_v38, 4  ;;  %v416_v52 = vshll.u32 %v8608_v42, 16  ;;  %v334_v13 = vld [vmem:[%s8560_s11 + $0x24] sm:$0x1] }
  0x1c   : > { %7678 = vmatpush3.bf16.msra.mxu0 %v8545_v7  ;;  %7535 = vmatprep.subr.bf16.mxu1 %v8248_v8  ;;  %v396_v50 = vrot.slane %v395_v39, 4  ;;  %v422_v53 = vshll.u32 %v8611_v43, 16  ;;  %v405_v56 = vor.u32 %v404_v46, %v400_v34  ;;  %v415_v57 = vrot.slane %v413_v48, 4  ;;  %v8666_v36 = vld [vmem:[%s8560_s11 + $0x30] sm:$0xf]  ;;  %v8263_v46 = vld [vmem:[%s10147_s1 + $0x88] sm:$0xff]  }
  0x1d   : > { %7679 = vmatprep.subr.bf16.mxu0 %v8555_v9  ;;  %v381_v55 = vsel %vm8600_vm2, %v376_v45, %v380_v28  ;;  %v426_v58 = vshrl.u32 %v8611_v43, 16  ;;  %v391_v60 = vsel %vm8600_vm2, %v386_v49, %v390_v30  ;;  %v418_v62 = vrot.slane %v416_v52, 5  ;;  %v8657_v28 = vld [vmem:[%s8560_s11 + $0x2c] sm:$0xf]  ;;  %v8677_v52 = vld [vmem:[%s8560_s11 + $0x34] sm:$0xf] }
  0x1e   : > { %v401_v61 = vsel %vm8600_vm2, %v396_v50, %v400_v34  ;;  %v424_v63 = vrot.slane %v422_v53, 5  ;;  %v6406_v0 = vcombine.low %v381_v55, %v391_v60  ;;  %v406_v2 = vrot.slane %v405_v56, 4 }
  0x1f   : > { %7536 = vmatpush3.bf16.msra.mxu1 %v8248_v8  ;;  %v428_v6 = vrot.slane %v426_v58, 4  ;;  %v432_v8 = vshll.u32 %v8619_v51, 16  ;;  %v6480_v12 = vcombine.low %v8608_v42, %v8611_v43  ;;  %v436_v15 = vshrl.u32 %v8619_v51, 16  ;;  %v335_v58 = vld [vmem:[%s8560_s11 + $0x38] sm:$0x1] }
  0x20   : > { %7680 = vmatpush3.bf16.msra.mxu0 %v8555_v9  ;;  %7537 = vmatprep.subr.bf16.mxu1 %v8250_v10  ;;  %v442_v16 = vshll.u32 %v8633_v59, 16  ;;  %v411_v17 = vsel %vm8600_vm2, %v406_v2, %v410_v47  ;;  %v446_v20 = vshrl.u32 %v8633_v59, 16  ;;  %v452_v31 = vshll.u32 %v334_v13, 16  ;;  %v8268_v2 = vld [vmem:[%s10147_s1 + $0x90] sm:$0xff]   ;;  %v8702_v13 = vld [vmem:[%s8560_s11 + $0x40] sm:$0xf] }
  0x21   : > { %7681 = vmatprep.subr.bf16.mxu0 %v8568_v11  ;;  %7543 = vmatprep.mubr.bf16.mxu1 %v6406_v0  ;;  %v429_v18 = vor.u32 %v428_v6, %v424_v63  ;;  %v434_v19 = vrot.slane %v432_v8, 5  ;;  %v6407_v23 = vcombine.low %v401_v61, %v411_v17  ;;  %v438_v25 = vrot.slane %v436_v15, 4 }
  0x22   : > { %v444_v27 = vrot.slane %v442_v16, 5  ;;  %v448_v30 = vrot.slane %v446_v20, 4  ;;  %v6481_v33 = vcombine.low %v8619_v51, %v8633_v59  ;;  %v466_v45 = vshll.u32 %v8657_v28, 16  ;;  %v336_v59 = vld [vmem:[%s8560_s11 + $0x4c] sm:$0x1] }
  0x23   : > { %7538 = vmatpush3.bf16.msra.mxu1 %v8250_v10  ;;  %v419_v10 = vor.u32 %v418_v62, %v415_v57  ;;  %v430_v29 = vrot.slane %v429_v18, 4  ;;  %v439_v35 = vor.u32 %v438_v25, %v434_v19  ;;  %v470_v56 = vshrl.u32 %v8657_v28, 16 }
  0x24   : > { %7682 = vmatpush3.bf16.msra.mxu0 %v8568_v11  ;;  %7539 = vmatprep.subr.bf16.mxu1 %v8252_v22  ;;  %v449_v43 = vor.u32 %v448_v30, %v444_v27  ;;  %v468_v55 = vrot.slane %v466_v45, 5  ;;  %v476_v57 = vshll.u32 %v8666_v36, 16  ;;  %v480_v21 = vshrl.u32 %v8666_v36, 16 }
  0x25   : > { %7683 = vmatprep.subr.bf16.mxu0 %v8594_v32  ;;  %v420_v24 = vrot.slane %v419_v10, 4  ;;  %v435_v42 = vsel %vm8600_vm2, %v430_v29, %v434_v19  ;;  %v440_v48 = vrot.slane %v439_v35, 4  ;;  %v472_v62 = vrot.slane %v470_v56, 4 }
  0x26   : > { %v450_v53 = vrot.slane %v449_v43, 4  ;;  %v486_v0 = vshll.u32 %v8677_v52, 16  ;;  %v482_v8 = vrot.slane %v480_v21, 4  ;;  %v490_v10 = vshrl.u32 %v8677_v52, 16  ;;  %v8728_v43 = vld [vmem:[%s8560_s11 + $0x48] sm:$0xf] }
  0x27   : > { %7540 = vmatpush3.bf16.msra.mxu1 %v8252_v22  ;;  %v8654_v22 = vld [vmem:[%s8560_s11 + $0x28] sm:$0xf]  ;;  %v425_v34 = vsel %vm8600_vm2, %v420_v24, %v424_v63  ;;  %v445_v60 = vsel %vm8600_vm2, %v440_v48, %v444_v27  ;;  %v478_v63 = vrot.slane %v476_v57, 5  ;;  %v496_v16 = vshll.u32 %v335_v58, 16  ;;  %v8746_v57 = vld [vmem:[%s8560_s11 + $0x50] sm:$0xf] }
  0x28   : > { %7684 = vmatpush3.bf16.msra.mxu0 %v8594_v32  ;;  %7541 = vmatprep.subr.bf16.mxu1 %v8254_v44  ;;  %v457_v38 = vshrl.u32 %v8654_v22, 16  ;;  %v460_v39 = vshll.u32 %v8654_v22, 16  ;;  %v6408_v47 = vcombine.low %v425_v34, %v435_v42  ;;  %v6482_v14 = vcombine.low %v8654_v22, %v8657_v28  ;;  %v8711_v22 = vld [vmem:[%s8560_s11 + $0x44] sm:$0xf]  ;;  %v8749_v21 = vld [vmem:[%s8560_s11 + $0x54] sm:$0xf] }
  0x29   : > { %7685 = vmatprep.subr.bf16.mxu0 %v8627_v54  ;;  %v488_v15 = vrot.slane %v486_v0, 5  ;;  %v6483_v17 = vcombine.low %v8666_v36, %v8677_v52  ;;  %v483_v19 = vor.u32 %v482_v8, %v478_v63  ;;  %v492_v20 = vrot.slane %v490_v10, 4  ;;  %v337_v52 = vld [vmem:[%s8560_s11 + $0x60] sm:$0x1] }
  0x2a   : > { %v459_v49 = vrot.slane %v457_v38, 4  ;;  %v462_v50 = vrot.slane %v460_v39, 5  ;;  %v498_v25 = vrot.slane %v496_v16, 5  ;;  %v510_v28 = vshll.u32 %v8702_v13, 16 }
  0x2b   : > { %7542 = vmatpush3.bf16.msra.mxu1 %v8254_v44  ;;  %v454_v44 = vrot.slane %v452_v31, 5  ;;  %v484_v29 = vrot.slane %v483_v19, 4  ;;  %v493_v30 = vor.u32 %v492_v20, %v488_v15  ;;  %v514_v34 = vshrl.u32 %v8702_v13, 16 }
  0x2c   : > { %7686 = vmatpush3.bf16.msra.mxu0 %v8627_v54  ;;  %7959 = vmatprep.subr.bf16.mxu1 %v8516_v1  ;;  %v463_v61 = vor.u32 %v462_v50, %v459_v49  ;;  %v512_v39 = vrot.slane %v510_v28, 5  ;;  %v520_v42 = vshll.u32 %v8711_v22, 16  ;;  %v524_v49 = vshrl.u32 %v8711_v22, 16 }
  0x2d   : > { %7815 = vmatprep.subr.bf16.mxu0 %v8258_v4  ;;  %v489_v45 = vsel %vm8600_vm2, %v484_v29, %v488_v15  ;;  %v516_v51 = vrot.slane %v514_v34, 4  ;;  %v534_v56 = vshrl.u32 %v8728_v43, 16  ;;  %v545_v8 = vshrl.u32 %v8746_v57, 16 }
  0x2e   : > { %7544 = vmatmul.mubr.bf16.vlgmr.msra.gmra.mrb[0].mxu1 %v6407_v23  ;;  %v464_v6 = vrot.slane %v463_v61, 4  ;;  %v522_v48 = vrot.slane %v520_v42, 5  ;;  %v526_v61 = vrot.slane %v524_v49, 4  ;;  %v554_v15 = vshll.u32 %v8749_v21, 16 }
  0x2f   : > { %7688 = vmatmul.mubr.bf16.vlgmr.msra.gmra.mrb[0].mxu0 %v6479_v41  ;;  %7967 = vmatpush3.bf16.msra.mxu1 %v8516_v1  ;;  %v8692_v1 = vld [vmem:[%s8560_s11 + $0x3c] sm:$0xf]  ;;  %v455_v41 = vsel %vm8600_vm2, %v450_v53, %v454_v44  ;;  %v517_v53 = vor.u32 %v516_v51, %v512_v39  ;;  %v547_v19 = vrot.slane %v545_v8, 4  ;;  %v558_v20 = vshrl.u32 %v8749_v21, 16 }
  0x30   : > { %7816 = vmatpush3.bf16.msra.mxu0 %v8258_v4  ;;  %7547 = vmatprep.mubr.bf16.mxu1 %v6408_v47  ;;  %v6409_v4 = vcombine.low %v445_v60, %v455_v41  ;;  %v469_v18 = vsel %vm8600_vm2, %v464_v6, %v468_v55  ;;  %v501_v23 = vshrl.u32 %v8692_v1, 16  ;;  %v504_v27 = vshll.u32 %v8692_v1, 16  ;;  %v8758_v6 = vld [vmem:[%s8560_s11 + $0x58] sm:$0xf] }
  0x31   : > { %7691 = vmatprep.mubr.bf16.mxu0 %v6480_v12  ;;  %7817 = vmatprep.subr.bf16.mxu0 %v8263_v46  ;;  %v473_v12 = vor.u32 %v472_v62, %v468_v55  ;;  %v530_v55 = vshll.u32 %v8728_v43, 16  ;;  %v536_v62 = vrot.slane %v534_v56, 4  ;;  %v556_v28 = vrot.slane %v554_v15, 5  ;;  %v8808_v56 = vld [vmem:[%s8560_s11 + $0x6c] sm:$0xf] }
  0x32   : > { %7960 = vmatprep.subr.bf16.mxu1 %v8525_v3  ;;  %v503_v31 = vrot.slane %v501_v23, 4  ;;  %v506_v38 = vrot.slane %v504_v27, 5  ;;  %v8773_v23 = vld [vmem:[%s8560_s11 + $0x5c] sm:$0xf]  ;;  %v564_v36 = vshll.u32 %v8758_v6, 16  ;;  %v6486_v29 = vcombine.low %v8746_v57, %v8749_v21 }
  0x33   : > { %7968 = vmatpush3.bf16.msra.mxu1 %v8525_v3  ;;  %v474_v24 = vrot.slane %v473_v12, 4  ;;  %v8273_v3 = vld [vmem:[%s10147_s1 + $0x98] sm:$0xff]   ;;  %v532_v41 = vrot.slane %v530_v55, 5  ;;  %v548_v12 = vshll.u32 %v8746_v57, 16 }
  0x34   : > { %7818 = vmatpush3.bf16.msra.mxu0 %v8263_v46  ;;  %7961 = vmatprep.subr.bf16.mxu1 %v8535_v5  ;;  %v494_v46 = vrot.slane %v493_v30, 4  ;;  %v507_v47 = vor.u32 %v506_v38, %v503_v31  ;;  %v566_v34 = vrot.slane %v564_v36, 5  ;;  %v8790_v38 = vld [vmem:[%s8560_s11 + $0x64] sm:$0xf] }
  0x35   : > { %7819 = vmatprep.subr.bf16.mxu0 %v8268_v2  ;;  %v479_v35 = vsel %vm8600_vm2, %v474_v24, %v478_v63  ;;  %v6485_v63 = vcombine.low %v8711_v22, %v8728_v43  ;;  %v8288_v24 = vld [vmem:[%s10147_s1 + $0xb0] sm:$0xff]   ;;  %v550_v27 = vrot.slane %v548_v12, 5  ;;  %v592_v57 = vshll.u32 %v8790_v38, 16 }
  0x36   : > { %7548 = vmatmul.mubr.bf16.gmra.mrb[4].mxu1 %v6409_v4  ;;  %v6410_v44 = vcombine.low %v469_v18, %v479_v35  ;;  %v499_v50 = vsel %vm8600_vm2, %v494_v46, %v498_v25  ;;  %v508_v60 = vrot.slane %v507_v47, 4  ;;  %v574_v35 = vshll.u32 %v8773_v23, 16  ;;  %v8795_v46 = vld [vmem:[%s8560_s11 + $0x68] sm:$0xf] }
  0x37   : > { %7692 = vmatmul.mubr.bf16.gmra.mrb[4].mxu0 %v6481_v33  ;;  %7969 = vmatpush3.bf16.msra.mxu1 %v8535_v5  ;;  %v8278_v33 = vld [vmem:[%s10147_s1 + $0xa0] sm:$0xff]   ;;  %v6484_v5 = vcombine.low %v8692_v1, %v8702_v13  ;;  %v6411_v58 = vcombine.low %v489_v45, %v499_v50  ;;  %v518_v1 = vrot.slane %v517_v53, 4  ;;  %v537_v13 = vor.u32 %v536_v62, %v532_v41 }
  0x38   : > { %7695 = vmatprep.mubr.bf16.mxu0 %v6482_v14  ;;  %7820 = vmatpush3.bf16.msra.mxu0 %v8268_v2  ;;  %v540_v14 = vshll.u32 %v336_v59, 16  ;;  %v513_v0 = vsel %vm8600_vm2, %v508_v60, %v512_v39  ;;  %v527_v2 = vor.u32 %v526_v61, %v522_v48  ;;  %v551_v31 = vor.u32 %v550_v27, %v547_v19 }
  0x39   : > { %7821 = vmatprep.subr.bf16.mxu0 %v8273_v3  ;;  %7962 = vmatprep.subr.bf16.mxu1 %v8545_v7  ;;  %v523_v10 = vsel %vm8600_vm2, %v518_v1, %v522_v48  ;;  %v538_v25 = vrot.slane %v537_v13, 4  ;;  %v578_v45 = vshrl.u32 %v8773_v23, 16  ;;  %v576_v59 = vrot.slane %v574_v35, 5  ;;  %v8818_v1 = vld [vmem:[%s8560_s11 + $0x70] sm:$0xf] }
  0x3a   : > { %7551 = vmatprep.mubr.bf16.mxu1 %v6410_v44  ;;  %v542_v4 = vrot.slane %v540_v14, 5  ;;  %v6412_v16 = vcombine.low %v513_v0, %v523_v10  ;;  %v528_v18 = vrot.slane %v527_v2, 4  ;;  %v552_v51 = vrot.slane %v551_v31, 4 }
  0x3b   : > { %7970 = vmatpush3.bf16.msra.mxu1 %v8545_v7  ;;  %v8283_v7 = vld [vmem:[%s10147_s1 + $0xa8] sm:$0xff]   ;;  %v6487_v47 = vcombine.low %v8758_v6, %v8773_v23  ;;  %v580_v49 = vrot.slane %v578_v45, 4  ;;  %v589_v50 = vshrl.u32 %v8790_v38, 16  ;;  %v594_v62 = vrot.slane %v592_v57, 5  ;;  %v8852_v45 = vld [vmem:[%s8560_s11 + $0x84] sm:$0xf] }
  0x3c   : > { %7822 = vmatpush3.bf16.msra.mxu0 %v8273_v3  ;;  %7963 = vmatprep.subr.bf16.mxu1 %v8555_v9  ;;  %v560_v3 = vrot.slane %v558_v20, 4  ;;  %v543_v30 = vsel %vm8600_vm2, %v538_v25, %v542_v4  ;;  %v557_v53 = vsel %vm8600_vm2, %v552_v51, %v556_v28  ;;  %v602_v2 = vshrl.u32 %v8795_v46, 16  ;;  %v338_v4 = vld [vmem:[%s8560_s11 + $0x74] sm:$0x1]  ;;  %v214_v25 = vld [vmem:[%s8560_s11 + $0x7c] sm:$0xf] }
  0x3d   : > { %7823 = vmatprep.subr.bf16.mxu0 %v8278_v33  ;;  %v581_v14 = vor.u32 %v580_v49, %v576_v59  ;;  %v591_v21 = vrot.slane %v589_v50, 4  ;;  %v618_v10 = vshll.u32 %v8818_v1, 16  ;;  %v622_v15 = vshrl.u32 %v8818_v1, 16  ;;  %v8863_v57 = vld [vmem:[%s8560_s11 + $0x8c] sm:$0xf] }
  0x3e   : > { %7552 = vmatmul.mubr.bf16.gmra.mrb[8].mxu1 %v6411_v58  ;;  %v561_v42 = vor.u32 %v560_v3, %v556_v28  ;;  %v598_v58 = vshll.u32 %v8795_v46, 16  ;;  %v604_v8 = vrot.slane %v602_v2, 4  ;;  %v646_v35 = vshrl.u32 %v214_v25, 16 }
  0x3f   : > { %7696 = vmatmul.mubr.bf16.gmra.mrb[8].mxu0 %v6483_v17  ;;  %7971 = vmatpush3.bf16.msra.mxu1 %v8555_v9  ;;  %v533_v17 = vsel %vm8600_vm2, %v528_v18, %v532_v41  ;;  %v568_v9 = vshrl.u32 %v8758_v6, 16  ;;  %v582_v43 = vrot.slane %v581_v14, 4  ;;  %v6488_v6 = vcombine.low %v8790_v38, %v8795_v46  ;;  %v8835_v18 = vld [vmem:[%s8560_s11 + $0x78] sm:$0xf] }
  0x40   : > { %7699 = vmatprep.mubr.bf16.mxu0 %v6484_v5  ;;  %7824 = vmatpush3.bf16.msra.mxu0 %v8278_v33  ;;  %v6413_v39 = vcombine.low %v533_v17, %v543_v30  ;;  %v584_v33 = vshll.u32 %v337_v52, 16  ;;  %v562_v48 = vrot.slane %v561_v42, 4  ;;  %v600_v0 = vrot.slane %v598_v58, 5  ;;  %v8842_v17 = vld [vmem:[%s8560_s11 + $0x80] sm:$0xf] }
  0x41   : > { %7555 = vmatprep.mubr.bf16.mxu1 %v6412_v16  ;;  %7825 = vmatprep.subr.bf16.mxu0 %v8283_v7  ;;  %v570_v44 = vrot.slane %v568_v9, 4  ;;  %v628_v16 = vshll.u32 %v338_v4, 16  ;;  %v620_v27 = vrot.slane %v618_v10, 5  ;;  %v624_v28 = vrot.slane %v622_v15, 4 }
  0x42   : > { %7964 = vmatprep.subr.bf16.mxu1 %v8568_v11  ;;  %v586_v55 = vrot.slane %v584_v33, 5  ;;  %v567_v60 = vsel %vm8600_vm2, %v562_v48, %v566_v34  ;;  %v605_v23 = vor.u32 %v604_v8, %v600_v0  ;;  %v6489_v52 = vcombine.low %v8808_v56, %v8818_v1 }
  0x43   : > { %7972 = vmatpush3.bf16.msra.mxu1 %v8568_v11  ;;  %v571_v5 = vor.u32 %v570_v44, %v566_v34  ;;  %v8293_v11 = vld [vmem:[%s10147_s1 + $0xb8] sm:$0xff]   ;;  %v6414_v41 = vcombine.low %v557_v53, %v567_v60  ;;  %v630_v36 = vrot.slane %v628_v16, 5  ;;  %v633_v9 = vshrl.u32 %v8835_v18, 16 }
  0x44   : > { %7826 = vmatpush3.bf16.msra.mxu0 %v8283_v7  ;;  %7965 = vmatprep.subr.bf16.mxu1 %v8594_v32  ;;  %v612_v7 = vshrl.u32 %v8808_v56, 16  ;;  %v587_v13 = vsel %vm8600_vm2, %v582_v43, %v586_v55  ;;  %v625_v30 = vor.u32 %v624_v28, %v620_v27  ;;  %v636_v31 = vshll.u32 %v8835_v18, 16  ;;  %v8879_v16 = vld [vmem:[%s8560_s11 + $0x98] sm:$0xf] }
  0x45   : > { %7827 = vmatprep.subr.bf16.mxu0 %v8288_v24  ;;  %v572_v61 = vrot.slane %v571_v5, 4  ;;  %v642_v34 = vshll.u32 %v214_v25, 16  ;;  %v635_v42 = vrot.slane %v633_v9, 4  ;;  %v652_v44 = vshll.u32 %v8842_v17, 16 }
  0x46   : > { %7556 = vmatmul.mubr.bf16.gmra.mrb[12].mxu1 %v6413_v39  ;;  %v626_v51 = vrot.slane %v625_v30, 4  ;;  %v648_v5 = vrot.slane %v646_v35, 4  ;;  %v6490_v50 = vcombine.low %v8835_v18, %v214_v25  ;;  %v656_v55 = vshrl.u32 %v8842_v17, 16 }
  0x47   : > { %7700 = vmatmul.mubr.bf16.gmra.mrb[12].mxu0 %v6485_v63  ;;  %7973 = vmatpush3.bf16.msra.mxu1 %v8594_v32  ;;  %v577_v22 = vsel %vm8600_vm2, %v572_v61, %v576_v59  ;;  %v608_v63 = vshll.u32 %v8808_v56, 16  ;;  %v595_v32 = vor.u32 %v594_v62, %v591_v21  ;;  %v638_v59 = vrot.slane %v636_v31, 5  ;;  %v218_v21 = vld [vmem:[%s8560_s11 + $0x90] sm:$0xf] }
  0x48   : > { %7703 = vmatprep.mubr.bf16.mxu0 %v6486_v29  ;;  %7828 = vmatpush3.bf16.msra.mxu0 %v8288_v24  ;;  %v6415_v19 = vcombine.low %v577_v22, %v587_v13  ;;  %v614_v24 = vrot.slane %v612_v7, 4  ;;  %v644_v33 = vrot.slane %v642_v34, 5  ;;  %v654_v49 = vrot.slane %v652_v44, 5  ;;  %v221_v34 = vld [vmem:[%s8560_s11 + $0xa0] sm:$0xf] }
  0x49   : > { %7829 = vmatprep.subr.bf16.mxu0 %v8293_v11  ;;  %7966 = vmatprep.subr.bf16.mxu1 %v8627_v54  ;;  %v610_v12 = vrot.slane %v608_v63, 5  ;;  %v596_v20 = vrot.slane %v595_v32, 4  ;;  %v639_v53 = vor.u32 %v638_v59, %v635_v42  ;;  %v662_v56 = vshll.u32 %v8852_v45, 16  ;;  %v8873_v32 = vld [vmem:[%s8560_s11 + $0x94] sm:$0xf] }
  0x4a   : > { %7559 = vmatprep.mubr.bf16.mxu1 %v6414_v41  ;;  %v649_v60 = vor.u32 %v648_v5, %v644_v33  ;;  %v666_v61 = vshrl.u32 %v8852_v45, 16  ;;  %v658_v41 = vrot.slane %v656_v55, 4  ;;  %v677_v43 = vshrl.u32 %v8863_v57, 16  ;;  %v222_v44 = vld [vmem:[%s8560_s11 + $0xa4] sm:$0xf] }
  0x4b   : > { %7974 = vmatpush3.bf16.msra.mxu1 %v8627_v54  ;;  %v601_v3 = vsel %vm8600_vm2, %v596_v20, %v600_v0  ;;  %v606_v54 = vrot.slane %v605_v23, 4  ;;  %v615_v29 = vor.u32 %v614_v24, %v610_v12  ;;  %v640_v1 = vrot.slane %v639_v53, 4 }
  0x4c   : > { %7830 = vmatpush3.bf16.msra.mxu0 %v8293_v11  ;;  %v631_v11 = vsel %vm8600_vm2, %v626_v51, %v630_v36  ;;  %v664_v62 = vrot.slane %v662_v56, 5  ;;  %v6491_v0 = vcombine.low %v8842_v17, %v8852_v45  ;;  %v650_v2 = vrot.slane %v649_v60, 4  ;;  %v340_v17 = vld [vmem:[%s8560_s11 + $0x9c] sm:$0x1] }
  0x4d   : > { %v611_v38 = vsel %vm8600_vm2, %v606_v54, %v610_v12  ;;  %v616_v39 = vrot.slane %v615_v29, 4  ;;  %v668_v4 = vrot.slane %v666_v61, 4  ;;  %v645_v63 = vsel %vm8600_vm2, %v640_v1, %v644_v33  ;;  %v8903_v61 = vld [vmem:[%s8560_s11 + $0xac] sm:$0xf] }
  0x4e   : > { %7560 = vmatmul.mubr.bf16.gmra.mrb[16].mxu1 %v6415_v19  ;;  %v6416_v46 = vcombine.low %v601_v3, %v611_v38  ;;  %v680_v8 = vshll.u32 %v8863_v57, 16  ;;  %v686_v7 = vshll.u32 %v218_v21, 16  ;;  %v655_v10 = vsel %vm8600_vm2, %v650_v2, %v654_v49 }
  0x4f   : > { %7704 = vmatmul.mubr.bf16.gmra.mrb[16].mxu0 %v6487_v47  ;;  %v339_v47 = vld [vmem:[%s8560_s11 + $0x88] sm:$0x1]  ;;  %v621_v48 = vsel %vm8600_vm2, %v616_v39, %v620_v27  ;;  %v669_v13 = vor.u32 %v668_v4, %v664_v62  ;;  %v679_v12 = vrot.slane %v677_v43, 4  ;;  %v690_v15 = vshrl.u32 %v218_v21, 16  ;;  %v341_v4 = vld [vmem:[%s8560_s11 + $0xb0] sm:$0x1] }
  0x50   : > { %7707 = vmatprep.mubr.bf16.mxu0 %v6488_v6  ;;  %7563 = vmatprep.mubr.bf16.mxu1 %v6416_v46  ;;  %v6417_v58 = vcombine.low %v621_v48, %v631_v11  ;;  %v672_v14 = vshll.u32 %v339_v47, 16  ;;  %v659_v6 = vor.u32 %v658_v41, %v654_v49  ;;  %v6418_v18 = vcombine.low %v645_v63, %v655_v10  ;;  %v8898_v48 = vld [vmem:[%s8560_s11 + $0xa8] sm:$0xf] }
  0x51   : > { %v682_v20 = vrot.slane %v680_v8, 5  ;;  %v688_v23 = vrot.slane %v686_v7, 5  ;;  %v670_v24 = vrot.slane %v669_v13, 4  ;;  %v692_v25 = vrot.slane %v690_v15, 4  ;;  %v225_v8 = vld [vmem:[%s8560_s11 + $0xb4] sm:$0xf] }
  0x52   : > { %v674_v22 = vrot.slane %v672_v14, 5  ;;  %v660_v19 = vrot.slane %v659_v6, 4  ;;  %v696_v27 = vshll.u32 %v8873_v32, 16  ;;  %v6492_v28 = vcombine.low %v8863_v57, %v218_v21  ;;  %v226_v15 = vld [vmem:[%s8560_s11 + $0xb8] sm:$0xf] }
  0x53   : > { %v700_v3 = vshrl.u32 %v8873_v32, 16  ;;  %v706_v54 = vshll.u32 %v8879_v16, 16  ;;  %v693_v9 = vor.u32 %v692_v25, %v688_v23  ;;  %v710_v31 = vshrl.u32 %v8879_v16, 16 }
  0x54   : > { %v665_v36 = vsel %vm8600_vm2, %v660_v19, %v664_v62  ;;  %v675_v29 = vsel %vm8600_vm2, %v670_v24, %v674_v22  ;;  %v698_v30 = vrot.slane %v696_v27, 5  ;;  %v716_v51 = vshll.u32 %v340_v17, 16  ;;  %v8921_v27 = vld [vmem:[%s8560_s11 + $0xbc] sm:$0xf] }
  0x55   : > { %v6419_v35 = vcombine.low %v665_v36, %v675_v29  ;;  %v702_v39 = vrot.slane %v700_v3, 4  ;;  %v708_v42 = vrot.slane %v706_v54, 5  ;;  %v694_v45 = vrot.slane %v693_v9, 4 }
  0x56   : > { %7564 = vmatmul.mubr.bf16.gmra.mrb[20].mxu1 %v6417_v58  ;;  %v712_v46 = vrot.slane %v710_v31, 4  ;;  %v6493_v59 = vcombine.low %v8873_v32, %v8879_v16  ;;  %v721_v5 = vshrl.u32 %v221_v34, 16  ;;  %v724_v49 = vshll.u32 %v221_v34, 16 }
  0x57   : > { %7708 = vmatmul.mubr.bf16.gmra.mrb[20].mxu0 %v6489_v52  ;;  %7567 = vmatprep.mubr.bf16.mxu1 %v6418_v18  ;;  %v683_v52 = vor.u32 %v682_v20, %v679_v12  ;;  %v703_v47 = vor.u32 %v702_v39, %v698_v30  ;;  %v718_v53 = vrot.slane %v716_v51, 5  ;;  %v730_v55 = vshll.u32 %v222_v44, 16  ;;  %v228_v39 = vld [vmem:[%s8560_s11 + $0xc0] sm:$0xf]  ;;  %v342_v51 = vld [vmem:[%s8560_s11 + $0xc4] sm:$0x1] }
  0x58   : > { %7711 = vmatprep.mubr.bf16.mxu0 %v6490_v50  ;;  %v699_v50 = vsel %vm8600_vm2, %v694_v45, %v698_v30  ;;  %v713_v11 = vor.u32 %v712_v46, %v708_v42  ;;  %v723_v58 = vrot.slane %v721_v5, 4  ;;  %v726_v60 = vrot.slane %v724_v49, 5 }
  0x59   : > { %v684_v38 = vrot.slane %v683_v52, 4  ;;  %v704_v57 = vrot.slane %v703_v47, 4  ;;  %v732_v21 = vrot.slane %v730_v55, 5  ;;  %v734_v1 = vshrl.u32 %v222_v44, 16 }
  0x5a   : > { %v714_v14 = vrot.slane %v713_v11, 4  ;;  %v740_v41 = vshll.u32 %v8898_v48, 16  ;;  %v6494_v2 = vcombine.low %v221_v34, %v222_v44  ;;  %v744_v22 = vshrl.u32 %v8898_v48, 16 }
  0x5b   : > { %v689_v33 = vsel %vm8600_vm2, %v684_v38, %v688_v23  ;;  %v709_v62 = vsel %vm8600_vm2, %v704_v57, %v708_v42  ;;  %v736_v63 = vrot.slane %v734_v1, 4  ;;  %v750_v32 = vshll.u32 %v8903_v61, 16 }
  0x5c   : > { %v6420_v56 = vcombine.low %v689_v33, %v699_v50  ;;  %v719_v43 = vsel %vm8600_vm2, %v714_v14, %v718_v53  ;;  %v742_v6 = vrot.slane %v740_v41, 5  ;;  %v746_v13 = vrot.slane %v744_v22, 4  ;;  %v229_v53 = vld [vmem:[%s8560_s11 + $0xc8] sm:$0xf] }
  0x5d   : > { %v6421_v7 = vcombine.low %v709_v62, %v719_v43  ;;  %v754_v12 = vshrl.u32 %v8903_v61, 16  ;;  %v737_v16 = vor.u32 %v736_v63, %v732_v21  ;;  %v752_v18 = vrot.slane %v750_v32, 5 }
  0x5e   : > { %7568 = vmatmul.mubr.bf16.gmra.mrb[24].mxu1 %v6419_v35  ;;  %v760_v19 = vshll.u32 %v341_v4, 16  ;;  %v6495_v20 = vcombine.low %v8898_v48, %v8903_v61  ;;  %v747_v24 = vor.u32 %v746_v13, %v742_v6  ;;  %v768_v17 = vshll.u32 %v225_v8, 16  ;;  %v232_v13 = vld [vmem:[%s8560_s11 + $0xd4] sm:$0xf] }
  0x5f   : > { %7712 = vmatmul.mubr.bf16.gmra.mrb[24].mxu0 %v6491_v0  ;;  %7571 = vmatprep.mubr.bf16.mxu1 %v6420_v56  ;;  %v727_v0 = vor.u32 %v726_v60, %v723_v58  ;;  %v756_v25 = vrot.slane %v754_v12, 4  ;;  %v738_v36 = vrot.slane %v737_v16, 4  ;;  %v774_v3 = vshll.u32 %v226_v15, 16  ;;  %v230_v60 = vld [vmem:[%s8560_s11 + $0xcc] sm:$0xf] }
  0x60   : > { %7715 = vmatprep.mubr.bf16.mxu0 %v6492_v28  ;;  %v765_v28 = vshrl.u32 %v225_v8, 16  ;;  %v762_v52 = vrot.slane %v760_v19, 5  ;;  %v748_v54 = vrot.slane %v747_v24, 4  ;;  %v778_v30 = vshrl.u32 %v226_v15, 16  ;;  %v343_v24 = vld [vmem:[%s8560_s11 + $0xd8] sm:$0x1] }
  0x61   : > { %v728_v10 = vrot.slane %v727_v0, 4  ;;  %v757_v29 = vor.u32 %v756_v25, %v752_v18  ;;  %v743_v31 = vsel %vm8600_vm2, %v738_v36, %v742_v6  ;;  %v770_v34 = vrot.slane %v768_v17, 5  ;;  %v233_v17 = vld [vmem:[%s8560_s11 + $0xdc] sm:$0xf] }
  0x62   : > { %v767_v9 = vrot.slane %v765_v28, 4  ;;  %v776_v35 = vrot.slane %v774_v3, 5  ;;  %v784_v38 = vshll.u32 %v8921_v27, 16  ;;  %v753_v44 = vsel %vm8600_vm2, %v748_v54, %v752_v18 }
  0x63   : > { %v733_v23 = vsel %vm8600_vm2, %v728_v10, %v732_v21  ;;  %v758_v45 = vrot.slane %v757_v29, 4  ;;  %v780_v46 = vrot.slane %v778_v30, 4  ;;  %v6496_v47 = vcombine.low %v225_v8, %v226_v15  ;;  %v234_v30 = vld [vmem:[%s8560_s11 + $0xe0] sm:$0xf] }
  0x64   : > { %v6422_v42 = vcombine.low %v733_v23, %v743_v31  ;;  %v786_v33 = vrot.slane %v784_v38, 5  ;;  %v788_v48 = vshrl.u32 %v8921_v27, 16  ;;  %v794_v50 = vshll.u32 %v228_v39, 16 }
  0x65   : > { %v763_v5 = vsel %vm8600_vm2, %v758_v45, %v762_v52  ;;  %v781_v49 = vor.u32 %v780_v46, %v776_v35  ;;  %v798_v11 = vshrl.u32 %v228_v39, 16  ;;  %v804_v58 = vshll.u32 %v342_v51, 16 }
  0x66   : > { %7572 = vmatmul.mubr.bf16.gmra.mrb[28].mxu1 %v6421_v7  ;;  %v6423_v55 = vcombine.low %v753_v44, %v763_v5  ;;  %v790_v57 = vrot.slane %v788_v48, 4  ;;  %v796_v14 = vrot.slane %v794_v50, 5  ;;  %v6497_v1 = vcombine.low %v8921_v27, %v228_v39 }
  0x67   : > { %7716 = vmatmul.mubr.bf16.gmra.mrb[28].mxu0 %v6493_v59  ;;  %v771_v59 = vor.u32 %v770_v34, %v767_v9  ;;  %7575 = vmatprep.mubr.bf16.mxu1 %v6422_v42  ;;  %v782_v61 = vrot.slane %v781_v49, 4  ;;  %v800_v21 = vrot.slane %v798_v11, 4  ;;  %v806_v0 = vrot.slane %v804_v58, 5  ;;  %v236_v11 = vld [vmem:[%s8560_s11 + $0xe8] sm:$0xf] }
  0x68   : > { %7719 = vmatprep.mubr.bf16.mxu0 %v6494_v2  ;;  %v791_v62 = vor.u32 %v790_v57, %v786_v33  ;;  %v8939_v2 = vld [vmem:[%s8560_s11 + $0xd0] sm:$0xf]  ;;  %v809_v4 = vshrl.u32 %v229_v53, 16  ;;  %v812_v63 = vshll.u32 %v229_v53, 16  ;;  %v818_v6 = vshll.u32 %v230_v60, 16 }
  0x69   : > { %v772_v56 = vrot.slane %v771_v59, 4  ;;  %v787_v22 = vsel %vm8600_vm2, %v782_v61, %v786_v33  ;;  %v801_v43 = vor.u32 %v800_v21, %v796_v14  ;;  %v822_v10 = vshrl.u32 %v230_v60, 16  ;;  %v8957_v59 = vld [vmem:[%s8560_s11 + $0xe4] sm:$0xf]  ;;  %v344_v58 = vld [vmem:[%s8560_s11 + $0xec] sm:$0x1] }
  0x6a   : > { %v792_v8 = vrot.slane %v791_v62, 4  ;;  %v811_v7 = vrot.slane %v809_v4, 4  ;;  %v814_v15 = vrot.slane %v812_v63, 5  ;;  %v820_v16 = vrot.slane %v818_v6, 5  ;;  %v237_v63 = vld [vmem:[%s8560_s11 + $0xf0] sm:$0xf] }
  0x6b   : > { %v777_v41 = vsel %vm8600_vm2, %v772_v56, %v776_v35  ;;  %v802_v12 = vrot.slane %v801_v43, 4  ;;  %v828_v18 = vshll.u32 %v8939_v2, 16  ;;  %v6498_v23 = vcombine.low %v229_v53, %v230_v60 }
  0x6c   : > { %v6424_v32 = vcombine.low %v777_v41, %v787_v22  ;;  %v797_v19 = vsel %vm8600_vm2, %v792_v8, %v796_v14  ;;  %v832_v25 = vshrl.u32 %v8939_v2, 16  ;;  %v815_v28 = vor.u32 %v814_v15, %v811_v7 }
  0x6d   : > { %v807_v27 = vsel %vm8600_vm2, %v802_v12, %v806_v0  ;;  %v830_v36 = vrot.slane %v828_v18, 5  ;;  %v838_v52 = vshll.u32 %v232_v13, 16  ;;  %v842_v9 = vshrl.u32 %v232_v13, 16  ;;  %v8973_v18 = vld [vmem:[%s8560_s11 + $0xf8] sm:$0xf] }
  0x6e   : > { %7576 = vmatmul.mubr.bf16.gmra.mrb[32].mxu1 %v6423_v55  ;;  %v6425_v3 = vcombine.low %v797_v19, %v807_v27  ;;  %v834_v29 = vrot.slane %v832_v25, 4  ;;  %v816_v31 = vrot.slane %v815_v28, 4  ;;  %v848_v35 = vshll.u32 %v343_v24, 16 }
  0x6f   : > { %7720 = vmatmul.mubr.bf16.gmra.mrb[32].mxu0 %v6495_v20  ;;  %7579 = vmatprep.mubr.bf16.mxu1 %v6424_v32  ;;  %v824_v20 = vrot.slane %v822_v10, 4  ;;  %v840_v34 = vrot.slane %v838_v52, 5  ;;  %v6499_v38 = vcombine.low %v8939_v2, %v232_v13  ;;  %v844_v44 = vrot.slane %v842_v9, 4  ;;  %v238_v10 = vld [vmem:[%s8560_s11 + $0xf4] sm:$0xf] }
  0x70   : > { %7723 = vmatprep.mubr.bf16.mxu0 %v6496_v47  ;;  %v835_v42 = vor.u32 %v834_v29, %v830_v36  ;;  %v853_v45 = vshrl.u32 %v233_v17, 16  ;;  %v821_v46 = vsel %vm8600_vm2, %v816_v31, %v820_v16  ;;  %v850_v51 = vrot.slane %v848_v35, 5  ;;  %v240_v29 = vld [vmem:[%s8560_s11 + $0xfc] sm:$0xf]  ;;  %v345_v35 = vld [vmem:[%s8560_s11 + $0x100] sm:$0x1] }
  0x71   : > { %v825_v54 = vor.u32 %v824_v20, %v820_v16  ;;  %v856_v33 = vshll.u32 %v233_v17, 16  ;;  %v862_v47 = vshll.u32 %v234_v30, 16  ;;  %v845_v49 = vor.u32 %v844_v44, %v840_v34 }
  0x72   : > { %v836_v5 = vrot.slane %v835_v42, 4  ;;  %v855_v50 = vrot.slane %v853_v45, 4  ;;  %v866_v57 = vshrl.u32 %v234_v30, 16  ;;  %v872_v14 = vshll.u32 %v8957_v59, 16 }
  0x73   : > { %v826_v39 = vrot.slane %v825_v54, 4  ;;  %v858_v55 = vrot.slane %v856_v33, 5  ;;  %v864_v56 = vrot.slane %v862_v47, 5  ;;  %v846_v61 = vrot.slane %v845_v49, 4  ;;  %v241_v33 = vld [vmem:[%s8560_s11 + $0x104] sm:$0xf] }
  0x74   : > { %v841_v60 = vsel %vm8600_vm2, %v836_v5, %v840_v34  ;;  %v6500_v21 = vcombine.low %v233_v17, %v234_v30  ;;  %v868_v41 = vrot.slane %v866_v57, 4  ;;  %v876_v62 = vshrl.u32 %v8957_v59, 16 }
  0x75   : > { %v831_v48 = vsel %vm8600_vm2, %v826_v39, %v830_v36  ;;  %v882_v0 = vshll.u32 %v236_v11, 16  ;;  %v851_v2 = vsel %vm8600_vm2, %v846_v61, %v850_v51  ;;  %v874_v4 = vrot.slane %v872_v14, 5 }
  0x76   : > { %7580 = vmatmul.mubr.bf16.gmra.mrb[36].mxu1 %v6425_v3  ;;  %v6426_v53 = vcombine.low %v821_v46, %v831_v48  ;;  %v886_v22 = vshrl.u32 %v236_v11, 16  ;;  %v892_v43 = vshll.u32 %v344_v58, 16  ;;  %v6427_v6 = vcombine.low %v841_v60, %v851_v2 }
  0x77   : > { %7724 = vmatmul.mubr.bf16.gmra.mrb[36].mxu0 %v6497_v1  ;;  %v859_v1 = vor.u32 %v858_v55, %v855_v50  ;;  %v869_v8 = vor.u32 %v868_v41, %v864_v56  ;;  %v878_v7 = vrot.slane %v876_v62, 4  ;;  %v884_v13 = vrot.slane %v882_v0, 5  ;;  %v242_v50 = vld [vmem:[%s8560_s11 + $0x108] sm:$0xf] }
  0x78   : > { %7727 = vmatprep.mubr.bf16.mxu0 %v6498_v23  ;;  %7583 = vmatprep.mubr.bf16.mxu1 %v6426_v53  ;;  %v888_v12 = vrot.slane %v886_v22, 4  ;;  %v894_v15 = vrot.slane %v892_v43, 5  ;;  %v6501_v16 = vcombine.low %v8957_v59, %v236_v11  ;;  %v897_v24 = vshrl.u32 %v237_v63, 16  ;;  %v244_v43 = vld [vmem:[%s8560_s11 + $0x110] sm:$0xf] }
  0x79   : > { %v860_v32 = vrot.slane %v859_v1, 4  ;;  %v870_v20 = vrot.slane %v869_v8, 4  ;;  %v879_v23 = vor.u32 %v878_v7, %v874_v4  ;;  %v900_v27 = vshll.u32 %v237_v63, 16  ;;  %v8993_v1 = vld [vmem:[%s8560_s11 + $0x10c] sm:$0xf] }
  0x7a   : > { %v889_v25 = vor.u32 %v888_v12, %v884_v13  ;;  %v906_v28 = vshll.u32 %v238_v10, 16  ;;  %v910_v36 = vshrl.u32 %v238_v10, 16  ;;  %v899_v3 = vrot.slane %v897_v24, 4 }
  0x7b   : > { %v865_v19 = vsel %vm8600_vm2, %v860_v32, %v864_v56  ;;  %v875_v52 = vsel %vm8600_vm2, %v870_v20, %v874_v4  ;;  %v880_v17 = vrot.slane %v879_v23, 4  ;;  %v916_v54 = vshll.u32 %v8973_v18, 16 }
  0x7c   : > { %v6428_v9 = vcombine.low %v865_v19, %v875_v52  ;;  %v890_v30 = vrot.slane %v889_v25, 4  ;;  %v902_v31 = vrot.slane %v900_v27, 5  ;;  %v908_v34 = vrot.slane %v906_v28, 5  ;;  %v245_v28 = vld [vmem:[%s8560_s11 + $0x118] sm:$0xf] }
  0x7d   : > { %v912_v39 = vrot.slane %v910_v36, 4  ;;  %v918_v42 = vrot.slane %v916_v54, 5  ;;  %v6502_v44 = vcombine.low %v237_v63, %v238_v10  ;;  %v920_v51 = vshrl.u32 %v8973_v18, 16  ;;  %v246_v54 = vld [vmem:[%s8560_s11 + $0x11c] sm:$0xf] }
  0x7e   : > { %7584 = vmatmul.mubr.bf16.gmra.mrb[40].mxu1 %v6427_v6  ;;  %v895_v45 = vsel %vm8600_vm2, %v890_v30, %v894_v15  ;;  %v903_v46 = vor.u32 %v902_v31, %v899_v3  ;;  %v926_v59 = vshll.u32 %v240_v29, 16  ;;  %v930_v5 = vshrl.u32 %v240_v29, 16 }
  0x7f   : > { %7728 = vmatmul.mubr.bf16.gmra.mrb[40].mxu0 %v6499_v38  ;;  %v885_v38 = vsel %vm8600_vm2, %v880_v17, %v884_v13  ;;  %7587 = vmatprep.mubr.bf16.mxu1 %v6428_v9  ;;  %v913_v48 = vor.u32 %v912_v39, %v908_v34  ;;  %v936_v49 = vshll.u32 %v345_v35, 16  ;;  %v922_v53 = vrot.slane %v920_v51, 4 }
  0x80   : > { %7731 = vmatprep.mubr.bf16.mxu0 %v6500_v21  ;;  %v6429_v47 = vcombine.low %v885_v38, %v895_v45  ;;  %v904_v11 = vrot.slane %v903_v46, 4  ;;  %v928_v55 = vrot.slane %v926_v59, 5  ;;  %v6503_v56 = vcombine.low %v8973_v18, %v240_v29  ;;  %v346_v18 = vld [vmem:[%s8560_s11 + $0x114] sm:$0x1]  ;;  %v247_v38 = vld [vmem:[%s8560_s11 + $0x120] sm:$0xf] }
  0x81   : > { %v914_v57 = vrot.slane %v913_v48, 4  ;;  %v932_v58 = vrot.slane %v930_v5, 4  ;;  %v938_v60 = vrot.slane %v936_v49, 5  ;;  %v941_v61 = vshrl.u32 %v241_v33, 16  ;;  %v248_v5 = vld [vmem:[%s8560_s11 + $0x124] sm:$0xf] }
  0x82   : > { %v909_v14 = vsel %vm8600_vm2, %v904_v11, %v908_v34  ;;  %v923_v21 = vor.u32 %v922_v53, %v918_v42  ;;  %v944_v41 = vshll.u32 %v241_v33, 16  ;;  %v950_v62 = vshll.u32 %v242_v50, 16 }
  0x83   : > { %v919_v0 = vsel %vm8600_vm2, %v914_v57, %v918_v42  ;;  %v933_v2 = vor.u32 %v932_v58, %v928_v55  ;;  %v943_v4 = vrot.slane %v941_v61, 4  ;;  %v954_v22 = vshrl.u32 %v242_v50, 16  ;;  %v347_v58 = vld [vmem:[%s8560_s11 + $0x128] sm:$0x1] }
  0x84   : > { %v6430_v63 = vcombine.low %v909_v14, %v919_v0  ;;  %v924_v6 = vrot.slane %v923_v21, 4  ;;  %v946_v32 = vrot.slane %v944_v41, 5  ;;  %v952_v8 = vrot.slane %v950_v62, 5  ;;  %v249_v41 = vld [vmem:[%s8560_s11 + $0x12c] sm:$0xf] }
  0x85   : > { %v934_v7 = vrot.slane %v933_v2, 4  ;;  %v956_v10 = vrot.slane %v954_v22, 4  ;;  %v960_v13 = vshll.u32 %v8993_v1, 16  ;;  %v6504_v12 = vcombine.low %v241_v33, %v242_v50  ;;  %v250_v22 = vld [vmem:[%s8560_s11 + $0x130] sm:$0xf] }
  0x86   : > { %7588 = vmatmul.mubr.bf16.gmra.mrb[44].mxu1 %v6429_v47  ;;  %v929_v15 = vsel %vm8600_vm2, %v924_v6, %v928_v55  ;;  %v964_v19 = vshrl.u32 %v8993_v1, 16  ;;  %v970_v20 = vshll.u32 %v244_v43, 16  ;;  %v974_v27 = vshrl.u32 %v244_v43, 16 }
  0x87   : > { %7732 = vmatmul.mubr.bf16.gmra.mrb[44].mxu0 %v6501_v16  ;;  %7591 = vmatprep.mubr.bf16.mxu1 %v6430_v63  ;;  %v947_v16 = vor.u32 %v946_v32, %v943_v4  ;;  %v939_v23 = vsel %vm8600_vm2, %v934_v7, %v938_v60  ;;  %v957_v24 = vor.u32 %v956_v10, %v952_v8  ;;  %v962_v25 = vrot.slane %v960_v13, 5  ;;  %v9024_v13 = vld [vmem:[%s8560_s11 + $0x134] sm:$0xf] }
  0x88   : > { %7735 = vmatprep.mubr.bf16.mxu0 %v6502_v44  ;;  %v6431_v36 = vcombine.low %v929_v15, %v939_v23  ;;  %v966_v17 = vrot.slane %v964_v19, 4  ;;  %v972_v3 = vrot.slane %v970_v20, 5  ;;  %v976_v9 = vrot.slane %v974_v27, 4 }
  0x89   : > { %v948_v52 = vrot.slane %v947_v16, 4  ;;  %v958_v29 = vrot.slane %v957_v24, 4  ;;  %v980_v30 = vshll.u32 %v346_v18, 16  ;;  %v6505_v31 = vcombine.low %v8993_v1, %v244_v43 }
  0x8a   : > { %v967_v35 = vor.u32 %v966_v17, %v962_v25  ;;  %v985_v39 = vshrl.u32 %v245_v28, 16  ;;  %v988_v42 = vshll.u32 %v245_v28, 16  ;;  %v977_v45 = vor.u32 %v976_v9, %v972_v3  ;;  %v252_v17 = vld [vmem:[%s8560_s11 + $0x138] sm:$0xf] }
  0x8b   : > { %v953_v34 = vsel %vm8600_vm2, %v948_v52, %v952_v8  ;;  %v963_v44 = vsel %vm8600_vm2, %v958_v29, %v962_v25  ;;  %v982_v46 = vrot.slane %v980_v30, 5  ;;  %v994_v51 = vshll.u32 %v246_v54, 16  ;;  %v348_v30 = vld [vmem:[%s8560_s11 + $0x13c] sm:$0x1] }
  0x8c   : > { %v6432_v59 = vcombine.low %v953_v34, %v963_v44  ;;  %v968_v33 = vrot.slane %v967_v35, 4  ;;  %v987_v47 = vrot.slane %v985_v39, 4  ;;  %v990_v48 = vrot.slane %v988_v42, 5 }
  0x8d   : > { %v978_v49 = vrot.slane %v977_v45, 4  ;;  %v996_v50 = vrot.slane %v994_v51, 5  ;;  %v998_v11 = vshrl.u32 %v246_v54, 16  ;;  %v1004_v53 = vshll.u32 %v247_v38, 16 }
  0x8e   : > { %7592 = vmatmul.mubr.bf16.gmra.mrb[48].mxu1 %v6431_v36  ;;  %v973_v55 = vsel %vm8600_vm2, %v968_v33, %v972_v3  ;;  %v6506_v57 = vcombine.low %v245_v28, %v246_v54  ;;  %v1008_v60 = vshrl.u32 %v247_v38, 16  ;;  %v1014_v1 = vshll.u32 %v248_v5, 16 }
  0x8f   : > { %7736 = vmatmul.mubr.bf16.gmra.mrb[48].mxu0 %v6503_v56  ;;  %7595 = vmatprep.mubr.bf16.mxu1 %v6432_v59  ;;  %v991_v56 = vor.u32 %v990_v48, %v987_v47  ;;  %v983_v61 = vsel %vm8600_vm2, %v978_v49, %v982_v46  ;;  %v1000_v14 = vrot.slane %v998_v11, 4  ;;  %v1006_v21 = vrot.slane %v1004_v53, 5  ;;  %v253_v46 = vld [vmem:[%s8560_s11 + $0x140] sm:$0xf]  ;;  %v254_v48 = vld [vmem:[%s8560_s11 + $0x144] sm:$0xf] }
  0x90   : > { %7739 = vmatprep.mubr.bf16.mxu0 %v6504_v12  ;;  %v6433_v62 = vcombine.low %v973_v55, %v983_v61  ;;  %v1010_v2 = vrot.slane %v1008_v60, 4  ;;  %v1018_v4 = vshrl.u32 %v248_v5, 16  ;;  %v1016_v63 = vrot.slane %v1014_v1, 5 }
  0x91   : > { %v992_v0 = vrot.slane %v991_v56, 4  ;;  %v1001_v43 = vor.u32 %v1000_v14, %v996_v50  ;;  %v1024_v6 = vshll.u32 %v347_v58, 16  ;;  %v6507_v32 = vcombine.low %v247_v38, %v248_v5 }
  0x92   : > { %v1011_v7 = vor.u32 %v1010_v2, %v1006_v21  ;;  %v1020_v10 = vrot.slane %v1018_v4, 4  ;;  %v1029_v12 = vshrl.u32 %v249_v41, 16  ;;  %v1032_v18 = vshll.u32 %v249_v41, 16  ;;  %v3619_v2 = vld [vmem:[%s8560_s11] sm:$0xe] }
  0x93   : > { %v997_v8 = vsel %vm8600_vm2, %v992_v0, %v996_v50  ;;  %v1002_v15 = vrot.slane %v1001_v43, 4  ;;  %v1026_v16 = vrot.slane %v1024_v6, 5  ;;  %v1038_v19 = vshll.u32 %v250_v22, 16 }
  0x94   : > { %v1012_v20 = vrot.slane %v1011_v7, 4  ;;  %v1021_v23 = vor.u32 %v1020_v10, %v1016_v63  ;;  %v1031_v24 = vrot.slane %v1029_v12, 4  ;;  %v1042_v25 = vshrl.u32 %v250_v22, 16 }
  0x95   : > { %v1007_v27 = vsel %vm8600_vm2, %v1002_v15, %v1006_v21  ;;  %v1034_v28 = vrot.slane %v1032_v18, 5  ;;  %v1040_v36 = vrot.slane %v1038_v19, 5  ;;  %v1048_v52 = vshll.u32 %v9024_v13, 16  ;;  %v8328_v19 = vld [vmem:[%s8560_s11 + $0x4] sm:$0xf] }
  0x96   : > { %7596 = vmatmul.mubr.bf16.gmra.mrb[52].mxu1 %v6433_v62  ;;  %v6434_v3 = vcombine.low %v997_v8, %v1007_v27  ;;  %v1017_v54 = vsel %vm8600_vm2, %v1012_v20, %v1016_v63  ;;  %v1022_v29 = vrot.slane %v1021_v23, 4  ;;  %v1044_v9 = vrot.slane %v1042_v25, 4  ;;  %v256_v8 = vld [vmem:[%s8560_s11 + $0x14c] sm:$0xf]  ;;  %v8329_v23 = vld [vmem:[%s8560_s11 + $0x8] sm:$0xf] }
  0x97   : > { %7740 = vmatmul.mubr.bf16.gmra.mrb[52].mxu0 %v6505_v31  ;;  %v1035_v31 = vor.u32 %v1034_v28, %v1031_v24  ;;  %v1050_v34 = vrot.slane %v1048_v52, 5  ;;  %v6508_v35 = vcombine.low %v249_v41, %v250_v22  ;;  %v1052_v38 = vshrl.u32 %v9024_v13, 16  ;;  %v349_v27 = vld [vmem:[%s8560_s11 + $0x150] sm:$0x1] }
  0x98   : > { %7743 = vmatprep.mubr.bf16.mxu0 %v6506_v57  ;;  %7599 = vmatprep.mubr.bf16.mxu1 %v6434_v3  ;;  %v1027_v39 = vsel %vm8600_vm2, %v1022_v29, %v1026_v16  ;;  %v1045_v42 = vor.u32 %v1044_v9, %v1040_v36  ;;  %v1058_v44 = vshll.u32 %v252_v17, 16  ;;  %v1062_v45 = vshrl.u32 %v252_v17, 16  ;;  %v255_v57 = vld [vmem:[%s8560_s11 + $0x148] sm:$0xf] }
  0x99   : > { %v6435_v51 = vcombine.low %v1017_v54, %v1027_v39  ;;  %v1036_v59 = vrot.slane %v1035_v31, 4  ;;  %v1054_v33 = vrot.slane %v1052_v38, 4  ;;  %v1068_v47 = vshll.u32 %v348_v30, 16 }
  0x9a   : > { %v1046_v5 = vrot.slane %v1045_v42, 4  ;;  %v1060_v49 = vrot.slane %v1058_v44, 5  ;;  %v1064_v50 = vrot.slane %v1062_v45, 4  ;;  %v6509_v11 = vcombine.low %v9024_v13, %v252_v17  ;;  %v8330_v44 = vld [vmem:[%s8560_s11 + $0xc] sm:$0xf] }
  0x9b   : > { %v1041_v53 = vsel %vm8600_vm2, %v1036_v59, %v1040_v36  ;;  %v1055_v55 = vor.u32 %v1054_v33, %v1050_v34  ;;  %v1070_v56 = vrot.slane %v1068_v47, 5  ;;  %v1073_v58 = vshrl.u32 %v253_v46, 16 }
  0x9c   : > { %v1051_v60 = vsel %vm8600_vm2, %v1046_v5, %v1050_v34  ;;  %v1065_v61 = vor.u32 %v1064_v50, %v1060_v49  ;;  %v1076_v14 = vshll.u32 %v253_v46, 16  ;;  %v1082_v21 = vshll.u32 %v254_v48, 16  ;;  %v258_v46 = vld [vmem:[%s8560_s11 + $0x158] sm:$0xf] }
  0x9d   : > { %v6436_v1 = vcombine.low %v1041_v53, %v1051_v60  ;;  %v1056_v41 = vrot.slane %v1055_v55, 4  ;;  %v1075_v62 = vrot.slane %v1073_v58, 4  ;;  %v1086_v0 = vshrl.u32 %v254_v48, 16  ;;  %v259_v48 = vld [vmem:[%s8560_s11 + $0x15c] sm:$0xf] }
  0x9e   : > { %7600 = vmatmul.mubr.bf16.gmra.mrb[56].mxu1 %v6435_v51  ;;  %v1066_v4 = vrot.slane %v1065_v61, 4  ;;  %v1078_v22 = vrot.slane %v1076_v14, 5  ;;  %v1084_v43 = vrot.slane %v1082_v21, 5  ;;  %v1092_v63 = vshll.u32 %v255_v57, 16  ;;  %v3620_v21 = vld [vmem:[%s8560_s11 + $0x14] sm:$0xe] }
  0x9f   : > { %7744 = vmatmul.mubr.bf16.gmra.mrb[56].mxu0 %v6507_v32  ;;  %7603 = vmatprep.mubr.bf16.mxu1 %v6436_v1  ;;  %v1061_v6 = vsel %vm8600_vm2, %v1056_v41, %v1060_v49  ;;  %v1088_v32 = vrot.slane %v1086_v0, 4  ;;  %v6550_v15 = vrot.slane %v3619_v2, 9  ;;  %v3720_v20 = vrot.slane %v8328_v19, 5  ;;  %v260_v2 = vld [vmem:[%s8560_s11 + $0x160] sm:$0xf] }
  0xa0   : > { %7747 = vmatprep.mubr.bf16.mxu0 %v6508_v35  ;;  %v1071_v7 = vsel %vm8600_vm2, %v1066_v4, %v1070_v56  ;;  %v1079_v10 = vor.u32 %v1078_v22, %v1075_v62  ;;  %v1094_v13 = vrot.slane %v1092_v63, 5  ;;  %v3723_v24 = vrot.slane %v8329_v23, 5  ;;  %v257_v35 = vld [vmem:[%s8560_s11 + $0x154] sm:$0xf] }
  0xa1   : > { %v6437_v16 = vcombine.low %v1061_v6, %v1071_v7  ;;  %v1089_v18 = vor.u32 %v1088_v32, %v1084_v43  ;;  %v1096_v28 = vshrl.u32 %v255_v57, 16  ;;  %v1102_v36 = vshll.u32 %v256_v8, 16  ;;  %v8331_v32 = vld [vmem:[%s8560_s11 + $0x18] sm:$0xf]  ;;  %v8332_v7 = vld [vmem:[%s8560_s11 + $0x1c] sm:$0xf] }
  0xa2   : > { %v1080_v25 = vrot.slane %v1079_v10, 4  ;;  %v1106_v52 = vshrl.u32 %v256_v8, 16  ;;  %v3721_v3 = vsel %vm9050_vm5, %v6550_v15, %v3720_v20  ;;  %v3722_v54 = vrot.slane %v3720_v20, 4 }
  0xa3   : > { %v1090_v17 = vrot.slane %v1089_v18, 4  ;;  %v3725_v29 = vrot.slane %v3723_v24, 4  ;;  %v1098_v30 = vrot.slane %v1096_v28, 4  ;;  %v1104_v31 = vrot.slane %v1102_v36, 5 }
  0xa4   : > { %v1085_v9 = vsel %vm8600_vm2, %v1080_v25, %v1084_v43  ;;  %v1108_v34 = vrot.slane %v1106_v52, 4  ;;  %v3724_v39 = vsel %vm9050_vm5, %v3722_v54, %v3723_v24  ;;  %v1112_v42 = vshll.u32 %v349_v27, 16  ;;  %v261_v52 = vld [vmem:[%s8560_s11 + $0x168] sm:$0xf] }
  0xa5   : > { %v1095_v38 = vsel %vm8600_vm2, %v1090_v17, %v1094_v13  ;;  %v3726_v45 = vrot.slane %v8330_v44, 5  ;;  %v6598_v59 = vcombine.low %v3721_v3, %v3724_v39  ;;  %v1099_v33 = vor.u32 %v1098_v30, %v1094_v13  ;;  %v8333_v39 = vld [vmem:[%s8560_s11 + $0x20] sm:$0xf]  ;;  %v8334_v44 = vld [vmem:[%s8560_s11 + $0x24] sm:$0x1] }
  0xa6   : > { %7604 = vmatmul.mubr.bf16.gmra.mrb[60].mxu1 %v6437_v16  ;;  %v6438_v51 = vcombine.low %v1085_v9, %v1095_v38  ;;  %v1109_v47 = vor.u32 %v1108_v34, %v1104_v31  ;;  %v1114_v5 = vrot.slane %v1112_v42, 5  ;;  %v1120_v56 = vshll.u32 %v257_v35, 16  ;;  %v262_v9 = vld [vmem:[%s8560_s11 + $0x16c] sm:$0xf] }
  0xa7   : > { %7748 = vmatmul.mubr.bf16.gmra.mrb[60].mxu0 %v6509_v11  ;;  %v3727_v49 = vsel %vm9050_vm5, %v3725_v29, %v3726_v45  ;;  %v3728_v50 = vrot.slane %v3726_v45, 4  ;;  %v1117_v11 = vshrl.u32 %v257_v35, 16  ;;  %v1100_v53 = vrot.slane %v1099_v33, 4  ;;  %v263_v33 = vld [vmem:[%s8560_s11 + $0x170] sm:$0xf] }
  0xa8   : > { %7607 = vmatprep.mubr.bf16.mxu1 %v6438_v51  ;;  %7831 = vmatprep.mubr.bf16.mxu0 %v6598_v59  ;;  %v1110_v55 = vrot.slane %v1109_v47, 4  ;;  %v1126_v57 = vshll.u32 %v258_v46, 16  ;;  %v1130_v61 = vshrl.u32 %v258_v46, 16  ;;  %v1136_v14 = vshll.u32 %v259_v48, 16 }
  0xa9   : > { %v3730_v58 = vsel %vm9050_vm5, %v3728_v50, %v3729_v40  ;;  %v1119_v60 = vrot.slane %v1117_v11, 4  ;;  %v1105_v1 = vsel %vm8600_vm2, %v1100_v53, %v1104_v31  ;;  %v1122_v0 = vrot.slane %v1120_v56, 5  ;;  %v350_v40 = vld [vmem:[%s8560_s11 + $0x164] sm:$0x1]  ;;  %v3621_v53 = vld [vmem:[%s8560_s11 + $0x28] sm:$0xe] }
  0xaa   : > { %v1115_v41 = vsel %vm8600_vm2, %v1110_v55, %v1114_v5  ;;  %v6599_v62 = vcombine.low %v3727_v49, %v3730_v58  ;;  %v1128_v26 = vrot.slane %v1126_v57, 5  ;;  %v1132_v22 = vrot.slane %v1130_v61, 4 }
  0xab   : > { %v6439_v4 = vcombine.low %v1105_v1, %v1115_v41  ;;  %v1138_v43 = vrot.slane %v1136_v14, 5  ;;  %v1123_v63 = vor.u32 %v1122_v0, %v1119_v60  ;;  %v6551_v6 = vrot.slane %v3620_v21, 9  ;;  %v264_v1 = vld [vmem:[%s8560_s11 + $0x174] sm:$0xf] }
  0xac   : > { %v3733_v8 = vrot.slane %v8331_v32, 5  ;;  %v3736_v10 = vrot.slane %v8332_v7, 5  ;;  %v1133_v13 = vor.u32 %v1132_v22, %v1128_v26  ;;  %v1140_v15 = vshrl.u32 %v259_v48, 16 }
  0xad   : > { %v1146_v16 = vshll.u32 %v260_v2, 16  ;;  %v1150_v18 = vshrl.u32 %v260_v2, 16  ;;  %v1124_v19 = vrot.slane %v1123_v63, 4  ;;  %v1156_v24 = vshll.u32 %v350_v40, 16  ;;  %v8335_v2 = vld [vmem:[%s8560_s11 + $0x2c] sm:$0xf] }
  0xae   : > { %7608 = vmatmul.mubr.bf16.gmra.mrb[64].mxu1 %v6439_v4  ;;  %v3734_v20 = vsel %vm9050_vm5, %v6551_v6, %v3733_v8  ;;  %v3735_v23 = vrot.slane %v3733_v8, 4  ;;  %v1134_v25 = vrot.slane %v1133_v13, 4  ;;  %v1142_v27 = vrot.slane %v1140_v15, 4  ;;  %v8336_v40 = vld [vmem:[%s8560_s11 + $0x30] sm:$0xf] }
  0xaf   : > { %7832 = vmatmul.mubr.bf16.vlgmr.msra.gmra.mrb[0].mxu0 %v6599_v62  ;;  %v1148_v28 = vrot.slane %v1146_v16, 5  ;;  %v1152_v36 = vrot.slane %v1150_v18, 4  ;;  %v1129_v17 = vsel %vm8600_vm2, %v1124_v19, %v1128_v26  ;;  %v1158_v54 = vrot.slane %v1156_v24, 5  ;;  %v351_v26 = vld [vmem:[%s8560_s11 + $0x178] sm:$0x1] }
  0xb0   : > { %v3737_v3 = vsel %vm9050_vm5, %v3735_v23, %v3736_v10  ;;  %v3738_v29 = vrot.slane %v3736_v10, 4  ;;  %v1139_v30 = vsel %vm8600_vm2, %v1134_v25, %v1138_v43  ;;  %v1143_v34 = vor.u32 %v1142_v27, %v1138_v43  ;;  %v265_v25 = vld [vmem:[%s8560_s11 + $0x17c] sm:$0xf] }
  0xb1   : > { %v6600_v31 = vcombine.low %v3734_v20, %v3737_v3  ;;  %v1153_v35 = vor.u32 %v1152_v36, %v1148_v28  ;;  %v6440_v38 = vcombine.low %v1129_v17, %v1139_v30  ;;  %v3739_v42 = vrot.slane %v8333_v39, 5  ;;  %v266_v17 = vld [vmem:[%s8560_s11 + $0x180] sm:$0xf]  ;;  %v8338_v30 = vld [vmem:[%s8560_s11 + $0x38] sm:$0x1] }
  0xb2   : > { %v3742_v45 = vrot.slane %v8334_v44, 5  ;;  %v1161_v46 = vshrl.u32 %v261_v52, 16  ;;  %v1144_v51 = vrot.slane %v1143_v34, 4  ;;  %v1164_v47 = vshll.u32 %v261_v52, 16 }
  0xb3   : > { %7835 = vmatprep.mubr.bf16.mxu0 %v6600_v31  ;;  %v1154_v59 = vrot.slane %v1153_v35, 4  ;;  %v1170_v48 = vshll.u32 %v262_v9, 16  ;;  %7611 = vmatprep.mubr.bf16.mxu1 %v6440_v38  ;;  %v3740_v5 = vsel %vm9050_vm5, %v3738_v29, %v3739_v42  ;;  %v3741_v49 = vrot.slane %v3739_v42, 4  ;;  %v8337_v29 = vld [vmem:[%s8560_s11 + $0x34] sm:$0xf] }
  0xb4   : > { %v1163_v50 = vrot.slane %v1161_v46, 4  ;;  %v1174_v11 = vshrl.u32 %v262_v9, 16  ;;  %v1149_v55 = vsel %vm8600_vm2, %v1144_v51, %v1148_v28  ;;  %v1166_v57 = vrot.slane %v1164_v47, 5  ;;  %v267_v38 = vld [vmem:[%s8560_s11 + $0x184] sm:$0xf] }
  0xb5   : > { %v1159_v56 = vsel %vm8600_vm2, %v1154_v59, %v1158_v54  ;;  %v1172_v58 = vrot.slane %v1170_v48, 5  ;;  %v3743_v61 = vsel %vm9050_vm5, %v3741_v49, %v3742_v45  ;;  %v1180_v21 = vshll.u32 %v263_v33, 16  ;;  %v3622_v59 = vld [vmem:[%s8560_s11 + $0x3c] sm:$0xe] }
  0xb6   : > { %v6441_v60 = vcombine.low %v1149_v55, %v1159_v56  ;;  %v1176_v14 = vrot.slane %v1174_v11, 4  ;;  %v6601_v41 = vcombine.low %v3740_v5, %v3743_v61  ;;  %v1167_v62 = vor.u32 %v1166_v57, %v1163_v50  ;;  %v268_v55 = vld [vmem:[%s8560_s11 + $0x188] sm:$0xf] }
  0xb7   : > { %v6552_v0 = vrot.slane %v3621_v53, 9  ;;  %v3746_v4 = vrot.slane %v8335_v2, 5  ;;  %v1182_v43 = vrot.slane %v1180_v21, 5  ;;  %v3749_v63 = vrot.slane %v8336_v40, 5  ;;  %v8340_v2 = vld [vmem:[%s8560_s11 + $0x44] sm:$0xf] }
  0xb8   : > { %7612 = vmatmul.mubr.bf16.gmra.mrb[68].mxu1 %v6441_v60  ;;  %v1177_v22 = vor.u32 %v1176_v14, %v1172_v58  ;;  %v1184_v6 = vshrl.u32 %v263_v33, 16  ;;  %7836 = vmatmul.mubr.bf16.gmra.mrb[4].mxu0 %v6601_v41  ;;  %v1168_v32 = vrot.slane %v1167_v62, 4  ;;  %v1190_v10 = vshll.u32 %v264_v1, 16  ;;  %v352_v62 = vld [vmem:[%s8560_s11 + $0x18c] sm:$0x1] }
  0xb9   : > { %v3747_v8 = vsel %vm9050_vm5, %v6552_v0, %v3746_v4  ;;  %v3748_v7 = vrot.slane %v3746_v4, 4  ;;  %v1194_v16 = vshrl.u32 %v264_v1, 16  ;;  %v1200_v18 = vshll.u32 %v351_v26, 16  ;;  %v8339_v1 = vld [vmem:[%s8560_s11 + $0x40] sm:$0xf] }
  0xba   : > { %v1178_v13 = vrot.slane %v1177_v22, 4  ;;  %v1186_v15 = vrot.slane %v1184_v6, 4  ;;  %v1173_v19 = vsel %vm8600_vm2, %v1168_v32, %v1172_v58  ;;  %v1192_v23 = vrot.slane %v1190_v10, 5 }
  0xbb   : > { %v3750_v20 = vsel %vm9050_vm5, %v3748_v7, %v3749_v63  ;;  %v3751_v24 = vrot.slane %v3749_v63, 4  ;;  %v1196_v52 = vrot.slane %v1194_v16, 4  ;;  %v1202_v54 = vrot.slane %v1200_v18, 5 }
  0xbc   : > { %v1183_v27 = vsel %vm8600_vm2, %v1178_v13, %v1182_v43  ;;  %v6602_v28 = vcombine.low %v3747_v8, %v3750_v20  ;;  %v1187_v36 = vor.u32 %v1186_v15, %v1182_v43  ;;  %v3752_v9 = vrot.slane %v8337_v29, 5  ;;  %v269_v13 = vld [vmem:[%s8560_s11 + $0x190] sm:$0xf]  ;;  %v270_v20 = vld [vmem:[%s8560_s11 + $0x194] sm:$0xf] }
  0xbd   : > { %v6442_v3 = vcombine.low %v1173_v19, %v1183_v27  ;;  %v3755_v31 = vrot.slane %v8338_v30, 5  ;;  %v1197_v35 = vor.u32 %v1196_v52, %v1192_v23  ;;  %v1205_v39 = vshrl.u32 %v265_v25, 16 }
  0xbe   : > { %7839 = vmatprep.mubr.bf16.mxu0 %v6602_v28  ;;  %v1188_v34 = vrot.slane %v1187_v36, 4  ;;  %v1208_v42 = vshll.u32 %v265_v25, 16  ;;  %v3753_v44 = vsel %vm9050_vm5, %v3751_v24, %v3752_v9  ;;  %v3754_v45 = vrot.slane %v3752_v9, 4  ;;  %v8341_v36 = vld [vmem:[%s8560_s11 + $0x48] sm:$0xf] }
  0xbf   : > { %7615 = vmatprep.mubr.bf16.mxu1 %v6442_v3  ;;  %v1214_v46 = vshll.u32 %v266_v17, 16  ;;  %v1218_v51 = vshrl.u32 %v266_v17, 16  ;;  %v1198_v47 = vrot.slane %v1197_v35, 4  ;;  %v1207_v48 = vrot.slane %v1205_v39, 4  ;;  %v8342_v17 = vld [vmem:[%s8560_s11 + $0x4c] sm:$0x1] }
  0xc0   : > { %v1193_v33 = vsel %vm8600_vm2, %v1188_v34, %v1192_v23  ;;  %v1210_v5 = vrot.slane %v1208_v42, 5  ;;  %v3756_v49 = vsel %vm9050_vm5, %v3754_v45, %v3755_v31  ;;  %v1224_v53 = vshll.u32 %v267_v38, 16  ;;  %v3623_v35 = vld [vmem:[%s8560_s11 + $0x50] sm:$0xe] }
  0xc1   : > { %v1216_v50 = vrot.slane %v1214_v46, 5  ;;  %v1220_v11 = vrot.slane %v1218_v51, 4  ;;  %v1203_v56 = vsel %vm8600_vm2, %v1198_v47, %v1202_v54  ;;  %v6603_v57 = vcombine.low %v3753_v44, %v3756_v49  ;;  %v271_v54 = vld [vmem:[%s8560_s11 + $0x198] sm:$0xf]  ;;  %v272_v49 = vld [vmem:[%s8560_s11 + $0x19c] sm:$0xf] }
  0xc2   : > { %v1211_v58 = vor.u32 %v1210_v5, %v1207_v48  ;;  %v6553_v60 = vrot.slane %v3622_v59, 9  ;;  %v6443_v61 = vcombine.low %v1193_v33, %v1203_v56  ;;  %v1226_v21 = vrot.slane %v1224_v53, 5  ;;  %v353_v56 = vld [vmem:[%s8560_s11 + $0x1a0] sm:$0x1] }
  0xc3   : > { %v1221_v14 = vor.u32 %v1220_v11, %v1216_v50  ;;  %v3759_v41 = vrot.slane %v8339_v1, 5  ;;  %7840 = vmatmul.mubr.bf16.gmra.mrb[8].mxu0 %v6603_v57  ;;  %v3762_v4 = vrot.slane %v8340_v2, 5  ;;  %v1228_v26 = vshrl.u32 %v267_v38, 16 }
  0xc4   : > { %v1212_v0 = vrot.slane %v1211_v58, 4  ;;  %v1234_v22 = vshll.u32 %v268_v55, 16  ;;  %7616 = vmatmul.mubr.bf16.gmra.mrb[72].mxu1 %v6443_v61  ;;  %v1238_v6 = vshrl.u32 %v268_v55, 16  ;;  %v1244_v10 = vshll.u32 %v352_v62, 16  ;;  %v8343_v58 = vld [vmem:[%s8560_s11 + $0x54] sm:$0xf] }
  0xc5   : > { %v1222_v43 = vrot.slane %v1221_v14, 4  ;;  %v3760_v40 = vsel %vm9050_vm5, %v6553_v60, %v3759_v41  ;;  %v3761_v63 = vrot.slane %v3759_v41, 4  ;;  %v1230_v8 = vrot.slane %v1228_v26, 4  ;;  %v8344_v61 = vld [vmem:[%s8560_s11 + $0x58] sm:$0xf] }
  0xc6   : > { %v1217_v32 = vsel %vm8600_vm2, %v1212_v0, %v1216_v50  ;;  %v1236_v7 = vrot.slane %v1234_v22, 5  ;;  %v1240_v18 = vrot.slane %v1238_v6, 4  ;;  %v3764_v19 = vrot.slane %v3762_v4, 4 }
  0xc7   : > { %v1227_v15 = vsel %vm8600_vm2, %v1222_v43, %v1226_v21  ;;  %v3763_v16 = vsel %vm9050_vm5, %v3761_v63, %v3762_v4  ;;  %v1231_v25 = vor.u32 %v1230_v8, %v1226_v21  ;;  %v1246_v27 = vrot.slane %v1244_v10, 5 }
  0xc8   : > { %v6444_v23 = vcombine.low %v1217_v32, %v1227_v15  ;;  %v6604_v24 = vcombine.low %v3760_v40, %v3763_v16  ;;  %v1241_v28 = vor.u32 %v1240_v18, %v1236_v7  ;;  %v3765_v52 = vrot.slane %v8341_v36, 5  ;;  %v273_v32 = vld [vmem:[%s8560_s11 + $0x1a4] sm:$0xf]  ;;  %v274_v15 = vld [vmem:[%s8560_s11 + $0x1a8] sm:$0xf] }
  0xc9   : > { %v3768_v3 = vrot.slane %v8342_v17, 5  ;;  %v1249_v29 = vshrl.u32 %v269_v13, 16  ;;  %v1232_v9 = vrot.slane %v1231_v25, 4  ;;  %v1252_v30 = vshll.u32 %v269_v13, 16  ;;  %v8346_v25 = vld [vmem:[%s8560_s11 + $0x60] sm:$0x1] }
  0xca   : > { %7619 = vmatprep.mubr.bf16.mxu1 %v6444_v23  ;;  %7843 = vmatprep.mubr.bf16.mxu0 %v6604_v24  ;;  %v1258_v31 = vshll.u32 %v270_v20, 16  ;;  %v1262_v34 = vshrl.u32 %v270_v20, 16  ;;  %v1242_v38 = vrot.slane %v1241_v28, 4  ;;  %v3766_v39 = vsel %vm9050_vm5, %v3764_v19, %v3765_v52  ;;  %v8345_v20 = vld [vmem:[%s8560_s11 + $0x5c] sm:$0xf] }
  0xcb   : > { %v3767_v42 = vrot.slane %v3765_v52, 4  ;;  %v1251_v44 = vrot.slane %v1249_v29, 4  ;;  %v1237_v45 = vsel %vm8600_vm2, %v1232_v9, %v1236_v7  ;;  %v1254_v46 = vrot.slane %v1252_v30, 5  ;;  %v275_v28 = vld [vmem:[%s8560_s11 + $0x1ac] sm:$0xf] }
  0xcc   : > { %v1260_v51 = vrot.slane %v1258_v31, 5  ;;  %v1264_v59 = vrot.slane %v1262_v34, 4  ;;  %v1247_v33 = vsel %vm8600_vm2, %v1242_v38, %v1246_v27  ;;  %v1268_v48 = vshll.u32 %v271_v54, 16 }
  0xcd   : > { %v3769_v47 = vsel %vm9050_vm5, %v3767_v42, %v3768_v3  ;;  %v6554_v5 = vrot.slane %v3623_v35, 9  ;;  %v6445_v50 = vcombine.low %v1237_v45, %v1247_v33  ;;  %v1255_v53 = vor.u32 %v1254_v46, %v1251_v44  ;;  %v3624_v35 = vld [vmem:[%s8560_s11 + $0x64] sm:$0xe]  ;;  %v276_v45 = vld [vmem:[%s8560_s11 + $0x1b0] sm:$0xf] }
  0xce   : > { %v6605_v11 = vcombine.low %v3766_v39, %v3769_v47  ;;  %v1265_v55 = vor.u32 %v1264_v59, %v1260_v51  ;;  %v1270_v57 = vrot.slane %v1268_v48, 5  ;;  %v3772_v60 = vrot.slane %v8343_v58, 5  ;;  %v354_v47 = vld [vmem:[%s8560_s11 + $0x1b4] sm:$0x1] }
  0xcf   : > { %v3775_v14 = vrot.slane %v8344_v61, 5  ;;  %v1272_v21 = vshrl.u32 %v271_v54, 16  ;;  %7620 = vmatmul.mubr.bf16.gmra.mrb[76].mxu1 %v6445_v50  ;;  %v1256_v1 = vrot.slane %v1255_v53, 4  ;;  %v1278_v62 = vshll.u32 %v272_v49, 16 }
  0xd0   : > { %7844 = vmatmul.mubr.bf16.gmra.mrb[12].mxu0 %v6605_v11  ;;  %v1266_v41 = vrot.slane %v1265_v55, 4  ;;  %v1282_v0 = vshrl.u32 %v272_v49, 16  ;;  %v3773_v2 = vsel %vm9050_vm5, %v6554_v5, %v3772_v60  ;;  %v3774_v4 = vrot.slane %v3772_v60, 4  ;;  %v8347_v49 = vld [vmem:[%s8560_s11 + $0x68] sm:$0xf] }
  0xd1   : > { %v1274_v26 = vrot.slane %v1272_v21, 4  ;;  %v1288_v22 = vshll.u32 %v353_v56, 16  ;;  %v1261_v43 = vsel %vm8600_vm2, %v1256_v1, %v1260_v51  ;;  %v1280_v63 = vrot.slane %v1278_v62, 5  ;;  %v8348_v11 = vld [vmem:[%s8560_s11 + $0x6c] sm:$0xf] }
  0xd2   : > { %v1271_v40 = vsel %vm8600_vm2, %v1266_v41, %v1270_v57  ;;  %v1284_v6 = vrot.slane %v1282_v0, 4  ;;  %v3776_v7 = vsel %vm9050_vm5, %v3774_v4, %v3775_v14  ;;  %v3777_v19 = vrot.slane %v3775_v14, 4 }
  0xd3   : > { %v6446_v8 = vcombine.low %v1261_v43, %v1271_v40  ;;  %v1275_v10 = vor.u32 %v1274_v26, %v1270_v57  ;;  %v1290_v13 = vrot.slane %v1288_v22, 5  ;;  %v6606_v16 = vcombine.low %v3773_v2, %v3776_v7  ;;  %v277_v2 = vld [vmem:[%s8560_s11 + $0x1b8] sm:$0xf]  ;;  %v278_v7 = vld [vmem:[%s8560_s11 + $0x1bc] sm:$0xf] }
  0xd4   : > { %v1285_v18 = vor.u32 %v1284_v6, %v1280_v63  ;;  %v3778_v23 = vrot.slane %v8345_v20, 5  ;;  %v3781_v27 = vrot.slane %v8346_v25, 5  ;;  %v1293_v36 = vshrl.u32 %v273_v32, 16 }
  0xd5   : > { %7623 = vmatprep.mubr.bf16.mxu1 %v6446_v8  ;;  %v1276_v24 = vrot.slane %v1275_v10, 4  ;;  %v1296_v52 = vshll.u32 %v273_v32, 16  ;;  %7847 = vmatprep.mubr.bf16.mxu0 %v6606_v16  ;;  %v1302_v29 = vshll.u32 %v274_v15, 16  ;;  %v1306_v34 = vshrl.u32 %v274_v15, 16  ;;  %v8349_v32 = vld [vmem:[%s8560_s11 + $0x70] sm:$0xf] }
  0xd6   : > { %v1286_v17 = vrot.slane %v1285_v18, 4  ;;  %v3779_v3 = vsel %vm9050_vm5, %v3777_v19, %v3778_v23  ;;  %v3780_v54 = vrot.slane %v3778_v23, 4  ;;  %v1295_v30 = vrot.slane %v1293_v36, 4  ;;  %v8350_v15 = vld [vmem:[%s8560_s11 + $0x74] sm:$0x1] }
  0xd7   : > { %v1281_v9 = vsel %vm8600_vm2, %v1276_v24, %v1280_v63  ;;  %v1298_v31 = vrot.slane %v1296_v52, 5  ;;  %v1304_v42 = vrot.slane %v1302_v29, 5  ;;  %v1312_v44 = vshll.u32 %v275_v28, 16  ;;  %v279_v18 = vld [vmem:[%s8560_s11 + $0x1c0] sm:$0xf] }
  0xd8   : > { %v1291_v38 = vsel %vm8600_vm2, %v1286_v17, %v1290_v13  ;;  %v3782_v39 = vsel %vm9050_vm5, %v3780_v54, %v3781_v27  ;;  %v1308_v33 = vrot.slane %v1306_v34, 4  ;;  %v6555_v5 = vrot.slane %v3624_v35, 9  ;;  %v3625_v17 = vld [vmem:[%s8560_s11 + $0x78] sm:$0xe] }
  0xd9   : > { %v6447_v46 = vcombine.low %v1281_v9, %v1291_v38  ;;  %v6607_v51 = vcombine.low %v3779_v3, %v3782_v39  ;;  %v1299_v59 = vor.u32 %v1298_v31, %v1295_v30  ;;  %v1314_v48 = vrot.slane %v1312_v44, 5  ;;  %v280_v38 = vld [vmem:[%s8560_s11 + $0x1c4] sm:$0xf]  ;;  %v355_v39 = vld [vmem:[%s8560_s11 + $0x1c8] sm:$0x1] }
  0xda   : > { %v3785_v50 = vrot.slane %v8347_v49, 5  ;;  %v3788_v53 = vrot.slane %v8348_v11, 5  ;;  %v1309_v56 = vor.u32 %v1308_v33, %v1304_v42  ;;  %v1316_v57 = vshrl.u32 %v275_v28, 16 }
  0xdb   : > { %7624 = vmatmul.mubr.bf16.gmra.mrb[80].mxu1 %v6447_v46  ;;  %7848 = vmatmul.mubr.bf16.gmra.mrb[16].mxu0 %v6607_v51  ;;  %v1300_v55 = vrot.slane %v1299_v59, 4  ;;  %v1322_v58 = vshll.u32 %v276_v45, 16  ;;  %v1326_v14 = vshrl.u32 %v276_v45, 16  ;;  %v1332_v21 = vshll.u32 %v354_v47, 16  ;;  %v8351_v59 = vld [vmem:[%s8560_s11 + $0x7c] sm:$0xf] }
  0xdc   : > { %v3786_v60 = vsel %vm9050_vm5, %v6555_v5, %v3785_v50  ;;  %v3787_v61 = vrot.slane %v3785_v50, 4  ;;  %v1310_v41 = vrot.slane %v1309_v56, 4  ;;  %v1318_v62 = vrot.slane %v1316_v57, 4  ;;  %v8352_v47 = vld [vmem:[%s8560_s11 + $0x80] sm:$0xf] }
  0xdd   : > { %v1305_v1 = vsel %vm8600_vm2, %v1300_v55, %v1304_v42  ;;  %v1324_v0 = vrot.slane %v1322_v58, 5  ;;  %v1328_v26 = vrot.slane %v1326_v14, 4  ;;  %v1334_v22 = vrot.slane %v1332_v21, 5 }
  0xde   : > { %v3789_v4 = vsel %vm9050_vm5, %v3787_v61, %v3788_v53  ;;  %v3790_v43 = vrot.slane %v3788_v53, 4  ;;  %v1315_v40 = vsel %vm8600_vm2, %v1310_v41, %v1314_v48  ;;  %v1319_v6 = vor.u32 %v1318_v62, %v1314_v48 }
  0xdf   : > { %v6608_v63 = vcombine.low %v3786_v60, %v3789_v4  ;;  %v3791_v8 = vrot.slane %v8349_v32, 5  ;;  %v6448_v10 = vcombine.low %v1305_v1, %v1315_v40  ;;  %v1329_v13 = vor.u32 %v1328_v26, %v1324_v0  ;;  %v281_v1 = vld [vmem:[%s8560_s11 + $0x1cc] sm:$0xf]  ;;  %v282_v4 = vld [vmem:[%s8560_s11 + $0x1d0] sm:$0xf] }
  0xe0   : > { %v3794_v16 = vrot.slane %v8350_v15, 5  ;;  %v1337_v19 = vshrl.u32 %v277_v2, 16  ;;  %v1320_v20 = vrot.slane %v1319_v6, 4  ;;  %v1340_v25 = vshll.u32 %v277_v2, 16  ;;  %v8353_v40 = vld [vmem:[%s8560_s11 + $0x84] sm:$0xf] }
  0xe1   : > { %7851 = vmatprep.mubr.bf16.mxu0 %v6608_v63  ;;  %v3792_v23 = vsel %vm9050_vm5, %v3790_v43, %v3791_v8  ;;  %v3793_v24 = vrot.slane %v3791_v8, 4  ;;  %7627 = vmatprep.mubr.bf16.mxu1 %v6448_v10  ;;  %v1330_v27 = vrot.slane %v1329_v13, 4  ;;  %v1346_v36 = vshll.u32 %v278_v7, 16  ;;  %v8354_v32 = vld [vmem:[%s8560_s11 + $0x88] sm:$0x1] }
  0xe2   : > { %v1339_v28 = vrot.slane %v1337_v19, 4  ;;  %v1350_v52 = vshrl.u32 %v278_v7, 16  ;;  %v1325_v3 = vsel %vm8600_vm2, %v1320_v20, %v1324_v0  ;;  %v1342_v29 = vrot.slane %v1340_v25, 5  ;;  %v283_v7 = vld [vmem:[%s8560_s11 + $0x1d4] sm:$0xf] }
  0xe3   : > { %v3795_v54 = vsel %vm9050_vm5, %v3793_v24, %v3794_v16  ;;  %v1356_v9 = vshll.u32 %v279_v18, 16  ;;  %v1335_v30 = vsel %vm8600_vm2, %v1330_v27, %v1334_v22  ;;  %v1348_v34 = vrot.slane %v1346_v36, 5  ;;  %v3626_v27 = vld [vmem:[%s8560_s11 + $0x8c] sm:$0xe] }
  0xe4   : > { %v6609_v31 = vcombine.low %v3792_v23, %v3795_v54  ;;  %v1352_v35 = vrot.slane %v1350_v52, 4  ;;  %v6449_v42 = vcombine.low %v1325_v3, %v1335_v30  ;;  %v1343_v44 = vor.u32 %v1342_v29, %v1339_v28  ;;  %v284_v3 = vld [vmem:[%s8560_s11 + $0x1d8] sm:$0xf] }
  0xe5   : > { %v1358_v45 = vrot.slane %v1356_v9, 5  ;;  %v6556_v46 = vrot.slane %v3625_v17, 9  ;;  %v3798_v33 = vrot.slane %v8351_v59, 5  ;;  %v3801_v48 = vrot.slane %v8352_v47, 5 }
  0xe6   : > { %7852 = vmatmul.mubr.bf16.gmra.mrb[20].mxu0 %v6609_v31  ;;  %v1353_v51 = vor.u32 %v1352_v35, %v1348_v34  ;;  %v1360_v5 = vshrl.u32 %v279_v18, 16  ;;  %7628 = vmatmul.mubr.bf16.gmra.mrb[84].mxu1 %v6449_v42  ;;  %v1344_v49 = vrot.slane %v1343_v44, 4  ;;  %v1366_v50 = vshll.u32 %v280_v38, 16  ;;  %v356_v31 = vld [vmem:[%s8560_s11 + $0x1dc] sm:$0x1] }
  0xe7   : > { %v1370_v11 = vshrl.u32 %v280_v38, 16  ;;  %v1376_v53 = vshll.u32 %v355_v39, 16  ;;  %v3799_v56 = vsel %vm9050_vm5, %v6556_v46, %v3798_v33  ;;  %v3800_v57 = vrot.slane %v3798_v33, 4  ;;  %v8355_v38 = vld [vmem:[%s8560_s11 + $0x90] sm:$0xf] }
  0xe8   : > { %v1354_v55 = vrot.slane %v1353_v51, 4  ;;  %v1362_v58 = vrot.slane %v1360_v5, 4  ;;  %v1349_v60 = vsel %vm8600_vm2, %v1344_v49, %v1348_v34  ;;  %v1368_v61 = vrot.slane %v1366_v50, 5  ;;  %v8356_v42 = vld [vmem:[%s8560_s11 + $0x94] sm:$0xf] }
  0xe9   : > { %v1372_v14 = vrot.slane %v1370_v11, 4  ;;  %v1378_v21 = vrot.slane %v1376_v53, 5  ;;  %v3802_v62 = vsel %vm9050_vm5, %v3800_v57, %v3801_v48  ;;  %v3803_v2 = vrot.slane %v3801_v48, 4 }
  0xea   : > { %v1359_v41 = vsel %vm8600_vm2, %v1354_v55, %v1358_v45  ;;  %v1363_v0 = vor.u32 %v1362_v58, %v1358_v45  ;;  %v6610_v22 = vcombine.low %v3799_v56, %v3802_v62  ;;  %v3804_v63 = vrot.slane %v8353_v40, 5  ;;  %v285_v55 = vld [vmem:[%s8560_s11 + $0x1e0] sm:$0xf]  ;;  %v286_v62 = vld [vmem:[%s8560_s11 + $0x1e4] sm:$0xf] }
  0xeb   : > { %v6450_v26 = vcombine.low %v1349_v60, %v1359_v41  ;;  %v1373_v43 = vor.u32 %v1372_v14, %v1368_v61  ;;  %v3807_v8 = vrot.slane %v8354_v32, 5  ;;  %v1381_v10 = vshrl.u32 %v281_v1, 16 }
  0xec   : > { %v1364_v6 = vrot.slane %v1363_v0, 4  ;;  %v1384_v13 = vshll.u32 %v281_v1, 16  ;;  %7855 = vmatprep.mubr.bf16.mxu0 %v6610_v22  ;;  %v3805_v16 = vsel %vm9050_vm5, %v3803_v2, %v3804_v63  ;;  %v3806_v18 = vrot.slane %v3804_v63, 4  ;;  %v8357_v1 = vld [vmem:[%s8560_s11 + $0x98] sm:$0xf] }
  0xed   : > { %7631 = vmatprep.mubr.bf16.mxu1 %v6450_v26  ;;  %v1374_v15 = vrot.slane %v1373_v43, 4  ;;  %v1390_v19 = vshll.u32 %v282_v4, 16  ;;  %v1383_v23 = vrot.slane %v1381_v10, 4  ;;  %v1394_v25 = vshrl.u32 %v282_v4, 16  ;;  %v8358_v4 = vld [vmem:[%s8560_s11 + $0x9c] sm:$0x1] }
  0xee   : > { %v1369_v20 = vsel %vm8600_vm2, %v1364_v6, %v1368_v61  ;;  %v1386_v24 = vrot.slane %v1384_v13, 5  ;;  %v3808_v36 = vsel %vm9050_vm5, %v3806_v18, %v3807_v8  ;;  %v1400_v17 = vshll.u32 %v283_v7, 16  ;;  %v287_v22 = vld [vmem:[%s8560_s11 + $0x1e8] sm:$0xf]  ;;  %v3627_v8 = vld [vmem:[%s8560_s11 + $0xa0] sm:$0xe] }
  0xef   : > { %v1379_v28 = vsel %vm8600_vm2, %v1374_v15, %v1378_v21  ;;  %v1392_v52 = vrot.slane %v1390_v19, 5  ;;  %v6611_v29 = vcombine.low %v3805_v16, %v3808_v36  ;;  %v1396_v30 = vrot.slane %v1394_v25, 4 }
  0xf0   : > { %v6451_v54 = vcombine.low %v1369_v20, %v1379_v28  ;;  %v1387_v9 = vor.u32 %v1386_v24, %v1383_v23  ;;  %v1402_v34 = vrot.slane %v1400_v17, 5  ;;  %v6557_v35 = vrot.slane %v3626_v27, 9  ;;  %v288_v24 = vld [vmem:[%s8560_s11 + $0x1ec] sm:$0xf]  ;;  %v357_v17 = vld [vmem:[%s8560_s11 + $0x1f0] sm:$0x1] }
  0xf1   : > { %v3811_v39 = vrot.slane %v8355_v38, 5  ;;  %v3814_v44 = vrot.slane %v8356_v42, 5  ;;  %7856 = vmatmul.mubr.bf16.gmra.mrb[24].mxu0 %v6611_v29  ;;  %v1397_v46 = vor.u32 %v1396_v30, %v1392_v52  ;;  %v1404_v51 = vshrl.u32 %v283_v7, 16 }
  0xf2   : > { %7632 = vmatmul.mubr.bf16.gmra.mrb[88].mxu1 %v6451_v54  ;;  %v1388_v45 = vrot.slane %v1387_v9, 4  ;;  %v1410_v59 = vshll.u32 %v284_v3, 16  ;;  %v1414_v48 = vshrl.u32 %v284_v3, 16  ;;  %v1420_v5 = vshll.u32 %v356_v31, 16 }
  0xf3   : > { %v3812_v33 = vsel %vm9050_vm5, %v6557_v35, %v3811_v39  ;;  %v3813_v47 = vrot.slane %v3811_v39, 4  ;;  %v1398_v50 = vrot.slane %v1397_v46, 4  ;;  %v1406_v11 = vrot.slane %v1404_v51, 4  ;;  %v8359_v35 = vld [vmem:[%s8560_s11 + $0xa4] sm:$0xf] }
  0xf4   : > { %v1393_v49 = vsel %vm8600_vm2, %v1388_v45, %v1392_v52  ;;  %v1412_v53 = vrot.slane %v1410_v59, 5  ;;  %v1416_v57 = vrot.slane %v1414_v48, 4  ;;  %v1422_v58 = vrot.slane %v1420_v5, 5  ;;  %v8360_v39 = vld [vmem:[%s8560_s11 + $0xa8] sm:$0xf] }
  0xf5   : > { %v3815_v56 = vsel %vm9050_vm5, %v3813_v47, %v3814_v44  ;;  %v3816_v60 = vrot.slane %v3814_v44, 4  ;;  %v1403_v61 = vsel %vm8600_vm2, %v1398_v50, %v1402_v34  ;;  %v1407_v21 = vor.u32 %v1406_v11, %v1402_v34 }
  0xf6   : > { %v6612_v14 = vcombine.low %v3812_v33, %v3815_v56  ;;  %v3817_v41 = vrot.slane %v8357_v1, 5  ;;  %v6452_v0 = vcombine.low %v1393_v49, %v1403_v61  ;;  %v1417_v2 = vor.u32 %v1416_v57, %v1412_v53  ;;  %v290_v61 = vld [vmem:[%s8560_s11 + $0x1f8] sm:$0xf] }
  0xf7   : > { %v3820_v26 = vrot.slane %v8358_v4, 5  ;;  %v1425_v43 = vshrl.u32 %v285_v55, 16  ;;  %v1408_v40 = vrot.slane %v1407_v21, 4  ;;  %v1428_v32 = vshll.u32 %v285_v55, 16  ;;  %v289_v55 = vld [vmem:[%s8560_s11 + $0x1f4] sm:$0xf] }
  0xf8   : > { %7859 = vmatprep.mubr.bf16.mxu0 %v6612_v14  ;;  %v3818_v63 = vsel %vm9050_vm5, %v3816_v60, %v3817_v41  ;;  %v3819_v6 = vrot.slane %v3817_v41, 4  ;;  %7635 = vmatprep.mubr.bf16.mxu1 %v6452_v0  ;;  %v1418_v7 = vrot.slane %v1417_v2, 4  ;;  %v1434_v13 = vshll.u32 %v286_v62, 16  ;;  %v291_v2 = vld [vmem:[%s8560_s11 + $0x1fc] sm:$0xf] }
  0xf9   : > { %v1427_v10 = vrot.slane %v1425_v43, 4  ;;  %v1438_v15 = vshrl.u32 %v286_v62, 16  ;;  %v1413_v18 = vsel %vm8600_vm2, %v1408_v40, %v1412_v53  ;;  %v1430_v20 = vrot.slane %v1428_v32, 5  ;;  %v8361_v62 = vld [vmem:[%s8560_s11 + $0xac] sm:$0xf] }
  0xfa   : > { %v3821_v19 = vsel %vm9050_vm5, %v3819_v6, %v3820_v26  ;;  %v1444_v23 = vshll.u32 %v287_v22, 16  ;;  %v1423_v27 = vsel %vm8600_vm2, %v1418_v7, %v1422_v58  ;;  %v1436_v36 = vrot.slane %v1434_v13, 5 }
  0xfb   : > { %v6613_v28 = vcombine.low %v3818_v63, %v3821_v19  ;;  %v1440_v52 = vrot.slane %v1438_v15, 4  ;;  %v6453_v54 = vcombine.low %v1413_v18, %v1423_v27  ;;  %v1431_v29 = vor.u32 %v1430_v20, %v1427_v10 }
  0xfc   : > { %v1446_v9 = vrot.slane %v1444_v23, 5  ;;  %v6558_v30 = vrot.slane %v3627_v8, 9  ;;  %v3824_v38 = vrot.slane %v8359_v35, 5  ;;  %v3827_v42 = vrot.slane %v8360_v39, 5  ;;  %v3628_v23 = vld [vmem:[%s8560_s11 + $0xb4] sm:$0xe] }
  0xfd   : > { %7860 = vmatmul.mubr.bf16.gmra.mrb[28].mxu0 %v6613_v28  ;;  %v1441_v34 = vor.u32 %v1440_v52, %v1436_v36  ;;  %v1448_v44 = vshrl.u32 %v287_v22, 16  ;;  %7636 = vmatmul.mubr.bf16.gmra.mrb[92].mxu1 %v6453_v54  ;;  %v1432_v45 = vrot.slane %v1431_v29, 4  ;;  %v1454_v46 = vshll.u32 %v288_v24, 16  ;;  %v8362_v22 = vld [vmem:[%s8560_s11 + $0xb0] sm:$0x1] }
  0xfe   : > { %v1458_v51 = vshrl.u32 %v288_v24, 16  ;;  %v1464_v59 = vshll.u32 %v357_v17, 16  ;;  %v3825_v47 = vsel %vm9050_vm5, %v6558_v30, %v3824_v38  ;;  %v3826_v48 = vrot.slane %v3824_v38, 4  ;;  %v292_v52 = vld [vmem:[%s8560_s11 + $0x200] sm:$0xf] }
  0xff   : > { %v1442_v33 = vrot.slane %v1441_v34, 4  ;;  %v1450_v5 = vrot.slane %v1448_v44, 4  ;;  %v1437_v49 = vsel %vm8600_vm2, %v1432_v45, %v1436_v36  ;;  %v1456_v50 = vrot.slane %v1454_v46, 5  ;;  %v358_v30 = vld [vmem:[%s8560_s11 + $0x204] sm:$0x1] }
 0x100   : > { %v1460_v11 = vrot.slane %v1458_v51, 4  ;;  %v1466_v53 = vrot.slane %v1464_v59, 5  ;;  %v3828_v57 = vsel %vm9050_vm5, %v3826_v48, %v3827_v42  ;;  %v3829_v60 = vrot.slane %v3827_v42, 4  ;;  %v8363_v38 = vld [vmem:[%s8560_s11 + $0xb8] sm:$0xf] }
 0x101   : > { %v9256_v16 = vpop.f32.mrb[0].mxu1  ;;  %v1447_v56 = vsel %vm8600_vm2, %v1442_v33, %v1446_v9  ;;  %v1451_v58 = vor.u32 %v1450_v5, %v1446_v9  ;;  %v6614_v1 = vcombine.low %v3825_v47, %v3828_v57  ;;  %v3830_v0 = vrot.slane %v8361_v62, 5  ;;  %v8364_v42 = vld [vmem:[%s8560_s11 + $0xbc] sm:$0xf]  ;;  %v293_v57 = vld [vmem:[%s8560_s11 + $0x208] sm:$0xf] }
 0x102   : > { %v9263_v25 = vpop.f32.mrb[1].mxu1  ;;  %v6454_v21 = vcombine.low %v1437_v49, %v1447_v56  ;;  %v1461_v41 = vor.u32 %v1460_v11, %v1456_v50  ;;  %v3833_v43 = vrot.slane %v8362_v22, 5  ;;  %v1469_v40 = vshrl.u32 %v289_v55, 16 }
 0x103   : > { %v9268_v3 = vpop.f32.mrb[2].mxu1  ;;  %v1452_v26 = vrot.slane %v1451_v58, 4  ;;  %v1472_v63 = vshll.u32 %v289_v55, 16  ;;  %7863 = vmatprep.mubr.bf16.mxu0 %v6614_v1  ;;  %v3831_v8 = vsel %vm9050_vm5, %v3829_v60, %v3830_v0  ;;  %v3832_v7 = vrot.slane %v3830_v0, 4 }
 0x104   : > { %v9270_v31 = vpop.f32.mrb[3].mxu1  ;;  %7639 = vmatprep.mubr.bf16.mxu1 %v6454_v21  ;;  %v1462_v32 = vrot.slane %v1461_v41, 4  ;;  %v1478_v10 = vshll.u32 %v290_v61, 16  ;;  %v1471_v18 = vrot.slane %v1469_v40, 4  ;;  %v1482_v20 = vshrl.u32 %v290_v61, 16 }
 0x105   : > { %v1457_v15 = vsel %vm8600_vm2, %v1452_v26, %v1456_v50  ;;  %v1474_v19 = vrot.slane %v1472_v63, 5  ;;  %v3834_v27 = vsel %vm9050_vm5, %v3832_v7, %v3833_v43  ;;  %v1488_v36 = vshll.u32 %v291_v2, 16  ;;  %v8365_v26 = vld [vmem:[%s8560_s11 + $0xc0] sm:$0xf]  ;;  %v294_v43 = vld [vmem:[%s8560_s11 + $0x20c] sm:$0xf] }
 0x106   : > { %v1467_v24 = vsel %vm8600_vm2, %v1462_v32, %v1466_v53  ;;  %v1480_v28 = vrot.slane %v1478_v10, 5  ;;  %v6615_v54 = vcombine.low %v3831_v8, %v3834_v27  ;;  %v1484_v9 = vrot.slane %v1482_v20, 4  ;;  %v8366_v32 = vld [vmem:[%s8560_s11 + $0xc4] sm:$0x1]  ;;  %v295_v7 = vld [vmem:[%s8560_s11 + $0x210] sm:$0xf] }
 0x107   : > { %v6455_v17 = vcombine.low %v1457_v15, %v1467_v24  ;;  %v1475_v29 = vor.u32 %v1474_v19, %v1471_v18  ;;  %v1490_v34 = vrot.slane %v1488_v36, 5  ;;  %v6559_v35 = vrot.slane %v3628_v23, 9  ;;  %v3629_v36 = vld [vmem:[%s8560_s11 + $0xc8] sm:$0xe] }
 0x108   : > { %v3837_v39 = vrot.slane %v8363_v38, 5  ;;  %v3840_v44 = vrot.slane %v8364_v42, 5  ;;  %7864 = vmatmul.mubr.bf16.gmra.mrb[32].mxu0 %v6615_v54  ;;  %v1485_v46 = vor.u32 %v1484_v9, %v1480_v28  ;;  %v1492_v51 = vshrl.u32 %v291_v2, 16  ;;  %v296_v9 = vld [vmem:[%s8560_s11 + $0x214] sm:$0xf] }
 0x109   : > { %v9284_v14 = vpop.f32.mrb[4].mxu1  ;;  %7640 = vmatmul.mubr.bf16.gmra.mrb[96].mxu1 %v6455_v17  ;;  %v1476_v45 = vrot.slane %v1475_v29, 4  ;;  %v1498_v59 = vshll.u32 %v292_v52, 16  ;;  %v1502_v5 = vshrl.u32 %v292_v52, 16  ;;  %v1508_v49 = vshll.u32 %v358_v30, 16 }
 0x10a   : > { %v9288_v4 = vpop.f32.mrb[5].mxu1  ;;  %v3838_v47 = vsel %vm9050_vm5, %v6559_v35, %v3837_v39  ;;  %v3839_v48 = vrot.slane %v3837_v39, 4  ;;  %v1486_v53 = vrot.slane %v1485_v46, 4  ;;  %v1494_v55 = vrot.slane %v1492_v51, 4  ;;  %v359_v42 = vld [vmem:[%s8560_s11 + $0x218] sm:$0x1] }
 0x10b   : > { %v9291_v6 = vpop.f32.mrb[6].mxu1  ;;  %v1481_v11 = vsel %vm8600_vm2, %v1476_v45, %v1480_v28  ;;  %v1500_v56 = vrot.slane %v1498_v59, 5  ;;  %v1504_v61 = vrot.slane %v1502_v5, 4  ;;  %v1510_v21 = vrot.slane %v1508_v49, 5  ;;  %v8367_v5 = vld [vmem:[%s8560_s11 + $0xcc] sm:$0xf] }
 0x10c   : > { %v9295_v13 = vpop.f32.mrb[7].mxu1  ;;  %v3841_v60 = vsel %vm9050_vm5, %v3839_v48, %v3840_v44  ;;  %v3842_v1 = vrot.slane %v3840_v44, 4  ;;  %v1491_v62 = vsel %vm8600_vm2, %v1486_v53, %v1490_v34  ;;  %v1495_v2 = vor.u32 %v1494_v55, %v1490_v34 }
 0x10d   : > { %v6616_v0 = vcombine.low %v3838_v47, %v3841_v60  ;;  %v3843_v22 = vrot.slane %v8365_v26, 5  ;;  %v6456_v40 = vcombine.low %v1481_v11, %v1491_v62  ;;  %v1505_v63 = vor.u32 %v1504_v61, %v1500_v56  ;;  %v8368_v11 = vld [vmem:[%s8560_s11 + $0xd0] sm:$0xf] }
 0x10e   : > { %v3846_v8 = vrot.slane %v8366_v32, 5  ;;  %v1513_v10 = vshrl.u32 %v293_v57, 16  ;;  %v1496_v15 = vrot.slane %v1495_v2, 4  ;;  %v1516_v20 = vshll.u32 %v293_v57, 16 }
 0x10f   : > { %7867 = vmatprep.mubr.bf16.mxu0 %v6616_v0  ;;  %v3844_v18 = vsel %vm9050_vm5, %v3842_v1, %v3843_v22  ;;  %v3845_v19 = vrot.slane %v3843_v22, 4  ;;  %7643 = vmatprep.mubr.bf16.mxu1 %v6456_v40  ;;  %v1506_v23 = vrot.slane %v1505_v63, 4  ;;  %v1522_v27 = vshll.u32 %v294_v43, 16  ;;  %v297_v63 = vld [vmem:[%s8560_s11 + $0x21c] sm:$0xf] }
 0x110   : > { %v1515_v24 = vrot.slane %v1513_v10, 4  ;;  %v1526_v28 = vshrl.u32 %v294_v43, 16  ;;  %v1501_v52 = vsel %vm8600_vm2, %v1496_v15, %v1500_v56  ;;  %v1518_v54 = vrot.slane %v1516_v20, 5  ;;  %v298_v15 = vld [vmem:[%s8560_s11 + $0x220] sm:$0xf] }
 0x111   : > { %v9308_v33 = vpop.f32.mrb[8].mxu1  ;;  %v3847_v17 = vsel %vm9050_vm5, %v3845_v19, %v3846_v8  ;;  %v1532_v29 = vshll.u32 %v295_v7, 16  ;;  %v1511_v34 = vsel %vm8600_vm2, %v1506_v23, %v1510_v21  ;;  %v1524_v38 = vrot.slane %v1522_v27, 5  ;;  %v8369_v23 = vld [vmem:[%s8560_s11 + $0xd4] sm:$0xf] }
 0x112   : > { %v9312_v50 = vpop.f32.mrb[9].mxu1  ;;  %v6617_v35 = vcombine.low %v3844_v18, %v3847_v17  ;;  %v1528_v39 = vrot.slane %v1526_v28, 4  ;;  %v6457_v45 = vcombine.low %v1501_v52, %v1511_v34  ;;  %v1519_v46 = vor.u32 %v1518_v54, %v1515_v24  ;;  %v299_v27 = vld [vmem:[%s8560_s11 + $0x224] sm:$0xf]  ;;  %v8370_v52 = vld [vmem:[%s8560_s11 + $0xd8] sm:$0x1] }
 0x113   : > { %v9317_v58 = vpop.f32.mrb[10].mxu1  ;;  %v1534_v51 = vrot.slane %v1532_v29, 5  ;;  %v6560_v59 = vrot.slane %v3629_v36, 9  ;;  %v3850_v49 = vrot.slane %v8367_v5, 5  ;;  %v3853_v53 = vrot.slane %v8368_v11, 5 }
 0x114   : > { %v9321_v41 = vpop.f32.mrb[11].mxu1  ;;  %7868 = vmatmul.mubr.bf16.gmra.mrb[36].mxu0 %v6617_v35  ;;  %v1529_v48 = vor.u32 %v1528_v39, %v1524_v38  ;;  %v1536_v55 = vshrl.u32 %v295_v7, 16  ;;  %7644 = vmatmul.mubr.bf16.gmra.mrb[100].mxu1 %v6457_v45  ;;  %v1520_v57 = vrot.slane %v1519_v46, 4  ;;  %v1542_v60 = vshll.u32 %v296_v9, 16 }
 0x115   : > { %v1546_v61 = vshrl.u32 %v296_v9, 16  ;;  %v1552_v21 = vshll.u32 %v359_v42, 16  ;;  %v3851_v62 = vsel %vm9050_vm5, %v6560_v59, %v3850_v49  ;;  %v3852_v0 = vrot.slane %v3850_v49, 4 }
 0x116   : > { %v1530_v1 = vrot.slane %v1529_v48, 4  ;;  %v1538_v2 = vrot.slane %v1536_v55, 4  ;;  %v1525_v26 = vsel %vm8600_vm2, %v1520_v57, %v1524_v38  ;;  %v1544_v22 = vrot.slane %v1542_v60, 5  ;;  %v3630_v48 = vld [vmem:[%s8560_s11 + $0xdc] sm:$0xe] }
 0x117   : > { %v1548_v43 = vrot.slane %v1546_v61, 4  ;;  %v1554_v40 = vrot.slane %v1552_v21, 5  ;;  %v3854_v8 = vsel %vm9050_vm5, %v3852_v0, %v3853_v53  ;;  %v3855_v10 = vrot.slane %v3853_v53, 4  ;;  %v300_v57 = vld [vmem:[%s8560_s11 + $0x228] sm:$0xf] }
 0x118   : > { %v1535_v32 = vsel %vm8600_vm2, %v1530_v1, %v1534_v51  ;;  %v1539_v7 = vor.u32 %v1538_v2, %v1534_v51  ;;  %v6618_v19 = vcombine.low %v3851_v62, %v3854_v8  ;;  %v3856_v24 = vrot.slane %v8369_v23, 5  ;;  %v360_v62 = vld [vmem:[%s8560_s11 + $0x22c] sm:$0x1] }
 0x119   : > { %v9337_v30 = vpop.f32.mrb[12].mxu1  ;;  %v6458_v18 = vcombine.low %v1525_v26, %v1535_v32  ;;  %v1549_v20 = vor.u32 %v1548_v43, %v1544_v22  ;;  %v3859_v17 = vrot.slane %v8370_v52, 5  ;;  %v1557_v54 = vshrl.u32 %v297_v63, 16  ;;  %v8371_v26 = vld [vmem:[%s8560_s11 + $0xe0] sm:$0xf] }
 0x11a   : > { %v9342_v44 = vpop.f32.mrb[13].mxu1  ;;  %v1540_v36 = vrot.slane %v1539_v7, 4  ;;  %v1560_v29 = vshll.u32 %v297_v63, 16  ;;  %7871 = vmatprep.mubr.bf16.mxu0 %v6618_v19  ;;  %v3857_v35 = vsel %vm9050_vm5, %v3855_v10, %v3856_v24  ;;  %v3858_v38 = vrot.slane %v3856_v24, 4  ;;  %v8372_v43 = vld [vmem:[%s8560_s11 + $0xe4] sm:$0xf] }
 0x11b   : > { %v9344_v47 = vpop.f32.mrb[14].mxu1  ;;  %7647 = vmatprep.mubr.bf16.mxu1 %v6458_v18  ;;  %v1550_v34 = vrot.slane %v1549_v20, 4  ;;  %v1566_v39 = vshll.u32 %v298_v15, 16  ;;  %v1559_v46 = vrot.slane %v1557_v54, 4  ;;  %v1570_v59 = vshrl.u32 %v298_v15, 16 }
 0x11c   : > { %v9348_v56 = vpop.f32.mrb[15].mxu1  ;;  %v1545_v45 = vsel %vm8600_vm2, %v1540_v36, %v1544_v22  ;;  %v1562_v51 = vrot.slane %v1560_v29, 5  ;;  %v3860_v11 = vsel %vm9050_vm5, %v3858_v38, %v3859_v17  ;;  %v1576_v55 = vshll.u32 %v299_v27, 16  ;;  %v301_v17 = vld [vmem:[%s8560_s11 + $0x230] sm:$0xf] }
 0x11d   : > { %v1555_v49 = vsel %vm8600_vm2, %v1550_v34, %v1554_v40  ;;  %v1568_v53 = vrot.slane %v1566_v39, 5  ;;  %v6619_v61 = vcombine.low %v3857_v35, %v3860_v11  ;;  %v1572_v1 = vrot.slane %v1570_v59, 4 }
 0x11e   : > { %v6459_v60 = vcombine.low %v1545_v45, %v1555_v49  ;;  %v1563_v21 = vor.u32 %v1562_v51, %v1559_v46  ;;  %v1578_v0 = vrot.slane %v1576_v55, 5  ;;  %v6561_v2 = vrot.slane %v3630_v48, 9  ;;  %v8373_v51 = vld [vmem:[%s8560_s11 + $0xe8] sm:$0xf]  ;;  %v302_v48 = vld [vmem:[%s8560_s11 + $0x234] sm:$0xf] }
 0x11f   : > { %v3863_v22 = vrot.slane %v8371_v26, 5  ;;  %v3866_v63 = vrot.slane %v8372_v43, 5  ;;  %7872 = vmatmul.mubr.bf16.gmra.mrb[40].mxu0 %v6619_v61  ;;  %v1573_v32 = vor.u32 %v1572_v1, %v1568_v53  ;;  %v1580_v8 = vshrl.u32 %v299_v27, 16  ;;  %v8374_v55 = vld [vmem:[%s8560_s11 + $0xec] sm:$0x1] }
 0x120   : > { %7648 = vmatmul.mubr.bf16.gmra.mrb[104].mxu1 %v6459_v60  ;;  %v1564_v40 = vrot.slane %v1563_v21, 4  ;;  %v1586_v7 = vshll.u32 %v300_v57, 16  ;;  %v1590_v18 = vshrl.u32 %v300_v57, 16  ;;  %v1596_v19 = vshll.u32 %v360_v62, 16  ;;  %v303_v60 = vld [vmem:[%s8560_s11 + $0x238] sm:$0xf] }
 0x121   : > { %v9362_v28 = vpop.f32.mrb[16].mxu1  ;;  %v3864_v10 = vsel %vm9050_vm5, %v6561_v2, %v3863_v22  ;;  %v3865_v15 = vrot.slane %v3863_v22, 4  ;;  %v1574_v24 = vrot.slane %v1573_v32, 4  ;;  %v1582_v36 = vrot.slane %v1580_v8, 4 }
 0x122   : > { %v9365_v9 = vpop.f32.mrb[17].mxu1  ;;  %v1569_v23 = vsel %vm8600_vm2, %v1564_v40, %v1568_v53  ;;  %v1588_v52 = vrot.slane %v1586_v7, 5  ;;  %v1592_v29 = vrot.slane %v1590_v18, 4  ;;  %v1598_v34 = vrot.slane %v1596_v19, 5 }
 0x123   : > { %v9369_v42 = vpop.f32.mrb[18].mxu1  ;;  %v3867_v54 = vsel %vm9050_vm5, %v3865_v15, %v3866_v63  ;;  %v3868_v35 = vrot.slane %v3866_v63, 4  ;;  %v1579_v39 = vsel %vm8600_vm2, %v1574_v24, %v1578_v0  ;;  %v1583_v46 = vor.u32 %v1582_v36, %v1578_v0  ;;  %v3631_v63 = vld [vmem:[%s8560_s11 + $0xf0] sm:$0xe]  ;;  %v361_v24 = vld [vmem:[%s8560_s11 + $0x240] sm:$0x1] }
 0x124   : > { %v9374_v5 = vpop.f32.mrb[19].mxu1  ;;  %v6620_v45 = vcombine.low %v3864_v10, %v3867_v54  ;;  %v3869_v59 = vrot.slane %v8373_v51, 5  ;;  %v6460_v11 = vcombine.low %v1569_v23, %v1579_v39  ;;  %v1593_v53 = vor.u32 %v1592_v29, %v1588_v52  ;;  %v304_v23 = vld [vmem:[%s8560_s11 + $0x23c] sm:$0xf]  ;;  %v8375_v39 = vld [vmem:[%s8560_s11 + $0xf4] sm:$0xf] }
 0x125   : > { %v3872_v57 = vrot.slane %v8374_v55, 5  ;;  %v1601_v61 = vshrl.u32 %v301_v17, 16  ;;  %v1584_v21 = vrot.slane %v1583_v46, 4  ;;  %v1604_v0 = vshll.u32 %v301_v17, 16  ;;  %v8376_v46 = vld [vmem:[%s8560_s11 + $0xf8] sm:$0xf] }
 0x126   : > { %7875 = vmatprep.mubr.bf16.mxu0 %v6620_v45  ;;  %v3870_v1 = vsel %vm9050_vm5, %v3868_v35, %v3869_v59  ;;  %v3871_v62 = vrot.slane %v3869_v59, 4  ;;  %7651 = vmatprep.mubr.bf16.mxu1 %v6460_v11  ;;  %v1594_v2 = vrot.slane %v1593_v53, 4  ;;  %v1610_v22 = vshll.u32 %v302_v48, 16 }
 0x127   : > { %v1603_v26 = vrot.slane %v1601_v61, 4  ;;  %v1614_v43 = vshrl.u32 %v302_v48, 16  ;;  %v1589_v40 = vsel %vm8600_vm2, %v1584_v21, %v1588_v52  ;;  %v1606_v8 = vrot.slane %v1604_v0, 5 }
 0x128   : > { %v3873_v32 = vsel %vm9050_vm5, %v3871_v62, %v3872_v57  ;;  %v1620_v7 = vshll.u32 %v303_v60, 16  ;;  %v1599_v10 = vsel %vm8600_vm2, %v1594_v2, %v1598_v34  ;;  %v1612_v18 = vrot.slane %v1610_v22, 5 }
 0x129   : > { %v9386_v20 = vpop.f32.mrb[20].mxu1  ;;  %v6621_v15 = vcombine.low %v3870_v1, %v3873_v32  ;;  %v1616_v19 = vrot.slane %v1614_v43, 4  ;;  %v6461_v36 = vcombine.low %v1589_v40, %v1599_v10  ;;  %v1607_v17 = vor.u32 %v1606_v8, %v1603_v26  ;;  %v305_v43 = vld [vmem:[%s8560_s11 + $0x244] sm:$0xf] }
 0x12a   : > { %v9391_v27 = vpop.f32.mrb[21].mxu1  ;;  %v1622_v54 = vrot.slane %v1620_v7, 5  ;;  %v6562_v29 = vrot.slane %v3631_v63, 9  ;;  %v3876_v45 = vrot.slane %v8375_v39, 5  ;;  %v3879_v51 = vrot.slane %v8376_v46, 5 }
 0x12b   : > { %v9395_v38 = vpop.f32.mrb[22].mxu1  ;;  %7876 = vmatmul.mubr.bf16.gmra.mrb[44].mxu0 %v6621_v15  ;;  %v1617_v35 = vor.u32 %v1616_v19, %v1612_v18  ;;  %v1624_v59 = vshrl.u32 %v303_v60, 16  ;;  %7652 = vmatmul.mubr.bf16.gmra.mrb[108].mxu1 %v6461_v36  ;;  %v1608_v34 = vrot.slane %v1607_v17, 4  ;;  %v1630_v11 = vshll.u32 %v304_v23, 16  ;;  %v306_v7 = vld [vmem:[%s8560_s11 + $0x248] sm:$0xf] }
 0x12c   : > { %v9401_v49 = vpop.f32.mrb[23].mxu1  ;;  %v1634_v53 = vshrl.u32 %v304_v23, 16  ;;  %v1640_v55 = vshll.u32 %v361_v24, 16  ;;  %v3877_v21 = vsel %vm9050_vm5, %v6562_v29, %v3876_v45  ;;  %v3878_v1 = vrot.slane %v3876_v45, 4  ;;  %v8377_v23 = vld [vmem:[%s8560_s11 + $0xfc] sm:$0xf] }
 0x12d   : > { %v1618_v61 = vrot.slane %v1617_v35, 4  ;;  %v1626_v62 = vrot.slane %v1624_v59, 4  ;;  %v1613_v60 = vsel %vm8600_vm2, %v1608_v34, %v1612_v18  ;;  %v1632_v2 = vrot.slane %v1630_v11, 5  ;;  %v8378_v36 = vld [vmem:[%s8560_s11 + $0x100] sm:$0x1] }
 0x12e   : > { %v1636_v26 = vrot.slane %v1634_v53, 4  ;;  %v1642_v22 = vrot.slane %v1640_v55, 5  ;;  %v3880_v40 = vsel %vm9050_vm5, %v3878_v1, %v3879_v51  ;;  %v3881_v8 = vrot.slane %v3879_v51, 4  ;;  %v307_v29 = vld [vmem:[%s8560_s11 + $0x24c] sm:$0xf] }
 0x12f   : > { %v1623_v63 = vsel %vm8600_vm2, %v1618_v61, %v1622_v54  ;;  %v1627_v32 = vor.u32 %v1626_v62, %v1622_v54  ;;  %v6622_v15 = vcombine.low %v3877_v21, %v3880_v40  ;;  %v3882_v18 = vrot.slane %v8377_v23, 5  ;;  %v3632_v61 = vld [vmem:[%s8560_s11 + $0x104] sm:$0xe]  ;;  %v8379_v23 = vld [vmem:[%s8560_s11 + $0x108] sm:$0xf] }
 0x130   : > { %v6462_v10 = vcombine.low %v1613_v60, %v1623_v63  ;;  %v1637_v19 = vor.u32 %v1636_v26, %v1632_v2  ;;  %v3885_v17 = vrot.slane %v8378_v36, 5  ;;  %v1645_v35 = vshrl.u32 %v305_v43, 16 }
 0x131   : > { %v9416_v52 = vpop.f32.mrb[24].mxu1  ;;  %v1628_v24 = vrot.slane %v1627_v32, 4  ;;  %v1648_v39 = vshll.u32 %v305_v43, 16  ;;  %7879 = vmatprep.mubr.bf16.mxu0 %v6622_v15  ;;  %v3883_v54 = vsel %vm9050_vm5, %v3881_v8, %v3882_v18  ;;  %v3884_v46 = vrot.slane %v3882_v18, 4  ;;  %v308_v43 = vld [vmem:[%s8560_s11 + $0x250] sm:$0xf] }
 0x132   : > { %v9420_v48 = vpop.f32.mrb[25].mxu1  ;;  %7655 = vmatprep.mubr.bf16.mxu1 %v6462_v10  ;;  %v1638_v45 = vrot.slane %v1637_v19, 4  ;;  %v1654_v51 = vshll.u32 %v306_v7, 16  ;;  %v1647_v11 = vrot.slane %v1645_v35, 4  ;;  %v1658_v55 = vshrl.u32 %v306_v7, 16 }
 0x133   : > { %v9422_v57 = vpop.f32.mrb[26].mxu1  ;;  %v1633_v34 = vsel %vm8600_vm2, %v1628_v24, %v1632_v2  ;;  %v1650_v53 = vrot.slane %v1648_v39, 5  ;;  %v3886_v62 = vsel %vm9050_vm5, %v3884_v46, %v3885_v17  ;;  %v1664_v26 = vshll.u32 %v307_v29, 16  ;;  %v362_v7 = vld [vmem:[%s8560_s11 + $0x254] sm:$0x1] }
 0x134   : > { %v9426_v0 = vpop.f32.mrb[27].mxu1  ;;  %v1643_v1 = vsel %vm8600_vm2, %v1638_v45, %v1642_v22  ;;  %v1656_v60 = vrot.slane %v1654_v51, 5  ;;  %v6623_v40 = vcombine.low %v3883_v54, %v3886_v62  ;;  %v1660_v8 = vrot.slane %v1658_v55, 4  ;;  %v8380_v18 = vld [vmem:[%s8560_s11 + $0x10c] sm:$0xf] }
 0x135   : > { %v6463_v2 = vcombine.low %v1633_v34, %v1643_v1  ;;  %v1651_v32 = vor.u32 %v1650_v53, %v1647_v11  ;;  %v1666_v15 = vrot.slane %v1664_v26, 5  ;;  %v6563_v19 = vrot.slane %v3632_v61, 9  ;;  %v309_v61 = vld [vmem:[%s8560_s11 + $0x258] sm:$0xf] }
 0x136   : > { %v3889_v22 = vrot.slane %v8379_v23, 5  ;;  %v3892_v24 = vrot.slane %v8380_v18, 5  ;;  %7880 = vmatmul.mubr.bf16.gmra.mrb[48].mxu0 %v6623_v40  ;;  %v1661_v17 = vor.u32 %v1660_v8, %v1656_v60  ;;  %v1668_v35 = vshrl.u32 %v307_v29, 16  ;;  %v310_v8 = vld [vmem:[%s8560_s11 + $0x25c] sm:$0xf] }
 0x137   : > { %7656 = vmatmul.mubr.bf16.gmra.mrb[112].mxu1 %v6463_v2  ;;  %v1652_v36 = vrot.slane %v1651_v32, 4  ;;  %v1674_v39 = vshll.u32 %v308_v43, 16  ;;  %v1678_v46 = vshrl.u32 %v308_v43, 16  ;;  %v1684_v51 = vshll.u32 %v362_v7, 16  ;;  %v8381_v32 = vld [vmem:[%s8560_s11 + $0x110] sm:$0xf] }
 0x138   : > { %v3890_v45 = vsel %vm9050_vm5, %v6563_v19, %v3889_v22  ;;  %v3891_v54 = vrot.slane %v3889_v22, 4  ;;  %v1662_v11 = vrot.slane %v1661_v17, 4  ;;  %v1670_v53 = vrot.slane %v1668_v35, 4  ;;  %v8382_v22 = vld [vmem:[%s8560_s11 + $0x114] sm:$0x1] }
 0x139   : > { %v9441_v59 = vpop.f32.mrb[28].mxu1  ;;  %v1657_v34 = vsel %vm8600_vm2, %v1652_v36, %v1656_v60  ;;  %v1676_v55 = vrot.slane %v1674_v39, 5  ;;  %v1680_v1 = vrot.slane %v1678_v46, 4  ;;  %v1686_v62 = vrot.slane %v1684_v51, 5  ;;  %v311_v36 = vld [vmem:[%s8560_s11 + $0x260] sm:$0xf] }
 0x13a   : > { %v9446_v21 = vpop.f32.mrb[29].mxu1  ;;  %v3893_v29 = vsel %vm9050_vm5, %v3891_v54, %v3892_v24  ;;  %v3894_v26 = vrot.slane %v3892_v24, 4  ;;  %v1667_v43 = vsel %vm8600_vm2, %v1662_v11, %v1666_v15  ;;  %v1671_v40 = vor.u32 %v1670_v53, %v1666_v15  ;;  %v3633_v54 = vld [vmem:[%s8560_s11 + $0x118] sm:$0xe] }
 0x13b   : > { %v9453_v63 = vpop.f32.mrb[30].mxu1  ;;  %v6624_v2 = vcombine.low %v3890_v45, %v3893_v29  ;;  %v3895_v60 = vrot.slane %v8381_v32, 5  ;;  %v6464_v19 = vcombine.low %v1657_v34, %v1667_v43  ;;  %v1681_v23 = vor.u32 %v1680_v1, %v1676_v55 }
 0x13c   : > { %v9456_v10 = vpop.f32.mrb[31].mxu1  ;;  %v3898_v18 = vrot.slane %v8382_v22, 5  ;;  %v1689_v17 = vshrl.u32 %v309_v61, 16  ;;  %v1672_v24 = vrot.slane %v1671_v40, 4  ;;  %v1692_v45 = vshll.u32 %v309_v61, 16 }
 0x13d   : > { %7883 = vmatprep.mubr.bf16.mxu0 %v6624_v2  ;;  %v3896_v39 = vsel %vm9050_vm5, %v3894_v26, %v3895_v60  ;;  %v3897_v15 = vrot.slane %v3895_v60, 4  ;;  %7659 = vmatprep.mubr.bf16.mxu1 %v6464_v19  ;;  %v1682_v51 = vrot.slane %v1681_v23, 4  ;;  %v1698_v11 = vshll.u32 %v310_v8, 16  ;;  %v312_v19 = vld [vmem:[%s8560_s11 + $0x264] sm:$0xf] }
 0x13e   : > { %v1691_v34 = vrot.slane %v1689_v17, 4  ;;  %v1702_v53 = vshrl.u32 %v310_v8, 16  ;;  %v1677_v1 = vsel %vm8600_vm2, %v1672_v24, %v1676_v55  ;;  %v1694_v61 = vrot.slane %v1692_v45, 5  ;;  %v363_v8 = vld [vmem:[%s8560_s11 + $0x268] sm:$0x1] }
 0x13f   : > { %v3899_v26 = vsel %vm9050_vm5, %v3897_v15, %v3898_v18  ;;  %v1708_v43 = vshll.u32 %v311_v36, 16  ;;  %v1687_v2 = vsel %vm8600_vm2, %v1682_v51, %v1686_v62  ;;  %v1700_v32 = vrot.slane %v1698_v11, 5  ;;  %v8383_v24 = vld [vmem:[%s8560_s11 + $0x11c] sm:$0xf]  ;;  %v8384_v18 = vld [vmem:[%s8560_s11 + $0x120] sm:$0xf] }
 0x140   : > { %v6625_v40 = vcombine.low %v3896_v39, %v3899_v26  ;;  %v1704_v60 = vrot.slane %v1702_v53, 4  ;;  %v6465_v23 = vcombine.low %v1677_v1, %v1687_v2  ;;  %v1695_v22 = vor.u32 %v1694_v61, %v1691_v34 }
 0x141   : > { %v9471_v7 = vpop.f32.mrb[32].mxu1  ;;  %v1710_v17 = vrot.slane %v1708_v43, 5  ;;  %v3905_v15 = vrot.slane %v8384_v18, 5  ;;  %v1712_v45 = vshrl.u32 %v311_v36, 16  ;;  %v1718_v62 = vshll.u32 %v312_v19, 16 }
 0x142   : > { %10154 = vst [vmem:[#allocation2_spill] sm:$0xff] %v9471_v7  ;;  %v9475_v35 = vpop.f32.mrb[33].mxu1  ;;  %7884 = vmatmul.mubr.bf16.gmra.mrb[52].mxu0 %v6625_v40  ;;  %v1705_v55 = vor.u32 %v1704_v60, %v1700_v32  ;;  %7660 = vmatmul.mubr.bf16.gmra.mrb[116].mxu1 %v6465_v23  ;;  %v1722_v39 = vshrl.u32 %v312_v19, 16  ;;  %v1728_v51 = vshll.u32 %v363_v8, 16  ;;  %v313_v40 = vld [vmem:[%s8560_s11 + $0x26c] sm:$0xf] }
 0x143   : > { %10155 = vst [vmem:[#allocation3_spill] sm:$0xff] %v9475_v35  ;;  %v9480_v46 = vpop.f32.mrb[34].mxu1  ;;  %v1696_v35 = vrot.slane %v1695_v22, 4  ;;  %v1714_v1 = vrot.slane %v1712_v45, 4  ;;  %v1720_v61 = vrot.slane %v1718_v62, 5  ;;  %v3907_v8 = vrot.slane %v3905_v15, 4 }
 0x144   : > { %10156 = vst [vmem:[#allocation4_spill] sm:$0xff] %v9480_v46  ;;  %v9482_v29 = vpop.f32.mrb[35].mxu1  ;;  %v3902_v46 = vrot.slane %v8383_v24, 5  ;;  %v1706_v53 = vrot.slane %v1705_v55, 4  ;;  %v1724_v43 = vrot.slane %v1722_v39, 4  ;;  %v1730_v2 = vrot.slane %v1728_v51, 5 }
 0x145   : > { %10157 = vst [vmem:[#allocation5_spill] sm:$0xff] %v9482_v29  ;;  %v6564_v29 = vrot.slane %v3633_v54, 9  ;;  %v1701_v36 = vsel %vm8600_vm2, %v1696_v35, %v1700_v32  ;;  %v314_v23 = vld [vmem:[%s8560_s11 + $0x270] sm:$0xf]  ;;  %v8385_v24 = vld [vmem:[%s8560_s11 + $0x124] sm:$0xf] }
 0x146   : > { %v3904_v34 = vrot.slane %v3902_v46, 4  ;;  %v1711_v19 = vsel %vm8600_vm2, %v1706_v53, %v1710_v17  ;;  %v1725_v55 = vor.u32 %v1724_v43, %v1720_v61  ;;  %v3908_v18 = vrot.slane %v8385_v24, 5  ;;  %v8386_v62 = vld [vmem:[%s8560_s11 + $0x128] sm:$0x1]  ;;  %v315_v51 = vld [vmem:[%s8560_s11 + $0x274] sm:$0xf] }
 0x147   : > { %v3903_v54 = vsel %vm9050_vm5, %v6564_v29, %v3902_v46  ;;  %v1715_v29 = vor.u32 %v1714_v1, %v1710_v17  ;;  %v6466_v35 = vcombine.low %v1701_v36, %v1711_v19  ;;  %v3911_v39 = vrot.slane %v8386_v62, 5 }
 0x148   : > { %v3906_v46 = vsel %vm9050_vm5, %v3904_v34, %v3905_v15  ;;  %v1736_v53 = vshll.u32 %v313_v40, 16  ;;  %v1726_v17 = vrot.slane %v1725_v55, 4  ;;  %v3909_v15 = vsel %vm9050_vm5, %v3907_v8, %v3908_v18 }
 0x149   : > { %v9494_v11 = vpop.f32.mrb[36].mxu1  ;;  %v6626_v32 = vcombine.low %v3903_v54, %v3906_v46  ;;  %v1716_v45 = vrot.slane %v1715_v29, 4  ;;  %7663 = vmatprep.mubr.bf16.mxu1 %v6466_v35  ;;  %v3910_v34 = vrot.slane %v3908_v18, 4  ;;  %v1742_v54 = vshll.u32 %v314_v23, 16  ;;  %v3634_v46 = vld [vmem:[%s8560_s11 + $0x12c] sm:$0xe] }
 0x14a   : > { %10158 = vst [vmem:[#allocation6_spill] sm:$0xff] %v9494_v11  ;;  %v9498_v26 = vpop.f32.mrb[37].mxu1  ;;  %v1738_v43 = vrot.slane %v1736_v53, 5  ;;  %v1746_v19 = vshrl.u32 %v314_v23, 16  ;;  %v1752_v8 = vshll.u32 %v315_v51, 16  ;;  %v6565_v23 = vrot.slane %v3634_v46, 9 }
 0x14b   : > { %10159 = vst [vmem:[#allocation7_spill] sm:$0xff] %v9498_v26  ;;  %v9503_v60 = vpop.f32.mrb[38].mxu1  ;;  %7887 = vmatprep.mubr.bf16.mxu0 %v6626_v32  ;;  %v1721_v1 = vsel %vm8600_vm2, %v1716_v45, %v1720_v61  ;;  %v3912_v29 = vsel %vm9050_vm5, %v3910_v34, %v3911_v39  ;;  %v1744_v35 = vrot.slane %v1742_v54, 5  ;;  %v316_v32 = vld [vmem:[%s8560_s11 + $0x278] sm:$0xf]  ;;  %v1756_v34 = vshrl.u32 %v315_v51, 16 }
 0x14c   : > { %10160 = vst [vmem:[#allocation8_spill] sm:$0xff] %v9503_v60  ;;  %v9510_v22 = vpop.f32.mrb[39].mxu1  ;;  %v1733_v60 = vshrl.u32 %v313_v40, 16  ;;  %v1731_v40 = vsel %vm8600_vm2, %v1726_v17, %v1730_v2  ;;  %v6627_v24 = vcombine.low %v3909_v15, %v3912_v29  ;;  %v1748_v62 = vrot.slane %v1746_v19, 4  ;;  %v364_v61 = vld [vmem:[%s8560_s11 + $0x27c] sm:$0x1] }
 0x14d   : > { %10161 = vst [vmem:[#allocation9_spill] sm:$0xff] %v9510_v22  ;;  %v6467_v55 = vcombine.low %v1721_v1, %v1731_v40  ;;  %v1754_v45 = vrot.slane %v1752_v8, 5  ;;  %v8387_v53 = vld [vmem:[%s8560_s11 + $0x130] sm:$0xf]  ;;  %v8388_v26 = vld [vmem:[%s8560_s11 + $0x134] sm:$0xf] }
 0x14e   : > { %v1735_v36 = vrot.slane %v1733_v60, 4  ;;  %v3915_v22 = vrot.slane %v8387_v53, 5  ;;  %v3918_v11 = vrot.slane %v8388_v26, 5  ;;  %7888 = vmatmul.mubr.bf16.gmra.mrb[56].mxu0 %v6627_v24  ;;  %v1749_v17 = vor.u32 %v1748_v62, %v1744_v35 }
 0x14f   : > { %7664 = vmatmul.mubr.bf16.gmra.mrb[120].mxu1 %v6467_v55  ;;  %v1762_v15 = vshll.u32 %v316_v32, 16  ;;  %v1772_v19 = vshll.u32 %v364_v61, 16  ;;  %v1758_v29 = vrot.slane %v1756_v34, 4  ;;  %v8389_v61 = vld [vmem:[%s8560_s11 + $0x138] sm:$0xf] }
 0x150   : > { %v1739_v18 = vor.u32 %v1738_v43, %v1735_v36  ;;  %v3916_v1 = vsel %vm9050_vm5, %v6565_v23, %v3915_v22  ;;  %v3917_v36 = vrot.slane %v3915_v22, 4  ;;  %v1766_v43 = vshrl.u32 %v316_v32, 16 }
 0x151   : > { %v9526_v60 = vpop.f32.mrb[40].mxu1  ;;  %v1750_v40 = vrot.slane %v1749_v17, 4  ;;  %v1764_v8 = vrot.slane %v1762_v15, 5  ;;  %v3920_v24 = vrot.slane %v3918_v11, 4  ;;  %v1759_v62 = vor.u32 %v1758_v29, %v1754_v45  ;;  %v8390_v17 = vld [vmem:[%s8560_s11 + $0x13c] sm:$0x1] }
 0x152   : > { %10162 = vst [vmem:[#allocation10_spill] sm:$0xff] %v9526_v60  ;;  %v9530_v2 = vpop.f32.mrb[41].mxu1  ;;  %v1740_v39 = vrot.slane %v1739_v18, 4  ;;  %v3919_v51 = vsel %vm9050_vm5, %v3917_v36, %v3918_v11  ;;  %v1768_v55 = vrot.slane %v1766_v43, 4  ;;  %v3635_v18 = vld [vmem:[%s8560_s11 + $0x140] sm:$0xe] }
 0x153   : > { %10163 = vst [vmem:[#allocation11_spill] sm:$0xff] %v9530_v2  ;;  %v9532_v54 = vpop.f32.mrb[42].mxu1  ;;  %v1755_v22 = vsel %vm8600_vm2, %v1750_v40, %v1754_v45  ;;  %v6628_v32 = vcombine.low %v3916_v1, %v3919_v51  ;;  %v3921_v23 = vrot.slane %v8389_v61, 5  ;;  %v3924_v34 = vrot.slane %v8390_v17, 5  ;;  %v8392_v40 = vld [vmem:[%s8560_s11 + $0x144] sm:$0xf] }
 0x154   : > { %10164 = vst [vmem:[#allocation12_spill] sm:$0xff] %v9532_v54  ;;  %v9536_v46 = vpop.f32.mrb[43].mxu1  ;;  %v1745_v26 = vsel %vm8600_vm2, %v1740_v39, %v1744_v35  ;;  %v1769_v53 = vor.u32 %v1768_v55, %v1764_v8  ;;  %v1774_v39 = vrot.slane %v1772_v19, 5  ;;  %v1760_v15 = vrot.slane %v1759_v62, 4  ;;  %v8393_v51 = vld [vmem:[%s8560_s11 + $0x148] sm:$0xf] }
 0x155   : > { %10165 = vst [vmem:[#allocation13_spill] sm:$0xff] %v9536_v46  ;;  %v6468_v35 = vcombine.low %v1745_v26, %v1755_v22  ;;  %7891 = vmatprep.mubr.bf16.mxu0 %v6628_v32  ;;  %v3922_v11 = vsel %vm9050_vm5, %v3920_v24, %v3921_v23  ;;  %v3923_v36 = vrot.slane %v3921_v23, 4  ;;  %v6566_v1 = vrot.slane %v3635_v18, 9  ;;  %v8391_v26 = vld [vmem:[%s8560_s11 + $0x140] sm:$0xf] }
 0x156   : > { %v1770_v43 = vrot.slane %v1769_v53, 4  ;;  %v6510_v29 = vcombine.low %v8391_v26, %v8392_v40  ;;  %v3928_v19 = vrot.slane %v8392_v40, 5  ;;  %v3931_v55 = vrot.slane %v8393_v51, 5  ;;  %v8394_v18 = vld [vmem:[%s8560_s11 + $0x14c] sm:$0xf] }
 0x157   : > { %7667 = vmatprep.mubr.bf16.mxu1 %v6468_v35  ;;  %v1765_v32 = vsel %vm8600_vm2, %v1760_v15, %v1764_v8  ;;  %v3925_v24 = vsel %vm9050_vm5, %v3923_v36, %v3924_v34  ;;  %v3934_v62 = vrot.slane %v8394_v18, 5  ;;  %v8395_v61 = vld [vmem:[%s8560_s11 + $0x150] sm:$0x1]  ;;  %v3636_v35 = vld [vmem:[%s8560_s11 + $0x154] sm:$0xe] }
 0x158   : > { %v3937_v23 = vrot.slane %v8395_v61, 5  ;;  %v1775_v17 = vsel %vm8600_vm2, %v1770_v43, %v1774_v39  ;;  %v6629_v26 = vcombine.low %v3922_v11, %v3925_v24  ;;  %v3929_v40 = vsel %vm9050_vm5, %v6566_v1, %v3928_v19  ;;  %v9575_v39 = vld [vmem:[%s8560_s11 + $0x15c] sm:$0xf]  ;;  %v8398_v24 = vld [vmem:[%s8560_s11 + $0x160] sm:$0xf] }
 0x159   : > { %v9549_v45 = vpop.f32.mrb[44].mxu1  ;;  %v3930_v8 = vrot.slane %v3928_v19, 4  ;;  %v6469_v34 = vcombine.low %v1765_v32, %v1775_v17  ;;  %v3933_v36 = vrot.slane %v3931_v55, 4  ;;  %v3944_v11 = vrot.slane %v9575_v39, 5  ;;  %v3637_v17 = vld [vmem:[%s8560_s11 + $0x168] sm:$0xe] }
 0x15a   : > { %10166 = vst [vmem:[#allocation14_spill] sm:$0xff] %v9549_v45  ;;  %v9554_v22 = vpop.f32.mrb[45].mxu1  ;;  %7892 = vmatmul.mubr.bf16.gmra.mrb[60].mxu0 %v6629_v26  ;;  %v8396_v45 = vld [vmem:[%s8560_s11 + $0x158] sm:$0xf]  ;;  %v6511_v26 = vcombine.low %v8393_v51, %v8394_v18  ;;  %v6568_v51 = vrot.slane %v3637_v17, 9 }
 0x15b   : > { %10167 = vst [vmem:[#allocation15_spill] sm:$0xff] %v9554_v22  ;;  %v9563_v53 = vpop.f32.mrb[46].mxu1  ;;  %v3936_v22 = vrot.slane %v3934_v62, 4  ;;  %v3932_v61 = vsel %vm9050_vm5, %v3930_v8, %v3931_v55  ;;  %v3941_v37 = vrot.slane %v8396_v45, 5  ;;  %7668 = vmatmul.mubr.bf16.gmra.mrb[124].mxu1 %v6469_v34  ;;  %v3935_v43 = vsel %vm9050_vm5, %v3933_v36, %v3934_v62  ;;  %v8399_v8 = vld [vmem:[%s8560_s11 + $0x16c] sm:$0xf] }
 0x15c   : > { %10168 = vst [vmem:[#allocation16_spill] sm:$0xff] %v9563_v53  ;;  %v9569_v15 = vpop.f32.mrb[47].mxu1  ;;  %v6567_v53 = vrot.slane %v3636_v35, 9  ;;  %v6630_v1 = vcombine.low %v3929_v40, %v3932_v61  ;;  %7751 = vmatprep.mubr.bf16.mxu1 %v6510_v29  ;;  %v3947_v35 = vrot.slane %v8398_v24, 5  ;;  %v3954_v34 = vrot.slane %v8399_v8, 5 }
 0x15d   : > { %10169 = vst [vmem:[#allocation17_spill] sm:$0xff] %v9569_v15  ;;  %v3938_v19 = vsel %vm9050_vm5, %v3936_v22, %v3937_v23  ;;  %v3943_v32 = vrot.slane %v3941_v37, 4  ;;  %v3946_v23 = vrot.slane %v3944_v11, 4  ;;  %v8403_v17 = vld [vmem:[%s8560_s11 + $0x174] sm:$0xf] }
 0x15e   : > { %v3942_v55 = vsel %vm9050_vm5, %v6567_v53, %v3941_v37  ;;  %7895 = vmatprep.mubr.bf16.mxu0 %v6630_v1  ;;  %v6631_v40 = vcombine.low %v3935_v43, %v3938_v19  ;;  %v3949_v36 = vrot.slane %v3947_v35, 4  ;;  %v8400_v53 = vld [vmem:[%s8560_s11 + $0x164] sm:$0x1]  ;;  %v8401_v1 = vld [vmem:[%s8560_s11 + $0x154] sm:$0xf]  ;;  %v3956_v18 = vrot.slane %v3954_v34, 4 }
 0x15f   : > { %v3945_v62 = vsel %vm9050_vm5, %v3943_v32, %v3944_v11  ;;  %v3950_v61 = vrot.slane %v8400_v53, 5  ;;  %v6512_v15 = vcombine.low %v8401_v1, %v8396_v45  ;;  %v9596_v43 = vld [vmem:[%s8560_s11 + $0x170] sm:$0xf]  ;;  %v3948_v11 = vsel %vm9050_vm5, %v3946_v23, %v3947_v35  ;;  %v9622_v54 = vld [vmem:[%s8560_s11 + $0x184] sm:$0xf] }
 0x160   : > { %v6632_v29 = vcombine.low %v3942_v55, %v3945_v62  ;;  %v3957_v19 = vrot.slane %v9596_v43, 5  ;;  %v3960_v62 = vrot.slane %v8403_v17, 5  ;;  %v3955_v53 = vsel %vm9050_vm5, %v6568_v51, %v3954_v34  ;;  %v8406_v34 = vld [vmem:[%s8560_s11 + $0x168] sm:$0xf]  ;;  %v9761_v2 = vld [vmem:[%s8560_s11 + $0x1d4] sm:$0xf] }
 0x161   : > { %v9589_v22 = vpop.f32.mrb[48].mxu1  ;;  %v3951_v45 = vsel %vm9050_vm5, %v3949_v36, %v3950_v61  ;;  %v6513_v35 = vcombine.low %v9575_v39, %v8398_v24  ;;  %v6514_v51 = vcombine.low %v8406_v34, %v8399_v8  ;;  %v3970_v39 = vrot.slane %v9622_v54, 5 }
 0x162   : > { %10170 = vst [vmem:[#allocation18_spill] sm:$0xff] %v9589_v22  ;;  %v9592_v37 = vpop.f32.mrb[49].mxu1  ;;  %7896 = vmatmul.mubr.bf16.gmra.mrb[64].mxu0 %v6631_v40  ;;  %v3958_v1 = vsel %vm9050_vm5, %v3956_v18, %v3957_v19  ;;  %v8404_v40 = vld [vmem:[%s8560_s11 + $0x180] sm:$0xf]  ;;  %v6633_v23 = vcombine.low %v3948_v11, %v3951_v45  ;;  %v3959_v61 = vrot.slane %v3957_v19, 4 }
 0x163   : > { %10171 = vst [vmem:[#allocation19_spill] sm:$0xff] %v9592_v37  ;;  %v9599_v32 = vpop.f32.mrb[50].mxu1  ;;  %7752 = vmatmul.mubr.bf16.vlgmr.msra.gmra.mrb[64].mxu1 %v6511_v26  ;;  %7899 = vmatprep.mubr.bf16.mxu0 %v6632_v29  ;;  %v3967_v26 = vrot.slane %v8404_v40, 5  ;;  %v3638_v29 = vld [vmem:[%s8560_s11 + $0x17c] sm:$0xe]  ;;  %v6634_v36 = vcombine.low %v3955_v53, %v3958_v1  ;;  %v3972_v34 = vrot.slane %v3970_v39, 4 }
 0x164   : > { %10172 = vst [vmem:[#allocation20_spill] sm:$0xff] %v9599_v32  ;;  %v9601_v55 = vpop.f32.mrb[51].mxu1  ;;  %7755 = vmatprep.mubr.bf16.mxu1 %v6512_v15  ;;  %v3962_v32 = vrot.slane %v3960_v62, 4  ;;  %v8405_v37 = vld [vmem:[%s8560_s11 + $0x178] sm:$0x1]  ;;  %v6569_v18 = vrot.slane %v3638_v29, 9 }
 0x165   : > { %10173 = vst [vmem:[#allocation21_spill] sm:$0xff] %v9601_v55  ;;  %v3963_v15 = vrot.slane %v8405_v37, 5  ;;  %v3969_v46 = vrot.slane %v3967_v26, 4  ;;  %v3961_v37 = vsel %vm9050_vm5, %v3959_v61, %v3960_v62  ;;  %v8408_v19 = vld [vmem:[%s8560_s11 + $0x188] sm:$0xf] }
 0x166   : > { %v3973_v45 = vrot.slane %v8408_v19, 5  ;;  %v3968_v53 = vsel %vm9050_vm5, %v6569_v18, %v3967_v26  ;;  %v8409_v29 = vld [vmem:[%s8560_s11 + $0x194] sm:$0xf] }
 0x167   : > { %v3964_v8 = vsel %vm9050_vm5, %v3962_v32, %v3963_v15  ;;  %v3971_v1 = vsel %vm9050_vm5, %v3969_v46, %v3970_v39  ;;  %v8410_v15 = vld [vmem:[%s8560_s11 + $0x18c] sm:$0x1]  ;;  %v9646_v46 = vld [vmem:[%s8560_s11 + $0x198] sm:$0xf] }
 0x168   : > { %v6635_v62 = vcombine.low %v3961_v37, %v3964_v8  ;;  %v6636_v61 = vcombine.low %v3968_v53, %v3971_v1  ;;  %v3975_v32 = vrot.slane %v3973_v45, 4  ;;  %v9660_v37 = vld [vmem:[%s8560_s11 + $0x19c] sm:$0xf] }
 0x169   : > { %v9615_v55 = vpop.f32.mrb[52].mxu1  ;;  %v3986_v8 = vrot.slane %v9660_v37, 5 }
 0x16a   : > { %10174 = vst [vmem:[#allocation22_spill] sm:$0xff] %v9615_v55  ;;  %v9618_v22 = vpop.f32.mrb[53].mxu1  ;;  %7900 = vmatmul.mubr.bf16.gmra.mrb[68].mxu0 %v6633_v23  ;;  %v3639_v23 = vld [vmem:[%s8560_s11 + $0x190] sm:$0xe]  ;;  %v3983_v55 = vrot.slane %v9646_v46, 5 }
 0x16b   : > { %10175 = vst [vmem:[#allocation23_spill] sm:$0xff] %v9618_v22  ;;  %v9625_v24 = vpop.f32.mrb[54].mxu1  ;;  %7756 = vmatmul.mubr.bf16.gmra.mrb[68].mxu1 %v6513_v35  ;;  %7903 = vmatprep.mubr.bf16.mxu0 %v6634_v36  ;;  %v3980_v35 = vrot.slane %v8409_v29, 5  ;;  %v6515_v36 = vcombine.low %v9596_v43, %v8403_v17  ;;  %v6570_v18 = vrot.slane %v3639_v23, 9  ;;  %v9668_v23 = vld [vmem:[%s8560_s11 + $0x1a8] sm:$0xf] }
 0x16c   : > { %10176 = vst [vmem:[#allocation24_spill] sm:$0xff] %v9625_v24  ;;  %v9627_v11 = vpop.f32.mrb[55].mxu1  ;;  %7759 = vmatprep.mubr.bf16.mxu1 %v6514_v51  ;;  %v8411_v24 = vld [vmem:[%s8560_s11 + $0x17c] sm:$0xf] }
 0x16d   : > { %10177 = vst [vmem:[#allocation25_spill] sm:$0xff] %v9627_v11  ;;  %v3976_v11 = vrot.slane %v8410_v15, 5  ;;  %v6516_v26 = vcombine.low %v8411_v24, %v8404_v40  ;;  %v3982_v22 = vrot.slane %v3980_v35, 4  ;;  %v3974_v40 = vsel %vm9050_vm5, %v3972_v34, %v3973_v45  ;;  %v8415_v15 = vld [vmem:[%s8560_s11 + $0x1a0] sm:$0x1] }
 0x16e   : > { %v3981_v53 = vsel %vm9050_vm5, %v6570_v18, %v3980_v35  ;;  %v3993_v45 = vrot.slane %v9668_v23, 5  ;;  %v3985_v34 = vrot.slane %v3983_v55, 4 }
 0x16f   : > { %v3977_v24 = vsel %vm9050_vm5, %v3975_v32, %v3976_v11  ;;  %v3984_v1 = vsel %vm9050_vm5, %v3982_v22, %v3983_v55  ;;  %v6517_v11 = vcombine.low %v9622_v54, %v8408_v19  ;;  %v3988_v32 = vrot.slane %v3986_v8, 4  ;;  %v8416_v22 = vld [vmem:[%s8560_s11 + $0x190] sm:$0xf] }
 0x170   : > { %v6518_v18 = vcombine.low %v8416_v22, %v8409_v29  ;;  %v3987_v29 = vsel %vm9050_vm5, %v3985_v34, %v3986_v8  ;;  %v6519_v34 = vcombine.low %v9646_v46, %v9660_v37  ;;  %v8421_v22 = vld [vmem:[%s8560_s11 + $0x1b4] sm:$0x1] }
 0x171   : > { %v9642_v51 = vpop.f32.mrb[56].mxu1 }
 0x172   : > { %10178 = vst [vmem:[#allocation26_spill] sm:$0xff] %v9642_v51  ;;  %v9649_v43 = vpop.f32.mrb[57].mxu1  ;;  %7904 = vmatmul.mubr.bf16.gmra.mrb[72].mxu0 %v6635_v62  ;;  %v6637_v62 = vcombine.low %v3974_v40, %v3977_v24  ;;  %v9727_v51 = vld [vmem:[%s8560_s11 + $0x1c4] sm:$0xf] }
 0x173   : > { %10179 = vst [vmem:[#allocation27_spill] sm:$0xff] %v9649_v43  ;;  %v9651_v17 = vpop.f32.mrb[58].mxu1  ;;  %7760 = vmatmul.mubr.bf16.gmra.mrb[72].mxu1 %v6515_v36  ;;  %7907 = vmatprep.mubr.bf16.mxu0 %v6636_v61  ;;  %v3640_v36 = vld [vmem:[%s8560_s11 + $0x1a4] sm:$0xe]  ;;  %v6638_v61 = vcombine.low %v3981_v53, %v3984_v1  ;;  %v9679_v43 = vld [vmem:[%s8560_s11 + $0x1ac] sm:$0xf] }
 0x174   : > { %10180 = vst [vmem:[#allocation28_spill] sm:$0xff] %v9651_v17  ;;  %v9653_v39 = vpop.f32.mrb[59].mxu1  ;;  %7763 = vmatprep.mubr.bf16.mxu1 %v6516_v26  ;;  %v3989_v26 = vrot.slane %v8415_v15, 5  ;;  %v3995_v17 = vrot.slane %v3993_v45, 4  ;;  %v3996_v54 = vrot.slane %v9679_v43, 5  ;;  %v4012_v46 = vrot.slane %v9727_v51, 5 }
 0x175   : > { %10181 = vst [vmem:[#allocation29_spill] sm:$0xff] %v9653_v39  ;;  %v6571_v39 = vrot.slane %v3640_v36, 9  ;;  %v9699_v53 = vld [vmem:[%s8560_s11 + $0x1b0] sm:$0xf] }
 0x176   : > { %v3990_v24 = vsel %vm9050_vm5, %v3988_v32, %v3989_v26  ;;  %v3999_v1 = vrot.slane %v9699_v53, 5  ;;  %v3998_v15 = vrot.slane %v3996_v54, 4 }
 0x177   : > { %v3994_v36 = vsel %vm9050_vm5, %v6571_v39, %v3993_v45  ;;  %v6639_v32 = vcombine.low %v3987_v29, %v3990_v24  ;;  %v9720_v39 = vld [vmem:[%s8560_s11 + $0x1c0] sm:$0xf] }
 0x178   : > { %v4001_v26 = vrot.slane %v3999_v1, 4  ;;  %v4000_v24 = vsel %vm9050_vm5, %v3998_v15, %v3999_v1 }
 0x179   : > { %v9675_v35 = vpop.f32.mrb[60].mxu1 }
 0x17a   : > { %10182 = vst [vmem:[#allocation30_spill] sm:$0xff] %v9675_v35  ;;  %v9682_v19 = vpop.f32.mrb[61].mxu1  ;;  %7908 = vmatmul.mubr.bf16.gmra.mrb[76].mxu0 %v6637_v62  ;;  %v3641_v62 = vld [vmem:[%s8560_s11 + $0x1b8] sm:$0xe] }
 0x17b   : > { %10183 = vst [vmem:[#allocation31_spill] sm:$0xff] %v9682_v19  ;;  %v9684_v40 = vpop.f32.mrb[62].mxu1  ;;  %7764 = vmatmul.mubr.bf16.gmra.mrb[76].mxu1 %v6517_v11  ;;  %7911 = vmatprep.mubr.bf16.mxu0 %v6638_v61  ;;  %v3997_v11 = vsel %vm9050_vm5, %v3995_v17, %v3996_v54  ;;  %v9708_v61 = vld [vmem:[%s8560_s11 + $0x1bc] sm:$0xf]  ;;  %v4009_v17 = vrot.slane %v9720_v39, 5 }
 0x17c   : > { %10184 = vst [vmem:[#allocation32_spill] sm:$0xff] %v9684_v40  ;;  %v9692_v55 = vpop.f32.mrb[63].mxu1  ;;  %7767 = vmatprep.mubr.bf16.mxu1 %v6518_v18  ;;  %v4006_v8 = vrot.slane %v9708_v61, 5  ;;  %v6640_v45 = vcombine.low %v3994_v36, %v3997_v11  ;;  %v4002_v18 = vrot.slane %v8421_v22, 5  ;;  %v8422_v40 = vld [vmem:[%s8560_s11 + $0x1a4] sm:$0xf] }
 0x17d   : > { %10186 = vst [vmem:[#allocation33_spill] sm:$0xff] %v9692_v55  ;;  %v6572_v55 = vrot.slane %v3641_v62, 9  ;;  %v6520_v19 = vcombine.low %v8422_v40, %v9668_v23  ;;  %v4011_v36 = vrot.slane %v4009_v17, 4  ;;  %v9740_v62 = vld [vmem:[%s8560_s11 + $0x1d0] sm:$0xf] }
 0x17e   : > { %v4008_v35 = vrot.slane %v4006_v8, 4  ;;  %v4003_v11 = vsel %vm9050_vm5, %v4001_v26, %v4002_v18  ;;  %v3642_v26 = vld [vmem:[%s8560_s11 + $0x1cc] sm:$0xe] }
 0x17f   : > { %v4013_v18 = vsel %vm9050_vm5, %v4011_v36, %v4012_v46 }
 0x182   : > { %v7833_v37 = vpop.f32.mrb[0].mxu0  ;;  %7912 = vmatmul.mubr.bf16.gmra.mrb[80].mxu0 %v6639_v32  ;;  %v4019_v32 = vrot.slane %v9740_v62, 5 }
 0x183   : > { %v7975_v54 = vadd.f32 %v7833_v37, %v9256_v16  ;;  %v4489_v29 = vpop.f32.mrb[1].mxu0  ;;  %7768 = vmatmul.mubr.bf16.gmra.mrb[80].mxu1 %v6519_v34  ;;  %7915 = vmatprep.mubr.bf16.mxu0 %v6640_v45  ;;  %v4007_v16 = vsel %vm9050_vm5, %v6572_v55, %v4006_v8  ;;  %v4014_v34 = vrot.slane %v4012_v46, 4  ;;  %v8425_v45 = vld [vmem:[%s8560_s11 + $0x1c8] sm:$0x1]  ;;  %v6641_v8 = vcombine.low %v4000_v24, %v4003_v11  ;;  %v9771_v24 = vld [vmem:[%s8560_s11 + $0x1d8] sm:$0xf] }
 0x184   : > { %v7976_v23 = vadd.f32 %v4489_v29, %v9263_v25  ;;  %v7834_v40 = vpop.f32.mrb[2].mxu0  ;;  %7771 = vmatprep.mubr.bf16.mxu1 %v6520_v19  ;;  %v4010_v25 = vsel %vm9050_vm5, %v4008_v35, %v4009_v17  ;;  %v4015_v22 = vrot.slane %v8425_v45, 5  ;;  %v8426_v35 = vld [vmem:[%s8560_s11 + $0x1b8] sm:$0xf]  ;;  %v4021_v45 = vrot.slane %v4019_v32, 4 }
 0x185   : > { %v7977_v1 = vadd.f32 %v7834_v40, %v9268_v3  ;;  %v4492_v15 = vpop.f32.mrb[3].mxu0  ;;  %v6521_v3 = vcombine.low %v9679_v43, %v9699_v53  ;;  %v6522_v17 = vcombine.low %v8426_v35, %v9708_v61  ;;  %v6642_v29 = vcombine.low %v4007_v16, %v4010_v25  ;;  %v8430_v35 = vld [vmem:[%s8560_s11 + $0x1dc] sm:$0x1] }
 0x186   : > { %v7978_v55 = vadd.f32 %v4492_v15, %v9270_v31  ;;  %v6573_v40 = vrot.slane %v3642_v26, 9  ;;  %v4022_v31 = vrot.slane %v9761_v2, 5  ;;  %v4016_v43 = vsel %vm9050_vm5, %v4014_v34, %v4015_v22  ;;  %v9780_v34 = vld [vmem:[%s8560_s11 + $0x1e4] sm:$0xf] }
 0x187   : > { %v5129_v19 = vpack.c.bf16 %v7977_v1, %v7975_v54  ;;  %v6523_v46 = vcombine.low %v9720_v39, %v9727_v51  ;;  %v4025_v36 = vrot.slane %v9771_v24, 5  ;;  %v6643_v15 = vcombine.low %v4013_v18, %v4016_v43  ;;  %v3643_v39 = vld [vmem:[%s8560_s11 + $0x1e0] sm:$0xe] }
 0x188   : > { %v5128_v37 = vpack.c.bf16 %v7978_v55, %v7976_v23  ;;  %v4020_v25 = vsel %vm9050_vm5, %v6573_v40, %v4019_v32  ;;  %v4023_v51 = vsel %vm9050_vm5, %v4021_v45, %v4022_v31  ;;  %v4032_v22 = vrot.slane %v9780_v34, 5 }
 0x189   : > { %7248 = vst [vmem:[%s9751_s23 + $0x8] sm:$0xff] %v5129_v19   ;;  %v5770_v53 = vunpack.c.l.bf16 %v5129_v19  ;;  %v5771_v23 = vunpack.c.h.bf16 %v5129_v19  ;;  %v4028_v18 = vrot.slane %v8430_v35, 5  ;;  %v6574_v60 = vrot.slane %v3643_v39, 9 }
 0x18a   : > { %6932 = vst [vmem:[%s9751_s23] sm:$0xff] %v5128_v37   ;;  %v5768_v54 = vunpack.c.l.bf16 %v5128_v37  ;;  %v5769_v61 = vunpack.c.h.bf16 %v5128_v37  ;;  %7916 = vmatmul.mubr.bf16.gmra.mrb[84].mxu0 %v6641_v8  ;;  %v4027_v8 = vrot.slane %v4025_v36, 4  ;;  %v9785_v37 = vld [vmem:[%s8560_s11 + $0x1e8] sm:$0xf]  ;;  %v4034_v7 = vrot.slane %v4032_v22, 4 }
 0x18b   : > { %7772 = vmatmul.mubr.bf16.gmra.mrb[84].mxu1 %v6521_v3  ;;  %7919 = vmatprep.mubr.bf16.mxu0 %v6642_v29  ;;  %v6031_v26 = vmul.f32 %v5770_v53, %v5770_v53  ;;  %v4024_v3 = vrot.slane %v4022_v31, 4  ;;  %v4035_v32 = vrot.slane %v9785_v37, 5  ;;  %v7837_v29 = vpop.f32.mrb[4].mxu0  ;;  %v9792_v31 = vld [vmem:[%s8560_s11 + $0x1ec] sm:$0xf] }
 0x18c   : > { %v5896_v11 = vadd.f32 %v5769_v61, %v5768_v54  ;;  %v6029_v16 = vmul.f32 %v5768_v54, %v5768_v54  ;;  %v6030_v1 = vmul.f32 %v5769_v61, %v5769_v61  ;;  %7775 = vmatprep.mubr.bf16.mxu1 %v6522_v17  ;;  %v6032_v17 = vmul.f32 %v5771_v23, %v5771_v23  ;;  %v4505_v54 = vpop.f32.mrb[5].mxu0  ;;  %v8432_v61 = vld [vmem:[%s8560_s11 + $0x1cc] sm:$0xf] }
 0x18d   : > { %v7979_v43 = vadd.f32 %v7837_v29, %v9284_v14  ;;  %v7838_v35 = vpop.f32.mrb[6].mxu0 }
 0x18e   : > { %v5897_v55 = vadd.f32 %v5896_v11, %v5770_v53  ;;  %v6157_v19 = vadd.f32 %v6030_v1, %v6029_v16  ;;  %v6524_v53 = vcombine.low %v8432_v61, %v9740_v62  ;;  %v6644_v11 = vcombine.low %v4020_v25, %v4023_v51  ;;  %v4508_v14 = vpop.f32.mrb[7].mxu0  ;;  %v3644_v62 = vld [vmem:[%s8560_s11 + $0x1f4] sm:$0xe] }
 0x18f   : > { %v4038_v16 = vrot.slane %v9792_v31, 5  ;;  %v7980_v1 = vadd.f32 %v4505_v54, %v9288_v4  ;;  %v7982_v25 = vadd.f32 %v4508_v14, %v9295_v13  ;;  %v4029_v51 = vsel %vm9050_vm5, %v4027_v8, %v4028_v18 }
 0x190   : > { %v5898_v40 = vadd.f32 %v5897_v55, %v5771_v23  ;;  %v6158_v45 = vadd.f32 %v6157_v19, %v6031_v26  ;;  %v7981_v26 = vadd.f32 %v7838_v35, %v9291_v6  ;;  %v4026_v55 = vsel %vm9050_vm5, %v4024_v3, %v4025_v36  ;;  %v9804_v19 = vld [vmem:[%s8560_s11 + $0x1f8] sm:$0xf]  ;;  %v8435_v36 = vld [vmem:[%s8560_s11 + $0x1f0] sm:$0x1] }
 0x191   : > { %v4037_v4 = vrot.slane %v4035_v32, 4  ;;  %v4045_v39 = vrot.slane %v9804_v19, 5  ;;  %v6525_v6 = vcombine.low %v9761_v2, %v9771_v24  ;;  %v4040_v13 = vrot.slane %v4038_v16, 4  ;;  %v8437_v2 = vld [vmem:[%s8560_s11 + $0x1e0] sm:$0xf] }
 0x192   : > { %v6159_v23 = vadd.f32 %v6158_v45, %v6032_v17  ;;  %7920 = vmatmul.mubr.bf16.gmra.mrb[88].mxu0 %v6643_v15  ;;  %v5131_v29 = vpack.c.bf16 %v7981_v26, %v7979_v43  ;;  %v4041_v15 = vrot.slane %v8435_v36, 5  ;;  %v5130_v3 = vpack.c.bf16 %v7982_v25, %v7980_v1  ;;  %v9815_v45 = vld [vmem:[%s8560_s11 + $0x1fc] sm:$0xf] }
 0x193   : > { %7776 = vmatmul.mubr.bf16.gmra.mrb[88].mxu1 %v6523_v46  ;;  %7923 = vmatprep.mubr.bf16.mxu0 %v6644_v11  ;;  %v4033_v8 = vsel %vm9050_vm5, %v6574_v60, %v4032_v22  ;;  %v4036_v18 = vsel %vm9050_vm5, %v4034_v7, %v4035_v32  ;;  %v6575_v17 = vrot.slane %v3644_v62, 9  ;;  %v4048_v46 = vrot.slane %v9815_v45, 5  ;;  %v9827_v22 = vld [vmem:[%s8560_s11 + $0x200] sm:$0xf] }
 0x194   : > { %7779 = vmatprep.mubr.bf16.mxu1 %v6524_v53  ;;  %7250 = vst [vmem:[%s9751_s23 + $0x18] sm:$0xff] %v5131_v29   ;;  %v6645_v43 = vcombine.low %v4026_v55, %v4029_v51  ;;  %v6526_v24 = vcombine.low %v8437_v2, %v9780_v34  ;;  %7249 = vst [vmem:[%s9751_s23 + $0x10] sm:$0xff] %v5130_v3   ;;  %v5772_v54 = vunpack.c.l.bf16 %v5130_v3  ;;  %v5773_v61 = vunpack.c.h.bf16 %v5130_v3  ;;  %v8439_v55 = vld [vmem:[%s8560_s11 + $0x204] sm:$0x1]  ;;  %v3645_v51 = vld [vmem:[%s8560_s11 + $0x208] sm:$0xe] }
 0x195   : > { %v9824_v60 = vsel %vm9050_vm5, %v4037_v4, %v4038_v16  ;;  %v4047_v7 = vrot.slane %v4045_v39, 4  ;;  %v4051_v32 = vrot.slane %v9827_v22, 5  ;;  %v5774_v53 = vunpack.c.l.bf16 %v5131_v29 }
 0x196   : > { %v6646_v11 = vcombine.low %v4033_v8, %v4036_v18  ;;  %v4042_v1 = vsel %vm9050_vm5, %v4040_v13, %v4041_v15  ;;  %v5899_v35 = vadd.f32 %v5898_v40, %v5772_v54  ;;  %v6033_v34 = vmul.f32 %v5772_v54, %v5772_v54  ;;  %v7841_v25 = vpop.f32.mrb[8].mxu0 }
 0x197   : > { %v9834_v26 = vsel %vm9050_vm5, %v6575_v17, %v4045_v39  ;;  %v4050_v14 = vrot.slane %v4048_v46, 4  ;;  %v4054_v16 = vrot.slane %v8439_v55, 5  ;;  %v5775_v62 = vunpack.c.h.bf16 %v5131_v29  ;;  %v4521_v18 = vpop.f32.mrb[9].mxu0  ;;  %v9843_v29 = vld [vmem:[%s8560_s11 + $0x20c] sm:$0xf] }
 0x198   : > { %v5900_v4 = vadd.f32 %v5899_v35, %v5773_v61  ;;  %v6034_v36 = vmul.f32 %v5773_v61, %v5773_v61  ;;  %v6160_v3 = vadd.f32 %v6159_v23, %v6033_v34  ;;  %v7983_v8 = vadd.f32 %v7841_v25, %v9308_v33  ;;  %v7842_v17 = vpop.f32.mrb[10].mxu0 }
 0x199   : > { %v4049_v40 = vsel %vm9050_vm5, %v4047_v7, %v4048_v46  ;;  %v4053_v39 = vrot.slane %v4051_v32, 4  ;;  %v6035_v13 = vmul.f32 %v5774_v53, %v5774_v53  ;;  %v7984_v15 = vadd.f32 %v4521_v18, %v9312_v50  ;;  %v9850_v7 = vld [vmem:[%s8560_s11 + $0x210] sm:$0xf]  ;;  %v9880_v18 = vld [vmem:[%s8560_s11 + $0x220] sm:$0xf] }
 0x19a   : > { %7924 = vmatmul.mubr.bf16.gmra.mrb[92].mxu0 %v6645_v43  ;;  %v4058_v2 = vrot.slane %v9843_v29, 5  ;;  %v5901_v23 = vadd.f32 %v5900_v4, %v5774_v53  ;;  %v6161_v54 = vadd.f32 %v6160_v3, %v6034_v36  ;;  %v7985_v33 = vadd.f32 %v7842_v17, %v9317_v58  ;;  %v4524_v43 = vpop.f32.mrb[11].mxu0  ;;  %v8446_v17 = vld [vmem:[%s8560_s11 + $0x218] sm:$0x1] }
 0x19b   : > { %7780 = vmatmul.mubr.bf16.gmra.mrb[92].mxu1 %v6525_v6  ;;  %7927 = vmatprep.mubr.bf16.mxu0 %v6646_v11  ;;  %v6527_v46 = vcombine.low %v9785_v37, %v9792_v31  ;;  %v6576_v61 = vrot.slane %v3645_v51, 9  ;;  %v4061_v50 = vrot.slane %v9850_v7, 5  ;;  %v7986_v6 = vadd.f32 %v4524_v43, %v9321_v41 }
 0x19c   : > { %7783 = vmatprep.mubr.bf16.mxu1 %v6526_v24  ;;  %v6036_v11 = vmul.f32 %v5775_v62, %v5775_v62  ;;  %v5902_v53 = vadd.f32 %v5901_v23, %v5775_v62  ;;  %v6162_v35 = vadd.f32 %v6161_v54, %v6035_v13  ;;  %v5133_v58 = vpack.c.bf16 %v7985_v33, %v7983_v8  ;;  %v9865_v62 = vld [vmem:[%s8560_s11 + $0x214] sm:$0xf] }
 0x19d   : > { %v6647_v24 = vcombine.low %v9824_v60, %v4042_v1  ;;  %v6648_v34 = vcombine.low %v9834_v26, %v4049_v40  ;;  %v9858_v37 = vsel %vm9050_vm5, %v4050_v14, %v4051_v32  ;;  %v5132_v31 = vpack.c.bf16 %v7986_v6, %v7984_v15  ;;  %v8443_v60 = vld [vmem:[%s8560_s11 + $0x1f4] sm:$0xf]  ;;  %v3646_v26 = vld [vmem:[%s8560_s11 + $0x21c] sm:$0xe] }
 0x19e   : > { %v9862_v55 = vsel %vm9050_vm5, %v4053_v39, %v4054_v16  ;;  %v4060_v41 = vrot.slane %v4058_v2, 4  ;;  %v4064_v25 = vrot.slane %v9865_v62, 5  ;;  %v6163_v51 = vadd.f32 %v6162_v35, %v6036_v11  ;;  %7252 = vst [vmem:[%s9751_s23 + $0x28] sm:$0xff] %v5133_v58   ;;  %v8444_v16 = vld [vmem:[%s8560_s11 + $0x208] sm:$0xf] }
 0x19f   : > { %v6528_v1 = vcombine.low %v8443_v60, %v9804_v19  ;;  %v6529_v32 = vcombine.low %v9815_v45, %v9827_v22  ;;  %7251 = vst [vmem:[%s9751_s23 + $0x20] sm:$0xff] %v5132_v31   ;;  %v5776_v14 = vunpack.c.l.bf16 %v5132_v31  ;;  %v5777_v4 = vunpack.c.h.bf16 %v5132_v31  ;;  %v9889_v11 = vld [vmem:[%s8560_s11 + $0x224] sm:$0xf] }
 0x1a0   : > { %v6530_v36 = vcombine.low %v8444_v16, %v9843_v29  ;;  %v4059_v3 = vsel %vm9050_vm5, %v6576_v61, %v4058_v2  ;;  %v4063_v8 = vrot.slane %v4061_v50, 4  ;;  %v4071_v40 = vrot.slane %v9880_v18, 5 }
 0x1a1   : > { %v6649_v19 = vcombine.low %v9858_v37, %v9862_v55  ;;  %v5778_v45 = vunpack.c.l.bf16 %v5133_v58  ;;  %v5903_v22 = vadd.f32 %v5902_v53, %v5776_v14  ;;  %v6037_v39 = vmul.f32 %v5776_v14, %v5776_v14  ;;  %v9893_v53 = vld [vmem:[%s8560_s11 + $0x228] sm:$0xf] }
 0x1a2   : > { %7928 = vmatmul.mubr.bf16.gmra.mrb[96].mxu0 %v6647_v24  ;;  %v4062_v13 = vsel %vm9050_vm5, %v4060_v41, %v4061_v50  ;;  %v4066_v15 = vrot.slane %v4064_v25, 4  ;;  %v4067_v29 = vrot.slane %v8446_v17, 5  ;;  %v6577_v2 = vrot.slane %v3646_v26, 9 }
 0x1a3   : > { %7784 = vmatmul.mubr.bf16.gmra.mrb[96].mxu1 %v6527_v46  ;;  %7931 = vmatprep.mubr.bf16.mxu0 %v6648_v34  ;;  %v5779_v23 = vunpack.c.h.bf16 %v5133_v58  ;;  %v5904_v54 = vadd.f32 %v5903_v22, %v5777_v4  ;;  %v6038_v33 = vmul.f32 %v5777_v4, %v5777_v4  ;;  %v6164_v43 = vadd.f32 %v6163_v51, %v6037_v39  ;;  %v7845_v61 = vpop.f32.mrb[12].mxu0  ;;  %v3647_v39 = vld [vmem:[%s8560_s11 + $0x230] sm:$0xe] }
 0x1a4   : > { %7787 = vmatprep.mubr.bf16.mxu1 %v6528_v1  ;;  %v4073_v6 = vrot.slane %v4071_v40, 4  ;;  %v4074_v46 = vrot.slane %v9889_v11, 5  ;;  %v4077_v35 = vrot.slane %v9893_v53, 5  ;;  %v7987_v50 = vadd.f32 %v7845_v61, %v9337_v30  ;;  %v4537_v24 = vpop.f32.mrb[13].mxu0 }
 0x1a5   : > { %v6039_v34 = vmul.f32 %v5778_v45, %v5778_v45  ;;  %v5905_v37 = vadd.f32 %v5904_v54, %v5778_v45  ;;  %v6165_v58 = vadd.f32 %v6164_v43, %v6038_v33  ;;  %v7988_v31 = vadd.f32 %v4537_v24, %v9342_v44  ;;  %v7846_v55 = vpop.f32.mrb[14].mxu0  ;;  %v8449_v45 = vld [vmem:[%s8560_s11 + $0x22c] sm:$0x1]  ;;  %v9925_v33 = vld [vmem:[%s8560_s11 + $0x238] sm:$0xf] }
 0x1a6   : > { %v6650_v41 = vcombine.low %v4059_v3, %v4062_v13  ;;  %v4065_v51 = vsel %vm9050_vm5, %v4063_v8, %v4064_v25  ;;  %v4068_v60 = vsel %vm9050_vm5, %v4066_v15, %v4067_v29  ;;  %v7989_v1 = vadd.f32 %v7846_v55, %v9344_v47  ;;  %v4540_v26 = vpop.f32.mrb[15].mxu0  ;;  %v8451_v29 = vld [vmem:[%s8560_s11 + $0x21c] sm:$0xf] }
 0x1a7   : > { %v6040_v30 = vmul.f32 %v5779_v23, %v5779_v23  ;;  %v5906_v14 = vadd.f32 %v5905_v37, %v5779_v23  ;;  %v6166_v4 = vadd.f32 %v6165_v58, %v6039_v34  ;;  %v7990_v16 = vadd.f32 %v4540_v26, %v9348_v56 }
 0x1a8   : > { %v4072_v44 = vsel %vm9050_vm5, %v6577_v2, %v4071_v40  ;;  %v4076_v3 = vrot.slane %v4074_v46, 4  ;;  %v4080_v25 = vrot.slane %v8449_v45, 5  ;;  %v5135_v8 = vpack.c.bf16 %v7989_v1, %v7987_v50  ;;  %v9913_v40 = vld [vmem:[%s8560_s11 + $0x234] sm:$0xf]  ;;  %v9933_v50 = vld [vmem:[%s8560_s11 + $0x23c] sm:$0xf] }
 0x1a9   : > { %v4075_v47 = vsel %vm9050_vm5, %v4073_v6, %v4074_v46  ;;  %v4079_v22 = vrot.slane %v4077_v35, 4  ;;  %v6167_v13 = vadd.f32 %v6166_v4, %v6040_v30  ;;  %v5134_v15 = vpack.c.bf16 %v7990_v16, %v7988_v31  ;;  %v3648_v31 = vld [vmem:[%s8560_s11 + $0x244] sm:$0xe] }
 0x1aa   : > { %7932 = vmatmul.mubr.bf16.gmra.mrb[100].mxu0 %v6649_v19  ;;  %v6531_v56 = vcombine.low %v9850_v7, %v9865_v62  ;;  %v4084_v17 = vrot.slane %v9913_v40, 5  ;;  %7254 = vst [vmem:[%s9751_s23 + $0x38] sm:$0xff] %v5135_v8   ;;  %v6651_v19 = vcombine.low %v4065_v51, %v4068_v60  ;;  %v6532_v2 = vcombine.low %v8451_v29, %v9880_v18 }
 0x1ab   : > { %7788 = vmatmul.mubr.bf16.gmra.mrb[100].mxu1 %v6529_v32  ;;  %7935 = vmatprep.mubr.bf16.mxu0 %v6650_v41  ;;  %7253 = vst [vmem:[%s9751_s23 + $0x30] sm:$0xff] %v5134_v15   ;;  %v5780_v23 = vunpack.c.l.bf16 %v5134_v15  ;;  %v5781_v32 = vunpack.c.h.bf16 %v5134_v15  ;;  %v6652_v54 = vcombine.low %v4072_v44, %v4075_v47  ;;  %v9922_v7 = vsel %vm9050_vm5, %v4076_v3, %v4077_v35  ;;  %v8454_v35 = vld [vmem:[%s8560_s11 + $0x240] sm:$0x1] }
 0x1ac   : > { %7791 = vmatprep.mubr.bf16.mxu1 %v6530_v36  ;;  %v6578_v62 = vrot.slane %v3647_v39, 9  ;;  %v4087_v36 = vrot.slane %v9925_v33, 5  ;;  %v9930_v43 = vsel %vm9050_vm5, %v4079_v22, %v4080_v25  ;;  %v5782_v18 = vunpack.c.l.bf16 %v5135_v8 }
 0x1ad   : > { %v5907_v61 = vadd.f32 %v5906_v14, %v5780_v23  ;;  %v6041_v6 = vmul.f32 %v5780_v23, %v5780_v23  ;;  %v4086_v46 = vrot.slane %v4084_v17, 4  ;;  %v4090_v24 = vrot.slane %v9933_v50, 5  ;;  %v9942_v14 = vld [vmem:[%s8560_s11 + $0x248] sm:$0xf] }
 0x1ae   : > { %v4093_v34 = vrot.slane %v8454_v35, 5  ;;  %v5783_v37 = vunpack.c.h.bf16 %v5135_v8  ;;  %v7849_v58 = vpop.f32.mrb[16].mxu0  ;;  %v6042_v41 = vmul.f32 %v5781_v32, %v5781_v32  ;;  %v4085_v26 = vsel %vm9050_vm5, %v6578_v62, %v4084_v17 }
 0x1af   : > { %v5908_v55 = vadd.f32 %v5907_v61, %v5781_v32  ;;  %v6168_v51 = vadd.f32 %v6167_v13, %v6041_v6  ;;  %v7991_v60 = vadd.f32 %v7849_v58, %v9362_v28  ;;  %v4553_v1 = vpop.f32.mrb[17].mxu0  ;;  %v4089_v30 = vrot.slane %v4087_v36, 4  ;;  %v8457_v6 = vld [vmem:[%s8560_s11 + $0x230] sm:$0xf]  ;;  %v8459_v58 = vld [vmem:[%s8560_s11 + $0x254] sm:$0x1] }
 0x1b0   : > { %v4097_v4 = vrot.slane %v9942_v14, 5  ;;  %v7992_v16 = vadd.f32 %v4553_v1, %v9365_v9  ;;  %v7850_v44 = vpop.f32.mrb[18].mxu0  ;;  %v6043_v3 = vmul.f32 %v5782_v18, %v5782_v18  ;;  %v4088_v47 = vsel %vm9050_vm5, %v4086_v46, %v4087_v36 }
 0x1b1   : > { %v5909_v45 = vadd.f32 %v5908_v55, %v5782_v18  ;;  %v6169_v25 = vadd.f32 %v6168_v51, %v6042_v41  ;;  %v7993_v8 = vadd.f32 %v7850_v44, %v9369_v42  ;;  %v4556_v28 = vpop.f32.mrb[19].mxu0  ;;  %v4092_v22 = vrot.slane %v4090_v24, 4  ;;  %v9951_v42 = vld [vmem:[%s8560_s11 + $0x24c] sm:$0xf]  ;;  %v3649_v51 = vld [vmem:[%s8560_s11 + $0x258] sm:$0xe] }
 0x1b2   : > { %7936 = vmatmul.mubr.bf16.gmra.mrb[104].mxu0 %v6651_v19  ;;  %v6579_v39 = vrot.slane %v3648_v31, 9  ;;  %v7994_v13 = vadd.f32 %v4556_v28, %v9374_v5  ;;  %v6044_v9 = vmul.f32 %v5783_v37, %v5783_v37  ;;  %v4099_v29 = vrot.slane %v4097_v4, 4 }
 0x1b3   : > { %7792 = vmatmul.mubr.bf16.gmra.mrb[104].mxu1 %v6531_v56  ;;  %7939 = vmatprep.mubr.bf16.mxu0 %v6652_v54  ;;  %v5910_v15 = vadd.f32 %v5909_v45, %v5783_v37  ;;  %v6170_v17 = vadd.f32 %v6169_v25, %v6043_v3  ;;  %v5137_v19 = vpack.c.bf16 %v7993_v8, %v7991_v60  ;;  %v4100_v56 = vrot.slane %v9951_v42, 5 }
 0x1b4   : > { %7795 = vmatprep.mubr.bf16.mxu1 %v6532_v2  ;;  %v5136_v23 = vpack.c.bf16 %v7994_v13, %v7992_v16  ;;  %v6533_v32 = vcombine.low %v9889_v11, %v9893_v53  ;;  %v6653_v5 = vcombine.low %v9922_v7, %v9930_v43  ;;  %v9960_v2 = vsel %vm9050_vm5, %v4089_v30, %v4090_v24  ;;  %v9973_v43 = vld [vmem:[%s8560_s11 + $0x250] sm:$0xf] }
 0x1b5   : > { %v6171_v54 = vadd.f32 %v6170_v17, %v6044_v9  ;;  %7256 = vst [vmem:[%s9751_s23 + $0x48] sm:$0xff] %v5137_v19   ;;  %v6654_v62 = vcombine.low %v4085_v26, %v4088_v47  ;;  %v4094_v36 = vsel %vm9050_vm5, %v4092_v22, %v4093_v34  ;;  %v6534_v11 = vcombine.low %v8457_v6, %v9913_v40 }
 0x1b6   : > { %7255 = vst [vmem:[%s9751_s23 + $0x40] sm:$0xff] %v5136_v23   ;;  %v5784_v18 = vunpack.c.l.bf16 %v5136_v23  ;;  %v5785_v61 = vunpack.c.h.bf16 %v5136_v23  ;;  %v6535_v53 = vcombine.low %v9925_v33, %v9933_v50  ;;  %v4098_v7 = vsel %vm9050_vm5, %v6579_v39, %v4097_v4  ;;  %v9981_v33 = vld [vmem:[%s8560_s11 + $0x25c] sm:$0xf]  ;;  %v8462_v23 = vld [vmem:[%s8560_s11 + $0x244] sm:$0xf] }
 0x1b7   : > { %v4103_v46 = vrot.slane %v9973_v43, 5  ;;  %v4101_v24 = vsel %vm9050_vm5, %v4099_v29, %v4100_v56  ;;  %v5786_v35 = vunpack.c.l.bf16 %v5137_v19  ;;  %v6655_v40 = vcombine.low %v9960_v2, %v4094_v36 }
 0x1b8   : > { %v5911_v34 = vadd.f32 %v5910_v15, %v5784_v18  ;;  %v6045_v37 = vmul.f32 %v5784_v18, %v5784_v18  ;;  %v4106_v31 = vrot.slane %v8459_v58, 5  ;;  %v4110_v50 = vrot.slane %v9981_v33, 5 }
 0x1b9   : > { %v6046_v55 = vmul.f32 %v5785_v61, %v5785_v61  ;;  %v7853_v41 = vpop.f32.mrb[20].mxu0  ;;  %v5787_v60 = vunpack.c.h.bf16 %v5137_v19  ;;  %v6656_v16 = vcombine.low %v4098_v7, %v4101_v24  ;;  %v4102_v44 = vrot.slane %v4100_v56, 4 }
 0x1ba   : > { %7940 = vmatmul.mubr.bf16.gmra.mrb[108].mxu0 %v6653_v5  ;;  %v5912_v1 = vadd.f32 %v5911_v34, %v5785_v61  ;;  %v6172_v26 = vadd.f32 %v6171_v54, %v6045_v37  ;;  %v7995_v30 = vadd.f32 %v7853_v41, %v9386_v20  ;;  %v4569_v4 = vpop.f32.mrb[21].mxu0  ;;  %v4105_v3 = vrot.slane %v4103_v46, 4  ;;  %v9989_v20 = vld [vmem:[%s8560_s11 + $0x260] sm:$0xf]  ;;  %v10000_v54 = vld [vmem:[%s8560_s11 + $0x264] sm:$0xf] }
 0x1bb   : > { %7796 = vmatmul.mubr.bf16.gmra.mrb[108].mxu1 %v6533_v32  ;;  %7943 = vmatprep.mubr.bf16.mxu0 %v6654_v62  ;;  %v7996_v45 = vadd.f32 %v4569_v4, %v9391_v27  ;;  %v7854_v25 = vpop.f32.mrb[22].mxu0  ;;  %v6047_v8 = vmul.f32 %v5786_v35, %v5786_v35  ;;  %v6580_v13 = vrot.slane %v3649_v51, 9  ;;  %v4112_v9 = vrot.slane %v4110_v50, 4  ;;  %v3650_v34 = vld [vmem:[%s8560_s11 + $0x26c] sm:$0xe] }
 0x1bc   : > { %7799 = vmatprep.mubr.bf16.mxu1 %v6534_v11  ;;  %v5913_v28 = vadd.f32 %v5912_v1, %v5786_v35  ;;  %v6173_v47 = vadd.f32 %v6172_v26, %v6046_v55  ;;  %v7997_v22 = vadd.f32 %v7854_v25, %v9395_v38  ;;  %v4572_v39 = vpop.f32.mrb[23].mxu0  ;;  %v4113_v15 = vrot.slane %v9989_v20, 5  ;;  %v8464_v11 = vld [vmem:[%s8560_s11 + $0x258] sm:$0xf]  ;;  %v8466_v55 = vld [vmem:[%s8560_s11 + $0x268] sm:$0x1] }
 0x1bd   : > { %v7998_v17 = vadd.f32 %v4572_v39, %v9401_v49  ;;  %v6048_v19 = vmul.f32 %v5787_v60, %v5787_v60  ;;  %v6536_v32 = vcombine.low %v8462_v23, %v9942_v14  ;;  %v4104_v5 = vsel %vm9050_vm5, %v4102_v44, %v4103_v46  ;;  %v10014_v46 = vld [vmem:[%s8560_s11 + $0x270] sm:$0xf] }
 0x1be   : > { %v5914_v27 = vadd.f32 %v5913_v28, %v5787_v60  ;;  %v6174_v29 = vadd.f32 %v6173_v47, %v6047_v8  ;;  %v5139_v56 = vpack.c.bf16 %v7997_v22, %v7995_v30  ;;  %v4107_v2 = vsel %vm9050_vm5, %v4105_v3, %v4106_v31  ;;  %v10020_v30 = vld [vmem:[%s8560_s11 + $0x274] sm:$0xf]  ;;  %v10026_v47 = vld [vmem:[%s8560_s11 + $0x278] sm:$0xf] }
 0x1bf   : > { %v5138_v38 = vpack.c.bf16 %v7998_v17, %v7996_v45  ;;  %v4116_v49 = vrot.slane %v10000_v54, 5  ;;  %v4111_v14 = vsel %vm9050_vm5, %v6580_v13, %v4110_v50  ;;  %v4114_v36 = vsel %vm9050_vm5, %v4112_v9, %v4113_v15 }
 0x1c0   : > { %v6175_v62 = vadd.f32 %v6174_v29, %v6048_v19  ;;  %7258 = vst [vmem:[%s9751_s23 + $0x58] sm:$0xff] %v5139_v56   ;;  %v6537_v6 = vcombine.low %v9951_v42, %v9973_v43  ;;  %v6538_v7 = vcombine.low %v8464_v11, %v9981_v33  ;;  %v4123_v24 = vrot.slane %v10014_v46, 5 }
 0x1c1   : > { %7257 = vst [vmem:[%s9751_s23 + $0x50] sm:$0xff] %v5138_v38   ;;  %v5788_v18 = vunpack.c.l.bf16 %v5138_v38  ;;  %v5789_v61 = vunpack.c.h.bf16 %v5138_v38  ;;  %v6657_v35 = vcombine.low %v4104_v5, %v4107_v2  ;;  %v5790_v37 = vunpack.c.l.bf16 %v5139_v56  ;;  %v8469_v38 = vld [vmem:[%s8560_s11 + $0x27c] sm:$0x1] }
 0x1c2   : > { %7944 = vmatmul.mubr.bf16.gmra.mrb[112].mxu0 %v6655_v40  ;;  %v4115_v31 = vrot.slane %v4113_v15, 4  ;;  %v4118_v50 = vrot.slane %v4116_v49, 4  ;;  %v4119_v41 = vrot.slane %v8466_v55, 5  ;;  %v5791_v42 = vunpack.c.h.bf16 %v5139_v56 }
 0x1c3   : > { %7800 = vmatmul.mubr.bf16.gmra.mrb[112].mxu1 %v6535_v53  ;;  %7947 = vmatprep.mubr.bf16.mxu0 %v6656_v16  ;;  %v5915_v40 = vadd.f32 %v5914_v27, %v5788_v18  ;;  %v6049_v58 = vmul.f32 %v5788_v18, %v5788_v18  ;;  %v6658_v53 = vcombine.low %v4111_v14, %v4114_v36  ;;  %v6581_v1 = vrot.slane %v3650_v34, 9  ;;  %v8470_v18 = vld [vmem:[%s8560_s11 + $0x26c] sm:$0xf]  ;;  %s6389_s11 = sshll.u32 %s10224_s13, 1 }
 0x1c4   : > { %7803 = vmatprep.mubr.bf16.mxu1 %v6536_v32  ;;  %v6050_v33 = vmul.f32 %v5789_v61, %v5789_v61  ;;  %v7857_v60 = vpop.f32.mrb[24].mxu0  ;;  %v4125_v26 = vrot.slane %v4123_v24, 4  ;;  %v4126_v4 = vrot.slane %v10020_v30, 5  ;;  %v6051_v3 = vmul.f32 %v5790_v37, %v5790_v37  ;;  %s187_s26 = scalar_lea.vmem %s10149_s3, %s6389_s11 }
 0x1c5   : > { %v5916_v43 = vadd.f32 %v5915_v40, %v5789_v61  ;;  %v6176_v51 = vadd.f32 %v6175_v62, %v6049_v58  ;;  %v7999_v16 = vadd.f32 %v7857_v60, %v9416_v52  ;;  %v4585_v44 = vpop.f32.mrb[25].mxu0  ;;  %v4129_v22 = vrot.slane %v10026_v47, 5 }
 0x1c6   : > { %v8000_v8 = vadd.f32 %v4585_v44, %v9420_v48  ;;  %v7858_v28 = vpop.f32.mrb[26].mxu0  ;;  %v6052_v9 = vmul.f32 %v5791_v42, %v5791_v42  ;;  %v4117_v48 = vsel %vm9050_vm5, %v4115_v31, %v4116_v49  ;;  %v4120_v19 = vsel %vm9050_vm5, %v4118_v50, %v4119_v41 }
 0x1c7   : > { %v5917_v45 = vadd.f32 %v5916_v43, %v5790_v37  ;;  %v6177_v25 = vadd.f32 %v6176_v51, %v6050_v33  ;;  %v8001_v39 = vadd.f32 %v7858_v28, %v9422_v57  ;;  %v4588_v13 = vpop.f32.mrb[27].mxu0  ;;  %v4124_v57 = vsel %vm9050_vm5, %v6581_v1, %v4123_v24 }
 0x1c8   : > { %v8002_v52 = vadd.f32 %v4588_v13, %v9426_v0  ;;  %v4127_v29 = vsel %vm9050_vm5, %v4125_v26, %v4126_v4  ;;  %v4128_v23 = vrot.slane %v4126_v4, 4  ;;  %v4131_v32 = vrot.slane %v4129_v22, 4 }
 0x1c9   : > { %v5918_v15 = vadd.f32 %v5917_v45, %v5791_v42  ;;  %v6178_v17 = vadd.f32 %v6177_v25, %v6051_v3  ;;  %v5141_v27 = vpack.c.bf16 %v8001_v39, %v7999_v16  ;;  %v4132_v5 = vrot.slane %v8469_v38, 5  ;;  %v10187_v39 = vld [vmem:[#allocation2_spill] sm:$0xff] }
 0x1ca   : > { %7948 = vmatmul.mubr.bf16.gmra.mrb[116].mxu0 %v6657_v35  ;;  %v5140_v0 = vpack.c.bf16 %v8002_v52, %v8000_v8  ;;  %v6659_v2 = vcombine.low %v4117_v48, %v4120_v19  ;;  %v6539_v14 = vcombine.low %v9989_v20, %v10000_v54  ;;  %v6660_v36 = vcombine.low %v4124_v57, %v4127_v29  ;;  %v10189_v19 = vld [vmem:[#allocation4_spill] sm:$0xff] }
 0x1cb   : > { %7804 = vmatmul.mubr.bf16.gmra.mrb[116].mxu1 %v6537_v6  ;;  %7951 = vmatprep.mubr.bf16.mxu0 %v6658_v53  ;;  %v6179_v56 = vadd.f32 %v6178_v17, %v6052_v9  ;;  %7260 = vst [vmem:[%s9751_s23 + $0x68] sm:$0xff] %v5141_v27   ;;  %v6540_v61 = vcombine.low %v8470_v18, %v10014_v46  ;;  %v5794_v6 = vunpack.c.l.bf16 %v5141_v27  ;;  %v5795_v34 = vunpack.c.h.bf16 %v5141_v27  ;;  %v10188_v17 = vld [vmem:[#allocation3_spill] sm:$0xff] }
 0x1cc   : > { %7807 = vmatprep.mubr.bf16.mxu1 %v6538_v7  ;;  %7259 = vst [vmem:[%s9751_s23 + $0x60] sm:$0xff] %v5140_v0   ;;  %v5792_v49 = vunpack.c.l.bf16 %v5140_v0  ;;  %v5793_v62 = vunpack.c.h.bf16 %v5140_v0  ;;  %v4130_v24 = vsel %vm9050_vm5, %v4128_v23, %v4129_v22  ;;  %v4133_v35 = vsel %vm9050_vm5, %v4131_v32, %v4132_v5  ;;  %v10190_v23 = vld [vmem:[#allocation5_spill] sm:$0xff] }
 0x1cd   : > { %v6055_v50 = vmul.f32 %v5794_v6, %v5794_v6  ;;  %v6661_v43 = vcombine.low %v4130_v24, %v4133_v35  ;;  %v6056_v51 = vmul.f32 %v5795_v34, %v5795_v34  ;;  %v10191_v35 = vld [vmem:[#allocation6_spill] sm:$0xff] }
 0x1ce   : > { %v5919_v11 = vadd.f32 %v5918_v15, %v5792_v49  ;;  %v6053_v7 = vmul.f32 %v5792_v49, %v5792_v49  ;;  %v6054_v58 = vmul.f32 %v5793_v62, %v5793_v62 }
 0x1d0   : > { %v7861_v37 = vpop.f32.mrb[28].mxu0  ;;  %v5920_v40 = vadd.f32 %v5919_v11, %v5793_v62  ;;  %v6180_v53 = vadd.f32 %v6179_v56, %v6053_v7 }
 0x1d1   : > { %v8003_v20 = vadd.f32 %v7861_v37, %v9441_v59  ;;  %v4601_v54 = vpop.f32.mrb[29].mxu0 }
 0x1d2   : > { %7952 = vmatmul.mubr.bf16.gmra.mrb[120].mxu0 %v6659_v2  ;;  %v8004_v46 = vadd.f32 %v4601_v54, %v9446_v21  ;;  %v7862_v31 = vpop.f32.mrb[30].mxu0  ;;  %v5921_v12 = vadd.f32 %v5920_v40, %v5794_v6  ;;  %v6181_v55 = vadd.f32 %v6180_v53, %v6054_v58  ;;  %v6541_v21 = vcombine.low %v10020_v30, %v10026_v47  ;;  %v10192_v40 = vld [vmem:[#allocation7_spill] sm:$0xff] }
 0x1d3   : > { %7808 = vmatmul.mubr.bf16.gmra.mrb[120].mxu1 %v6539_v14  ;;  %7955 = vmatprep.mubr.bf16.mxu0 %v6660_v36  ;;  %v8005_v41 = vadd.f32 %v7862_v31, %v9453_v63  ;;  %v4604_v42 = vpop.f32.mrb[31].mxu0  ;;  %v10193_v31 = vld [vmem:[#allocation8_spill] sm:$0xff] }
 0x1d4   : > { %7811 = vmatprep.mubr.bf16.mxu1 %v6540_v61  ;;  %v8006_v33 = vadd.f32 %v4604_v42, %v9456_v10  ;;  %v5922_v59 = vadd.f32 %v5921_v12, %v5795_v34  ;;  %v6182_v60 = vadd.f32 %v6181_v55, %v6055_v50  ;;  %v10194_v55 = vld [vmem:[#allocation9_spill] sm:$0xff] }
 0x1d5   : > { %v5143_v1 = vpack.c.bf16 %v8005_v41, %v8003_v20 }
 0x1d6   : > { %v5142_v26 = vpack.c.bf16 %v8006_v33, %v8004_v46  ;;  %v6183_v4 = vadd.f32 %v6182_v60, %v6056_v51 }
 0x1d7   : > { %7262 = vst [vmem:[%s9751_s23 + $0x78] sm:$0xff] %v5143_v1   ;;  %v5798_v63 = vunpack.c.l.bf16 %v5143_v1  ;;  %v5799_v25 = vunpack.c.h.bf16 %v5143_v1 }
 0x1d8   : > { %7261 = vst [vmem:[%s9751_s23 + $0x70] sm:$0xff] %v5142_v26   ;;  %v5796_v16 = vunpack.c.l.bf16 %v5142_v26  ;;  %v5797_v44 = vunpack.c.h.bf16 %v5142_v26 }
 0x1d9   : > { %v6059_v47 = vmul.f32 %v5798_v63, %v5798_v63  ;;  %v6060_v29 = vmul.f32 %v5799_v25, %v5799_v25 }
 0x1da   : > { %7956 = vmatmul.mubr.bf16.gmra.mrb[124].mxu0 %v6661_v43  ;;  %v5923_v3 = vadd.f32 %v5922_v59, %v5796_v16  ;;  %v6057_v45 = vmul.f32 %v5796_v16, %v5796_v16  ;;  %v6058_v8 = vmul.f32 %v5797_v44, %v5797_v44 }
 0x1db   : > { %7812 = vmatmul.mubr.bf16.gmra.mrb[124].mxu1 %v6541_v21  ;;  %v7865_v22 = vpop.f32.mrb[32].mxu0 }
 0x1dc   : > { %v5924_v10 = vadd.f32 %v5923_v3, %v5797_v44  ;;  %v6184_v28 = vadd.f32 %v6183_v4, %v6057_v45  ;;  %v8007_v13 = vadd.f32 %v7865_v22, %v10187_v39  ;;  %v4617_v30 = vpop.f32.mrb[33].mxu0 }
 0x1dd   : > { %v8008_v52 = vadd.f32 %v4617_v30, %v10188_v17  ;;  %v7866_v48 = vpop.f32.mrb[34].mxu0  ;;  %v10196_v30 = vld [vmem:[#allocation11_spill] sm:$0xff] }
 0x1de   : > { %v5925_v9 = vadd.f32 %v5924_v10, %v5798_v63  ;;  %v6185_v15 = vadd.f32 %v6184_v28, %v6058_v8  ;;  %v8009_v27 = vadd.f32 %v7866_v48, %v10189_v19  ;;  %v4620_v57 = vpop.f32.mrb[35].mxu0  ;;  %v10195_v10 = vld [vmem:[#allocation10_spill] sm:$0xff] }
 0x1df   : > { %v8010_v32 = vadd.f32 %v4620_v57, %v10190_v23  ;;  %v10198_v57 = vld [vmem:[#allocation13_spill] sm:$0xff] }
 0x1e0   : > { %v5926_v56 = vadd.f32 %v5925_v9, %v5799_v25  ;;  %v6186_v0 = vadd.f32 %v6185_v15, %v6059_v47  ;;  %v5145_v38 = vpack.c.bf16 %v8009_v27, %v8007_v13  ;;  %v10197_v15 = vld [vmem:[#allocation12_spill] sm:$0xff] }
 0x1e1   : > { %v5144_v2 = vpack.c.bf16 %v8010_v32, %v8008_v52 }
 0x1e2   : > { %v6187_v5 = vadd.f32 %v6186_v0, %v6060_v29  ;;  %7264 = vst [vmem:[%s9751_s23 + $0x88] sm:$0xff] %v5145_v38   ;;  %v5802_v14 = vunpack.c.l.bf16 %v5145_v38  ;;  %v5803_v61 = vunpack.c.h.bf16 %v5145_v38 }
 0x1e3   : > { %7263 = vst [vmem:[%s9751_s23 + $0x80] sm:$0xff] %v5144_v2   ;;  %v5800_v49 = vunpack.c.l.bf16 %v5144_v2  ;;  %v5801_v62 = vunpack.c.h.bf16 %v5144_v2 }
 0x1e4   : > { %v6063_v20 = vmul.f32 %v5802_v14, %v5802_v14  ;;  %v6064_v42 = vmul.f32 %v5803_v61, %v5803_v61 }
 0x1e5   : > { %v5927_v36 = vadd.f32 %v5926_v56, %v5800_v49  ;;  %v6061_v18 = vmul.f32 %v5800_v49, %v5800_v49  ;;  %v6062_v7 = vmul.f32 %v5801_v62, %v5801_v62 }
 0x1e7   : > { %v7869_v6 = vpop.f32.mrb[36].mxu0  ;;  %v5928_v11 = vadd.f32 %v5927_v36, %v5801_v62  ;;  %v6188_v24 = vadd.f32 %v6187_v5, %v6061_v18 }
 0x1e8   : > { %v8011_v34 = vadd.f32 %v7869_v6, %v10191_v35  ;;  %v4633_v37 = vpop.f32.mrb[37].mxu0  ;;  %v10199_v6 = vld [vmem:[#allocation14_spill] sm:$0xff] }
 0x1e9   : > { %v8012_v58 = vadd.f32 %v4633_v37, %v10192_v40  ;;  %v7870_v53 = vpop.f32.mrb[38].mxu0  ;;  %v5929_v54 = vadd.f32 %v5928_v11, %v5802_v14  ;;  %v6189_v46 = vadd.f32 %v6188_v24, %v6062_v7  ;;  %v10200_v24 = vld [vmem:[#allocation15_spill] sm:$0xff] }
 0x1ea   : > { %v8013_v50 = vadd.f32 %v7870_v53, %v10193_v31  ;;  %v4636_v12 = vpop.f32.mrb[39].mxu0  ;;  %v10201_v53 = vld [vmem:[#allocation16_spill] sm:$0xff] }
 0x1eb   : > { %v8014_v41 = vadd.f32 %v4636_v12, %v10194_v55  ;;  %v5930_v43 = vadd.f32 %v5929_v54, %v5803_v61  ;;  %v6190_v33 = vadd.f32 %v6189_v46, %v6063_v20  ;;  %v10202_v46 = vld [vmem:[#allocation17_spill] sm:$0xff] }
 0x1ec   : > { %v5147_v51 = vpack.c.bf16 %v8013_v50, %v8011_v34 }
 0x1ed   : > { %v5146_v59 = vpack.c.bf16 %v8014_v41, %v8012_v58  ;;  %v6191_v60 = vadd.f32 %v6190_v33, %v6064_v42 }
 0x1ee   : > { %7266 = vst [vmem:[%s9751_s23 + $0x98] sm:$0xff] %v5147_v51   ;;  %v5806_v26 = vunpack.c.l.bf16 %v5147_v51  ;;  %v5807_v44 = vunpack.c.h.bf16 %v5147_v51 }
 0x1ef   : > { %7265 = vst [vmem:[%s9751_s23 + $0x90] sm:$0xff] %v5146_v59   ;;  %v5804_v1 = vunpack.c.l.bf16 %v5146_v59  ;;  %v5805_v21 = vunpack.c.h.bf16 %v5146_v59 }
 0x1f0   : > { %v6067_v22 = vmul.f32 %v5806_v26, %v5806_v26  ;;  %v6068_v48 = vmul.f32 %v5807_v44, %v5807_v44 }
 0x1f1   : > { %v5931_v4 = vadd.f32 %v5930_v43, %v5804_v1  ;;  %v6065_v16 = vmul.f32 %v5804_v1, %v5804_v1  ;;  %v6066_v3 = vmul.f32 %v5805_v21, %v5805_v21 }
 0x1f2   : > { %v7873_v25 = vpop.f32.mrb[40].mxu0 }
 0x1f3   : > { %v5932_v63 = vadd.f32 %v5931_v4, %v5805_v21  ;;  %v6192_v45 = vadd.f32 %v6191_v60, %v6065_v16  ;;  %v8015_v8 = vadd.f32 %v7873_v25, %v10195_v10  ;;  %v4649_v28 = vpop.f32.mrb[41].mxu0 }
 0x1f4   : > { %v8016_v47 = vadd.f32 %v4649_v28, %v10196_v30  ;;  %v7874_v9 = vpop.f32.mrb[42].mxu0  ;;  %v10204_v28 = vld [vmem:[#allocation19_spill] sm:$0xff] }
 0x1f5   : > { %v5933_v39 = vadd.f32 %v5932_v63, %v5806_v26  ;;  %v6193_v13 = vadd.f32 %v6192_v45, %v6066_v3  ;;  %v8017_v17 = vadd.f32 %v7874_v9, %v10197_v15  ;;  %v4652_v52 = vpop.f32.mrb[43].mxu0  ;;  %v10203_v63 = vld [vmem:[#allocation18_spill] sm:$0xff] }
 0x1f6   : > { %v8018_v29 = vadd.f32 %v4652_v52, %v10198_v57  ;;  %v10206_v52 = vld [vmem:[#allocation21_spill] sm:$0xff] }
 0x1f7   : > { %v5934_v19 = vadd.f32 %v5933_v39, %v5807_v44  ;;  %v6194_v27 = vadd.f32 %v6193_v13, %v6067_v22  ;;  %v5149_v56 = vpack.c.bf16 %v8017_v17, %v8015_v8  ;;  %v10205_v13 = vld [vmem:[#allocation20_spill] sm:$0xff] }
 0x1f8   : > { %v5148_v23 = vpack.c.bf16 %v8018_v29, %v8016_v47 }
 0x1f9   : > { %v6195_v0 = vadd.f32 %v6194_v27, %v6068_v48  ;;  %7268 = vst [vmem:[%s9751_s23 + $0xa8] sm:$0xff] %v5149_v56   ;;  %v5810_v5 = vunpack.c.l.bf16 %v5149_v56  ;;  %v5811_v62 = vunpack.c.h.bf16 %v5149_v56 }
 0x1fa   : > { %7267 = vst [vmem:[%s9751_s23 + $0xa0] sm:$0xff] %v5148_v23   ;;  %v5808_v32 = vunpack.c.l.bf16 %v5148_v23  ;;  %v5809_v38 = vunpack.c.h.bf16 %v5148_v23 }
 0x1fb   : > { %v6071_v37 = vmul.f32 %v5810_v5, %v5810_v5  ;;  %v6072_v50 = vmul.f32 %v5811_v62, %v5811_v62 }
 0x1fc   : > { %v5935_v2 = vadd.f32 %v5934_v19, %v5808_v32  ;;  %v6069_v49 = vmul.f32 %v5808_v32, %v5808_v32  ;;  %v6070_v18 = vmul.f32 %v5809_v38, %v5809_v38 }
 0x1fe   : > { %v7877_v14 = vpop.f32.mrb[44].mxu0  ;;  %v5936_v36 = vadd.f32 %v5935_v2, %v5809_v38  ;;  %v6196_v61 = vadd.f32 %v6195_v0, %v6069_v49 }
 0x1ff   : > { %v8019_v11 = vadd.f32 %v7877_v14, %v10199_v6  ;;  %v4665_v7 = vpop.f32.mrb[45].mxu0  ;;  %v10207_v14 = vld [vmem:[#allocation22_spill] sm:$0xff] }
 0x200   : > { %v8020_v35 = vadd.f32 %v4665_v7, %v10200_v24  ;;  %v7878_v34 = vpop.f32.mrb[46].mxu0  ;;  %v5937_v40 = vadd.f32 %v5936_v36, %v5810_v5  ;;  %v6197_v58 = vadd.f32 %v6196_v61, %v6070_v18  ;;  %v10208_v61 = vld [vmem:[#allocation23_spill] sm:$0xff] }
 0x201   : > { %v8021_v20 = vadd.f32 %v7878_v34, %v10201_v53  ;;  %v4668_v54 = vpop.f32.mrb[47].mxu0  ;;  %v10209_v34 = vld [vmem:[#allocation24_spill] sm:$0xff] }
 0x202   : > { %v8022_v31 = vadd.f32 %v4668_v54, %v10202_v46  ;;  %v5938_v12 = vadd.f32 %v5937_v40, %v5811_v62  ;;  %v6198_v55 = vadd.f32 %v6197_v58, %v6071_v37  ;;  %v10210_v58 = vld [vmem:[#allocation25_spill] sm:$0xff] }
 0x203   : > { %v5151_v41 = vpack.c.bf16 %v8021_v20, %v8019_v11 }
 0x204   : > { %v5150_v42 = vpack.c.bf16 %v8022_v31, %v8020_v35  ;;  %v6199_v43 = vadd.f32 %v6198_v55, %v6072_v50 }
 0x205   : > { %7270 = vst [vmem:[%s9751_s23 + $0xb8] sm:$0xff] %v5151_v41   ;;  %v5814_v59 = vunpack.c.l.bf16 %v5151_v41  ;;  %v5815_v21 = vunpack.c.h.bf16 %v5151_v41 }
 0x206   : > { %7269 = vst [vmem:[%s9751_s23 + $0xb0] sm:$0xff] %v5150_v42   ;;  %v5812_v33 = vunpack.c.l.bf16 %v5150_v42  ;;  %v5813_v51 = vunpack.c.h.bf16 %v5150_v42 }
 0x207   : > { %v6075_v25 = vmul.f32 %v5814_v59, %v5814_v59  ;;  %v6076_v9 = vmul.f32 %v5815_v21, %v5815_v21 }
 0x208   : > { %v5939_v60 = vadd.f32 %v5938_v12, %v5812_v33  ;;  %v6073_v1 = vmul.f32 %v5812_v33, %v5812_v33  ;;  %v6074_v4 = vmul.f32 %v5813_v51, %v5813_v51 }
 0x209   : > { %v7881_v44 = vpop.f32.mrb[48].mxu0 }
 0x20a   : > { %v5940_v26 = vadd.f32 %v5939_v60, %v5813_v51  ;;  %v6200_v16 = vadd.f32 %v6199_v43, %v6073_v1  ;;  %v8023_v3 = vadd.f32 %v7881_v44, %v10203_v63  ;;  %v4681_v45 = vpop.f32.mrb[49].mxu0 }
 0x20b   : > { %v8024_v22 = vadd.f32 %v4681_v45, %v10204_v28  ;;  %v7882_v39 = vpop.f32.mrb[50].mxu0  ;;  %v10212_v45 = vld [vmem:[#allocation27_spill] sm:$0xff] }
 0x20c   : > { %v5941_v10 = vadd.f32 %v5940_v26, %v5814_v59  ;;  %v6201_v8 = vadd.f32 %v6200_v16, %v6074_v4  ;;  %v8025_v30 = vadd.f32 %v7882_v39, %v10205_v13  ;;  %v4684_v47 = vpop.f32.mrb[51].mxu0  ;;  %v10211_v26 = vld [vmem:[#allocation26_spill] sm:$0xff] }
 0x20d   : > { %v8026_v48 = vadd.f32 %v4684_v47, %v10206_v52  ;;  %v10214_v47 = vld [vmem:[#allocation29_spill] sm:$0xff] }
 0x20e   : > { %v5942_v15 = vadd.f32 %v5941_v10, %v5815_v21  ;;  %v6202_v17 = vadd.f32 %v6201_v8, %v6075_v25  ;;  %v5153_v19 = vpack.c.bf16 %v8025_v30, %v8023_v3  ;;  %v10213_v8 = vld [vmem:[#allocation28_spill] sm:$0xff] }
 0x20f   : > { %v5152_v57 = vpack.c.bf16 %v8026_v48, %v8024_v22 }
 0x210   : > { %v6203_v27 = vadd.f32 %v6202_v17, %v6076_v9  ;;  %7272 = vst [vmem:[%s9751_s23 + $0xc8] sm:$0xff] %v5153_v19   ;;  %v5818_v0 = vunpack.c.l.bf16 %v5153_v19  ;;  %v5819_v38 = vunpack.c.h.bf16 %v5153_v19 }
 0x211   : > { %7271 = vst [vmem:[%s9751_s23 + $0xc0] sm:$0xff] %v5152_v57   ;;  %v5816_v29 = vunpack.c.l.bf16 %v5152_v57  ;;  %v5817_v56 = vunpack.c.h.bf16 %v5152_v57 }
 0x212   : > { %v6079_v7 = vmul.f32 %v5818_v0, %v5818_v0  ;;  %v6080_v20 = vmul.f32 %v5819_v38, %v5819_v38 }
 0x213   : > { %v5943_v23 = vadd.f32 %v5942_v15, %v5816_v29  ;;  %v6077_v32 = vmul.f32 %v5816_v29, %v5816_v29  ;;  %v6078_v49 = vmul.f32 %v5817_v56, %v5817_v56 }
 0x215   : > { %v7885_v5 = vpop.f32.mrb[52].mxu0  ;;  %v5944_v2 = vadd.f32 %v5943_v23, %v5817_v56  ;;  %v6204_v62 = vadd.f32 %v6203_v27, %v6077_v32 }
 0x216   : > { %v8027_v36 = vadd.f32 %v7885_v5, %v10207_v14  ;;  %v4697_v18 = vpop.f32.mrb[53].mxu0  ;;  %v10215_v5 = vld [vmem:[#allocation30_spill] sm:$0xff] }
 0x217   : > { %v8028_v6 = vadd.f32 %v4697_v18, %v10208_v61  ;;  %v7886_v11 = vpop.f32.mrb[54].mxu0  ;;  %v5945_v24 = vadd.f32 %v5944_v2, %v5818_v0  ;;  %v6205_v35 = vadd.f32 %v6204_v62, %v6078_v49  ;;  %v10216_v62 = vld [vmem:[#allocation31_spill] sm:$0xff] }
 0x218   : > { %v8029_v37 = vadd.f32 %v7886_v11, %v10209_v34  ;;  %v4700_v40 = vpop.f32.mrb[55].mxu0  ;;  %v10217_v11 = vld [vmem:[#allocation32_spill] sm:$0xff] }
 0x219   : > { %v8030_v53 = vadd.f32 %v4700_v40, %v10210_v58  ;;  %v5946_v54 = vadd.f32 %v5945_v24, %v5819_v38  ;;  %v6206_v46 = vadd.f32 %v6205_v35, %v6079_v7  ;;  %v10218_v35 = vld [vmem:[#allocation33_spill] sm:$0xff] }
 0x21a   : > { %v5155_v31 = vpack.c.bf16 %v8029_v37, %v8027_v36 }
 0x21b   : > { %v5154_v50 = vpack.c.bf16 %v8030_v53, %v8028_v6  ;;  %v6207_v12 = vadd.f32 %v6206_v46, %v6080_v20 }
 0x21c   : > { %7274 = vst [vmem:[%s9751_s23 + $0xd8] sm:$0xff] %v5155_v31   ;;  %v5822_v42 = vunpack.c.l.bf16 %v5155_v31  ;;  %v5823_v51 = vunpack.c.h.bf16 %v5155_v31 }
 0x21d   : > { %7273 = vst [vmem:[%s9751_s23 + $0xd0] sm:$0xff] %v5154_v50   ;;  %v5820_v55 = vunpack.c.l.bf16 %v5154_v50  ;;  %v5821_v41 = vunpack.c.h.bf16 %v5154_v50 }
 0x21e   : > { %v6083_v44 = vmul.f32 %v5822_v42, %v5822_v42  ;;  %v6084_v39 = vmul.f32 %v5823_v51, %v5823_v51 }
 0x21f   : > { %v5947_v43 = vadd.f32 %v5946_v54, %v5820_v55  ;;  %v6081_v33 = vmul.f32 %v5820_v55, %v5820_v55  ;;  %v6082_v60 = vmul.f32 %v5821_v41, %v5821_v41 }
 0x221   : > { %v5948_v59 = vadd.f32 %v5947_v43, %v5821_v41  ;;  %v6208_v1 = vadd.f32 %v6207_v12, %v6081_v33  ;;  %v7889_v21 = vpop.f32.mrb[56].mxu0 }
 0x222   : > { %v8031_v4 = vadd.f32 %v7889_v21, %v10211_v26  ;;  %v4713_v16 = vpop.f32.mrb[57].mxu0 }
 0x223   : > { %v5949_v63 = vadd.f32 %v5948_v59, %v5822_v42  ;;  %v6209_v3 = vadd.f32 %v6208_v1, %v6082_v60  ;;  %v8032_v25 = vadd.f32 %v4713_v16, %v10212_v45  ;;  %v7890_v10 = vpop.f32.mrb[58].mxu0 }
 0x224   : > { %v8033_v28 = vadd.f32 %v7890_v10, %v10213_v8  ;;  %v4716_v22 = vpop.f32.mrb[59].mxu0 }
 0x225   : > { %v5950_v13 = vadd.f32 %v5949_v63, %v5823_v51  ;;  %v6210_v30 = vadd.f32 %v6209_v3, %v6083_v44  ;;  %v8034_v9 = vadd.f32 %v4716_v22, %v10214_v47 }
 0x226   : > { %v5157_v15 = vpack.c.bf16 %v8033_v28, %v8031_v4 }
 0x227   : > { %v6211_v17 = vadd.f32 %v6210_v30, %v6084_v39  ;;  %v5156_v52 = vpack.c.bf16 %v8034_v9, %v8032_v25 }
 0x228   : > { %7276 = vst [vmem:[%s9751_s23 + $0xe8] sm:$0xff] %v5157_v15   ;;  %v5826_v27 = vunpack.c.l.bf16 %v5157_v15  ;;  %v5827_v56 = vunpack.c.h.bf16 %v5157_v15 }
 0x229   : > { %7275 = vst [vmem:[%s9751_s23 + $0xe0] sm:$0xff] %v5156_v52   ;;  %v5824_v48 = vunpack.c.l.bf16 %v5156_v52  ;;  %v5825_v19 = vunpack.c.h.bf16 %v5156_v52 }
 0x22a   : > { %v6087_v18 = vmul.f32 %v5826_v27, %v5826_v27  ;;  %v6088_v37 = vmul.f32 %v5827_v56, %v5827_v56 }
 0x22b   : > { %v5951_v57 = vadd.f32 %v5950_v13, %v5824_v48  ;;  %v6085_v29 = vmul.f32 %v5824_v48, %v5824_v48  ;;  %v6086_v32 = vmul.f32 %v5825_v19, %v5825_v19 }
 0x22d   : > { %v7893_v0 = vpop.f32.mrb[60].mxu0  ;;  %v5952_v23 = vadd.f32 %v5951_v57, %v5825_v19  ;;  %v6212_v38 = vadd.f32 %v6211_v17, %v6085_v29 }
 0x22e   : > { %v8035_v2 = vadd.f32 %v7893_v0, %v10215_v5  ;;  %v4729_v49 = vpop.f32.mrb[61].mxu0 }
 0x22f   : > { %v8036_v14 = vadd.f32 %v4729_v49, %v10216_v62  ;;  %v7894_v36 = vpop.f32.mrb[62].mxu0  ;;  %v5953_v61 = vadd.f32 %v5952_v23, %v5826_v27  ;;  %v6213_v6 = vadd.f32 %v6212_v38, %v6086_v32 }
 0x230   : > { %v8037_v7 = vadd.f32 %v7894_v36, %v10217_v11  ;;  %v4732_v24 = vpop.f32.mrb[63].mxu0 }
 0x231   : > { %v8038_v34 = vadd.f32 %v4732_v24, %v10218_v35  ;;  %v5954_v40 = vadd.f32 %v5953_v61, %v5827_v56  ;;  %v6214_v58 = vadd.f32 %v6213_v6, %v6087_v18 }
 0x232   : > { %v5159_v53 = vpack.c.bf16 %v8037_v7, %v8035_v2 }
 0x233   : > { %v5158_v20 = vpack.c.bf16 %v8038_v34, %v8036_v14  ;;  %v6215_v54 = vadd.f32 %v6214_v58, %v6088_v37 }
 0x234   : > { %7278 = vst [vmem:[%s9751_s23 + $0xf8] sm:$0xff] %v5159_v53   ;;  %v5830_v41 = vunpack.c.l.bf16 %v5159_v53  ;;  %v5831_v60 = vunpack.c.h.bf16 %v5159_v53 }
 0x235   : > { %7277 = vst [vmem:[%s9751_s23 + $0xf0] sm:$0xff] %v5158_v20   ;;  %v5828_v46 = vunpack.c.l.bf16 %v5158_v20  ;;  %v5829_v31 = vunpack.c.h.bf16 %v5158_v20  ;;  %v7897_v50 = vpop.f32.mrb[64].mxu0 }
 0x236   : > { %v7753_v12 = vpop.f32.mrb[64].mxu1  ;;  %v4745_v55 = vpop.f32.mrb[65].mxu0  ;;  %v6091_v25 = vmul.f32 %v5830_v41, %v5830_v41  ;;  %v6092_v39 = vmul.f32 %v5831_v60, %v5831_v60 }
 0x237   : > { %v5955_v42 = vadd.f32 %v5954_v40, %v5828_v46  ;;  %v6089_v43 = vmul.f32 %v5828_v46, %v5828_v46  ;;  %v8039_v33 = vadd.f32 %v7897_v50, %v7753_v12  ;;  %v3364_v51 = vpop.f32.mrb[65].mxu1  ;;  %v7898_v59 = vpop.f32.mrb[66].mxu0  ;;  %v6090_v16 = vmul.f32 %v5829_v31, %v5829_v31 }
 0x238   : > { %v8040_v1 = vadd.f32 %v4745_v55, %v3364_v51  ;;  %v7754_v21 = vpop.f32.mrb[66].mxu1  ;;  %v4748_v26 = vpop.f32.mrb[67].mxu0 }
 0x239   : > { %v5956_v4 = vadd.f32 %v5955_v42, %v5829_v31  ;;  %v6216_v44 = vadd.f32 %v6215_v54, %v6089_v43  ;;  %v8041_v63 = vadd.f32 %v7898_v59, %v7754_v21  ;;  %v3367_v3 = vpop.f32.mrb[67].mxu1 }
 0x23a   : > { %v8042_v45 = vadd.f32 %v4748_v26, %v3367_v3 }
 0x23b   : > { %v5957_v10 = vadd.f32 %v5956_v4, %v5830_v41  ;;  %v6217_v8 = vadd.f32 %v6216_v44, %v6090_v16  ;;  %v5161_v28 = vpack.c.bf16 %v8041_v63, %v8039_v33 }
 0x23c   : > { %v5160_v22 = vpack.c.bf16 %v8042_v45, %v8040_v1 }
 0x23d   : > { %v5958_v13 = vadd.f32 %v5957_v10, %v5831_v60  ;;  %v6218_v30 = vadd.f32 %v6217_v8, %v6091_v25  ;;  %7280 = vst [vmem:[%s9751_s23 + $0x108] sm:$0xff] %v5161_v28   ;;  %v7901_v47 = vpop.f32.mrb[68].mxu0  ;;  %v5834_v29 = vunpack.c.l.bf16 %v5161_v28  ;;  %v5835_v5 = vunpack.c.h.bf16 %v5161_v28 }
 0x23e   : > { %7279 = vst [vmem:[%s9751_s23 + $0x100] sm:$0xff] %v5160_v22   ;;  %v5832_v9 = vunpack.c.l.bf16 %v5160_v22  ;;  %v5833_v15 = vunpack.c.h.bf16 %v5160_v22  ;;  %v7757_v17 = vpop.f32.mrb[68].mxu1  ;;  %v4761_v52 = vpop.f32.mrb[69].mxu0 }
 0x23f   : > { %v6219_v48 = vadd.f32 %v6218_v30, %v6092_v39  ;;  %v8043_v19 = vadd.f32 %v7901_v47, %v7757_v17  ;;  %v3380_v27 = vpop.f32.mrb[69].mxu1  ;;  %v7902_v57 = vpop.f32.mrb[70].mxu0  ;;  %v6095_v6 = vmul.f32 %v5834_v29, %v5834_v29  ;;  %v6096_v35 = vmul.f32 %v5835_v5, %v5835_v5 }
 0x240   : > { %v5959_v56 = vadd.f32 %v5958_v13, %v5832_v9  ;;  %v6093_v0 = vmul.f32 %v5832_v9, %v5832_v9  ;;  %v8044_v23 = vadd.f32 %v4761_v52, %v3380_v27  ;;  %v7758_v32 = vpop.f32.mrb[70].mxu1  ;;  %v4764_v38 = vpop.f32.mrb[71].mxu0  ;;  %v6094_v14 = vmul.f32 %v5833_v15, %v5833_v15 }
 0x241   : > { %v8045_v2 = vadd.f32 %v7902_v57, %v7758_v32  ;;  %v3383_v49 = vpop.f32.mrb[71].mxu1 }
 0x242   : > { %v5960_v62 = vadd.f32 %v5959_v56, %v5833_v15  ;;  %v6220_v36 = vadd.f32 %v6219_v48, %v6093_v0  ;;  %v8046_v18 = vadd.f32 %v4764_v38, %v3383_v49 }
 0x243   : > { %v5163_v61 = vpack.c.bf16 %v8045_v2, %v8043_v19 }
 0x244   : > { %v5961_v11 = vadd.f32 %v5960_v62, %v5834_v29  ;;  %v6221_v7 = vadd.f32 %v6220_v36, %v6094_v14  ;;  %v5162_v24 = vpack.c.bf16 %v8046_v18, %v8044_v23 }
 0x245   : > { %7282 = vst [vmem:[%s9751_s23 + $0x118] sm:$0xff] %v5163_v61   ;;  %v7905_v34 = vpop.f32.mrb[72].mxu0  ;;  %v5838_v12 = vunpack.c.l.bf16 %v5163_v61  ;;  %v5839_v51 = vunpack.c.h.bf16 %v5163_v61 }
 0x246   : > { %v6222_v37 = vadd.f32 %v6221_v7, %v6095_v6  ;;  %7281 = vst [vmem:[%s9751_s23 + $0x110] sm:$0xff] %v5162_v24   ;;  %v5836_v40 = vunpack.c.l.bf16 %v5162_v24  ;;  %v5837_v58 = vunpack.c.h.bf16 %v5162_v24  ;;  %v5962_v53 = vadd.f32 %v5961_v11, %v5835_v5  ;;  %v7761_v20 = vpop.f32.mrb[72].mxu1  ;;  %v4777_v54 = vpop.f32.mrb[73].mxu0 }
 0x247   : > { %v8047_v46 = vadd.f32 %v7905_v34, %v7761_v20  ;;  %v3396_v31 = vpop.f32.mrb[73].mxu1  ;;  %v7906_v50 = vpop.f32.mrb[74].mxu0  ;;  %v6099_v63 = vmul.f32 %v5838_v12, %v5838_v12  ;;  %v6100_v10 = vmul.f32 %v5839_v51, %v5839_v51 }
 0x248   : > { %v5963_v55 = vadd.f32 %v5962_v53, %v5836_v40  ;;  %v6097_v41 = vmul.f32 %v5836_v40, %v5836_v40  ;;  %v6223_v42 = vadd.f32 %v6222_v37, %v6096_v35  ;;  %v7762_v43 = vpop.f32.mrb[74].mxu1  ;;  %v4780_v33 = vpop.f32.mrb[75].mxu0  ;;  %v8048_v59 = vadd.f32 %v4777_v54, %v3396_v31 }
 0x249   : > { %v8049_v60 = vadd.f32 %v7906_v50, %v7762_v43  ;;  %v3399_v1 = vpop.f32.mrb[75].mxu1  ;;  %v6098_v26 = vmul.f32 %v5837_v58, %v5837_v58 }
 0x24a   : > { %v5964_v21 = vadd.f32 %v5963_v55, %v5837_v58  ;;  %v6224_v4 = vadd.f32 %v6223_v42, %v6097_v41  ;;  %v8050_v16 = vadd.f32 %v4780_v33, %v3399_v1 }
 0x24b   : > { %v5165_v44 = vpack.c.bf16 %v8049_v60, %v8047_v46 }
 0x24c   : > { %v5965_v3 = vadd.f32 %v5964_v21, %v5838_v12  ;;  %v6225_v45 = vadd.f32 %v6224_v4, %v6098_v26  ;;  %v5164_v25 = vpack.c.bf16 %v8050_v16, %v8048_v59 }
 0x24d   : > { %7284 = vst [vmem:[%s9751_s23 + $0x128] sm:$0xff] %v5165_v44   ;;  %v7909_v8 = vpop.f32.mrb[76].mxu0  ;;  %v5842_v52 = vunpack.c.l.bf16 %v5165_v44  ;;  %v5843_v56 = vunpack.c.h.bf16 %v5165_v44 }
 0x24e   : > { %v6226_v28 = vadd.f32 %v6225_v45, %v6099_v63  ;;  %7283 = vst [vmem:[%s9751_s23 + $0x120] sm:$0xff] %v5164_v25   ;;  %v5840_v22 = vunpack.c.l.bf16 %v5164_v25  ;;  %v5841_v39 = vunpack.c.h.bf16 %v5164_v25  ;;  %v5966_v13 = vadd.f32 %v5965_v3, %v5839_v51  ;;  %v7765_v30 = vpop.f32.mrb[76].mxu1  ;;  %v4793_v47 = vpop.f32.mrb[77].mxu0 }
 0x24f   : > { %v8051_v9 = vadd.f32 %v7909_v8, %v7765_v30  ;;  %v3412_v15 = vpop.f32.mrb[77].mxu1  ;;  %v7910_v17 = vpop.f32.mrb[78].mxu0  ;;  %v6103_v14 = vmul.f32 %v5842_v52, %v5842_v52  ;;  %v6104_v6 = vmul.f32 %v5843_v56, %v5843_v56 }
 0x250   : > { %v5967_v48 = vadd.f32 %v5966_v13, %v5840_v22  ;;  %v6101_v19 = vmul.f32 %v5840_v22, %v5840_v22  ;;  %v6227_v27 = vadd.f32 %v6226_v28, %v6100_v10  ;;  %v7766_v57 = vpop.f32.mrb[78].mxu1  ;;  %v4796_v29 = vpop.f32.mrb[79].mxu0  ;;  %v8052_v0 = vadd.f32 %v4793_v47, %v3412_v15 }
 0x251   : > { %v8053_v23 = vadd.f32 %v7910_v17, %v7766_v57  ;;  %v3415_v32 = vpop.f32.mrb[79].mxu1  ;;  %v6102_v5 = vmul.f32 %v5841_v39, %v5841_v39 }
 0x252   : > { %v5968_v38 = vadd.f32 %v5967_v48, %v5841_v39  ;;  %v6228_v2 = vadd.f32 %v6227_v27, %v6101_v19  ;;  %v8054_v49 = vadd.f32 %v4796_v29, %v3415_v32 }
 0x253   : > { %v5167_v62 = vpack.c.bf16 %v8053_v23, %v8051_v9 }
 0x254   : > { %v5969_v36 = vadd.f32 %v5968_v38, %v5842_v52  ;;  %v6229_v18 = vadd.f32 %v6228_v2, %v6102_v5  ;;  %v5166_v61 = vpack.c.bf16 %v8054_v49, %v8052_v0 }
 0x255   : > { %7286 = vst [vmem:[%s9751_s23 + $0x138] sm:$0xff] %v5167_v62   ;;  %v7913_v11 = vpop.f32.mrb[80].mxu0  ;;  %v5846_v54 = vunpack.c.l.bf16 %v5167_v62  ;;  %v5847_v41 = vunpack.c.h.bf16 %v5167_v62 }
 0x256   : > { %v6230_v7 = vadd.f32 %v6229_v18, %v6103_v14  ;;  %7285 = vst [vmem:[%s9751_s23 + $0x130] sm:$0xff] %v5166_v61   ;;  %v5844_v24 = vunpack.c.l.bf16 %v5166_v61  ;;  %v5845_v35 = vunpack.c.h.bf16 %v5166_v61  ;;  %v5970_v34 = vadd.f32 %v5969_v36, %v5843_v56  ;;  %v7769_v37 = vpop.f32.mrb[80].mxu1  ;;  %v4809_v40 = vpop.f32.mrb[81].mxu0 }
 0x257   : > { %v8055_v58 = vadd.f32 %v7913_v11, %v7769_v37  ;;  %v3428_v53 = vpop.f32.mrb[81].mxu1  ;;  %v7914_v20 = vpop.f32.mrb[82].mxu0  ;;  %v6107_v26 = vmul.f32 %v5846_v54, %v5846_v54  ;;  %v6108_v63 = vmul.f32 %v5847_v41, %v5847_v41 }
 0x258   : > { %v5971_v46 = vadd.f32 %v5970_v34, %v5844_v24  ;;  %v6105_v31 = vmul.f32 %v5844_v24, %v5844_v24  ;;  %v6231_v50 = vadd.f32 %v6230_v7, %v6104_v6  ;;  %v7770_v12 = vpop.f32.mrb[82].mxu1  ;;  %v4812_v55 = vpop.f32.mrb[83].mxu0  ;;  %v8056_v42 = vadd.f32 %v4809_v40, %v3428_v53 }
 0x259   : > { %v8057_v43 = vadd.f32 %v7914_v20, %v7770_v12  ;;  %v3431_v33 = vpop.f32.mrb[83].mxu1  ;;  %v6106_v59 = vmul.f32 %v5845_v35, %v5845_v35 }
 0x25a   : > { %v5972_v51 = vadd.f32 %v5971_v46, %v5845_v35  ;;  %v6232_v60 = vadd.f32 %v6231_v50, %v6105_v31  ;;  %v8058_v1 = vadd.f32 %v4812_v55, %v3431_v33 }
 0x25b   : > { %v5169_v21 = vpack.c.bf16 %v8057_v43, %v8055_v58 }
 0x25c   : > { %v5973_v4 = vadd.f32 %v5972_v51, %v5846_v54  ;;  %v6233_v16 = vadd.f32 %v6232_v60, %v6106_v59  ;;  %v5168_v44 = vpack.c.bf16 %v8058_v1, %v8056_v42 }
 0x25d   : > { %7288 = vst [vmem:[%s9751_s23 + $0x148] sm:$0xff] %v5169_v21   ;;  %v7917_v3 = vpop.f32.mrb[84].mxu0  ;;  %v5850_v47 = vunpack.c.l.bf16 %v5169_v21  ;;  %v5851_v19 = vunpack.c.h.bf16 %v5169_v21 }
 0x25e   : > { %v6234_v45 = vadd.f32 %v6233_v16, %v6107_v26  ;;  %7287 = vst [vmem:[%s9751_s23 + $0x140] sm:$0xff] %v5168_v44   ;;  %v5848_v25 = vunpack.c.l.bf16 %v5168_v44  ;;  %v5849_v10 = vunpack.c.h.bf16 %v5168_v44  ;;  %v5974_v8 = vadd.f32 %v5973_v4, %v5847_v41  ;;  %v7773_v28 = vpop.f32.mrb[84].mxu1  ;;  %v4825_v22 = vpop.f32.mrb[85].mxu0 }
 0x25f   : > { %v8059_v39 = vadd.f32 %v7917_v3, %v7773_v28  ;;  %v3444_v13 = vpop.f32.mrb[85].mxu1  ;;  %v7918_v30 = vpop.f32.mrb[86].mxu0  ;;  %v6111_v5 = vmul.f32 %v5850_v47, %v5850_v47  ;;  %v6112_v14 = vmul.f32 %v5851_v19, %v5851_v19 }
 0x260   : > { %v5975_v9 = vadd.f32 %v5974_v8, %v5848_v25  ;;  %v6109_v15 = vmul.f32 %v5848_v25, %v5848_v25  ;;  %v6235_v17 = vadd.f32 %v6234_v45, %v6108_v63  ;;  %v7774_v52 = vpop.f32.mrb[86].mxu1  ;;  %v4828_v48 = vpop.f32.mrb[87].mxu0  ;;  %v8060_v27 = vadd.f32 %v4825_v22, %v3444_v13 }
 0x261   : > { %v8061_v57 = vadd.f32 %v7918_v30, %v7774_v52  ;;  %v3447_v29 = vpop.f32.mrb[87].mxu1  ;;  %v6110_v0 = vmul.f32 %v5849_v10, %v5849_v10 }
 0x262   : > { %v5976_v56 = vadd.f32 %v5975_v9, %v5849_v10  ;;  %v6236_v23 = vadd.f32 %v6235_v17, %v6109_v15  ;;  %v8062_v32 = vadd.f32 %v4828_v48, %v3447_v29 }
 0x263   : > { %v5171_v38 = vpack.c.bf16 %v8061_v57, %v8059_v39 }
 0x264   : > { %v5977_v2 = vadd.f32 %v5976_v56, %v5850_v47  ;;  %v6237_v49 = vadd.f32 %v6236_v23, %v6110_v0  ;;  %v5170_v62 = vpack.c.bf16 %v8062_v32, %v8060_v27 }
 0x265   : > { %7290 = vst [vmem:[%s9751_s23 + $0x158] sm:$0xff] %v5171_v38   ;;  %v7921_v36 = vpop.f32.mrb[88].mxu0  ;;  %v5854_v40 = vunpack.c.l.bf16 %v5171_v38  ;;  %v5855_v31 = vunpack.c.h.bf16 %v5171_v38 }
 0x266   : > { %v6238_v18 = vadd.f32 %v6237_v49, %v6111_v5  ;;  %7289 = vst [vmem:[%s9751_s23 + $0x150] sm:$0xff] %v5170_v62   ;;  %v5852_v61 = vunpack.c.l.bf16 %v5170_v62  ;;  %v5853_v6 = vunpack.c.h.bf16 %v5170_v62  ;;  %v5978_v11 = vadd.f32 %v5977_v2, %v5851_v19  ;;  %v7777_v7 = vpop.f32.mrb[88].mxu1  ;;  %v4841_v24 = vpop.f32.mrb[89].mxu0 }
 0x267   : > { %v8063_v35 = vadd.f32 %v7921_v36, %v7777_v7  ;;  %v3460_v34 = vpop.f32.mrb[89].mxu1  ;;  %v7922_v37 = vpop.f32.mrb[90].mxu0  ;;  %v6115_v59 = vmul.f32 %v5854_v40, %v5854_v40  ;;  %v6116_v26 = vmul.f32 %v5855_v31, %v5855_v31 }
 0x268   : > { %v5979_v58 = vadd.f32 %v5978_v11, %v5852_v61  ;;  %v6113_v53 = vmul.f32 %v5852_v61, %v5852_v61  ;;  %v6239_v20 = vadd.f32 %v6238_v18, %v6112_v14  ;;  %v7778_v54 = vpop.f32.mrb[90].mxu1  ;;  %v4844_v46 = vpop.f32.mrb[91].mxu0  ;;  %v8064_v50 = vadd.f32 %v4841_v24, %v3460_v34 }
 0x269   : > { %v8065_v12 = vadd.f32 %v7922_v37, %v7778_v54  ;;  %v3463_v55 = vpop.f32.mrb[91].mxu1  ;;  %v6114_v42 = vmul.f32 %v5853_v6, %v5853_v6 }
 0x26a   : > { %v5980_v41 = vadd.f32 %v5979_v58, %v5853_v6  ;;  %v6240_v43 = vadd.f32 %v6239_v20, %v6113_v53  ;;  %v8066_v33 = vadd.f32 %v4844_v46, %v3463_v55 }
 0x26b   : > { %v5173_v51 = vpack.c.bf16 %v8065_v12, %v8063_v35 }
 0x26c   : > { %v5981_v60 = vadd.f32 %v5980_v41, %v5854_v40  ;;  %v6241_v1 = vadd.f32 %v6240_v43, %v6114_v42  ;;  %v5172_v21 = vpack.c.bf16 %v8066_v33, %v8064_v50 }
 0x26d   : > { %7292 = vst [vmem:[%s9751_s23 + $0x168] sm:$0xff] %v5173_v51   ;;  %v7925_v4 = vpop.f32.mrb[92].mxu0  ;;  %v5858_v22 = vunpack.c.l.bf16 %v5173_v51  ;;  %v5859_v15 = vunpack.c.h.bf16 %v5173_v51 }
 0x26e   : > { %v6242_v16 = vadd.f32 %v6241_v1, %v6115_v59  ;;  %7291 = vst [vmem:[%s9751_s23 + $0x160] sm:$0xff] %v5172_v21   ;;  %v5856_v44 = vunpack.c.l.bf16 %v5172_v21  ;;  %v5857_v63 = vunpack.c.h.bf16 %v5172_v21  ;;  %v5982_v3 = vadd.f32 %v5981_v60, %v5855_v31  ;;  %v7781_v45 = vpop.f32.mrb[92].mxu1  ;;  %v4857_v25 = vpop.f32.mrb[93].mxu0 }
 0x26f   : > { %v8067_v10 = vadd.f32 %v7925_v4, %v7781_v45  ;;  %v3476_v8 = vpop.f32.mrb[93].mxu1  ;;  %v7926_v28 = vpop.f32.mrb[94].mxu0  ;;  %v6119_v0 = vmul.f32 %v5858_v22, %v5858_v22  ;;  %v6120_v5 = vmul.f32 %v5859_v15, %v5859_v15 }
 0x270   : > { %v5983_v39 = vadd.f32 %v5982_v3, %v5856_v44  ;;  %v6117_v13 = vmul.f32 %v5856_v44, %v5856_v44  ;;  %v6243_v30 = vadd.f32 %v6242_v16, %v6116_v26  ;;  %v7782_v47 = vpop.f32.mrb[94].mxu1  ;;  %v4860_v9 = vpop.f32.mrb[95].mxu0  ;;  %v8068_v17 = vadd.f32 %v4857_v25, %v3476_v8 }
 0x271   : > { %v8069_v52 = vadd.f32 %v7926_v28, %v7782_v47  ;;  %v3479_v48 = vpop.f32.mrb[95].mxu1  ;;  %v6118_v27 = vmul.f32 %v5857_v63, %v5857_v63 }
 0x272   : > { %v5984_v19 = vadd.f32 %v5983_v39, %v5857_v63  ;;  %v6244_v57 = vadd.f32 %v6243_v30, %v6117_v13  ;;  %v8070_v29 = vadd.f32 %v4860_v9, %v3479_v48 }
 0x273   : > { %v5175_v56 = vpack.c.bf16 %v8069_v52, %v8067_v10 }
 0x274   : > { %v5985_v23 = vadd.f32 %v5984_v19, %v5858_v22  ;;  %v6245_v32 = vadd.f32 %v6244_v57, %v6118_v27  ;;  %v5174_v38 = vpack.c.bf16 %v8070_v29, %v8068_v17 }
 0x275   : > { %7294 = vst [vmem:[%s9751_s23 + $0x178] sm:$0xff] %v5175_v56   ;;  %v7929_v2 = vpop.f32.mrb[96].mxu0  ;;  %v5862_v24 = vunpack.c.l.bf16 %v5175_v56  ;;  %v5863_v53 = vunpack.c.h.bf16 %v5175_v56 }
 0x276   : > { %v6246_v49 = vadd.f32 %v6245_v32, %v6119_v0  ;;  %7293 = vst [vmem:[%s9751_s23 + $0x170] sm:$0xff] %v5174_v38   ;;  %v5860_v62 = vunpack.c.l.bf16 %v5174_v38  ;;  %v5861_v14 = vunpack.c.h.bf16 %v5174_v38  ;;  %v5986_v36 = vadd.f32 %v5985_v23, %v5859_v15  ;;  %v7785_v18 = vpop.f32.mrb[96].mxu1  ;;  %v4873_v61 = vpop.f32.mrb[97].mxu0 }
 0x277   : > { %v8071_v6 = vadd.f32 %v7929_v2, %v7785_v18  ;;  %v3492_v11 = vpop.f32.mrb[97].mxu1  ;;  %v7930_v7 = vpop.f32.mrb[98].mxu0  ;;  %v6123_v42 = vmul.f32 %v5862_v24, %v5862_v24  ;;  %v6124_v59 = vmul.f32 %v5863_v53, %v5863_v53 }
 0x278   : > { %v5987_v35 = vadd.f32 %v5986_v36, %v5860_v62  ;;  %v6121_v34 = vmul.f32 %v5860_v62, %v5860_v62  ;;  %v6247_v37 = vadd.f32 %v6246_v49, %v6120_v5  ;;  %v7786_v40 = vpop.f32.mrb[98].mxu1  ;;  %v4876_v58 = vpop.f32.mrb[99].mxu0  ;;  %v8072_v20 = vadd.f32 %v4873_v61, %v3492_v11 }
 0x279   : > { %v8073_v54 = vadd.f32 %v7930_v7, %v7786_v40  ;;  %v3495_v46 = vpop.f32.mrb[99].mxu1  ;;  %v6122_v50 = vmul.f32 %v5861_v14, %v5861_v14 }
 0x27a   : > { %v5988_v31 = vadd.f32 %v5987_v35, %v5861_v14  ;;  %v6248_v12 = vadd.f32 %v6247_v37, %v6121_v34  ;;  %v8074_v55 = vadd.f32 %v4876_v58, %v3495_v46 }
 0x27b   : > { %v5177_v41 = vpack.c.bf16 %v8073_v54, %v8071_v6 }
 0x27c   : > { %v5989_v43 = vadd.f32 %v5988_v31, %v5862_v24  ;;  %v6249_v33 = vadd.f32 %v6248_v12, %v6122_v50  ;;  %v5176_v51 = vpack.c.bf16 %v8074_v55, %v8072_v20 }
 0x27d   : > { %7296 = vst [vmem:[%s9751_s23 + $0x188] sm:$0xff] %v5177_v41   ;;  %v7933_v60 = vpop.f32.mrb[100].mxu0  ;;  %v5866_v25 = vunpack.c.l.bf16 %v5177_v41  ;;  %v5867_v13 = vunpack.c.h.bf16 %v5177_v41 }
 0x27e   : > { %v6250_v1 = vadd.f32 %v6249_v33, %v6123_v42  ;;  %7295 = vst [vmem:[%s9751_s23 + $0x180] sm:$0xff] %v5176_v51   ;;  %v5864_v21 = vunpack.c.l.bf16 %v5176_v51  ;;  %v5865_v26 = vunpack.c.h.bf16 %v5176_v51  ;;  %v5990_v4 = vadd.f32 %v5989_v43, %v5863_v53  ;;  %v7789_v16 = vpop.f32.mrb[100].mxu1  ;;  %v4889_v44 = vpop.f32.mrb[101].mxu0 }
 0x27f   : > { %v8075_v63 = vadd.f32 %v7933_v60, %v7789_v16  ;;  %v3508_v3 = vpop.f32.mrb[101].mxu1  ;;  %v7934_v45 = vpop.f32.mrb[102].mxu0  ;;  %v6127_v27 = vmul.f32 %v5866_v25, %v5866_v25  ;;  %v6128_v0 = vmul.f32 %v5867_v13, %v5867_v13 }
 0x280   : > { %v5991_v10 = vadd.f32 %v5990_v4, %v5864_v21  ;;  %v6125_v8 = vmul.f32 %v5864_v21, %v5864_v21  ;;  %v6251_v28 = vadd.f32 %v6250_v1, %v6124_v59  ;;  %v7790_v22 = vpop.f32.mrb[102].mxu1  ;;  %v4892_v39 = vpop.f32.mrb[103].mxu0  ;;  %v8076_v30 = vadd.f32 %v4889_v44, %v3508_v3 }
 0x281   : > { %v8077_v47 = vadd.f32 %v7934_v45, %v7790_v22  ;;  %v3511_v9 = vpop.f32.mrb[103].mxu1  ;;  %v6126_v17 = vmul.f32 %v5865_v26, %v5865_v26 }
 0x282   : > { %v5992_v15 = vadd.f32 %v5991_v10, %v5865_v26  ;;  %v6252_v52 = vadd.f32 %v6251_v28, %v6125_v8  ;;  %v8078_v48 = vadd.f32 %v4892_v39, %v3511_v9 }
 0x283   : > { %v5179_v19 = vpack.c.bf16 %v8077_v47, %v8075_v63 }
 0x284   : > { %v5993_v57 = vadd.f32 %v5992_v15, %v5866_v25  ;;  %v6253_v29 = vadd.f32 %v6252_v52, %v6126_v17  ;;  %v5178_v56 = vpack.c.bf16 %v8078_v48, %v8076_v30 }
 0x285   : > { %7298 = vst [vmem:[%s9751_s23 + $0x198] sm:$0xff] %v5179_v19   ;;  %v7937_v23 = vpop.f32.mrb[104].mxu0  ;;  %v5870_v61 = vunpack.c.l.bf16 %v5179_v19  ;;  %v5871_v34 = vunpack.c.h.bf16 %v5179_v19 }
 0x286   : > { %v6254_v32 = vadd.f32 %v6253_v29, %v6127_v27  ;;  %7297 = vst [vmem:[%s9751_s23 + $0x190] sm:$0xff] %v5178_v56   ;;  %v5868_v38 = vunpack.c.l.bf16 %v5178_v56  ;;  %v5869_v5 = vunpack.c.h.bf16 %v5178_v56  ;;  %v5994_v2 = vadd.f32 %v5993_v57, %v5867_v13  ;;  %v7793_v49 = vpop.f32.mrb[104].mxu1  ;;  %v4905_v62 = vpop.f32.mrb[105].mxu0 }
 0x287   : > { %v8079_v14 = vadd.f32 %v7937_v23, %v7793_v49  ;;  %v3524_v36 = vpop.f32.mrb[105].mxu1  ;;  %v7938_v18 = vpop.f32.mrb[106].mxu0  ;;  %v6131_v50 = vmul.f32 %v5870_v61, %v5870_v61  ;;  %v6132_v42 = vmul.f32 %v5871_v34, %v5871_v34 }
 0x288   : > { %v5995_v6 = vadd.f32 %v5994_v2, %v5868_v38  ;;  %v6129_v11 = vmul.f32 %v5868_v38, %v5868_v38  ;;  %v6255_v7 = vadd.f32 %v6254_v32, %v6128_v0  ;;  %v7794_v24 = vpop.f32.mrb[106].mxu1  ;;  %v4908_v35 = vpop.f32.mrb[107].mxu0  ;;  %v8080_v37 = vadd.f32 %v4905_v62, %v3524_v36 }
 0x289   : > { %v8081_v40 = vadd.f32 %v7938_v18, %v7794_v24  ;;  %v3527_v58 = vpop.f32.mrb[107].mxu1  ;;  %v6130_v20 = vmul.f32 %v5869_v5, %v5869_v5 }
 0x28a   : > { %v5996_v53 = vadd.f32 %v5995_v6, %v5869_v5  ;;  %v6256_v54 = vadd.f32 %v6255_v7, %v6129_v11  ;;  %v8082_v46 = vadd.f32 %v4908_v35, %v3527_v58 }
 0x28b   : > { %v5181_v31 = vpack.c.bf16 %v8081_v40, %v8079_v14 }
 0x28c   : > { %v5997_v12 = vadd.f32 %v5996_v53, %v5870_v61  ;;  %v6257_v55 = vadd.f32 %v6256_v54, %v6130_v20  ;;  %v5180_v41 = vpack.c.bf16 %v8082_v46, %v8080_v37 }
 0x28d   : > { %7300 = vst [vmem:[%s9751_s23 + $0x1a8] sm:$0xff] %v5181_v31   ;;  %v7941_v43 = vpop.f32.mrb[108].mxu0  ;;  %v5874_v44 = vunpack.c.l.bf16 %v5181_v31  ;;  %v5875_v8 = vunpack.c.h.bf16 %v5181_v31 }
 0x28e   : > { %v6258_v33 = vadd.f32 %v6257_v55, %v6131_v50  ;;  %7299 = vst [vmem:[%s9751_s23 + $0x1a0] sm:$0xff] %v5180_v41   ;;  %v5872_v51 = vunpack.c.l.bf16 %v5180_v41  ;;  %v5873_v59 = vunpack.c.h.bf16 %v5180_v41  ;;  %v5998_v60 = vadd.f32 %v5997_v12, %v5871_v34  ;;  %v7797_v1 = vpop.f32.mrb[108].mxu1  ;;  %v4921_v21 = vpop.f32.mrb[109].mxu0 }
 0x28f   : > { %v8083_v26 = vadd.f32 %v7941_v43, %v7797_v1  ;;  %v3540_v4 = vpop.f32.mrb[109].mxu1  ;;  %v7942_v16 = vpop.f32.mrb[110].mxu0  ;;  %v6135_v17 = vmul.f32 %v5874_v44, %v5874_v44  ;;  %v6136_v27 = vmul.f32 %v5875_v8, %v5875_v8 }
 0x290   : > { %v5999_v63 = vadd.f32 %v5998_v60, %v5872_v51  ;;  %v6133_v3 = vmul.f32 %v5872_v51, %v5872_v51  ;;  %v6259_v45 = vadd.f32 %v6258_v33, %v6132_v42  ;;  %v7798_v25 = vpop.f32.mrb[110].mxu1  ;;  %v4924_v10 = vpop.f32.mrb[111].mxu0  ;;  %v8084_v28 = vadd.f32 %v4921_v21, %v3540_v4 }
 0x291   : > { %v8085_v22 = vadd.f32 %v7942_v16, %v7798_v25  ;;  %v3543_v39 = vpop.f32.mrb[111].mxu1  ;;  %v6134_v30 = vmul.f32 %v5873_v59, %v5873_v59 }
 0x292   : > { %v6000_v13 = vadd.f32 %v5999_v63, %v5873_v59  ;;  %v6260_v47 = vadd.f32 %v6259_v45, %v6133_v3  ;;  %v8086_v9 = vadd.f32 %v4924_v10, %v3543_v39 }
 0x293   : > { %v5183_v15 = vpack.c.bf16 %v8085_v22, %v8083_v26 }
 0x294   : > { %v6001_v52 = vadd.f32 %v6000_v13, %v5874_v44  ;;  %v6261_v48 = vadd.f32 %v6260_v47, %v6134_v30  ;;  %v5182_v19 = vpack.c.bf16 %v8086_v9, %v8084_v28 }
 0x295   : > { %7302 = vst [vmem:[%s9751_s23 + $0x1b8] sm:$0xff] %v5183_v15   ;;  %v7945_v57 = vpop.f32.mrb[112].mxu0  ;;  %v5878_v62 = vunpack.c.l.bf16 %v5183_v15  ;;  %v5879_v11 = vunpack.c.h.bf16 %v5183_v15 }
 0x296   : > { %v6262_v29 = vadd.f32 %v6261_v48, %v6135_v17  ;;  %7301 = vst [vmem:[%s9751_s23 + $0x1b0] sm:$0xff] %v5182_v19   ;;  %v5876_v56 = vunpack.c.l.bf16 %v5182_v19  ;;  %v5877_v0 = vunpack.c.h.bf16 %v5182_v19  ;;  %v6002_v23 = vadd.f32 %v6001_v52, %v5875_v8  ;;  %v7801_v32 = vpop.f32.mrb[112].mxu1  ;;  %v4937_v38 = vpop.f32.mrb[113].mxu0 }
 0x297   : > { %v8087_v5 = vadd.f32 %v7945_v57, %v7801_v32  ;;  %v3556_v2 = vpop.f32.mrb[113].mxu1  ;;  %v7946_v49 = vpop.f32.mrb[114].mxu0  ;;  %v6139_v20 = vmul.f32 %v5878_v62, %v5878_v62  ;;  %v6140_v50 = vmul.f32 %v5879_v11, %v5879_v11 }
 0x298   : > { %v6003_v14 = vadd.f32 %v6002_v23, %v5876_v56  ;;  %v6137_v36 = vmul.f32 %v5876_v56, %v5876_v56  ;;  %v6263_v18 = vadd.f32 %v6262_v29, %v6136_v27  ;;  %v7802_v61 = vpop.f32.mrb[114].mxu1  ;;  %v4940_v6 = vpop.f32.mrb[115].mxu0  ;;  %v8088_v7 = vadd.f32 %v4937_v38, %v3556_v2 }
 0x299   : > { %v8089_v24 = vadd.f32 %v7946_v49, %v7802_v61  ;;  %v3559_v35 = vpop.f32.mrb[115].mxu1  ;;  %v6138_v37 = vmul.f32 %v5877_v0, %v5877_v0 }
 0x29a   : > { %v6004_v34 = vadd.f32 %v6003_v14, %v5877_v0  ;;  %v6264_v40 = vadd.f32 %v6263_v18, %v6137_v36  ;;  %v8090_v58 = vadd.f32 %v4940_v6, %v3559_v35 }
 0x29b   : > { %v5185_v53 = vpack.c.bf16 %v8089_v24, %v8087_v5 }
 0x29c   : > { %v6005_v54 = vadd.f32 %v6004_v34, %v5878_v62  ;;  %v6265_v46 = vadd.f32 %v6264_v40, %v6138_v37  ;;  %v5184_v31 = vpack.c.bf16 %v8090_v58, %v8088_v7 }
 0x29d   : > { %7304 = vst [vmem:[%s9751_s23 + $0x1c8] sm:$0xff] %v5185_v53   ;;  %v7949_v12 = vpop.f32.mrb[116].mxu0  ;;  %v5882_v21 = vunpack.c.l.bf16 %v5185_v53  ;;  %v5883_v3 = vunpack.c.h.bf16 %v5185_v53 }
 0x29e   : > { %v6266_v55 = vadd.f32 %v6265_v46, %v6139_v20  ;;  %7303 = vst [vmem:[%s9751_s23 + $0x1c0] sm:$0xff] %v5184_v31   ;;  %v5880_v41 = vunpack.c.l.bf16 %v5184_v31  ;;  %v5881_v42 = vunpack.c.h.bf16 %v5184_v31  ;;  %v6006_v43 = vadd.f32 %v6005_v54, %v5879_v11  ;;  %v7805_v33 = vpop.f32.mrb[116].mxu1  ;;  %v4953_v51 = vpop.f32.mrb[117].mxu0 }
 0x29f   : > { %v8091_v59 = vadd.f32 %v7949_v12, %v7805_v33  ;;  %v3572_v60 = vpop.f32.mrb[117].mxu1  ;;  %v7950_v1 = vpop.f32.mrb[118].mxu0  ;;  %v6143_v30 = vmul.f32 %v5882_v21, %v5882_v21  ;;  %v6144_v17 = vmul.f32 %v5883_v3, %v5883_v3 }
 0x2a0   : > { %v6007_v26 = vadd.f32 %v6006_v43, %v5880_v41  ;;  %v6141_v4 = vmul.f32 %v5880_v41, %v5880_v41  ;;  %v6267_v16 = vadd.f32 %v6266_v55, %v6140_v50  ;;  %v7806_v44 = vpop.f32.mrb[118].mxu1  ;;  %v4956_v63 = vpop.f32.mrb[119].mxu0  ;;  %v8092_v45 = vadd.f32 %v4953_v51, %v3572_v60 }
 0x2a1   : > { %v8093_v25 = vadd.f32 %v7950_v1, %v7806_v44  ;;  %v3575_v10 = vpop.f32.mrb[119].mxu1  ;;  %v6142_v28 = vmul.f32 %v5881_v42, %v5881_v42 }
 0x2a2   : > { %v6008_v8 = vadd.f32 %v6007_v26, %v5881_v42  ;;  %v6268_v22 = vadd.f32 %v6267_v16, %v6141_v4  ;;  %v8094_v39 = vadd.f32 %v4956_v63, %v3575_v10 }
 0x2a3   : > { %v5187_v13 = vpack.c.bf16 %v8093_v25, %v8091_v59 }
 0x2a4   : > { %v6009_v47 = vadd.f32 %v6008_v8, %v5882_v21  ;;  %v6269_v9 = vadd.f32 %v6268_v22, %v6142_v28  ;;  %v5186_v15 = vpack.c.bf16 %v8094_v39, %v8092_v45 }
 0x2a5   : > { %7306 = vst [vmem:[%s9751_s23 + $0x1d8] sm:$0xff] %v5187_v13   ;;  %v7953_v52 = vpop.f32.mrb[120].mxu0  ;;  %v5886_v38 = vunpack.c.l.bf16 %v5187_v13  ;;  %v5887_v36 = vunpack.c.h.bf16 %v5187_v13 }
 0x2a6   : > { %v6270_v48 = vadd.f32 %v6269_v9, %v6143_v30  ;;  %7305 = vst [vmem:[%s9751_s23 + $0x1d0] sm:$0xff] %v5186_v15   ;;  %v5884_v19 = vunpack.c.l.bf16 %v5186_v15  ;;  %v5885_v27 = vunpack.c.h.bf16 %v5186_v15  ;;  %v6010_v57 = vadd.f32 %v6009_v47, %v5883_v3  ;;  %v7809_v29 = vpop.f32.mrb[120].mxu1  ;;  %v4969_v56 = vpop.f32.mrb[121].mxu0 }
 0x2a7   : > { %v8095_v0 = vadd.f32 %v7953_v52, %v7809_v29  ;;  %v3588_v23 = vpop.f32.mrb[121].mxu1  ;;  %v7954_v32 = vpop.f32.mrb[122].mxu0  ;;  %v6147_v37 = vmul.f32 %v5886_v38, %v5886_v38  ;;  %v6148_v20 = vmul.f32 %v5887_v36, %v5887_v36 }
 0x2a8   : > { %v6011_v5 = vadd.f32 %v6010_v57, %v5884_v19  ;;  %v6145_v2 = vmul.f32 %v5884_v19, %v5884_v19  ;;  %v6271_v49 = vadd.f32 %v6270_v48, %v6144_v17  ;;  %v7810_v62 = vpop.f32.mrb[122].mxu1  ;;  %v4972_v14 = vpop.f32.mrb[123].mxu0  ;;  %v8096_v18 = vadd.f32 %v4969_v56, %v3588_v23 }
 0x2a9   : > { %v8097_v61 = vadd.f32 %v7954_v32, %v7810_v62  ;;  %v3591_v6 = vpop.f32.mrb[123].mxu1  ;;  %v6146_v7 = vmul.f32 %v5885_v27, %v5885_v27 }
 0x2aa   : > { %v6012_v11 = vadd.f32 %v6011_v5, %v5885_v27  ;;  %v6272_v24 = vadd.f32 %v6271_v49, %v6145_v2  ;;  %v8098_v35 = vadd.f32 %v4972_v14, %v3591_v6 }
 0x2ab   : > { %v5189_v34 = vpack.c.bf16 %v8097_v61, %v8095_v0 }
 0x2ac   : > { %v6013_v40 = vadd.f32 %v6012_v11, %v5886_v38  ;;  %v6273_v58 = vadd.f32 %v6272_v24, %v6146_v7  ;;  %v5188_v53 = vpack.c.bf16 %v8098_v35, %v8096_v18 }
 0x2ad   : > { %7308 = vst [vmem:[%s9751_s23 + $0x1e8] sm:$0xff] %v5189_v34   ;;  %v7957_v54 = vpop.f32.mrb[124].mxu0  ;;  %v5890_v51 = vunpack.c.l.bf16 %v5189_v34  ;;  %v5891_v4 = vunpack.c.h.bf16 %v5189_v34 }
 0x2ae   : > { %v6274_v46 = vadd.f32 %v6273_v58, %v6147_v37  ;;  %7307 = vst [vmem:[%s9751_s23 + $0x1e0] sm:$0xff] %v5188_v53   ;;  %v5888_v31 = vunpack.c.l.bf16 %v5188_v53  ;;  %v5889_v50 = vunpack.c.h.bf16 %v5188_v53  ;;  %v6014_v12 = vadd.f32 %v6013_v40, %v5887_v36  ;;  %v7813_v55 = vpop.f32.mrb[124].mxu1  ;;  %v4985_v41 = vpop.f32.mrb[125].mxu0 }
 0x2af   : > { %v8099_v42 = vadd.f32 %v7957_v54, %v7813_v55  ;;  %v3604_v43 = vpop.f32.mrb[125].mxu1  ;;  %v7958_v33 = vpop.f32.mrb[126].mxu0  ;;  %v6151_v28 = vmul.f32 %v5890_v51, %v5890_v51  ;;  %v6152_v30 = vmul.f32 %v5891_v4, %v5891_v4 }
 0x2b0   : > { %v6015_v59 = vadd.f32 %v6014_v12, %v5888_v31  ;;  %v6149_v60 = vmul.f32 %v5888_v31, %v5888_v31  ;;  %v6275_v1 = vadd.f32 %v6274_v46, %v6148_v20  ;;  %v7814_v21 = vpop.f32.mrb[126].mxu1  ;;  %v4988_v26 = vpop.f32.mrb[127].mxu0  ;;  %v8100_v16 = vadd.f32 %v4985_v41, %v3604_v43 }
 0x2b1   : > { %v8101_v44 = vadd.f32 %v7958_v33, %v7814_v21  ;;  %v3607_v63 = vpop.f32.mrb[127].mxu1  ;;  %v6150_v45 = vmul.f32 %v5889_v50, %v5889_v50 }
 0x2b2   : > { %v6016_v3 = vadd.f32 %v6015_v59, %v5889_v50  ;;  %v6276_v25 = vadd.f32 %v6275_v1, %v6149_v60  ;;  %v8102_v10 = vadd.f32 %v4988_v26, %v3607_v63 }
 0x2b3   : > { %v5191_v8 = vpack.c.bf16 %v8101_v44, %v8099_v42 }
 0x2b4   : > { %v6017_v22 = vadd.f32 %v6016_v3, %v5890_v51  ;;  %v6277_v39 = vadd.f32 %v6276_v25, %v6150_v45  ;;  %v5190_v13 = vpack.c.bf16 %v8102_v10, %v8100_v16 }
 0x2b5   : > { %7310 = vst [vmem:[%s9751_s23 + $0x1f8] sm:$0xff] %v5191_v8   ;;  %v5894_v52 = vunpack.c.l.bf16 %v5191_v8  ;;  %v5895_v57 = vunpack.c.h.bf16 %v5191_v8 }
 0x2b6   : > { %v6278_v47 = vadd.f32 %v6277_v39, %v6151_v28  ;;  %7309 = vst [vmem:[%s9751_s23 + $0x1f0] sm:$0xff] %v5190_v13   ;;  %v5892_v9 = vunpack.c.l.bf16 %v5190_v13  ;;  %v5893_v15 = vunpack.c.h.bf16 %v5190_v13  ;;  %v6018_v17 = vadd.f32 %v6017_v22, %v5891_v4 }
 0x2b7   : > { %v6155_v23 = vmul.f32 %v5894_v52, %v5894_v52  ;;  %v6156_v5 = vmul.f32 %v5895_v57, %v5895_v57 }
 0x2b8   : > { %v6019_v48 = vadd.f32 %v6018_v17, %v5892_v9  ;;  %v6153_v19 = vmul.f32 %v5892_v9, %v5892_v9  ;;  %v6279_v27 = vadd.f32 %v6278_v47, %v6152_v30  ;;  %v6154_v56 = vmul.f32 %v5893_v15, %v5893_v15 }
 0x2ba   : > { %v6020_v29 = vadd.f32 %v6019_v48, %v5893_v15  ;;  %v6280_v0 = vadd.f32 %v6279_v27, %v6153_v19 }
 0x2bc   : > { %v6021_v32 = vadd.f32 %v6020_v29, %v5894_v52  ;;  %v6281_v38 = vadd.f32 %v6280_v0, %v6154_v56 }
 0x2be   : > { %v6022_v2 = vadd.f32 %v6021_v32, %v5895_v57  ;;  %v6282_v49 = vadd.f32 %v6281_v38, %v6155_v23 }
 0x2c0   : > { %v6023_v62 = vrot.slane %v6022_v2, 4  ;;  %v6283_v14 = vadd.f32 %v6282_v49, %v6156_v5 }
 0x2c2   : > { %v6024_v36 = vadd.f32 %v6023_v62, %v6022_v2  ;;  %v6284_v18 = vrot.slane %v6283_v14, 4 }
 0x2c4   : > { %v6025_v61 = vrot.slane %v6024_v36, 2  ;;  %v6285_v6 = vadd.f32 %v6284_v18, %v6283_v14 }
 0x2c6   : > { %v6026_v11 = vadd.f32 %v6025_v61, %v6024_v36  ;;  %v6286_v7 = vrot.slane %v6285_v6, 2 }
 0x2c8   : > { %v6027_v24 = vrot.slane %v6026_v11, 1  ;;  %v6287_v35 = vadd.f32 %v6286_v7, %v6285_v6 }
 0x2ca   : > { %v6288_v34 = vrot.slane %v6287_v35, 1  ;;  %v6028_v37 = vadd.f32 %v6027_v24, %v6026_v11 }
 0x2cc   : > { %v6289_v40 = vadd.f32 %v6288_v34, %v6287_v35 }
 0x2ce   : > { %v6291_v58 = vsel %vm6290_vm6, %v6028_v37, %v6289_v40 }
 0x2cf   : > { %6292 = vst [vmem:[%s187_s26] sm:$0x3] %v6291_v58 }
 0x2d0 PF: > { %s14_s12 = sadd.s32 1, %s8477_s12  }
 0x2d1   : > { %p11_p6 = scmp.ge.s32.totalorder %s14_s12, 4  }
 0x2d3   :  { %13 = sbr.rel (!%p11_p6) target bundleno = 1 (0x1), region = 72 }

</bundles_post_ra>
